<compile_context>
chip_gen: v7x
topology: tpu7x:2x2x1
jax: 0.10.0
libtpu: 0.0.40
codegen_flags: <defaults>
</compile_context>

<pallas_src>
import numpy as np
import jax
import jax.numpy as jnp
from jax.experimental import pallas as pl
from jax.experimental.pallas import tpu as pltpu

EMBED_DIM = 200
HIDDEN_DIM = 256
DENSE_HIDDEN = 512


# -------------------- fused LSTM (left+right) + head kernel -----------------
def _make_siamese_lstm_kernel(Bp, Tt):
    H = HIDDEN_DIM

    def kernel(lens_ref, gx_ref, whh_ref, w1_ref, b1_ref, w2_ref, b2_ref,
               out_ref, h_sc, c_sc):
        g = pl.program_id(0)

        @pl.when(g == 0)
        def _():
            h_sc[...] = jnp.zeros_like(h_sc)
            c_sc[...] = jnp.zeros_like(c_sc)

        t0 = g * Tt
        lens = lens_ref[...]          # (2Bp, 1) int32, resident
        whh = whh_ref[...]            # (H, 4H) bf16, resident

        def step(tt, carry):
            h, c = carry
            # gates_x already contains x @ W_ih^T + (b_ih + b_hh)
            gates = (jnp.dot(h.astype(jnp.bfloat16), whh,
                             preferred_element_type=jnp.float32)
                     + gx_ref[tt].astype(jnp.float32))       # (2Bp, 4H)
            # PyTorch gate order [i, f, g, o]
            i_g = jax.nn.sigmoid(gates[:, 0:H])
            f_g = jax.nn.sigmoid(gates[:, H:2 * H])
            g_g = jnp.tanh(gates[:, 2 * H:3 * H])
            o_g = jax.nn.sigmoid(gates[:, 3 * H:4 * H])
            c_new = f_g * c + i_g * g_g
            h_new = o_g * jnp.tanh(c_new)
            # pack_padded_sequence semantics: freeze state once t >= len[b]
            live = (t0 + tt) < lens                          # (2Bp, 1) bool
            return jnp.where(live, h_new, h), jnp.where(live, c_new, c)

        h, c = jax.lax.fori_loop(0, Tt, step, (h_sc[...], c_sc[...]),
                                 unroll=True)
        h_sc[...] = h
        c_sc[...] = c

        @pl.when(g == pl.num_programs(0) - 1)
        def _():
            # Dense head fused: |h_l - h_r| -> 256->512 relu -> 512->1
            h_l = h[0:Bp, :]
            h_r = h[Bp:2 * Bp, :]
            d = jnp.abs(h_l - h_r)
            hid = jnp.dot(d, w1_ref[...],
                          preferred_element_type=jnp.float32) + b1_ref[...]
            hid = jnp.maximum(hid, 0.0)
            # N=1 output: VPU multiply + lane reduce instead of MXU matmul
            out_ref[...] = (jnp.sum(hid * w2_ref[...], axis=-1, keepdims=True)
                            + b2_ref[...])

    return kernel


# ------------------------------ Full forward --------------------------------
def siamese_forward(params, x_left, x_right, left_lens, right_lens, *, t_block=8):
    B, S = x_left.shape
    H = HIDDEN_DIM
    Bp = max(8, pl.cdiv(B, 8) * 8)               # pad batch to f32 sublane multiple
    Tt = t_block
    S_pad = pl.cdiv(S, Tt) * Tt

    emb = params["embed"]
    # Embedding gather + permute(1,0,2) is glue (plain JAX).
    xl = jnp.transpose(emb[x_left], (1, 0, 2)).astype(jnp.float32)   # (S, B, E)
    xr = jnp.transpose(emb[x_right], (1, 0, 2)).astype(jnp.float32)

    def pad_sb(a):
        return jnp.pad(a, ((0, S_pad - S), (0, Bp - B), (0, 0)))

    # Fuse left/right along batch: left rows [0:Bp], right rows [Bp:2Bp].
    x = jnp.concatenate([pad_sb(xl), pad_sb(xr)], axis=1)            # (S_pad, 2Bp, E)

    # Hoisted input projection: one big bf16 matmul, f32 accumulation,
    # bias folded in; streamed to the recurrence as bf16.
    gx = jnp.einsum("sbe,ef->sbf",
                    x.astype(jnp.bfloat16),
                    params["wih_T"].astype(jnp.bfloat16),
                    preferred_element_type=jnp.float32)
    gx = (gx + params["b_lstm"].reshape(1, 1, 4 * H)).astype(jnp.bfloat16)

    # Padded rows get len=0 so their state never updates (stays zero).
    lens = jnp.concatenate([
        jnp.pad(left_lens.astype(jnp.int32), (0, Bp - B)),
        jnp.pad(right_lens.astype(jnp.int32), (0, Bp - B)),
    ]).reshape(2 * Bp, 1)

    whh = params["whh_T"].astype(jnp.bfloat16)                       # (H, 4H)
    w1 = params["w1_T"].astype(jnp.float32)                          # (H, 512)
    b1 = params["b1"].reshape(1, DENSE_HIDDEN).astype(jnp.float32)
    w2 = params["w2_T"].reshape(1, DENSE_HIDDEN).astype(jnp.float32)
    b2 = params["b2"].reshape(1, 1).astype(jnp.float32)

    kernel = _make_siamese_lstm_kernel(Bp, Tt)

    logits = pl.pallas_call(
        kernel,
        out_shape=jax.ShapeDtypeStruct((Bp, 1), jnp.float32),
        grid_spec=pltpu.PrefetchScalarGridSpec(
            num_scalar_prefetch=0,
            grid=(S_pad // Tt,),
            in_specs=[
                pl.BlockSpec((2 * Bp, 1), lambda g: (0, 0)),             # lens
                pl.BlockSpec((Tt, 2 * Bp, 4 * H), lambda g: (g, 0, 0)),  # gates_x stream
                pl.BlockSpec((H, 4 * H), lambda g: (0, 0)),              # W_hh^T bf16
                pl.BlockSpec((H, DENSE_HIDDEN), lambda g: (0, 0)),       # dense_hidden W^T
                pl.BlockSpec((1, DENSE_HIDDEN), lambda g: (0, 0)),       # dense_hidden b
                pl.BlockSpec((1, DENSE_HIDDEN), lambda g: (0, 0)),       # dense_out W row
                pl.BlockSpec((1, 1), lambda g: (0, 0)),                  # dense_out b
            ],
            out_specs=pl.BlockSpec((Bp, 1), lambda g: (0, 0)),
            scratch_shapes=[pltpu.VMEM((2 * Bp, H), jnp.float32),        # h state
                            pltpu.VMEM((2 * Bp, H), jnp.float32)],       # c state
        ),
        compiler_params=pltpu.CompilerParams(
            dimension_semantics=("arbitrary",),
            vmem_limit_bytes=32 * 1024 * 1024),
    )(lens, gx, whh, w1, b1, w2, b2)

    return logits[:B].reshape(1, B, 1)   # matches PyTorch h_n leading num_layers dim


# ------------------------------ Pure-JAX ref ---------------------------------
def ref_forward(params, x_left, x_right, left_lens, right_lens):
    H = HIDDEN_DIM
    hp = jax.lax.Precision.HIGHEST

    def lstm(x_emb, lens):
        S, B, _ = x_emb.shape

        def step(carry, xt_t):
            h, c = carry
            xt, t = xt_t
            gates = (jnp.dot(xt, params["wih_T"], precision=hp)
                     + jnp.dot(h, params["whh_T"], precision=hp) + params["b_lstm"])
            i = jax.nn.sigmoid(gates[:, :H]); f = jax.nn.sigmoid(gates[:, H:2 * H])
            g = jnp.tanh(gates[:, 2 * H:3 * H]); o = jax.nn.sigmoid(gates[:, 3 * H:])
            cn = f * c + i * g
            hn = o * jnp.tanh(cn)
            m = (t < lens)[:, None]
            return (jnp.where(m, hn, h), jnp.where(m, cn, c)), None

        init = (jnp.zeros((B, H), jnp.float32), jnp.zeros((B, H), jnp.float32))
        (h, _), _ = jax.lax.scan(step, init, (x_emb, jnp.arange(S)))
        return h

    xl = jnp.transpose(params["embed"][x_left], (1, 0, 2)).astype(jnp.float32)
    xr = jnp.transpose(params["embed"][x_right], (1, 0, 2)).astype(jnp.float32)
    h_l = lstm(xl, left_lens)
    h_r = lstm(xr, right_lens)
    d = jnp.abs(h_l - h_r)
    hid = jnp.maximum(jnp.dot(d, params["w1_T"], precision=hp) + params["b1"], 0.0)
    out = jnp.dot(hid, params["w2_T"], precision=hp) + params["b2"]
    return out.reshape(1, -1, 1)


# ------------------------------ Param init -----------------------------------
def init_params(vocab_size, key):
    ks = jax.random.split(key, 8)
    H, E = HIDDEN_DIM, EMBED_DIM
    k_lstm = 1.0 / np.sqrt(H)
    k_d1 = 1.0 / np.sqrt(H)
    k_d2 = 1.0 / np.sqrt(DENSE_HIDDEN)
    b_ih = jax.random.uniform(ks[3], (4 * H,), jnp.float32, -k_lstm, k_lstm)
    b_hh = jax.random.uniform(ks[4], (4 * H,), jnp.float32, -k_lstm, k_lstm)
    return {
        # nn.Embedding default is N(0,1); scaled down for well-conditioned gates
        "embed": 0.1 * jax.random.normal(ks[0], (vocab_size, E), jnp.float32),
        "wih_T": jax.random.uniform(ks[1], (E, 4 * H), jnp.float32, -k_lstm, k_lstm),
        "whh_T": jax.random.uniform(ks[2], (H, 4 * H), jnp.float32, -k_lstm, k_lstm),
        "b_lstm": b_ih + b_hh,
        "w1_T": jax.random.uniform(ks[5], (H, DENSE_HIDDEN), jnp.float32, -k_d1, k_d1),
        "b1": jax.random.uniform(ks[6], (DENSE_HIDDEN,), jnp.float32, -k_d1, k_d1),
        "w2_T": jax.random.uniform(ks[7], (DENSE_HIDDEN, 1), jnp.float32, -k_d2, k_d2),
        "b2": jnp.zeros((1,), jnp.float32),
    }


if __name__ == "__main__":
    VOCAB = 50
    B, S = 2, 12          # S not a multiple of the time block -> exercises padding
    key = jax.random.PRNGKey(0)
    k_p, k_xl, k_xr = jax.random.split(key, 3)

    params = init_params(VOCAB, k_p)
    x_left = jax.random.randint(k_xl, (B, S), 0, VOCAB, dtype=jnp.int32)
    x_right = jax.random.randint(k_xr, (B, S), 0, VOCAB, dtype=jnp.int32)
    left_lens = jnp.array([12, 5], dtype=jnp.int32)
    right_lens = jnp.array([7, 10], dtype=jnp.int32)

    out = siamese_forward(params, x_left, x_right, left_lens, right_lens, t_block=8)
    out = jax.block_until_ready(out)
    assert out.shape == (1, B, 1), out.shape

    ref = jax.block_until_ready(ref_forward(params, x_left, x_right, left_lens, right_lens))
    assert np.allclose(np.asarray(out), np.asarray(ref), atol=5e-2, rtol=5e-2), (
        "mismatch", np.max(np.abs(np.asarray(out) - np.asarray(ref))))

    print("KERNEL_OK")
</pallas_src>

<mosaic_0001>
module attributes {stable_mosaic.version = 11 : i64} {
  func.func @kernel(%arg0: i32, %arg1: memref<16x1xi32, #tpu.memory_space<vmem>>, %arg2: memref<8x16x1024xbf16, #tpu.memory_space<vmem>>, %arg3: memref<256x1024xbf16, #tpu.memory_space<vmem>>, %arg4: memref<256x512xf32, #tpu.memory_space<vmem>>, %arg5: memref<1x512xf32, #tpu.memory_space<vmem>>, %arg6: memref<1x512xf32, #tpu.memory_space<vmem>>, %arg7: memref<1x1xf32, #tpu.memory_space<vmem>>, %arg8: memref<8x1xf32, #tpu.memory_space<vmem>>, %arg9: memref<16x256xf32, #tpu.memory_space<vmem>>, %arg10: memref<16x256xf32, #tpu.memory_space<vmem>>) attributes {dimension_semantics = [#tpu.dimension_semantics<arbitrary>], iteration_bounds = array<i64: 2>, scalar_prefetch = 0 : i64, scratch_operands = 2 : i64, tpu.core_type = #tpu.core_type<tc>, window_params = [{pipeline_mode = #tpu.pipeline_mode<synchronous>, transform_indices = @transform_0, window_bounds = array<i64: 16, 1>}, {transform_indices = @transform_1, window_bounds = array<i64: 8, 16, 1024>}, {pipeline_mode = #tpu.pipeline_mode<synchronous>, transform_indices = @transform_2, window_bounds = array<i64: 256, 1024>}, {pipeline_mode = #tpu.pipeline_mode<synchronous>, transform_indices = @transform_3, window_bounds = array<i64: 256, 512>}, {pipeline_mode = #tpu.pipeline_mode<synchronous>, transform_indices = @transform_4, window_bounds = array<i64: 1, 512>}, {pipeline_mode = #tpu.pipeline_mode<synchronous>, transform_indices = @transform_5, window_bounds = array<i64: 1, 512>}, {pipeline_mode = #tpu.pipeline_mode<synchronous>, transform_indices = @transform_6, window_bounds = array<i64: 1, 1>}, {pipeline_mode = #tpu.pipeline_mode<synchronous>, transform_indices = @transform_7, window_bounds = array<i64: 8, 1>}]} {
    %c0_i32 = arith.constant 0 : i32
    %0 = arith.cmpi eq, %arg0, %c0_i32 : i32
    %1 = arith.extui %0 : i1 to i32
    %c0_i32_0 = arith.constant 0 : i32
    %2 = arith.cmpi ne, %1, %c0_i32_0 : i32
    scf.if %2 {
      %cst_63 = arith.constant 0.000000e+00 : f32
      %341 = vector.broadcast %cst_63 : f32 to vector<16x256xf32>
      %c0_64 = arith.constant 0 : index
      %c0_65 = arith.constant 0 : index
      %342 = vector.load %arg9[%c0_64, %c0_65] : memref<16x256xf32, #tpu.memory_space<vmem>>, vector<16x256xf32>
      tpu.vector_store %arg9[%c0_64, %c0_65], %341 {strides = array<i32>} : memref<16x256xf32, #tpu.memory_space<vmem>>, vector<16x256xf32>,
      %cst_66 = arith.constant 0.000000e+00 : f32
      %343 = vector.broadcast %cst_66 : f32 to vector<16x256xf32>
      %c0_67 = arith.constant 0 : index
      %c0_68 = arith.constant 0 : index
      %344 = vector.load %arg10[%c0_67, %c0_68] : memref<16x256xf32, #tpu.memory_space<vmem>>, vector<16x256xf32>
      tpu.vector_store %arg10[%c0_67, %c0_68], %343 {strides = array<i32>} : memref<16x256xf32, #tpu.memory_space<vmem>>, vector<16x256xf32>,
    } else {
    }
    %c8_i32 = arith.constant 8 : i32
    %3 = arith.muli %arg0, %c8_i32 : i32
    %c0 = arith.constant 0 : index
    %c0_1 = arith.constant 0 : index
    %4 = vector.load %arg1[%c0, %c0_1] : memref<16x1xi32, #tpu.memory_space<vmem>>, vector<16x1xi32>
    %c0_2 = arith.constant 0 : index
    %c0_3 = arith.constant 0 : index
    %5 = vector.load %arg3[%c0_2, %c0_3] : memref<256x1024xbf16, #tpu.memory_space<vmem>>, vector<256x1024xbf16>
    %c0_4 = arith.constant 0 : index
    %c0_5 = arith.constant 0 : index
    %6 = vector.load %arg9[%c0_4, %c0_5] : memref<16x256xf32, #tpu.memory_space<vmem>>, vector<16x256xf32>
    %c0_6 = arith.constant 0 : index
    %c0_7 = arith.constant 0 : index
    %7 = vector.load %arg10[%c0_6, %c0_7] : memref<16x256xf32, #tpu.memory_space<vmem>>, vector<16x256xf32>
    %c0_i32_8 = arith.constant 0 : i32
    %8 = arith.truncf %6 : vector<16x256xf32> to vector<16x256xbf16>
    %cst = arith.constant dense<0.000000e+00> : vector<16x1024xf32>
    %9 = tpu.matmul %8, %5, %cst {dimension_numbers = #tpu.dot_dimension_numbers<[1], [0], [0], [1], [0, 0, 1, 1], [], []>} : vector<16x256xbf16>, vector<256x1024xbf16>, vector<16x1024xf32> -> vector<16x1024xf32>
    %10 = arith.index_cast %c0_i32_8 : i32 to index
    %c0_9 = arith.constant 0 : index
    %c0_10 = arith.constant 0 : index
    %11 = vector.load %arg2[%10, %c0_9, %c0_10] : memref<8x16x1024xbf16, #tpu.memory_space<vmem>>, vector<1x16x1024xbf16>
    %12 = vector.shape_cast %11 : vector<1x16x1024xbf16> to vector<16x1024xbf16>
    %13 = arith.extf %12 : vector<16x1024xbf16> to vector<16x1024xf32>
    %14 = arith.addf %9, %13 : vector<16x1024xf32>
    %15 = vector.extract_strided_slice %14 {offsets = [0, 0], sizes = [16, 256], strides = [1, 1]} : vector<16x1024xf32> to vector<16x256xf32>
    %16 = arith.negf %15 : vector<16x256xf32>
    %17 = math.exp %16 : vector<16x256xf32>
    %cst_11 = arith.constant 1.000000e+00 : f32
    %18 = vector.broadcast %cst_11 : f32 to vector<16x256xf32>
    %19 = arith.addf %18, %17 : vector<16x256xf32>
    %20 = arith.divf %18, %19 : vector<16x256xf32>
    %21 = vector.extract_strided_slice %14 {offsets = [0, 256], sizes = [16, 256], strides = [1, 1]} : vector<16x1024xf32> to vector<16x256xf32>
    %22 = arith.negf %21 : vector<16x256xf32>
    %23 = math.exp %22 : vector<16x256xf32>
    %cst_12 = arith.constant 1.000000e+00 : f32
    %24 = vector.broadcast %cst_12 : f32 to vector<16x256xf32>
    %25 = arith.addf %24, %23 : vector<16x256xf32>
    %26 = arith.divf %24, %25 : vector<16x256xf32>
    %27 = vector.extract_strided_slice %14 {offsets = [0, 512], sizes = [16, 256], strides = [1, 1]} : vector<16x1024xf32> to vector<16x256xf32>
    %28 = math.tanh %27 : vector<16x256xf32>
    %29 = vector.extract_strided_slice %14 {offsets = [0, 768], sizes = [16, 256], strides = [1, 1]} : vector<16x1024xf32> to vector<16x256xf32>
    %30 = arith.negf %29 : vector<16x256xf32>
    %31 = math.exp %30 : vector<16x256xf32>
    %cst_13 = arith.constant 1.000000e+00 : f32
    %32 = vector.broadcast %cst_13 : f32 to vector<16x256xf32>
    %33 = arith.addf %32, %31 : vector<16x256xf32>
    %34 = arith.divf %32, %33 : vector<16x256xf32>
    %35 = arith.mulf %26, %7 : vector<16x256xf32>
    %36 = arith.mulf %20, %28 : vector<16x256xf32>
    %37 = arith.addf %35, %36 : vector<16x256xf32>
    %38 = math.tanh %37 : vector<16x256xf32>
    %39 = arith.mulf %34, %38 : vector<16x256xf32>
    %40 = arith.addi %3, %c0_i32_8 : i32
    %41 = vector.broadcast %40 : i32 to vector<16x1xi32>
    %42 = arith.cmpi slt, %41, %4 : vector<16x1xi32>
    %43 = vector.shape_cast %42 : vector<16x1xi1> to vector<16x1xi1>
    %44 = vector.broadcast %43 : vector<16x1xi1> to vector<16x256xi1>
    %45 = arith.select %44, %39, %6 : vector<16x256xi1>, vector<16x256xf32>
    %46 = vector.shape_cast %42 : vector<16x1xi1> to vector<16x1xi1>
    %47 = vector.broadcast %46 : vector<16x1xi1> to vector<16x256xi1>
    %48 = arith.select %47, %37, %7 : vector<16x256xi1>, vector<16x256xf32>
    %c1_i32 = arith.constant 1 : i32
    %49 = arith.truncf %45 : vector<16x256xf32> to vector<16x256xbf16>
    %cst_14 = arith.constant dense<0.000000e+00> : vector<16x1024xf32>
    %50 = tpu.matmul %49, %5, %cst_14 {dimension_numbers = #tpu.dot_dimension_numbers<[1], [0], [0], [1], [0, 0, 1, 1], [], []>} : vector<16x256xbf16>, vector<256x1024xbf16>, vector<16x1024xf32> -> vector<16x1024xf32>
    %51 = arith.index_cast %c1_i32 : i32 to index
    %c0_15 = arith.constant 0 : index
    %c0_16 = arith.constant 0 : index
    %52 = vector.load %arg2[%51, %c0_15, %c0_16] : memref<8x16x1024xbf16, #tpu.memory_space<vmem>>, vector<1x16x1024xbf16>
    %53 = vector.shape_cast %52 : vector<1x16x1024xbf16> to vector<16x1024xbf16>
    %54 = arith.extf %53 : vector<16x1024xbf16> to vector<16x1024xf32>
    %55 = arith.addf %50, %54 : vector<16x1024xf32>
    %56 = vector.extract_strided_slice %55 {offsets = [0, 0], sizes = [16, 256], strides = [1, 1]} : vector<16x1024xf32> to vector<16x256xf32>
    %57 = arith.negf %56 : vector<16x256xf32>
    %58 = math.exp %57 : vector<16x256xf32>
    %cst_17 = arith.constant 1.000000e+00 : f32
    %59 = vector.broadcast %cst_17 : f32 to vector<16x256xf32>
    %60 = arith.addf %59, %58 : vector<16x256xf32>
    %61 = arith.divf %59, %60 : vector<16x256xf32>
    %62 = vector.extract_strided_slice %55 {offsets = [0, 256], sizes = [16, 256], strides = [1, 1]} : vector<16x1024xf32> to vector<16x256xf32>
    %63 = arith.negf %62 : vector<16x256xf32>
    %64 = math.exp %63 : vector<16x256xf32>
    %cst_18 = arith.constant 1.000000e+00 : f32
    %65 = vector.broadcast %cst_18 : f32 to vector<16x256xf32>
    %66 = arith.addf %65, %64 : vector<16x256xf32>
    %67 = arith.divf %65, %66 : vector<16x256xf32>
    %68 = vector.extract_strided_slice %55 {offsets = [0, 512], sizes = [16, 256], strides = [1, 1]} : vector<16x1024xf32> to vector<16x256xf32>
    %69 = math.tanh %68 : vector<16x256xf32>
    %70 = vector.extract_strided_slice %55 {offsets = [0, 768], sizes = [16, 256], strides = [1, 1]} : vector<16x1024xf32> to vector<16x256xf32>
    %71 = arith.negf %70 : vector<16x256xf32>
    %72 = math.exp %71 : vector<16x256xf32>
    %cst_19 = arith.constant 1.000000e+00 : f32
    %73 = vector.broadcast %cst_19 : f32 to vector<16x256xf32>
    %74 = arith.addf %73, %72 : vector<16x256xf32>
    %75 = arith.divf %73, %74 : vector<16x256xf32>
    %76 = arith.mulf %67, %48 : vector<16x256xf32>
    %77 = arith.mulf %61, %69 : vector<16x256xf32>
    %78 = arith.addf %76, %77 : vector<16x256xf32>
    %79 = math.tanh %78 : vector<16x256xf32>
    %80 = arith.mulf %75, %79 : vector<16x256xf32>
    %81 = arith.addi %3, %c1_i32 : i32
    %82 = vector.broadcast %81 : i32 to vector<16x1xi32>
    %83 = arith.cmpi slt, %82, %4 : vector<16x1xi32>
    %84 = vector.shape_cast %83 : vector<16x1xi1> to vector<16x1xi1>
    %85 = vector.broadcast %84 : vector<16x1xi1> to vector<16x256xi1>
    %86 = arith.select %85, %80, %45 : vector<16x256xi1>, vector<16x256xf32>
    %87 = vector.shape_cast %83 : vector<16x1xi1> to vector<16x1xi1>
    %88 = vector.broadcast %87 : vector<16x1xi1> to vector<16x256xi1>
    %89 = arith.select %88, %78, %48 : vector<16x256xi1>, vector<16x256xf32>
    %c2_i32 = arith.constant 2 : i32
    %90 = arith.truncf %86 : vector<16x256xf32> to vector<16x256xbf16>
    %cst_20 = arith.constant dense<0.000000e+00> : vector<16x1024xf32>
    %91 = tpu.matmul %90, %5, %cst_20 {dimension_numbers = #tpu.dot_dimension_numbers<[1], [0], [0], [1], [0, 0, 1, 1], [], []>} : vector<16x256xbf16>, vector<256x1024xbf16>, vector<16x1024xf32> -> vector<16x1024xf32>
    %92 = arith.index_cast %c2_i32 : i32 to index
    %c0_21 = arith.constant 0 : index
    %c0_22 = arith.constant 0 : index
    %93 = vector.load %arg2[%92, %c0_21, %c0_22] : memref<8x16x1024xbf16, #tpu.memory_space<vmem>>, vector<1x16x1024xbf16>
    %94 = vector.shape_cast %93 : vector<1x16x1024xbf16> to vector<16x1024xbf16>
    %95 = arith.extf %94 : vector<16x1024xbf16> to vector<16x1024xf32>
    %96 = arith.addf %91, %95 : vector<16x1024xf32>
    %97 = vector.extract_strided_slice %96 {offsets = [0, 0], sizes = [16, 256], strides = [1, 1]} : vector<16x1024xf32> to vector<16x256xf32>
    %98 = arith.negf %97 : vector<16x256xf32>
    %99 = math.exp %98 : vector<16x256xf32>
    %cst_23 = arith.constant 1.000000e+00 : f32
    %100 = vector.broadcast %cst_23 : f32 to vector<16x256xf32>
    %101 = arith.addf %100, %99 : vector<16x256xf32>
    %102 = arith.divf %100, %101 : vector<16x256xf32>
    %103 = vector.extract_strided_slice %96 {offsets = [0, 256], sizes = [16, 256], strides = [1, 1]} : vector<16x1024xf32> to vector<16x256xf32>
    %104 = arith.negf %103 : vector<16x256xf32>
    %105 = math.exp %104 : vector<16x256xf32>
    %cst_24 = arith.constant 1.000000e+00 : f32
    %106 = vector.broadcast %cst_24 : f32 to vector<16x256xf32>
    %107 = arith.addf %106, %105 : vector<16x256xf32>
    %108 = arith.divf %106, %107 : vector<16x256xf32>
    %109 = vector.extract_strided_slice %96 {offsets = [0, 512], sizes = [16, 256], strides = [1, 1]} : vector<16x1024xf32> to vector<16x256xf32>
    %110 = math.tanh %109 : vector<16x256xf32>
    %111 = vector.extract_strided_slice %96 {offsets = [0, 768], sizes = [16, 256], strides = [1, 1]} : vector<16x1024xf32> to vector<16x256xf32>
    %112 = arith.negf %111 : vector<16x256xf32>
    %113 = math.exp %112 : vector<16x256xf32>
    %cst_25 = arith.constant 1.000000e+00 : f32
    %114 = vector.broadcast %cst_25 : f32 to vector<16x256xf32>
    %115 = arith.addf %114, %113 : vector<16x256xf32>
    %116 = arith.divf %114, %115 : vector<16x256xf32>
    %117 = arith.mulf %108, %89 : vector<16x256xf32>
    %118 = arith.mulf %102, %110 : vector<16x256xf32>
    %119 = arith.addf %117, %118 : vector<16x256xf32>
    %120 = math.tanh %119 : vector<16x256xf32>
    %121 = arith.mulf %116, %120 : vector<16x256xf32>
    %122 = arith.addi %3, %c2_i32 : i32
    %123 = vector.broadcast %122 : i32 to vector<16x1xi32>
    %124 = arith.cmpi slt, %123, %4 : vector<16x1xi32>
    %125 = vector.shape_cast %124 : vector<16x1xi1> to vector<16x1xi1>
    %126 = vector.broadcast %125 : vector<16x1xi1> to vector<16x256xi1>
    %127 = arith.select %126, %121, %86 : vector<16x256xi1>, vector<16x256xf32>
    %128 = vector.shape_cast %124 : vector<16x1xi1> to vector<16x1xi1>
    %129 = vector.broadcast %128 : vector<16x1xi1> to vector<16x256xi1>
    %130 = arith.select %129, %119, %89 : vector<16x256xi1>, vector<16x256xf32>
    %c3_i32 = arith.constant 3 : i32
    %131 = arith.truncf %127 : vector<16x256xf32> to vector<16x256xbf16>
    %cst_26 = arith.constant dense<0.000000e+00> : vector<16x1024xf32>
    %132 = tpu.matmul %131, %5, %cst_26 {dimension_numbers = #tpu.dot_dimension_numbers<[1], [0], [0], [1], [0, 0, 1, 1], [], []>} : vector<16x256xbf16>, vector<256x1024xbf16>, vector<16x1024xf32> -> vector<16x1024xf32>
    %133 = arith.index_cast %c3_i32 : i32 to index
    %c0_27 = arith.constant 0 : index
    %c0_28 = arith.constant 0 : index
    %134 = vector.load %arg2[%133, %c0_27, %c0_28] : memref<8x16x1024xbf16, #tpu.memory_space<vmem>>, vector<1x16x1024xbf16>
    %135 = vector.shape_cast %134 : vector<1x16x1024xbf16> to vector<16x1024xbf16>
    %136 = arith.extf %135 : vector<16x1024xbf16> to vector<16x1024xf32>
    %137 = arith.addf %132, %136 : vector<16x1024xf32>
    %138 = vector.extract_strided_slice %137 {offsets = [0, 0], sizes = [16, 256], strides = [1, 1]} : vector<16x1024xf32> to vector<16x256xf32>
    %139 = arith.negf %138 : vector<16x256xf32>
    %140 = math.exp %139 : vector<16x256xf32>
    %cst_29 = arith.constant 1.000000e+00 : f32
    %141 = vector.broadcast %cst_29 : f32 to vector<16x256xf32>
    %142 = arith.addf %141, %140 : vector<16x256xf32>
    %143 = arith.divf %141, %142 : vector<16x256xf32>
    %144 = vector.extract_strided_slice %137 {offsets = [0, 256], sizes = [16, 256], strides = [1, 1]} : vector<16x1024xf32> to vector<16x256xf32>
    %145 = arith.negf %144 : vector<16x256xf32>
    %146 = math.exp %145 : vector<16x256xf32>
    %cst_30 = arith.constant 1.000000e+00 : f32
    %147 = vector.broadcast %cst_30 : f32 to vector<16x256xf32>
    %148 = arith.addf %147, %146 : vector<16x256xf32>
    %149 = arith.divf %147, %148 : vector<16x256xf32>
    %150 = vector.extract_strided_slice %137 {offsets = [0, 512], sizes = [16, 256], strides = [1, 1]} : vector<16x1024xf32> to vector<16x256xf32>
    %151 = math.tanh %150 : vector<16x256xf32>
    %152 = vector.extract_strided_slice %137 {offsets = [0, 768], sizes = [16, 256], strides = [1, 1]} : vector<16x1024xf32> to vector<16x256xf32>
    %153 = arith.negf %152 : vector<16x256xf32>
    %154 = math.exp %153 : vector<16x256xf32>
    %cst_31 = arith.constant 1.000000e+00 : f32
    %155 = vector.broadcast %cst_31 : f32 to vector<16x256xf32>
    %156 = arith.addf %155, %154 : vector<16x256xf32>
    %157 = arith.divf %155, %156 : vector<16x256xf32>
    %158 = arith.mulf %149, %130 : vector<16x256xf32>
    %159 = arith.mulf %143, %151 : vector<16x256xf32>
    %160 = arith.addf %158, %159 : vector<16x256xf32>
    %161 = math.tanh %160 : vector<16x256xf32>
    %162 = arith.mulf %157, %161 : vector<16x256xf32>
    %163 = arith.addi %3, %c3_i32 : i32
    %164 = vector.broadcast %163 : i32 to vector<16x1xi32>
    %165 = arith.cmpi slt, %164, %4 : vector<16x1xi32>
    %166 = vector.shape_cast %165 : vector<16x1xi1> to vector<16x1xi1>
    %167 = vector.broadcast %166 : vector<16x1xi1> to vector<16x256xi1>
    %168 = arith.select %167, %162, %127 : vector<16x256xi1>, vector<16x256xf32>
    %169 = vector.shape_cast %165 : vector<16x1xi1> to vector<16x1xi1>
    %170 = vector.broadcast %169 : vector<16x1xi1> to vector<16x256xi1>
    %171 = arith.select %170, %160, %130 : vector<16x256xi1>, vector<16x256xf32>
    %c4_i32 = arith.constant 4 : i32
    %172 = arith.truncf %168 : vector<16x256xf32> to vector<16x256xbf16>
    %cst_32 = arith.constant dense<0.000000e+00> : vector<16x1024xf32>
    %173 = tpu.matmul %172, %5, %cst_32 {dimension_numbers = #tpu.dot_dimension_numbers<[1], [0], [0], [1], [0, 0, 1, 1], [], []>} : vector<16x256xbf16>, vector<256x1024xbf16>, vector<16x1024xf32> -> vector<16x1024xf32>
    %174 = arith.index_cast %c4_i32 : i32 to index
    %c0_33 = arith.constant 0 : index
    %c0_34 = arith.constant 0 : index
    %175 = vector.load %arg2[%174, %c0_33, %c0_34] : memref<8x16x1024xbf16, #tpu.memory_space<vmem>>, vector<1x16x1024xbf16>
    %176 = vector.shape_cast %175 : vector<1x16x1024xbf16> to vector<16x1024xbf16>
    %177 = arith.extf %176 : vector<16x1024xbf16> to vector<16x1024xf32>
    %178 = arith.addf %173, %177 : vector<16x1024xf32>
    %179 = vector.extract_strided_slice %178 {offsets = [0, 0], sizes = [16, 256], strides = [1, 1]} : vector<16x1024xf32> to vector<16x256xf32>
    %180 = arith.negf %179 : vector<16x256xf32>
    %181 = math.exp %180 : vector<16x256xf32>
    %cst_35 = arith.constant 1.000000e+00 : f32
    %182 = vector.broadcast %cst_35 : f32 to vector<16x256xf32>
    %183 = arith.addf %182, %181 : vector<16x256xf32>
    %184 = arith.divf %182, %183 : vector<16x256xf32>
    %185 = vector.extract_strided_slice %178 {offsets = [0, 256], sizes = [16, 256], strides = [1, 1]} : vector<16x1024xf32> to vector<16x256xf32>
    %186 = arith.negf %185 : vector<16x256xf32>
    %187 = math.exp %186 : vector<16x256xf32>
    %cst_36 = arith.constant 1.000000e+00 : f32
    %188 = vector.broadcast %cst_36 : f32 to vector<16x256xf32>
    %189 = arith.addf %188, %187 : vector<16x256xf32>
    %190 = arith.divf %188, %189 : vector<16x256xf32>
    %191 = vector.extract_strided_slice %178 {offsets = [0, 512], sizes = [16, 256], strides = [1, 1]} : vector<16x1024xf32> to vector<16x256xf32>
    %192 = math.tanh %191 : vector<16x256xf32>
    %193 = vector.extract_strided_slice %178 {offsets = [0, 768], sizes = [16, 256], strides = [1, 1]} : vector<16x1024xf32> to vector<16x256xf32>
    %194 = arith.negf %193 : vector<16x256xf32>
    %195 = math.exp %194 : vector<16x256xf32>
    %cst_37 = arith.constant 1.000000e+00 : f32
    %196 = vector.broadcast %cst_37 : f32 to vector<16x256xf32>
    %197 = arith.addf %196, %195 : vector<16x256xf32>
    %198 = arith.divf %196, %197 : vector<16x256xf32>
    %199 = arith.mulf %190, %171 : vector<16x256xf32>
    %200 = arith.mulf %184, %192 : vector<16x256xf32>
    %201 = arith.addf %199, %200 : vector<16x256xf32>
    %202 = math.tanh %201 : vector<16x256xf32>
    %203 = arith.mulf %198, %202 : vector<16x256xf32>
    %204 = arith.addi %3, %c4_i32 : i32
    %205 = vector.broadcast %204 : i32 to vector<16x1xi32>
    %206 = arith.cmpi slt, %205, %4 : vector<16x1xi32>
    %207 = vector.shape_cast %206 : vector<16x1xi1> to vector<16x1xi1>
    %208 = vector.broadcast %207 : vector<16x1xi1> to vector<16x256xi1>
    %209 = arith.select %208, %203, %168 : vector<16x256xi1>, vector<16x256xf32>
    %210 = vector.shape_cast %206 : vector<16x1xi1> to vector<16x1xi1>
    %211 = vector.broadcast %210 : vector<16x1xi1> to vector<16x256xi1>
    %212 = arith.select %211, %201, %171 : vector<16x256xi1>, vector<16x256xf32>
    %c5_i32 = arith.constant 5 : i32
    %213 = arith.truncf %209 : vector<16x256xf32> to vector<16x256xbf16>
    %cst_38 = arith.constant dense<0.000000e+00> : vector<16x1024xf32>
    %214 = tpu.matmul %213, %5, %cst_38 {dimension_numbers = #tpu.dot_dimension_numbers<[1], [0], [0], [1], [0, 0, 1, 1], [], []>} : vector<16x256xbf16>, vector<256x1024xbf16>, vector<16x1024xf32> -> vector<16x1024xf32>
    %215 = arith.index_cast %c5_i32 : i32 to index
    %c0_39 = arith.constant 0 : index
    %c0_40 = arith.constant 0 : index
    %216 = vector.load %arg2[%215, %c0_39, %c0_40] : memref<8x16x1024xbf16, #tpu.memory_space<vmem>>, vector<1x16x1024xbf16>
    %217 = vector.shape_cast %216 : vector<1x16x1024xbf16> to vector<16x1024xbf16>
    %218 = arith.extf %217 : vector<16x1024xbf16> to vector<16x1024xf32>
    %219 = arith.addf %214, %218 : vector<16x1024xf32>
    %220 = vector.extract_strided_slice %219 {offsets = [0, 0], sizes = [16, 256], strides = [1, 1]} : vector<16x1024xf32> to vector<16x256xf32>
    %221 = arith.negf %220 : vector<16x256xf32>
    %222 = math.exp %221 : vector<16x256xf32>
    %cst_41 = arith.constant 1.000000e+00 : f32
    %223 = vector.broadcast %cst_41 : f32 to vector<16x256xf32>
    %224 = arith.addf %223, %222 : vector<16x256xf32>
    %225 = arith.divf %223, %224 : vector<16x256xf32>
    %226 = vector.extract_strided_slice %219 {offsets = [0, 256], sizes = [16, 256], strides = [1, 1]} : vector<16x1024xf32> to vector<16x256xf32>
    %227 = arith.negf %226 : vector<16x256xf32>
    %228 = math.exp %227 : vector<16x256xf32>
    %cst_42 = arith.constant 1.000000e+00 : f32
    %229 = vector.broadcast %cst_42 : f32 to vector<16x256xf32>
    %230 = arith.addf %229, %228 : vector<16x256xf32>
    %231 = arith.divf %229, %230 : vector<16x256xf32>
    %232 = vector.extract_strided_slice %219 {offsets = [0, 512], sizes = [16, 256], strides = [1, 1]} : vector<16x1024xf32> to vector<16x256xf32>
    %233 = math.tanh %232 : vector<16x256xf32>
    %234 = vector.extract_strided_slice %219 {offsets = [0, 768], sizes = [16, 256], strides = [1, 1]} : vector<16x1024xf32> to vector<16x256xf32>
    %235 = arith.negf %234 : vector<16x256xf32>
    %236 = math.exp %235 : vector<16x256xf32>
    %cst_43 = arith.constant 1.000000e+00 : f32
    %237 = vector.broadcast %cst_43 : f32 to vector<16x256xf32>
    %238 = arith.addf %237, %236 : vector<16x256xf32>
    %239 = arith.divf %237, %238 : vector<16x256xf32>
    %240 = arith.mulf %231, %212 : vector<16x256xf32>
    %241 = arith.mulf %225, %233 : vector<16x256xf32>
    %242 = arith.addf %240, %241 : vector<16x256xf32>
    %243 = math.tanh %242 : vector<16x256xf32>
    %244 = arith.mulf %239, %243 : vector<16x256xf32>
    %245 = arith.addi %3, %c5_i32 : i32
    %246 = vector.broadcast %245 : i32 to vector<16x1xi32>
    %247 = arith.cmpi slt, %246, %4 : vector<16x1xi32>
    %248 = vector.shape_cast %247 : vector<16x1xi1> to vector<16x1xi1>
    %249 = vector.broadcast %248 : vector<16x1xi1> to vector<16x256xi1>
    %250 = arith.select %249, %244, %209 : vector<16x256xi1>, vector<16x256xf32>
    %251 = vector.shape_cast %247 : vector<16x1xi1> to vector<16x1xi1>
    %252 = vector.broadcast %251 : vector<16x1xi1> to vector<16x256xi1>
    %253 = arith.select %252, %242, %212 : vector<16x256xi1>, vector<16x256xf32>
    %c6_i32 = arith.constant 6 : i32
    %254 = arith.truncf %250 : vector<16x256xf32> to vector<16x256xbf16>
    %cst_44 = arith.constant dense<0.000000e+00> : vector<16x1024xf32>
    %255 = tpu.matmul %254, %5, %cst_44 {dimension_numbers = #tpu.dot_dimension_numbers<[1], [0], [0], [1], [0, 0, 1, 1], [], []>} : vector<16x256xbf16>, vector<256x1024xbf16>, vector<16x1024xf32> -> vector<16x1024xf32>
    %256 = arith.index_cast %c6_i32 : i32 to index
    %c0_45 = arith.constant 0 : index
    %c0_46 = arith.constant 0 : index
    %257 = vector.load %arg2[%256, %c0_45, %c0_46] : memref<8x16x1024xbf16, #tpu.memory_space<vmem>>, vector<1x16x1024xbf16>
    %258 = vector.shape_cast %257 : vector<1x16x1024xbf16> to vector<16x1024xbf16>
    %259 = arith.extf %258 : vector<16x1024xbf16> to vector<16x1024xf32>
    %260 = arith.addf %255, %259 : vector<16x1024xf32>
    %261 = vector.extract_strided_slice %260 {offsets = [0, 0], sizes = [16, 256], strides = [1, 1]} : vector<16x1024xf32> to vector<16x256xf32>
    %262 = arith.negf %261 : vector<16x256xf32>
    %263 = math.exp %262 : vector<16x256xf32>
    %cst_47 = arith.constant 1.000000e+00 : f32
    %264 = vector.broadcast %cst_47 : f32 to vector<16x256xf32>
    %265 = arith.addf %264, %263 : vector<16x256xf32>
    %266 = arith.divf %264, %265 : vector<16x256xf32>
    %267 = vector.extract_strided_slice %260 {offsets = [0, 256], sizes = [16, 256], strides = [1, 1]} : vector<16x1024xf32> to vector<16x256xf32>
    %268 = arith.negf %267 : vector<16x256xf32>
    %269 = math.exp %268 : vector<16x256xf32>
    %cst_48 = arith.constant 1.000000e+00 : f32
    %270 = vector.broadcast %cst_48 : f32 to vector<16x256xf32>
    %271 = arith.addf %270, %269 : vector<16x256xf32>
    %272 = arith.divf %270, %271 : vector<16x256xf32>
    %273 = vector.extract_strided_slice %260 {offsets = [0, 512], sizes = [16, 256], strides = [1, 1]} : vector<16x1024xf32> to vector<16x256xf32>
    %274 = math.tanh %273 : vector<16x256xf32>
    %275 = vector.extract_strided_slice %260 {offsets = [0, 768], sizes = [16, 256], strides = [1, 1]} : vector<16x1024xf32> to vector<16x256xf32>
    %276 = arith.negf %275 : vector<16x256xf32>
    %277 = math.exp %276 : vector<16x256xf32>
    %cst_49 = arith.constant 1.000000e+00 : f32
    %278 = vector.broadcast %cst_49 : f32 to vector<16x256xf32>
    %279 = arith.addf %278, %277 : vector<16x256xf32>
    %280 = arith.divf %278, %279 : vector<16x256xf32>
    %281 = arith.mulf %272, %253 : vector<16x256xf32>
    %282 = arith.mulf %266, %274 : vector<16x256xf32>
    %283 = arith.addf %281, %282 : vector<16x256xf32>
    %284 = math.tanh %283 : vector<16x256xf32>
    %285 = arith.mulf %280, %284 : vector<16x256xf32>
    %286 = arith.addi %3, %c6_i32 : i32
    %287 = vector.broadcast %286 : i32 to vector<16x1xi32>
    %288 = arith.cmpi slt, %287, %4 : vector<16x1xi32>
    %289 = vector.shape_cast %288 : vector<16x1xi1> to vector<16x1xi1>
    %290 = vector.broadcast %289 : vector<16x1xi1> to vector<16x256xi1>
    %291 = arith.select %290, %285, %250 : vector<16x256xi1>, vector<16x256xf32>
    %292 = vector.shape_cast %288 : vector<16x1xi1> to vector<16x1xi1>
    %293 = vector.broadcast %292 : vector<16x1xi1> to vector<16x256xi1>
    %294 = arith.select %293, %283, %253 : vector<16x256xi1>, vector<16x256xf32>
    %c7_i32 = arith.constant 7 : i32
    %295 = arith.truncf %291 : vector<16x256xf32> to vector<16x256xbf16>
    %cst_50 = arith.constant dense<0.000000e+00> : vector<16x1024xf32>
    %296 = tpu.matmul %295, %5, %cst_50 {dimension_numbers = #tpu.dot_dimension_numbers<[1], [0], [0], [1], [0, 0, 1, 1], [], []>} : vector<16x256xbf16>, vector<256x1024xbf16>, vector<16x1024xf32> -> vector<16x1024xf32>
    %297 = arith.index_cast %c7_i32 : i32 to index
    %c0_51 = arith.constant 0 : index
    %c0_52 = arith.constant 0 : index
    %298 = vector.load %arg2[%297, %c0_51, %c0_52] : memref<8x16x1024xbf16, #tpu.memory_space<vmem>>, vector<1x16x1024xbf16>
    %299 = vector.shape_cast %298 : vector<1x16x1024xbf16> to vector<16x1024xbf16>
    %300 = arith.extf %299 : vector<16x1024xbf16> to vector<16x1024xf32>
    %301 = arith.addf %296, %300 : vector<16x1024xf32>
    %302 = vector.extract_strided_slice %301 {offsets = [0, 0], sizes = [16, 256], strides = [1, 1]} : vector<16x1024xf32> to vector<16x256xf32>
    %303 = arith.negf %302 : vector<16x256xf32>
    %304 = math.exp %303 : vector<16x256xf32>
    %cst_53 = arith.constant 1.000000e+00 : f32
    %305 = vector.broadcast %cst_53 : f32 to vector<16x256xf32>
    %306 = arith.addf %305, %304 : vector<16x256xf32>
    %307 = arith.divf %305, %306 : vector<16x256xf32>
    %308 = vector.extract_strided_slice %301 {offsets = [0, 256], sizes = [16, 256], strides = [1, 1]} : vector<16x1024xf32> to vector<16x256xf32>
    %309 = arith.negf %308 : vector<16x256xf32>
    %310 = math.exp %309 : vector<16x256xf32>
    %cst_54 = arith.constant 1.000000e+00 : f32
    %311 = vector.broadcast %cst_54 : f32 to vector<16x256xf32>
    %312 = arith.addf %311, %310 : vector<16x256xf32>
    %313 = arith.divf %311, %312 : vector<16x256xf32>
    %314 = vector.extract_strided_slice %301 {offsets = [0, 512], sizes = [16, 256], strides = [1, 1]} : vector<16x1024xf32> to vector<16x256xf32>
    %315 = math.tanh %314 : vector<16x256xf32>
    %316 = vector.extract_strided_slice %301 {offsets = [0, 768], sizes = [16, 256], strides = [1, 1]} : vector<16x1024xf32> to vector<16x256xf32>
    %317 = arith.negf %316 : vector<16x256xf32>
    %318 = math.exp %317 : vector<16x256xf32>
    %cst_55 = arith.constant 1.000000e+00 : f32
    %319 = vector.broadcast %cst_55 : f32 to vector<16x256xf32>
    %320 = arith.addf %319, %318 : vector<16x256xf32>
    %321 = arith.divf %319, %320 : vector<16x256xf32>
    %322 = arith.mulf %313, %294 : vector<16x256xf32>
    %323 = arith.mulf %307, %315 : vector<16x256xf32>
    %324 = arith.addf %322, %323 : vector<16x256xf32>
    %325 = math.tanh %324 : vector<16x256xf32>
    %326 = arith.mulf %321, %325 : vector<16x256xf32>
    %327 = arith.addi %3, %c7_i32 : i32
    %328 = vector.broadcast %327 : i32 to vector<16x1xi32>
    %329 = arith.cmpi slt, %328, %4 : vector<16x1xi32>
    %330 = vector.shape_cast %329 : vector<16x1xi1> to vector<16x1xi1>
    %331 = vector.broadcast %330 : vector<16x1xi1> to vector<16x256xi1>
    %332 = arith.select %331, %326, %291 : vector<16x256xi1>, vector<16x256xf32>
    %333 = vector.shape_cast %329 : vector<16x1xi1> to vector<16x1xi1>
    %334 = vector.broadcast %333 : vector<16x1xi1> to vector<16x256xi1>
    %335 = arith.select %334, %324, %294 : vector<16x256xi1>, vector<16x256xf32>
    %c8_i32_56 = arith.constant 8 : i32
    %c0_57 = arith.constant 0 : index
    %c0_58 = arith.constant 0 : index
    %336 = vector.load %arg9[%c0_57, %c0_58] : memref<16x256xf32, #tpu.memory_space<vmem>>, vector<16x256xf32>
    tpu.vector_store %arg9[%c0_57, %c0_58], %332 {strides = array<i32>} : memref<16x256xf32, #tpu.memory_space<vmem>>, vector<16x256xf32>,
    %c0_59 = arith.constant 0 : index
    %c0_60 = arith.constant 0 : index
    %337 = vector.load %arg10[%c0_59, %c0_60] : memref<16x256xf32, #tpu.memory_space<vmem>>, vector<16x256xf32>
    tpu.vector_store %arg10[%c0_59, %c0_60], %335 {strides = array<i32>} : memref<16x256xf32, #tpu.memory_space<vmem>>, vector<16x256xf32>,
    %c1_i32_61 = arith.constant 1 : i32
    %338 = arith.cmpi eq, %arg0, %c1_i32_61 : i32
    %339 = arith.extui %338 : i1 to i32
    %c0_i32_62 = arith.constant 0 : i32
    %340 = arith.cmpi ne, %339, %c0_i32_62 : i32
    scf.if %340 {
      %341 = vector.extract_strided_slice %332 {offsets = [0, 0], sizes = [8, 256], strides = [1, 1]} : vector<16x256xf32> to vector<8x256xf32>
      %342 = vector.extract_strided_slice %332 {offsets = [8, 0], sizes = [8, 256], strides = [1, 1]} : vector<16x256xf32> to vector<8x256xf32>
      %343 = arith.subf %341, %342 : vector<8x256xf32>
      %344 = math.absf %343 : vector<8x256xf32>
      %c0_63 = arith.constant 0 : index
      %c0_64 = arith.constant 0 : index
      %345 = vector.load %arg4[%c0_63, %c0_64] : memref<256x512xf32, #tpu.memory_space<vmem>>, vector<256x512xf32>
      %cst_65 = arith.constant dense<0.000000e+00> : vector<8x512xf32>
      %346 = tpu.matmul %344, %345, %cst_65 {dimension_numbers = #tpu.dot_dimension_numbers<[1], [0], [0], [1], [0, 0, 1, 1], [], []>} : vector<8x256xf32>, vector<256x512xf32>, vector<8x512xf32> -> vector<8x512xf32>
      %c0_66 = arith.constant 0 : index
      %c0_67 = arith.constant 0 : index
      %347 = vector.load %arg5[%c0_66, %c0_67] : memref<1x512xf32, #tpu.memory_space<vmem>>, vector<1x512xf32>
      %348 = vector.broadcast %347 : vector<1x512xf32> to vector<8x512xf32>
      %349 = arith.addf %346, %348 : vector<8x512xf32>
      %cst_68 = arith.constant 0.000000e+00 : f32
      %350 = vector.broadcast %cst_68 : f32 to vector<8x512xf32>
      %351 = arith.maximumf %349, %350 : vector<8x512xf32>
      %c0_69 = arith.constant 0 : index
      %c0_70 = arith.constant 0 : index
      %352 = vector.load %arg6[%c0_69, %c0_70] : memref<1x512xf32, #tpu.memory_space<vmem>>, vector<1x512xf32>
      %353 = vector.broadcast %352 : vector<1x512xf32> to vector<8x512xf32>
      %354 = arith.mulf %351, %353 : vector<8x512xf32>
      %cst_71 = arith.constant dense<0.000000e+00> : vector<8xf32>
      %355 = vector.multi_reduction <add>, %354, %cst_71 [1] : vector<8x512xf32> to vector<8xf32>
      %356 = vector.shape_cast %355 : vector<8xf32> to vector<8x1xf32>
      %c0_72 = arith.constant 0 : index
      %c0_73 = arith.constant 0 : index
      %357 = vector.load %arg7[%c0_72, %c0_73] : memref<1x1xf32, #tpu.memory_space<vmem>>, vector<1x1xf32>
      %358 = vector.broadcast %357 : vector<1x1xf32> to vector<8x1xf32>
      %359 = arith.addf %356, %358 : vector<8x1xf32>
      %c0_74 = arith.constant 0 : index
      %c0_75 = arith.constant 0 : index
      %360 = vector.load %arg8[%c0_74, %c0_75] : memref<8x1xf32, #tpu.memory_space<vmem>>, vector<8x1xf32>
      tpu.vector_store %arg8[%c0_74, %c0_75], %359 {strides = array<i32>} : memref<8x1xf32, #tpu.memory_space<vmem>>, vector<8x1xf32>,
    } else {
    }
    return
  }
  func.func @transform_0(%arg0: i32) -> (i32, i32) {
    %c0_i32 = arith.constant 0 : i32
    %c0_i32_0 = arith.constant 0 : i32
    %c0_i32_1 = arith.constant 0 : i32
    return %c0_i32, %c0_i32_0 : i32, i32
  }
  func.func @transform_1(%arg0: i32) -> (i32, i32, i32) {
    %c0_i32 = arith.constant 0 : i32
    %c0_i32_0 = arith.constant 0 : i32
    %c0_i32_1 = arith.constant 0 : i32
    return %arg0, %c0_i32, %c0_i32_0 : i32, i32, i32
  }
  func.func @transform_2(%arg0: i32) -> (i32, i32) {
    %c0_i32 = arith.constant 0 : i32
    %c0_i32_0 = arith.constant 0 : i32
    %c0_i32_1 = arith.constant 0 : i32
    return %c0_i32, %c0_i32_0 : i32, i32
  }
  func.func @transform_3(%arg0: i32) -> (i32, i32) {
    %c0_i32 = arith.constant 0 : i32
    %c0_i32_0 = arith.constant 0 : i32
    %c0_i32_1 = arith.constant 0 : i32
    return %c0_i32, %c0_i32_0 : i32, i32
  }
  func.func @transform_4(%arg0: i32) -> (i32, i32) {
    %c0_i32 = arith.constant 0 : i32
    %c0_i32_0 = arith.constant 0 : i32
    %c0_i32_1 = arith.constant 0 : i32
    return %c0_i32, %c0_i32_0 : i32, i32
  }
  func.func @transform_5(%arg0: i32) -> (i32, i32) {
    %c0_i32 = arith.constant 0 : i32
    %c0_i32_0 = arith.constant 0 : i32
    %c0_i32_1 = arith.constant 0 : i32
    return %c0_i32, %c0_i32_0 : i32, i32
  }
  func.func @transform_6(%arg0: i32) -> (i32, i32) {
    %c0_i32 = arith.constant 0 : i32
    %c0_i32_0 = arith.constant 0 : i32
    %c0_i32_1 = arith.constant 0 : i32
    return %c0_i32, %c0_i32_0 : i32, i32
  }
  func.func @transform_7(%arg0: i32) -> (i32, i32) {
    %c0_i32 = arith.constant 0 : i32
    %c0_i32_0 = arith.constant 0 : i32
    %c0_i32_1 = arith.constant 0 : i32
    return %c0_i32, %c0_i32_0 : i32, i32
  }
}

</mosaic_0001>

<bundles_post_ra>
// kernel: tpu_custom_call.1
= control target key start
LH: loop header
LB: loop body
LE: loop exit
PB: predicated region body
PF: predicated region fallthrough
CT: control target
= control target key end

     0   :  { %s7307_s0 = inlined_call_operand.vmem [shape: s32[16,1], index: 0, kind: input, shape index: {}]   ;;  %s7308_s1 = inlined_call_operand.hbm [shape: bf16[16,16,1024], index: 1, kind: input, shape index: {}]   ;;  %s7309_s2 = inlined_call_operand.hbm [shape: bf16[256,1024], index: 2, kind: input, shape index: {}]   ;;  %s7310_s3 = inlined_call_operand.hbm [shape: f32[256,512], index: 3, kind: input, shape index: {}]   ;;  %s7311_s4 = inlined_call_operand.vmem [shape: f32[1,512], index: 4, kind: input, shape index: {}]   ;;  %s7312_s5 = inlined_call_operand.vmem [shape: f32[1,512], index: 5, kind: input, shape index: {}]   ;;  %s7313_s6 = inlined_call_operand.<no memory space> [shape: f32[1,1], index: 6, kind: input, shape index: {}]   ;;  %s7314_s7 = inlined_call_operand.vmem [shape: f32[8,1], index: 7, kind: output, shape index: {}]  }
   0x1   :  { %v12_v0 = vstv %s7313_s6 }
   0x2   :  { %13 = vst [vmem:[#allocation4] sm:$0x1] %v12_v0 }
   0x3   :  { %14 = vsyncpa [#allocation6], 0 }
   0x4   :  { %16 = vsyncpa [#allocation6 + $0x1], 0 }
   0x5   :  { %17 = vsyncpa [#allocation8], 0  ;;  %s5238_s26 = smov 0   ;;  %s5240_s27 = smov 0  }
   0x6   :  { %s5242_s28 = smov 0   ;;  %s5244_s29 = smov 0  }
   0x7 LB: > { %s5257_s6 = sadd.s32 4294967295, %s5186_s29   ;;  %p64_p0 = scmp.ne.s32.totalorder %s5178_s27, %s5174_s26  ;;  %s5186_s29 = sphi %s5244_s29, %s8437_s29   ;;  %s5182_s28 = sphi %s5242_s28, %s8436_s28   ;;  %s5178_s27 = sphi %s5240_s27, %s8435_s27   ;;  %s5174_s26 = sphi %s5238_s26, %s8434_s26  }
   0x8   : > { %p7315_p1 = scmp.eq.s32.totalorder %s5257_s6, 0  ;;  %p4054_p2 = scmp.ge.s32.totalorder %s5186_s29, 1 }
   0x9   : > { %p201_p3 = scmp.lt.s32.totalorder %s5186_s29, 3  ;;  %s5188_s9 = smov [#allocation7]  }
   0xa   : > { %p5266_p5 = por %p7315_p1, %p64_p0  ;;  %s216_s10 = sshll.u32 %s5188_s9, 4  ;;  %s217_s10 = int_to_ptr.vmem [resolvable:$true] %s216_s10 }
   0xb   : > { %p5270_p6 = pnand %p4054_p2, %p201_p3  ;;  %s5189_s12 = smov [#allocation9]  }
   0xc   : > { %s7597_s30 = scalar_select %p5266_p5, 1, 0 }
   0xd   : > { %s7598_s8 = scalar_select %p5270_p6, 1, 0 }
   0xe   : > { %p4492_p7 = pneg %p5270_p6  ;;  %s229_s13 = sshll.u32 %s5189_s12, 4  ;;  %s5282_s13 = int_to_ptr.vmem [resolvable:$true] %s229_s13 }
   0xf   : > { %s5062_s16 = scalar_lea.hbm %s7309_s2, 16384 }
  0x10   : > { %p5278_p8 = pnand %p4492_p7, %p7315_p1  ;;  %p5063_p9 = scmp.ne.s32.totalorder %s7309_s2, %s5062_s16 }
  0x11   : > { %p5069_p13 = scmp.lt.u32.totalorder %s5062_s16, %s7309_s2 }
  0x12   : > { %p5064_p10 = pneg %p5278_p8 }
  0x14   : > { %p5065_p11 = pnand %p5064_p10, %p5063_p9 }
  0x16   : > { %p5066_p12 = pneg %p5065_p11 }
  0x18   : > { %p5071_p0 = pnand %p5069_p13, %p5066_p12 }
  0x1a   : > { %5074 = shalt.err (!%p5071_p0)
}
  0x1b   : > { %s5075_s21 = scalar_lea.vmem %s217_s10, 16384  ;;  %p5083_p4 = scmp.lt.s32.totalorder %s217_s10, %s217_s10 }
  0x1c   : > { %p5076_p2 = scmp.ne.s32.totalorder %s217_s10, %s5075_s21  ;;  %p5084_p1 = scmp.lt.s32.totalorder %s5075_s21, %s5075_s21 }
  0x1e   : > { %p5078_p3 = pnand %p5076_p2, %p5064_p10  ;;  %p5085_p5 = por %p5084_p1, %p5083_p4 }
  0x20   : > { %p5079_p7 = pneg %p5078_p3 }
  0x22   : > { %p5086_p6 = pnand %p5085_p5, %p5079_p7 }
  0x24   : > { %5089 = shalt.err (!%p5086_p6)
}
  0x25   : > { %s5190_s22 = smov 512   ;;  %s5191_s23 = smov 32  }
  0x26   : > { %4495 = dma.hbm_to_vmem [thread:$0]  (!%p5278_p8), %s7309_s2, 16384, %s217_s10, [#allocation8], %s5190_s22, %s5190_s22, %s5191_s23  }
  0x27   : > { %s5090_s12 = scalar_lea.hbm %s7310_s3, 16384 }
  0x28   : > { %p5091_p1 = scmp.ne.s32.totalorder %s7310_s3, %s5090_s12  ;;  %p5097_p6 = scmp.lt.u32.totalorder %s5090_s12, %s7310_s3 }
  0x2a   : > { %p5093_p4 = pnand %p5091_p1, %p5064_p10 }
  0x2c   : > { %p5094_p5 = pneg %p5093_p4 }
  0x2e   : > { %p5099_p9 = pnand %p5097_p6, %p5094_p5 }
  0x30   : > { %5102 = shalt.err (!%p5099_p9)
}
  0x31   : > { %s5103_s10 = scalar_lea.vmem %s5282_s13, 16384  ;;  %p5111_p0 = scmp.lt.s32.totalorder %s5282_s13, %s5282_s13 }
  0x32   : > { %p5104_p11 = scmp.ne.s32.totalorder %s5282_s13, %s5103_s10  ;;  %p5112_p2 = scmp.lt.s32.totalorder %s5103_s10, %s5103_s10 }
  0x34   : > { %p5106_p12 = pnand %p5104_p11, %p5064_p10  ;;  %p5113_p3 = por %p5112_p2, %p5111_p0 }
  0x36   : > { %p5107_p13 = pneg %p5106_p12 }
  0x38   : > { %p5114_p7 = pnand %p5113_p3, %p5107_p13 }
  0x3a   : > { %5117 = shalt.err (!%p5114_p7)
}
  0x3b   : > { %4498 = dma.hbm_to_vmem [thread:$0]  (!%p5278_p8), %s7310_s3, 16384, %s5282_s13, [#allocation8], %s5190_s22, %s5190_s22, %s5191_s23  }
  0x3c   : > { %s5338_s20 = sadd.s32 1, %s5186_s29   ;;  %s51_s11 = sadd.s32 1, %s5182_s28 }
  0x3d   : > { %s48_s21 = ssub.s32 %s5186_s29, %s5338_s20  ;;  %p58_p10 = scmp.ne.s32.totalorder %s5182_s28, %s5178_s27 }
  0x3e   : > { %p49_p1 = scmp.eq.s32.totalorder %s48_s21, 0  ;;  %p59_p4 = scmp.eq.s32.totalorder %s5186_s29, 0 }
  0x3f   : > { %p4505_p5 = scmp.lt.s32.totalorder %s5186_s29, 2  ;;  %s252_s24 = sand.u32 1, %s5182_s28  }
  0x40   : > { %s5349_s25 = scalar_select %p49_p1, %s5182_s28, %s51_s11  }
  0x41   : > { %p60_p6 = por %p59_p4, %p58_p10  ;;  %s4058_s26 = sshll.u32 %s252_s24, 9 }
  0x42   : > { %s4353_s9 = sshll.u32 %s5186_s29, 13  ;;  %s256_s13 = scalar_lea.vmem [#allocation5], %s4058_s26 }
  0x43   : > { %s5355_s15 = scalar_lea.hbm %s7308_s1, %s4353_s9  ;;  %s264_s16 = sshll.u32 %s256_s13, 4  ;;  %s5361_s16 = int_to_ptr.vmem [resolvable:$true] %s264_s16 }
  0x44   : > { %p5357_p8 = pnand %p4505_p5, %p60_p6  ;;  %s5363_s29 = scalar_lea.sflag [#allocation6], %s252_s24 }
  0x45   : > { %s5118_s10 = scalar_lea.hbm %s5355_s15, 8192  ;;  %s5123_s11 = scalar_lea.hbm %s7308_s1, 16384 }
  0x46   : > { %p5119_p9 = scmp.ne.s32.totalorder %s5355_s15, %s5118_s10  ;;  %p5120_p11 = pneg %p5357_p8 }
  0x47   : > { %p5124_p0 = scmp.lt.u32.totalorder %s5355_s15, %s7308_s1  ;;  %p5125_p2 = scmp.lt.u32.totalorder %s5123_s11, %s5118_s10 }
  0x48   : > { %p5121_p12 = pnand %p5120_p11, %p5119_p9  ;;  %p5127_p7 = scmp.lt.u32.totalorder %s5118_s10, %s5355_s15 }
  0x49   : > { %p5126_p3 = por %p5125_p2, %p5124_p0 }
  0x4a   : > { %p5122_p13 = pneg %p5121_p12 }
  0x4b   : > { %p5128_p10 = por %p5127_p7, %p5126_p3 }
  0x4d   : > { %p5129_p1 = pnand %p5128_p10, %p5122_p13 }
  0x4f   : > { %5132 = shalt.err (!%p5129_p1)
}
  0x50   : > { %s5133_s24 = scalar_lea.vmem %s5361_s16, 8192  ;;  %s5192_s9 = smov [#allocation5]  }
  0x51   : > { %p5134_p4 = scmp.ne.s32.totalorder %s5361_s16, %s5133_s24  ;;  %s5138_s12 = sshll.u32 %s5192_s9, 4  ;;  %s5139_s12 = int_to_ptr.vmem [resolvable:$false] %s5138_s12 }
  0x52   : > { %s5140_s14 = scalar_lea.vmem %s5139_s12, 16384  ;;  %p5141_p9 = scmp.lt.s32.totalorder %s5361_s16, %s5139_s12 }
  0x53   : > { %p5136_p5 = pnand %p5134_p4, %p5120_p11  ;;  %p5142_p12 = scmp.lt.s32.totalorder %s5140_s14, %s5133_s24 }
  0x55   : > { %p5137_p6 = pneg %p5136_p5  ;;  %p5143_p0 = por %p5142_p12, %p5141_p9 }
  0x57   : > { %p5144_p2 = pnand %p5143_p0, %p5137_p6 }
  0x59   : > { %5147 = shalt.err (!%p5144_p2)
}
  0x5a   : > { %4502 = dma.hbm_to_vmem [thread:$0]  (!%p5357_p8), %s5355_s15, 8192, %s5361_s16, %s5363_s29, %s5190_s22, %s5190_s22, %s5191_s23  }
  0x5b   : > { %p7601_p11 = scmp.ne.s32.totalorder %s7598_s8, 0 }
  0x5d   : > { %276 = sbr.rel (%p7601_p11) target bundleno = 3149 (0xc4d), region = 48 }
  0x64   : > { %s278_s13 = sand.u32 1, %s5178_s27   ;;  %p7602_p13 = scmp.ne.s32.totalorder %s7597_s30, 0 }
  0x65   : > { %s4063_s10 = sshll.u32 %s278_s13, 9  ;;  %s279_s18 = scalar_lea.sflag [#allocation6], %s278_s13 }
  0x66   : > { %s5397_s19 = scalar_lea.vmem [#allocation5], %s4063_s10 }
  0x67   : > { %5165 = dma.done.wait (%p7602_p13), %s279_s18, 8192  }
  0x68   : > { %5167 = vsyncadd (%p7602_p13), %s279_s18, 4294959104  ;;  %p7603_p3 = scmp.eq.s32.totalorder %s5257_s6, 0 }
  0x6a   : > { %5169 = dma.done.wait (%p7603_p3), [#allocation8], 32768   ;;  %p7604_p8 = pmov %p7603_p3 }
  0x6b   : > { %p7605_p7 = scmp.ne.s32.totalorder %s5257_s6, 0 }
  0x6c   : > { %5171 = vsyncadd (%p7604_p8), [#allocation8], 4294934528  ;;  %v5193_v1 = vmov (!%p7605_p7), 0.0  }
  0x6d   : > { %320 = sbr.rel (%p7605_p7) target bundleno = 116 (0x74), region = 64  ;;  %321 = vst [vmem:[#allocation2] sm:$0xff] (!%p7605_p7), %v5193_v1  ;;  %322 = vst [vmem:[#allocation2 + $0x8] sm:$0xff] (!%p7605_p7), %v5193_v1 }
  0x6e   : > { %323 = vst [vmem:[#allocation2 + $0x10] sm:$0xff] (!%p7605_p7), %v5193_v1  ;;  %324 = vst [vmem:[#allocation2 + $0x18] sm:$0xff] (!%p7605_p7), %v5193_v1 }
  0x6f   : > { %325 = vst [vmem:[#allocation3] sm:$0xff] (!%p7605_p7), %v5193_v1  ;;  %326 = vst [vmem:[#allocation3 + $0x8] sm:$0xff] (!%p7605_p7), %v5193_v1 }
  0x70   : > { %327 = vst [vmem:[#allocation3 + $0x10] sm:$0xff] (!%p7605_p7), %v5193_v1  ;;  %328 = vst [vmem:[#allocation3 + $0x18] sm:$0xff] (!%p7605_p7), %v5193_v1 }
  0x74 PF: > { %v332_v2 = vld [vmem:[#allocation7] sm:$0xff]  ;;  %v333_v4 = vld [vmem:[#allocation7 + $0x8] sm:$0xff]  ;;  %v7328_v28 = vmov 0   ;;  %s5538_s30 = sshll.u32 %s5257_s6, 3  ;;  %p4348_p10 = scmp.ne.s32.totalorder %s5257_s6, 1 }
  0x75   : > { %v336_v3 = vld [vmem:[#allocation7 + $0x20] sm:$0xff]  ;;  %v337_v6 = vld [vmem:[#allocation7 + $0x28] sm:$0xff]  ;;  %4546 = vset.pattern.permute.xlu0 %v7328_v28  ;;  %4547 = vset.pattern.permute.xlu1 %v7328_v28  ;;  %v463_v57 = vld [vmem:[#allocation2 + $0x18] sm:$0xff]  ;;  %s2035_s8 = sadd.s32 2, %s5538_s30  ;;  %s2352_s17 = sadd.s32 3, %s5538_s30 }
  0x76   : > { %v5409_v5 = vcombine.high %v332_v2, %v336_v3  ;;  %v5411_v7 = vcombine.low %v332_v2, %v336_v3  ;;  %v340_v8 = vld [vmem:[#allocation7 + $0x40] sm:$0xff]  ;;  %v5413_v10 = vcombine.high %v333_v4, %v337_v6  ;;  %v5415_v11 = vcombine.low %v333_v4, %v337_v6  ;;  %v341_v13 = vld [vmem:[#allocation7 + $0x48] sm:$0xff]  ;;  %s2669_s29 = sadd.s32 4, %s5538_s30  ;;  %s2986_s11 = sadd.s32 5, %s5538_s30 }
  0x77   : > { %v344_v9 = vld [vmem:[#allocation7 + $0x60] sm:$0xff]  ;;  %v345_v14 = vld [vmem:[#allocation7 + $0x68] sm:$0xff]  ;;  %s3303_s21 = sadd.s32 6, %s5538_s30  ;;  %s3620_s26 = sadd.s32 7, %s5538_s30 }
  0x78   : > { %7606 = vst [vmem:[#allocation12_spill] sm:$0xff] %v5409_v5  ;;  %7607 = vst [vmem:[#allocation13_spill] sm:$0xff] %v5411_v7  ;;  %v5417_v12 = vcombine.high %v340_v8, %v344_v9  ;;  %v348_v15 = vld [vmem:[#allocation7 + $0x80] sm:$0xff]  ;;  %1134 = vmatprep.subr.bf16.mxu0 %v5409_v5  ;;  %v5420_v16 = vcombine.high %v341_v13, %v345_v14  ;;  %v349_v18 = vld [vmem:[#allocation7 + $0x88] sm:$0xff]  ;;  %1177 = vmatprep.subr.bf16.mxu1 %v5413_v10  ;;  %s1718_s24 = sadd.s32 1, %s5538_s30 }
  0x79   : > { %7608 = vst [vmem:[#allocation14_spill] sm:$0xff] %v5413_v10  ;;  %7609 = vst [vmem:[#allocation15_spill] sm:$0xff] %v5415_v11  ;;  %v352_v17 = vld [vmem:[#allocation7 + $0xa0] sm:$0xff]  ;;  %v353_v19 = vld [vmem:[#allocation7 + $0xa8] sm:$0xff]  ;;  %1135 = vmatpush1.bf16.msra.mxu0 %v5411_v7  ;;  %v5424_v20 = vcombine.low %v340_v8, %v344_v9  ;;  %1178 = vmatpush1.bf16.msra.mxu1 %v5415_v11  ;;  %v5428_v21 = vcombine.low %v341_v13, %v345_v14 }
  0x7a   : > { %7610 = vst [vmem:[#allocation16_spill] sm:$0xff] %v5417_v12  ;;  %7611 = vst [vmem:[#allocation17_spill] sm:$0xff] %v5420_v16  ;;  %1136 = vmatprep.subr.bf16.mxu0 %v5417_v12  ;;  %v5430_v22 = vcombine.high %v348_v15, %v352_v17  ;;  %1179 = vmatprep.subr.bf16.mxu1 %v5420_v16  ;;  %v5433_v23 = vcombine.high %v349_v18, %v353_v19  ;;  %v356_v24 = vld [vmem:[#allocation7 + $0xc0] sm:$0xff]  ;;  %v357_v26 = vld [vmem:[#allocation7 + $0xc8] sm:$0xff] }
  0x7b   : > { %7612 = vst [vmem:[#allocation18_spill] sm:$0xff] %v5424_v20  ;;  %7613 = vst [vmem:[#allocation19_spill] sm:$0xff] %v5428_v21  ;;  %v360_v25 = vld [vmem:[#allocation7 + $0xe0] sm:$0xff]  ;;  %v361_v27 = vld [vmem:[#allocation7 + $0xe8] sm:$0xff]  ;;  %v5438_v29 = vcombine.low %v348_v15, %v352_v17  ;;  %v5442_v30 = vcombine.low %v349_v18, %v353_v19 }
  0x7c   : > { %7614 = vst [vmem:[#allocation20_spill] sm:$0xff] %v5430_v22  ;;  %7615 = vst [vmem:[#allocation21_spill] sm:$0xff] %v5433_v23  ;;  %v5444_v31 = vcombine.high %v356_v24, %v360_v25  ;;  %v5447_v32 = vcombine.high %v357_v26, %v361_v27  ;;  %v364_v33 = vld [vmem:[#allocation7 + $0x100] sm:$0xff]  ;;  %v365_v35 = vld [vmem:[#allocation7 + $0x108] sm:$0xff]  ;;  %v5450_v37 = vcombine.low %v356_v24, %v360_v25 }
  0x7d   : > { %1137 = vmatpush1.bf16.msra.mxu0 %v5424_v20  ;;  %7616 = vst [vmem:[#allocation22_spill] sm:$0xff] %v5438_v29  ;;  %1180 = vmatpush1.bf16.msra.mxu1 %v5428_v21  ;;  %7617 = vst [vmem:[#allocation23_spill] sm:$0xff] %v5442_v30  ;;  %v368_v34 = vld [vmem:[#allocation7 + $0x120] sm:$0xff]  ;;  %v369_v36 = vld [vmem:[#allocation7 + $0x128] sm:$0xff]  ;;  %v5454_v38 = vcombine.low %v357_v26, %v361_v27 }
  0x7e   : > { %1138 = vmatprep.subr.bf16.mxu0 %v5430_v22  ;;  %7618 = vst [vmem:[#allocation24_spill] sm:$0xff] %v5444_v31  ;;  %1181 = vmatprep.subr.bf16.mxu1 %v5433_v23  ;;  %7619 = vst [vmem:[#allocation25_spill] sm:$0xff] %v5447_v32  ;;  %v5456_v39 = vcombine.high %v364_v33, %v368_v34  ;;  %v5459_v40 = vcombine.high %v365_v35, %v369_v36  ;;  %v372_v41 = vld [vmem:[#allocation7 + $0x140] sm:$0xff]  ;;  %v373_v43 = vld [vmem:[#allocation7 + $0x148] sm:$0xff] }
  0x7f   : > { %7620 = vst [vmem:[#allocation26_spill] sm:$0xff] %v5450_v37  ;;  %7621 = vst [vmem:[#allocation27_spill] sm:$0xff] %v5454_v38  ;;  %v376_v42 = vld [vmem:[#allocation7 + $0x160] sm:$0xff]  ;;  %v377_v44 = vld [vmem:[#allocation7 + $0x168] sm:$0xff]  ;;  %v5462_v45 = vcombine.low %v364_v33, %v368_v34  ;;  %v5466_v46 = vcombine.low %v365_v35, %v369_v36 }
  0x80   : > { %7622 = vst [vmem:[#allocation28_spill] sm:$0xff] %v5456_v39  ;;  %7623 = vst [vmem:[#allocation29_spill] sm:$0xff] %v5459_v40  ;;  %v5468_v47 = vcombine.high %v372_v41, %v376_v42  ;;  %v5471_v48 = vcombine.high %v373_v43, %v377_v44  ;;  %v380_v49 = vld [vmem:[#allocation7 + $0x180] sm:$0xff]  ;;  %v381_v51 = vld [vmem:[#allocation7 + $0x188] sm:$0xff]  ;;  %v5474_v53 = vcombine.low %v372_v41, %v376_v42 }
  0x81   : > { %1139 = vmatpush1.bf16.msra.mxu0 %v5438_v29  ;;  %1182 = vmatpush1.bf16.msra.mxu1 %v5442_v30  ;;  %7624 = vst [vmem:[#allocation30_spill] sm:$0xff] %v5462_v45  ;;  %7625 = vst [vmem:[#allocation31_spill] sm:$0xff] %v5466_v46  ;;  %v384_v50 = vld [vmem:[#allocation7 + $0x1a0] sm:$0xff]  ;;  %v385_v52 = vld [vmem:[#allocation7 + $0x1a8] sm:$0xff]  ;;  %v5478_v54 = vcombine.low %v373_v43, %v377_v44 }
  0x82   : > { %1140 = vmatprep.subr.bf16.mxu0 %v5444_v31  ;;  %1183 = vmatprep.subr.bf16.mxu1 %v5447_v32  ;;  %7626 = vst [vmem:[#allocation32_spill] sm:$0xff] %v5468_v47  ;;  %7627 = vst [vmem:[#allocation33_spill] sm:$0xff] %v5471_v48  ;;  %v5480_v55 = vcombine.high %v380_v49, %v384_v50  ;;  %v461_v56 = vld [vmem:[#allocation2 + $0x8] sm:$0xff]  ;;  %v5483_v58 = vcombine.high %v381_v51, %v385_v52 }
  0x83   : > { %7628 = vst [vmem:[#allocation34_spill] sm:$0xff] %v5474_v53  ;;  %7629 = vst [vmem:[#allocation35_spill] sm:$0xff] %v5478_v54  ;;  %v388_v59 = vld [vmem:[#allocation7 + $0x1c0] sm:$0xff]  ;;  %v5485_v61 = vpack.c.bf16 %v463_v57, %v461_v56  ;;  %v389_v62 = vld [vmem:[#allocation7 + $0x1c8] sm:$0xff]  ;;  %v5488_v0 = vcombine.low %v380_v49, %v384_v50  ;;  %v5493_v1 = vcombine.low %v381_v51, %v385_v52 }
  0x84   : > { %7630 = vst [vmem:[#allocation36_spill] sm:$0xff] %v5480_v55  ;;  %7631 = vst [vmem:[#allocation37_spill] sm:$0xff] %v5483_v58  ;;  %v392_v60 = vld [vmem:[#allocation7 + $0x1e0] sm:$0xff]  ;;  %v393_v63 = vld [vmem:[#allocation7 + $0x1e8] sm:$0xff] }
  0x85   : > { %1141 = vmatpush1.bf16.msra.mxu0 %v5450_v37  ;;  %1184 = vmatpush1.bf16.msra.mxu1 %v5454_v38  ;;  %7632 = vst [vmem:[#allocation38_spill] sm:$0xff] %v5488_v0  ;;  %7633 = vst [vmem:[#allocation39_spill] sm:$0xff] %v5493_v1  ;;  %v5495_v2 = vcombine.high %v388_v59, %v392_v60  ;;  %v5498_v3 = vcombine.high %v389_v62, %v393_v63  ;;  %v396_v4 = vld [vmem:[#allocation7 + $0x200] sm:$0xff]  ;;  %v397_v8 = vld [vmem:[#allocation7 + $0x208] sm:$0xff] }
  0x86   : > { %1142 = vmatprep.subr.bf16.mxu0 %v5456_v39  ;;  %1185 = vmatprep.subr.bf16.mxu1 %v5459_v40  ;;  %v400_v6 = vld [vmem:[#allocation7 + $0x220] sm:$0xff]  ;;  %v401_v9 = vld [vmem:[#allocation7 + $0x228] sm:$0xff]  ;;  %v5502_v13 = vcombine.low %v388_v59, %v392_v60  ;;  %v5506_v14 = vcombine.low %v389_v62, %v393_v63 }
  0x87   : > { %1166 = vmatprep.mubr.bf16.mxu0 %v5485_v61  ;;  %7634 = vst [vmem:[#allocation40_spill] sm:$0xff] %v5495_v2  ;;  %7635 = vst [vmem:[#allocation41_spill] sm:$0xff] %v5498_v3  ;;  %1209 = vmatprep.mubr.bf16.mxu1 %v5485_v61  ;;  %v5508_v15 = vcombine.high %v396_v4, %v400_v6  ;;  %v5511_v17 = vcombine.high %v397_v8, %v401_v9  ;;  %v404_v18 = vld [vmem:[#allocation7 + $0x240] sm:$0xff]  ;;  %v405_v24 = vld [vmem:[#allocation7 + $0x248] sm:$0xff] }
  0x88   : > { %7636 = vst [vmem:[#allocation42_spill] sm:$0xff] %v5502_v13  ;;  %7637 = vst [vmem:[#allocation43_spill] sm:$0xff] %v5506_v14  ;;  %v408_v19 = vld [vmem:[#allocation7 + $0x260] sm:$0xff]  ;;  %v409_v25 = vld [vmem:[#allocation7 + $0x268] sm:$0xff]  ;;  %v5514_v26 = vcombine.low %v396_v4, %v400_v6  ;;  %v5518_v27 = vcombine.low %v397_v8, %v401_v9  ;;  %v1402_v8 = vstv %s5538_s30 }
  0x89   : > { %1143 = vmatpush1.bf16.msra.mxu0 %v5462_v45  ;;  %1186 = vmatpush1.bf16.msra.mxu1 %v5466_v46  ;;  %7638 = vst [vmem:[#allocation44_spill] sm:$0xff] %v5508_v15  ;;  %7639 = vst [vmem:[#allocation45_spill] sm:$0xff] %v5511_v17  ;;  %v5520_v33 = vcombine.high %v404_v18, %v408_v19  ;;  %v5523_v34 = vcombine.high %v405_v24, %v409_v25  ;;  %v412_v35 = vld [vmem:[#allocation7 + $0x280] sm:$0xff]  ;;  %v413_v41 = vld [vmem:[#allocation7 + $0x288] sm:$0xff] }
  0x8a   : > { %1144 = vmatprep.subr.bf16.mxu0 %v5468_v47  ;;  %1187 = vmatprep.subr.bf16.mxu1 %v5471_v48  ;;  %7640 = vst [vmem:[#allocation46_spill] sm:$0xff] %v5514_v26  ;;  %7641 = vst [vmem:[#allocation47_spill] sm:$0xff] %v5518_v27  ;;  %v416_v36 = vld [vmem:[#allocation7 + $0x2a0] sm:$0xff]  ;;  %v417_v42 = vld [vmem:[#allocation7 + $0x2a8] sm:$0xff]  ;;  %v5526_v43 = vcombine.low %v404_v18, %v408_v19  ;;  %v5530_v44 = vcombine.low %v405_v24, %v409_v25 }
  0x8b   : > { %7642 = vst [vmem:[#allocation48_spill] sm:$0xff] %v5520_v33  ;;  %7643 = vst [vmem:[#allocation49_spill] sm:$0xff] %v5523_v34  ;;  %v5532_v49 = vcombine.high %v412_v35, %v416_v36  ;;  %v5535_v50 = vcombine.high %v413_v41, %v417_v42  ;;  %v420_v51 = vld [vmem:[#allocation7 + $0x2c0] sm:$0xff]  ;;  %v421_v56 = vld [vmem:[#allocation7 + $0x2c8] sm:$0xff]  ;;  %v5541_v59 = vcombine.low %v412_v35, %v416_v36 }
  0x8c   : > { %7644 = vst [vmem:[#allocation50_spill] sm:$0xff] %v5526_v43  ;;  %7645 = vst [vmem:[#allocation51_spill] sm:$0xff] %v5530_v44  ;;  %v424_v52 = vld [vmem:[#allocation7 + $0x2e0] sm:$0xff]  ;;  %v425_v57 = vld [vmem:[#allocation7 + $0x2e8] sm:$0xff]  ;;  %v5545_v60 = vcombine.low %v413_v41, %v417_v42 }
  0x8d   : > { %1145 = vmatpush1.bf16.msra.mxu0 %v5474_v53  ;;  %1188 = vmatpush1.bf16.msra.mxu1 %v5478_v54  ;;  %7646 = vst [vmem:[#allocation52_spill] sm:$0xff] %v5532_v49  ;;  %7647 = vst [vmem:[#allocation53_spill] sm:$0xff] %v5535_v50  ;;  %v5547_v62 = vcombine.high %v420_v51, %v424_v52  ;;  %v5550_v63 = vcombine.high %v421_v56, %v425_v57  ;;  %v428_v4 = vld [vmem:[#allocation7 + $0x300] sm:$0xff]  ;;  %v429_v9 = vld [vmem:[#allocation7 + $0x308] sm:$0xff] }
  0x8e   : > { %1146 = vmatprep.subr.bf16.mxu0 %v5480_v55  ;;  %1189 = vmatprep.subr.bf16.mxu1 %v5483_v58  ;;  %7648 = vst [vmem:[#allocation54_spill] sm:$0xff] %v5541_v59  ;;  %7649 = vst [vmem:[#allocation55_spill] sm:$0xff] %v5545_v60  ;;  %v432_v6 = vld [vmem:[#allocation7 + $0x320] sm:$0xff]  ;;  %v433_v18 = vld [vmem:[#allocation7 + $0x328] sm:$0xff]  ;;  %v5555_v19 = vcombine.low %v420_v51, %v424_v52  ;;  %v5557_v24 = vcombine.low %v421_v56, %v425_v57  ;;  %v5579_v56 = vstv %s2035_s8 }
  0x8f   : > { %7650 = vst [vmem:[#allocation56_spill] sm:$0xff] %v5547_v62  ;;  %7651 = vst [vmem:[#allocation57_spill] sm:$0xff] %v5550_v63  ;;  %v5562_v25 = vld [vmem:[%s7307_s0] sm:$0xff]  ;;  %v5567_v35 = vld [vmem:[%s7307_s0 + $0x8] sm:$0xff]  ;;  %v5571_v36 = vcombine.high %v428_v4, %v432_v6  ;;  %v5576_v41 = vcombine.high %v429_v9, %v433_v18 }
  0x90   : > { %7652 = vst [vmem:[#allocation58_spill] sm:$0xff] %v5555_v19  ;;  %7653 = vst [vmem:[#allocation59_spill] sm:$0xff] %v5557_v24  ;;  %vm1403_vm0 = vcmp.lt.s32.totalorder %v1402_v8, %v5562_v25  ;;  %vm1404_vm1 = vcmp.lt.s32.totalorder %v1402_v8, %v5567_v35  ;;  %v436_v42 = vld [vmem:[#allocation7 + $0x340] sm:$0xff]  ;;  %v437_v57 = vld [vmem:[#allocation7 + $0x348] sm:$0xff]  ;;  %vm2037_vm2 = vcmp.lt.s32.totalorder %v5579_v56, %v5562_v25 }
  0x91   : > { %1147 = vmatpush1.bf16.msra.mxu0 %v5488_v0  ;;  %1190 = vmatpush1.bf16.msra.mxu1 %v5493_v1  ;;  %7654 = vst [vmem:[#allocation60_spill] sm:$0xff] %v5567_v35  ;;  %7655 = vst [vmem:[#allocation61_spill] sm:$0xff] %v5571_v36  ;;  %v440_v51 = vld [vmem:[#allocation7 + $0x360] sm:$0xff]  ;;  %v1405_v52 = vsel %vm1403_vm0, 1, %v7328_v28  ;;  %v1406_v8 = vsel %vm1404_vm1, 1, %v7328_v28  ;;  %v5588_v35 = vcombine.low %v429_v9, %v433_v18  ;;  %v445_v28 = vld [vmem:[#allocation7 + $0x388] sm:$0xff] }
  0x92   : > { %1148 = vmatprep.subr.bf16.mxu0 %v5495_v2  ;;  %1191 = vmatprep.subr.bf16.mxu1 %v5498_v3  ;;  %7656 = vst [vmem:[#allocation62_spill] sm:$0xff] %v5576_v41  ;;  %7657 = vst [vmem:[#allocation63_spill] sm:$0xff] %v5579_v56  ;;  %v5601_v9 = vcombine.low %v436_v42, %v440_v51  ;;  %v7664_v18 = vmov 0  }
  0x93   : > { %1408 = vperm.xlu0 %4546, %v1405_v52   ;;  %7659 = vst [vmem:[#allocation65_spill] sm:$0xff] %v5588_v35 }
  0x94   : > { %7663 = vst [vmem:[#allocation69_spill] sm:$0xff] %v5601_v9 }
  0x95   : > { %1149 = vmatpush1.bf16.msra.mxu0 %v5502_v13  ;;  %1192 = vmatpush1.bf16.msra.mxu1 %v5506_v14 }
  0x96   : > { %1150 = vmatprep.subr.bf16.mxu0 %v5508_v15  ;;  %1193 = vmatprep.subr.bf16.mxu1 %v5511_v17 }
  0x97   : > { %1411 = vperm.xlu0 %4546, %v1406_v8  }
  0x99   : > { %1151 = vmatpush1.bf16.msra.mxu0 %v5514_v26  ;;  %1194 = vmatpush1.bf16.msra.mxu1 %v5518_v27 }
  0x9a   : > { %1152 = vmatprep.subr.bf16.mxu0 %v5520_v33  ;;  %1195 = vmatprep.subr.bf16.mxu1 %v5523_v34 }
  0x9d   : > { %1153 = vmatpush1.bf16.msra.mxu0 %v5526_v43  ;;  %1196 = vmatpush1.bf16.msra.mxu1 %v5530_v44 }
  0x9e   : > { %1154 = vmatprep.subr.bf16.mxu0 %v5532_v49  ;;  %1197 = vmatprep.subr.bf16.mxu1 %v5535_v50  ;;  %v457_v50 = vld [vmem:[#allocation7 + $0x3e8] sm:$0xff] }
  0xa1   : > { %1155 = vmatpush1.bf16.msra.mxu0 %v5541_v59  ;;  %1198 = vmatpush1.bf16.msra.mxu1 %v5545_v60  ;;  %v441_v60 = vld [vmem:[#allocation7 + $0x368] sm:$0xff] }
  0xa2   : > { %1156 = vmatprep.subr.bf16.mxu0 %v5547_v62  ;;  %1199 = vmatprep.subr.bf16.mxu1 %v5550_v63  ;;  %v5583_v62 = vcombine.low %v428_v4, %v432_v6  ;;  %v5590_v63 = vcombine.high %v436_v42, %v440_v51  ;;  %v5595_v52 = vcombine.high %v437_v57, %v441_v60  ;;  %v448_v4 = vld [vmem:[#allocation7 + $0x3a0] sm:$0xff]  ;;  %v5597_v6 = vstv %s2352_s17  ;;  %v449_v59 = vld [vmem:[#allocation7 + $0x3a8] sm:$0xff] }
  0xa3   : > { %7662 = vst [vmem:[#allocation68_spill] sm:$0xff] %v5597_v6  ;;  %v5606_v56 = vcombine.low %v437_v57, %v441_v60  ;;  %vm2354_vm3 = vcmp.lt.s32.totalorder %v5597_v6, %v5562_v25  ;;  %v5613_v8 = vcombine.high %v445_v28, %v449_v59  ;;  %v456_v42 = vld [vmem:[#allocation7 + $0x3e0] sm:$0xff]  ;;  %v5615_v51 = vstv %s2669_s29 }
  0xa4   : > { %7658 = vst [vmem:[#allocation64_spill] sm:$0xff] %v5583_v62  ;;  %7660 = vst [vmem:[#allocation66_spill] sm:$0xff] %v5590_v63  ;;  %v2356_v57 = vsel %vm2354_vm3, 1, %v7664_v18  ;;  %v5624_v6 = vcombine.low %v445_v28, %v449_v59  ;;  %vm2671_vm4 = vcmp.lt.s32.totalorder %v5615_v51, %v5562_v25  ;;  %v5639_v59 = vld [vmem:[#allocation2] sm:$0xff] }
  0xa5   : > { %1157 = vmatpush1.bf16.msra.mxu0 %v5555_v19  ;;  %1200 = vmatpush1.bf16.msra.mxu1 %v5557_v24  ;;  %7661 = vst [vmem:[#allocation67_spill] sm:$0xff] %v5595_v52  ;;  %v444_v19 = vld [vmem:[#allocation7 + $0x380] sm:$0xff]  ;;  %7665 = vst [vmem:[#allocation70_spill] sm:$0xff] %v5606_v56  ;;  %v453_v24 = vld [vmem:[#allocation7 + $0x3c8] sm:$0xff] }
  0xa6   : > { %1158 = vmatprep.subr.bf16.mxu0 %v5571_v36  ;;  %1201 = vmatprep.subr.bf16.mxu1 %v5576_v41  ;;  %v2039_v36 = vsel %vm2037_vm2, 1, %v7664_v18  ;;  %v5608_v41 = vcombine.high %v444_v19, %v448_v4  ;;  %7667 = vst [vmem:[#allocation72_spill] sm:$0xff] %v5613_v8  ;;  %7668 = vst [vmem:[#allocation73_spill] sm:$0xff] %v5615_v51  ;;  %v5619_v60 = vcombine.low %v444_v19, %v448_v4  ;;  %v338_v19 = vld [vmem:[#allocation7 + $0x30] sm:$0xff] }
  0xa7   : > { %2042 = vperm.xlu0 %4546, %v2039_v36   ;;  %7670 = vst [vmem:[#allocation75_spill] sm:$0xff] %v5624_v6  ;;  %v5631_v36 = vcombine.high %v453_v24, %v457_v50  ;;  %v5633_v4 = vstv %s2986_s11  ;;  %7675 = vst [vmem:[#allocation80_spill] sm:$0xff] %v5639_v59  ;;  %v2673_v51 = vsel %vm2671_vm4, 1, %v7664_v18 }
  0xa8   : > { %7666 = vst [vmem:[#allocation71_spill] sm:$0xff] %v5608_v41  ;;  %7669 = vst [vmem:[#allocation74_spill] sm:$0xff] %v5619_v60  ;;  %vm2988_vm5 = vcmp.lt.s32.totalorder %v5633_v4, %v5562_v25 }
  0xa9   : > { %1159 = vmatpush1.bf16.msra.mxu0 %v5583_v62  ;;  %1202 = vmatpush1.bf16.msra.mxu1 %v5588_v35  ;;  %v452_v62 = vld [vmem:[#allocation7 + $0x3c0] sm:$0xff]  ;;  %7672 = vst [vmem:[#allocation77_spill] sm:$0xff] %v5631_v36  ;;  %7673 = vst [vmem:[#allocation78_spill] sm:$0xff] %v5633_v4  ;;  %v339_v35 = vld [vmem:[#allocation7 + $0x38] sm:$0xff]  ;;  %v2990_v4 = vsel %vm2988_vm5, 1, %v7664_v18 }
  0xaa   : > { %1160 = vmatprep.subr.bf16.mxu0 %v5590_v63  ;;  %1203 = vmatprep.subr.bf16.mxu1 %v5595_v52  ;;  %v5626_v52 = vcombine.high %v452_v62, %v456_v42  ;;  %v335_v63 = vld [vmem:[#allocation7 + $0x18] sm:$0xff]  ;;  %v5637_v28 = vcombine.low %v452_v62, %v456_v42  ;;  %v342_v42 = vld [vmem:[#allocation7 + $0x50] sm:$0xff] }
  0xab   : > { %2359 = vperm.xlu0 %4546, %v2356_v57   ;;  %v5653_v62 = vcombine.high %v335_v63, %v339_v35  ;;  %v346_v57 = vld [vmem:[#allocation7 + $0x70] sm:$0xff] }
  0xac   : > { %7671 = vst [vmem:[#allocation76_spill] sm:$0xff] %v5626_v52  ;;  %7674 = vst [vmem:[#allocation79_spill] sm:$0xff] %v5637_v28  ;;  %v5670_v49 = vcombine.high %v342_v42, %v346_v57 }
  0xad   : > { %1161 = vmatpush1.bf16.msra.mxu0 %v5601_v9  ;;  %1204 = vmatpush1.bf16.msra.mxu1 %v5606_v56  ;;  %v334_v9 = vld [vmem:[#allocation7 + $0x10] sm:$0xff]  ;;  %7679 = vst [vmem:[#allocation84_spill] sm:$0xff] %v5653_v62 }
  0xae   : > { %1162 = vmatprep.subr.bf16.mxu0 %v5608_v41  ;;  %1205 = vmatprep.subr.bf16.mxu1 %v5613_v8  ;;  %v5641_v41 = vld [vmem:[#allocation2 + $0x10] sm:$0xff]  ;;  %v5646_v8 = vcombine.low %v453_v24, %v457_v50  ;;  %v5648_v56 = vcombine.high %v334_v9, %v338_v19  ;;  %v347_v50 = vld [vmem:[#allocation7 + $0x78] sm:$0xff]  ;;  %v5663_v24 = vcombine.low %v334_v9, %v338_v19  ;;  %v5677_v19 = vstv %s3620_s26 }
  0xaf   : > { %7676 = vst [vmem:[#allocation81_spill] sm:$0xff] %v5641_v41  ;;  %2676 = vperm.xlu0 %4546, %v2673_v51   ;;  %7683 = vst [vmem:[#allocation88_spill] sm:$0xff] %v5670_v49  ;;  %v354_v9 = vld [vmem:[#allocation7 + $0xb0] sm:$0xff]  ;;  %vm3622_vm7 = vcmp.lt.s32.totalorder %v5677_v19, %v5562_v25 }
  0xb0   : > { %7677 = vst [vmem:[#allocation82_spill] sm:$0xff] %v5646_v8  ;;  %7678 = vst [vmem:[#allocation83_spill] sm:$0xff] %v5648_v56 }
  0xb1   : > { %1163 = vmatpush1.bf16.msra.mxu0 %v5619_v60  ;;  %1206 = vmatpush1.bf16.msra.mxu1 %v5624_v6  ;;  %v5655_v60 = vstv %s3303_s21  ;;  %v5659_v6 = vpack.c.bf16 %v5641_v41, %v5639_v59  ;;  %7681 = vst [vmem:[#allocation86_spill] sm:$0xff] %v5663_v24  ;;  %v350_v59 = vld [vmem:[#allocation7 + $0x90] sm:$0xff]  ;;  %7685 = vst [vmem:[#allocation90_spill] sm:$0xff] %v5677_v19  ;;  %v351_v41 = vld [vmem:[#allocation7 + $0x98] sm:$0xff] }
  0xb2   : > { %1164 = vmatprep.subr.bf16.mxu0 %v5626_v52  ;;  %1207 = vmatprep.subr.bf16.mxu1 %v5631_v36  ;;  %7680 = vst [vmem:[#allocation85_spill] sm:$0xff] %v5655_v60  ;;  %v343_v52 = vld [vmem:[#allocation7 + $0x58] sm:$0xff]  ;;  %v5668_v36 = vcombine.low %v335_v63, %v339_v35  ;;  %vm3305_vm6 = vcmp.lt.s32.totalorder %v5655_v60, %v5562_v25 }
  0xb3   : > { %v5675_v51 = vcombine.high %v343_v52, %v347_v50  ;;  %2993 = vperm.xlu0 %4546, %v2990_v4   ;;  %v5682_v63 = vcombine.low %v342_v42, %v346_v57  ;;  %v3307_v35 = vsel %vm3305_vm6, 1, %v7664_v18  ;;  %v5687_v60 = vcombine.low %v343_v52, %v347_v50  ;;  %v362_v42 = vld [vmem:[#allocation7 + $0xf0] sm:$0xff]  ;;  %v359_v57 = vld [vmem:[#allocation7 + $0xd8] sm:$0xff] }
  0xb4   : > { %7682 = vst [vmem:[#allocation87_spill] sm:$0xff] %v5668_v36  ;;  %v5699_v52 = vcombine.low %v350_v59, %v354_v9  ;;  %v3624_v50 = vsel %vm3622_vm7, 1, %v7664_v18  ;;  %v367_v19 = vld [vmem:[#allocation7 + $0x118] sm:$0xff] }
  0xb5   : > { %1165 = vmatpush1.bf16.msra.mxu0 %v5637_v28  ;;  %1208 = vmatpush1.bf16.msra.mxu1 %v5646_v8  ;;  %7684 = vst [vmem:[#allocation89_spill] sm:$0xff] %v5675_v51  ;;  %v355_v8 = vld [vmem:[#allocation7 + $0xb8] sm:$0xff]  ;;  %7686 = vst [vmem:[#allocation91_spill] sm:$0xff] %v5682_v63 }
  0xb6   : > { %1220 = vmatprep.subr.bf16.mxu0 %v5648_v56  ;;  %1263 = vmatprep.subr.bf16.mxu1 %v5653_v62  ;;  %7687 = vst [vmem:[#allocation92_spill] sm:$0xff] %v5687_v60  ;;  %v5689_v62 = vcombine.high %v350_v59, %v354_v9  ;;  %v5694_v4 = vcombine.high %v351_v41, %v355_v8  ;;  %v363_v56 = vld [vmem:[#allocation7 + $0xf8] sm:$0xff]  ;;  %7690 = vst [vmem:[#allocation95_spill] sm:$0xff] %v5699_v52 }
  0xb7   : > { %3310 = vperm.xlu0 %4546, %v3307_v35   ;;  %v370_v35 = vld [vmem:[#allocation7 + $0x130] sm:$0xff] }
  0xb8   : > { %1167 = vmatmul.mubr.bf16.vlgmr.msra.gmra.mrb[0].mxu0 %v5659_v6  ;;  %1210 = vmatmul.mubr.bf16.vlgmr.msra.gmra.mrb[0].mxu1 %v5659_v6  ;;  %7688 = vst [vmem:[#allocation93_spill] sm:$0xff] %v5689_v62  ;;  %7689 = vst [vmem:[#allocation94_spill] sm:$0xff] %v5694_v4 }
  0xb9   : > { %1221 = vmatpush1.bf16.msra.mxu0 %v5663_v24  ;;  %1264 = vmatpush1.bf16.msra.mxu1 %v5668_v36  ;;  %v358_v24 = vld [vmem:[#allocation7 + $0xd0] sm:$0xff]  ;;  %v5709_v36 = vcombine.high %v359_v57, %v363_v56 }
  0xba   : > { %1222 = vmatprep.subr.bf16.mxu0 %v5670_v49  ;;  %1265 = vmatprep.subr.bf16.mxu1 %v5675_v51  ;;  %v5704_v51 = vcombine.low %v351_v41, %v355_v8  ;;  %v5706_v49 = vcombine.high %v358_v24, %v362_v42  ;;  %v5712_v59 = vcombine.low %v358_v24, %v362_v42 }
  0xbb   : > { %1252 = vmatprep.mubr.bf16.mxu0 %v5485_v61  ;;  %1295 = vmatprep.mubr.bf16.mxu1 %v5485_v61  ;;  %7693 = vst [vmem:[#allocation98_spill] sm:$0xff] %v5709_v36  ;;  %v366_v61 = vld [vmem:[#allocation7 + $0x110] sm:$0xff]  ;;  %v5716_v41 = vcombine.low %v359_v57, %v363_v56 }
  0xbc   : > { %7691 = vst [vmem:[#allocation96_spill] sm:$0xff] %v5704_v51  ;;  %7692 = vst [vmem:[#allocation97_spill] sm:$0xff] %v5706_v49  ;;  %3627 = vperm.xlu0 %4546, %v3624_v50   ;;  %v5718_v8 = vcombine.high %v366_v61, %v370_v35  ;;  %v379_v50 = vld [vmem:[#allocation7 + $0x178] sm:$0xff]  ;;  %v5724_v24 = vcombine.low %v366_v61, %v370_v35 }
  0xbd   : > { %1223 = vmatpush1.bf16.msra.mxu0 %v5682_v63  ;;  %1266 = vmatpush1.bf16.msra.mxu1 %v5687_v60  ;;  %v371_v63 = vld [vmem:[#allocation7 + $0x138] sm:$0xff]  ;;  %7694 = vst [vmem:[#allocation99_spill] sm:$0xff] %v5712_v59  ;;  %7695 = vst [vmem:[#allocation100_spill] sm:$0xff] %v5716_v41 }
  0xbe   : > { %1224 = vmatprep.subr.bf16.mxu0 %v5689_v62  ;;  %1267 = vmatprep.subr.bf16.mxu1 %v5694_v4  ;;  %7696 = vst [vmem:[#allocation101_spill] sm:$0xff] %v5718_v8  ;;  %v5721_v9 = vcombine.high %v367_v19, %v371_v63  ;;  %v374_v4 = vld [vmem:[#allocation7 + $0x150] sm:$0xff]  ;;  %v375_v60 = vld [vmem:[#allocation7 + $0x158] sm:$0xff]  ;;  %7698 = vst [vmem:[#allocation103_spill] sm:$0xff] %v5724_v24  ;;  %v5728_v56 = vcombine.low %v367_v19, %v371_v63 }
  0xbf   : > { %v378_v62 = vld [vmem:[#allocation7 + $0x170] sm:$0xff]  ;;  %v5733_v57 = vcombine.high %v375_v60, %v379_v50  ;;  %v5740_v19 = vcombine.low %v375_v60, %v379_v50 }
  0xc0   : > { %7697 = vst [vmem:[#allocation102_spill] sm:$0xff] %v5721_v9  ;;  %7699 = vst [vmem:[#allocation104_spill] sm:$0xff] %v5728_v56  ;;  %v5730_v42 = vcombine.high %v374_v4, %v378_v62  ;;  %v5736_v61 = vcombine.low %v374_v4, %v378_v62 }
  0xc1   : > { %1225 = vmatpush1.bf16.msra.mxu0 %v5699_v52  ;;  %1268 = vmatpush1.bf16.msra.mxu1 %v5704_v51  ;;  %7701 = vst [vmem:[#allocation106_spill] sm:$0xff] %v5733_v57  ;;  %v383_v51 = vld [vmem:[#allocation7 + $0x198] sm:$0xff]  ;;  %7703 = vst [vmem:[#allocation108_spill] sm:$0xff] %v5740_v19 }
  0xc2   : > { %1226 = vmatprep.subr.bf16.mxu0 %v5706_v49  ;;  %1269 = vmatprep.subr.bf16.mxu1 %v5709_v36  ;;  %7700 = vst [vmem:[#allocation105_spill] sm:$0xff] %v5730_v42  ;;  %v382_v36 = vld [vmem:[#allocation7 + $0x190] sm:$0xff]  ;;  %v387_v52 = vld [vmem:[#allocation7 + $0x1b8] sm:$0xff]  ;;  %7702 = vst [vmem:[#allocation107_spill] sm:$0xff] %v5736_v61 }
  0xc3   : > { %v386_v49 = vld [vmem:[#allocation7 + $0x1b0] sm:$0xff]  ;;  %v5745_v35 = vcombine.high %v383_v51, %v387_v52  ;;  %v5752_v60 = vcombine.low %v383_v51, %v387_v52 }
  0xc4   : > { %v5742_v63 = vcombine.high %v382_v36, %v386_v49  ;;  %v5748_v62 = vcombine.low %v382_v36, %v386_v49 }
  0xc5   : > { %1227 = vmatpush1.bf16.msra.mxu0 %v5712_v59  ;;  %1270 = vmatpush1.bf16.msra.mxu1 %v5716_v41  ;;  %7705 = vst [vmem:[#allocation110_spill] sm:$0xff] %v5745_v35  ;;  %v391_v41 = vld [vmem:[#allocation7 + $0x1d8] sm:$0xff]  ;;  %7707 = vst [vmem:[#allocation112_spill] sm:$0xff] %v5752_v60 }
  0xc6   : > { %1228 = vmatprep.subr.bf16.mxu0 %v5718_v8  ;;  %1271 = vmatprep.subr.bf16.mxu1 %v5721_v9  ;;  %7704 = vst [vmem:[#allocation109_spill] sm:$0xff] %v5742_v63  ;;  %v390_v9 = vld [vmem:[#allocation7 + $0x1d0] sm:$0xff]  ;;  %v395_v59 = vld [vmem:[#allocation7 + $0x1f8] sm:$0xff]  ;;  %7706 = vst [vmem:[#allocation111_spill] sm:$0xff] %v5748_v62 }
  0xc7   : > { %v394_v8 = vld [vmem:[#allocation7 + $0x1f0] sm:$0xff]  ;;  %v5757_v50 = vcombine.high %v391_v41, %v395_v59  ;;  %v5764_v36 = vcombine.low %v391_v41, %v395_v59 }
  0xc8   : > { %v5754_v4 = vcombine.high %v390_v9, %v394_v8  ;;  %v5760_v49 = vcombine.low %v390_v9, %v394_v8 }
  0xc9   : > { %1229 = vmatpush1.bf16.msra.mxu0 %v5724_v24  ;;  %1272 = vmatpush1.bf16.msra.mxu1 %v5728_v56  ;;  %7709 = vst [vmem:[#allocation114_spill] sm:$0xff] %v5757_v50  ;;  %v399_v56 = vld [vmem:[#allocation7 + $0x218] sm:$0xff]  ;;  %7711 = vst [vmem:[#allocation116_spill] sm:$0xff] %v5764_v36 }
  0xca   : > { %1230 = vmatprep.subr.bf16.mxu0 %v5730_v42  ;;  %1273 = vmatprep.subr.bf16.mxu1 %v5733_v57  ;;  %7708 = vst [vmem:[#allocation113_spill] sm:$0xff] %v5754_v4  ;;  %v398_v57 = vld [vmem:[#allocation7 + $0x210] sm:$0xff]  ;;  %v403_v24 = vld [vmem:[#allocation7 + $0x238] sm:$0xff]  ;;  %7710 = vst [vmem:[#allocation115_spill] sm:$0xff] %v5760_v49 }
  0xcb   : > { %v402_v42 = vld [vmem:[#allocation7 + $0x230] sm:$0xff]  ;;  %v5769_v52 = vcombine.high %v399_v56, %v403_v24  ;;  %v5776_v59 = vcombine.low %v399_v56, %v403_v24 }
  0xcc   : > { %v5766_v51 = vcombine.high %v398_v57, %v402_v42  ;;  %v5772_v8 = vcombine.low %v398_v57, %v402_v42 }
  0xcd   : > { %1231 = vmatpush1.bf16.msra.mxu0 %v5736_v61  ;;  %1274 = vmatpush1.bf16.msra.mxu1 %v5740_v19  ;;  %7713 = vst [vmem:[#allocation118_spill] sm:$0xff] %v5769_v52  ;;  %v407_v19 = vld [vmem:[#allocation7 + $0x258] sm:$0xff]  ;;  %7715 = vst [vmem:[#allocation120_spill] sm:$0xff] %v5776_v59 }
  0xce   : > { %1232 = vmatprep.subr.bf16.mxu0 %v5742_v63  ;;  %1275 = vmatprep.subr.bf16.mxu1 %v5745_v35  ;;  %7712 = vst [vmem:[#allocation117_spill] sm:$0xff] %v5766_v51  ;;  %v406_v35 = vld [vmem:[#allocation7 + $0x250] sm:$0xff]  ;;  %v411_v61 = vld [vmem:[#allocation7 + $0x278] sm:$0xff]  ;;  %7714 = vst [vmem:[#allocation119_spill] sm:$0xff] %v5772_v8 }
  0xcf   : > { %v410_v63 = vld [vmem:[#allocation7 + $0x270] sm:$0xff]  ;;  %v5781_v9 = vcombine.high %v407_v19, %v411_v61  ;;  %v5788_v24 = vcombine.low %v407_v19, %v411_v61 }
  0xd0   : > { %v5778_v41 = vcombine.high %v406_v35, %v410_v63  ;;  %v5784_v42 = vcombine.low %v406_v35, %v410_v63 }
  0xd1   : > { %1233 = vmatpush1.bf16.msra.mxu0 %v5748_v62  ;;  %1276 = vmatpush1.bf16.msra.mxu1 %v5752_v60  ;;  %7717 = vst [vmem:[#allocation122_spill] sm:$0xff] %v5781_v9  ;;  %v415_v60 = vld [vmem:[#allocation7 + $0x298] sm:$0xff]  ;;  %7719 = vst [vmem:[#allocation124_spill] sm:$0xff] %v5788_v24 }
  0xd2   : > { %1234 = vmatprep.subr.bf16.mxu0 %v5754_v4  ;;  %1277 = vmatprep.subr.bf16.mxu1 %v5757_v50  ;;  %7716 = vst [vmem:[#allocation121_spill] sm:$0xff] %v5778_v41  ;;  %v414_v50 = vld [vmem:[#allocation7 + $0x290] sm:$0xff]  ;;  %v419_v62 = vld [vmem:[#allocation7 + $0x2b8] sm:$0xff]  ;;  %7718 = vst [vmem:[#allocation123_spill] sm:$0xff] %v5784_v42 }
  0xd3   : > { %v418_v4 = vld [vmem:[#allocation7 + $0x2b0] sm:$0xff]  ;;  %v5793_v57 = vcombine.high %v415_v60, %v419_v62  ;;  %v5800_v61 = vcombine.low %v415_v60, %v419_v62 }
  0xd4   : > { %v5790_v56 = vcombine.high %v414_v50, %v418_v4  ;;  %v5796_v63 = vcombine.low %v414_v50, %v418_v4 }
  0xd5   : > { %1235 = vmatpush1.bf16.msra.mxu0 %v5760_v49  ;;  %1278 = vmatpush1.bf16.msra.mxu1 %v5764_v36  ;;  %7721 = vst [vmem:[#allocation126_spill] sm:$0xff] %v5793_v57  ;;  %v423_v36 = vld [vmem:[#allocation7 + $0x2d8] sm:$0xff]  ;;  %7723 = vst [vmem:[#allocation128_spill] sm:$0xff] %v5800_v61 }
  0xd6   : > { %1236 = vmatprep.subr.bf16.mxu0 %v5766_v51  ;;  %1279 = vmatprep.subr.bf16.mxu1 %v5769_v52  ;;  %7720 = vst [vmem:[#allocation125_spill] sm:$0xff] %v5790_v56  ;;  %v422_v52 = vld [vmem:[#allocation7 + $0x2d0] sm:$0xff]  ;;  %v427_v49 = vld [vmem:[#allocation7 + $0x2f8] sm:$0xff]  ;;  %7722 = vst [vmem:[#allocation127_spill] sm:$0xff] %v5796_v63 }
  0xd7   : > { %v426_v51 = vld [vmem:[#allocation7 + $0x2f0] sm:$0xff]  ;;  %v5805_v35 = vcombine.high %v423_v36, %v427_v49  ;;  %v5812_v62 = vcombine.low %v423_v36, %v427_v49 }
  0xd8   : > { %v5802_v19 = vcombine.high %v422_v52, %v426_v51  ;;  %v5808_v4 = vcombine.low %v422_v52, %v426_v51 }
  0xd9   : > { %1237 = vmatpush1.bf16.msra.mxu0 %v5772_v8  ;;  %1280 = vmatpush1.bf16.msra.mxu1 %v5776_v59  ;;  %7725 = vst [vmem:[#allocation130_spill] sm:$0xff] %v5805_v35  ;;  %v431_v59 = vld [vmem:[#allocation7 + $0x318] sm:$0xff]  ;;  %7727 = vst [vmem:[#allocation132_spill] sm:$0xff] %v5812_v62 }
  0xda   : > { %1238 = vmatprep.subr.bf16.mxu0 %v5778_v41  ;;  %1281 = vmatprep.subr.bf16.mxu1 %v5781_v9  ;;  %7724 = vst [vmem:[#allocation129_spill] sm:$0xff] %v5802_v19  ;;  %v430_v9 = vld [vmem:[#allocation7 + $0x310] sm:$0xff]  ;;  %v435_v8 = vld [vmem:[#allocation7 + $0x338] sm:$0xff]  ;;  %7726 = vst [vmem:[#allocation131_spill] sm:$0xff] %v5808_v4 }
  0xdb   : > { %v434_v41 = vld [vmem:[#allocation7 + $0x330] sm:$0xff]  ;;  %v5817_v50 = vcombine.high %v431_v59, %v435_v8  ;;  %v5824_v49 = vcombine.low %v431_v59, %v435_v8 }
  0xdc   : > { %v5814_v60 = vcombine.high %v430_v9, %v434_v41  ;;  %v5820_v51 = vcombine.low %v430_v9, %v434_v41 }
  0xdd   : > { %1239 = vmatpush1.bf16.msra.mxu0 %v5784_v42  ;;  %1282 = vmatpush1.bf16.msra.mxu1 %v5788_v24  ;;  %7729 = vst [vmem:[#allocation134_spill] sm:$0xff] %v5817_v50  ;;  %v439_v24 = vld [vmem:[#allocation7 + $0x358] sm:$0xff]  ;;  %7731 = vst [vmem:[#allocation136_spill] sm:$0xff] %v5824_v49 }
  0xde   : > { %1240 = vmatprep.subr.bf16.mxu0 %v5790_v56  ;;  %1283 = vmatprep.subr.bf16.mxu1 %v5793_v57  ;;  %7728 = vst [vmem:[#allocation133_spill] sm:$0xff] %v5814_v60  ;;  %v438_v57 = vld [vmem:[#allocation7 + $0x350] sm:$0xff]  ;;  %v443_v42 = vld [vmem:[#allocation7 + $0x378] sm:$0xff]  ;;  %7730 = vst [vmem:[#allocation135_spill] sm:$0xff] %v5820_v51 }
  0xdf   : > { %v442_v56 = vld [vmem:[#allocation7 + $0x370] sm:$0xff]  ;;  %v5829_v52 = vcombine.high %v439_v24, %v443_v42  ;;  %v5836_v8 = vcombine.low %v439_v24, %v443_v42 }
  0xe0   : > { %v5826_v36 = vcombine.high %v438_v57, %v442_v56  ;;  %v5832_v41 = vcombine.low %v438_v57, %v442_v56 }
  0xe1   : > { %1241 = vmatpush1.bf16.msra.mxu0 %v5796_v63  ;;  %1284 = vmatpush1.bf16.msra.mxu1 %v5800_v61  ;;  %7733 = vst [vmem:[#allocation138_spill] sm:$0xff] %v5829_v52  ;;  %v447_v61 = vld [vmem:[#allocation7 + $0x398] sm:$0xff]  ;;  %7735 = vst [vmem:[#allocation140_spill] sm:$0xff] %v5836_v8 }
  0xe2   : > { %1242 = vmatprep.subr.bf16.mxu0 %v5802_v19  ;;  %1285 = vmatprep.subr.bf16.mxu1 %v5805_v35  ;;  %7732 = vst [vmem:[#allocation137_spill] sm:$0xff] %v5826_v36  ;;  %v446_v35 = vld [vmem:[#allocation7 + $0x390] sm:$0xff]  ;;  %v451_v63 = vld [vmem:[#allocation7 + $0x3b8] sm:$0xff]  ;;  %7734 = vst [vmem:[#allocation139_spill] sm:$0xff] %v5832_v41 }
  0xe3   : > { %v450_v19 = vld [vmem:[#allocation7 + $0x3b0] sm:$0xff]  ;;  %v5841_v9 = vcombine.high %v447_v61, %v451_v63  ;;  %v5848_v42 = vcombine.low %v447_v61, %v451_v63  ;;  %v7745_v63 = vld [vmem:[#allocation53_spill] sm:$0xff] }
  0xe4   : > { %v5838_v59 = vcombine.high %v446_v35, %v450_v19  ;;  %v5844_v56 = vcombine.low %v446_v35, %v450_v19  ;;  %v7746_v61 = vld [vmem:[#allocation54_spill] sm:$0xff]  ;;  %v7747_v35 = vld [vmem:[#allocation55_spill] sm:$0xff] }
  0xe5   : > { %1243 = vmatpush1.bf16.msra.mxu0 %v5808_v4  ;;  %1286 = vmatpush1.bf16.msra.mxu1 %v5812_v62  ;;  %7737 = vst [vmem:[#allocation142_spill] sm:$0xff] %v5841_v9  ;;  %v455_v62 = vld [vmem:[#allocation7 + $0x3d8] sm:$0xff]  ;;  %7739 = vst [vmem:[#allocation144_spill] sm:$0xff] %v5848_v42 }
  0xe6   : > { %1244 = vmatprep.subr.bf16.mxu0 %v5814_v60  ;;  %1287 = vmatprep.subr.bf16.mxu1 %v5817_v50  ;;  %7736 = vst [vmem:[#allocation141_spill] sm:$0xff] %v5838_v59  ;;  %v454_v50 = vld [vmem:[#allocation7 + $0x3d0] sm:$0xff]  ;;  %v459_v4 = vld [vmem:[#allocation7 + $0x3f8] sm:$0xff]  ;;  %7738 = vst [vmem:[#allocation143_spill] sm:$0xff] %v5844_v56 }
  0xe7   : > { %v458_v60 = vld [vmem:[#allocation7 + $0x3f0] sm:$0xff]  ;;  %v5853_v57 = vcombine.high %v455_v62, %v459_v4  ;;  %v5860_v19 = vcombine.low %v455_v62, %v459_v4  ;;  %v7748_v4 = vld [vmem:[#allocation56_spill] sm:$0xff]  ;;  %v7749_v62 = vld [vmem:[#allocation57_spill] sm:$0xff] }
  0xe8   : > { %v5850_v24 = vcombine.high %v454_v50, %v458_v60 }
  0xe9   : > { %1245 = vmatpush1.bf16.msra.mxu0 %v5820_v51  ;;  %1288 = vmatpush1.bf16.msra.mxu1 %v5824_v49  ;;  %7741 = vst [vmem:[#allocation146_spill] sm:$0xff] %v5853_v57  ;;  %7743 = vst [vmem:[#allocation148_spill] sm:$0xff] %v5860_v19 }
  0xea   : > { %1246 = vmatprep.subr.bf16.mxu0 %v5826_v36  ;;  %1289 = vmatprep.subr.bf16.mxu1 %v5829_v52  ;;  %7740 = vst [vmem:[#allocation145_spill] sm:$0xff] %v5850_v24  ;;  %v5856_v52 = vcombine.low %v454_v50, %v458_v60  ;;  %v7750_v60 = vld [vmem:[#allocation58_spill] sm:$0xff]  ;;  %v7751_v50 = vld [vmem:[#allocation59_spill] sm:$0xff] }
  0xec   : > { %7742 = vst [vmem:[#allocation147_spill] sm:$0xff] %v5856_v52 }
  0xed   : > { %1247 = vmatpush1.bf16.msra.mxu0 %v5832_v41  ;;  %1290 = vmatpush1.bf16.msra.mxu1 %v5836_v8 }
  0xee   : > { %1248 = vmatprep.subr.bf16.mxu0 %v5838_v59  ;;  %1291 = vmatprep.subr.bf16.mxu1 %v5841_v9 }
  0xf1   : > { %1249 = vmatpush1.bf16.msra.mxu0 %v5844_v56  ;;  %1292 = vmatpush1.bf16.msra.mxu1 %v5848_v42 }
  0xf2   : > { %1250 = vmatprep.subr.bf16.mxu0 %v5850_v24  ;;  %1293 = vmatprep.subr.bf16.mxu1 %v5853_v57 }
  0xf5   : > { %1251 = vmatpush1.bf16.msra.mxu0 %v5856_v52  ;;  %1294 = vmatpush1.bf16.msra.mxu1 %v5860_v19 }
  0xf6   : > { %1450 = vmatprep.subr.bf16.mxu0 %v5409_v5  ;;  %1493 = vmatprep.subr.bf16.mxu1 %v5413_v10 }
  0xf8   : > { %1253 = vmatmul.mubr.bf16.vlgmr.msra.gmra.mrb[4].mxu0 %v5659_v6  ;;  %1296 = vmatmul.mubr.bf16.vlgmr.msra.gmra.mrb[4].mxu1 %v5659_v6  ;;  %v7744_v6 = vld [vmem:[#allocation52_spill] sm:$0xff] }
  0xf9   : > { %1451 = vmatpush1.bf16.msra.mxu0 %v5411_v7  ;;  %1494 = vmatpush1.bf16.msra.mxu1 %v5415_v11 }
  0xfa   : > { %1452 = vmatprep.subr.bf16.mxu0 %v5417_v12  ;;  %1495 = vmatprep.subr.bf16.mxu1 %v5420_v16 }
  0xfd   : > { %1453 = vmatpush1.bf16.msra.mxu0 %v5424_v20  ;;  %1496 = vmatpush1.bf16.msra.mxu1 %v5428_v21 }
  0xfe   : > { %1454 = vmatprep.subr.bf16.mxu0 %v5430_v22  ;;  %1497 = vmatprep.subr.bf16.mxu1 %v5433_v23 }
 0x101   : > { %1455 = vmatpush1.bf16.msra.mxu0 %v5438_v29  ;;  %1498 = vmatpush1.bf16.msra.mxu1 %v5442_v30 }
 0x102   : > { %1456 = vmatprep.subr.bf16.mxu0 %v5444_v31  ;;  %1499 = vmatprep.subr.bf16.mxu1 %v5447_v32 }
 0x105   : > { %1457 = vmatpush1.bf16.msra.mxu0 %v5450_v37  ;;  %1500 = vmatpush1.bf16.msra.mxu1 %v5454_v38 }
 0x106   : > { %1458 = vmatprep.subr.bf16.mxu0 %v5456_v39  ;;  %1501 = vmatprep.subr.bf16.mxu1 %v5459_v40 }
 0x109   : > { %1459 = vmatpush1.bf16.msra.mxu0 %v5462_v45  ;;  %1502 = vmatpush1.bf16.msra.mxu1 %v5466_v46 }
 0x10a   : > { %1460 = vmatprep.subr.bf16.mxu0 %v5468_v47  ;;  %1503 = vmatprep.subr.bf16.mxu1 %v5471_v48 }
 0x10d   : > { %1461 = vmatpush1.bf16.msra.mxu0 %v5474_v53  ;;  %1504 = vmatpush1.bf16.msra.mxu1 %v5478_v54 }
 0x10e   : > { %1462 = vmatprep.subr.bf16.mxu0 %v5480_v55  ;;  %1505 = vmatprep.subr.bf16.mxu1 %v5483_v58 }
 0x111   : > { %1463 = vmatpush1.bf16.msra.mxu0 %v5488_v0  ;;  %1506 = vmatpush1.bf16.msra.mxu1 %v5493_v1 }
 0x112   : > { %1464 = vmatprep.subr.bf16.mxu0 %v5495_v2  ;;  %1507 = vmatprep.subr.bf16.mxu1 %v5498_v3 }
 0x115   : > { %1465 = vmatpush1.bf16.msra.mxu0 %v5502_v13  ;;  %1508 = vmatpush1.bf16.msra.mxu1 %v5506_v14 }
 0x116   : > { %1466 = vmatprep.subr.bf16.mxu0 %v5508_v15  ;;  %1509 = vmatprep.subr.bf16.mxu1 %v5511_v17  ;;  %v474_v17 = vld [vmem:[%s5397_s19 + $0x20] sm:$0xff] }
 0x117   : > { %v486_v13 = vunpack.c.l.bf16 %v474_v17  ;;  %v487_v1 = vunpack.c.h.bf16 %v474_v17 }
 0x119   : > { %1467 = vmatpush1.bf16.msra.mxu0 %v5514_v26  ;;  %1510 = vmatpush1.bf16.msra.mxu1 %v5518_v27  ;;  %v470_v27 = vld [vmem:[%s5397_s19] sm:$0xff] }
 0x11a   : > { %1468 = vmatprep.subr.bf16.mxu0 %v5520_v33  ;;  %1511 = vmatprep.subr.bf16.mxu1 %v5523_v34  ;;  %v7752_v34 = vld [vmem:[#allocation61_spill] sm:$0xff]  ;;  %v478_v26 = vunpack.c.l.bf16 %v470_v27  ;;  %v479_v15 = vunpack.c.h.bf16 %v470_v27 }
 0x11d   : > { %1469 = vmatpush1.bf16.msra.mxu0 %v5526_v43  ;;  %1512 = vmatpush1.bf16.msra.mxu1 %v5530_v44  ;;  %v7753_v43 = vld [vmem:[#allocation62_spill] sm:$0xff]  ;;  %v7754_v44 = vld [vmem:[#allocation64_spill] sm:$0xff] }
 0x11e   : > { %1470 = vmatprep.subr.bf16.mxu0 %v7744_v6  ;;  %1513 = vmatprep.subr.bf16.mxu1 %v7745_v63  ;;  %v7755_v6 = vld [vmem:[#allocation65_spill] sm:$0xff]  ;;  %v7756_v63 = vld [vmem:[#allocation66_spill] sm:$0xff] }
 0x121   : > { %1471 = vmatpush1.bf16.msra.mxu0 %v7746_v61  ;;  %1514 = vmatpush1.bf16.msra.mxu1 %v7747_v35  ;;  %v7757_v61 = vld [vmem:[#allocation67_spill] sm:$0xff]  ;;  %v7758_v35 = vld [vmem:[#allocation69_spill] sm:$0xff] }
 0x122   : > { %1472 = vmatprep.subr.bf16.mxu0 %v7748_v4  ;;  %1515 = vmatprep.subr.bf16.mxu1 %v7749_v62  ;;  %v7759_v4 = vld [vmem:[#allocation70_spill] sm:$0xff]  ;;  %v7760_v62 = vld [vmem:[#allocation71_spill] sm:$0xff] }
 0x125   : > { %1473 = vmatpush1.bf16.msra.mxu0 %v7750_v60  ;;  %1516 = vmatpush1.bf16.msra.mxu1 %v7751_v50  ;;  %v7761_v60 = vld [vmem:[#allocation72_spill] sm:$0xff]  ;;  %v7762_v50 = vld [vmem:[#allocation74_spill] sm:$0xff] }
 0x126   : > { %1474 = vmatprep.subr.bf16.mxu0 %v7752_v34  ;;  %1517 = vmatprep.subr.bf16.mxu1 %v7753_v43  ;;  %v7763_v34 = vld [vmem:[#allocation75_spill] sm:$0xff] }
 0x129   : > { %1475 = vmatpush1.bf16.msra.mxu0 %v7754_v44  ;;  %1518 = vmatpush1.bf16.msra.mxu1 %v7755_v6  ;;  %v7764_v44 = vld [vmem:[#allocation76_spill] sm:$0xff]  ;;  %v7765_v6 = vld [vmem:[#allocation77_spill] sm:$0xff] }
 0x12a   : > { %1476 = vmatprep.subr.bf16.mxu0 %v7756_v63  ;;  %1519 = vmatprep.subr.bf16.mxu1 %v7757_v61  ;;  %v7766_v61 = vld [vmem:[#allocation82_spill] sm:$0xff] }
 0x12d   : > { %1477 = vmatpush1.bf16.msra.mxu0 %v7758_v35  ;;  %1520 = vmatpush1.bf16.msra.mxu1 %v7759_v4  ;;  %v7767_v4 = vld [vmem:[#allocation83_spill] sm:$0xff] }
 0x12e   : > { %1478 = vmatprep.subr.bf16.mxu0 %v7760_v62  ;;  %1521 = vmatprep.subr.bf16.mxu1 %v7761_v60  ;;  %v7768_v62 = vld [vmem:[#allocation84_spill] sm:$0xff] }
 0x131   : > { %1479 = vmatpush1.bf16.msra.mxu0 %v7762_v50  ;;  %1522 = vmatpush1.bf16.msra.mxu1 %v7763_v34 }
 0x132   : > { %1480 = vmatprep.subr.bf16.mxu0 %v7764_v44  ;;  %1523 = vmatprep.subr.bf16.mxu1 %v7765_v6  ;;  %v471_v6 = vld [vmem:[%s5397_s19 + $0x8] sm:$0xff] }
 0x133   : > { %v481_v14 = vunpack.c.h.bf16 %v471_v6 }
 0x135   : > { %1481 = vmatpush1.bf16.msra.mxu0 %v5637_v28  ;;  %1524 = vmatpush1.bf16.msra.mxu1 %v7766_v61  ;;  %v480_v28 = vunpack.c.l.bf16 %v471_v6  ;;  %v475_v61 = vld [vmem:[%s5397_s19 + $0x28] sm:$0xff] }
 0x136   : > { %1536 = vmatprep.subr.bf16.mxu0 %v7767_v4  ;;  %1579 = vmatprep.subr.bf16.mxu1 %v7768_v62  ;;  %v488_v62 = vunpack.c.l.bf16 %v475_v61  ;;  %v489_v58 = vunpack.c.h.bf16 %v475_v61  ;;  %v473_v61 = vld [vmem:[%s5397_s19 + $0x18] sm:$0xff] }
 0x18b   : > { %v1168_v60 = vpop.f32.mrb[0].mxu0  ;;  %v1211_v50 = vpop.f32.mrb[0].mxu1 }
 0x18c   : > { %v1170_v35 = vpop.f32.mrb[1].mxu0  ;;  %v1213_v63 = vpop.f32.mrb[1].mxu1  ;;  %v1169_v4 = vadd.f32 %v1168_v60, %v478_v26  ;;  %v1212_v3 = vadd.f32 %v1211_v50, %v480_v28  ;;  %v1719_v28 = vstv %s1718_s24  ;;  %v7773_v60 = vld [vmem:[#allocation78_spill] sm:$0xff] }
 0x18d   : > { %v1172_v34 = vpop.f32.mrb[2].mxu0  ;;  %v1215_v43 = vpop.f32.mrb[2].mxu1  ;;  %v1171_v2 = vadd.f32 %v1170_v35, %v479_v15  ;;  %v1214_v0 = vadd.f32 %v1213_v63, %v481_v14  ;;  %vm1720_vm8 = vcmp.lt.s32.totalorder %v1719_v28, %v5562_v25  ;;  %v7769_v14 = vld [vmem:[#allocation60_spill] sm:$0xff]  ;;  %v7772_v15 = vld [vmem:[#allocation73_spill] sm:$0xff] }
 0x18e   : > { %v1174_v33 = vpop.f32.mrb[3].mxu0  ;;  %v1217_v44 = vpop.f32.mrb[3].mxu1  ;;  %v4196_v55 = vmul.f32 -1.442695, %v1169_v4  ;;  %v1173_v54 = vadd.f32 %v1172_v34, %v486_v13  ;;  %v4200_v53 = vmul.f32 -1.442695, %v1212_v3  ;;  %v1216_v48 = vadd.f32 %v1215_v43, %v488_v62 }
 0x18f   : > { %v4197_v47 = vmul.f32 -1.442695, %v1171_v2  ;;  %v1175_v46 = vadd.f32 %v1174_v33, %v487_v1  ;;  %v4201_v45 = vmul.f32 -1.442695, %v1214_v0  ;;  %v1218_v40 = vadd.f32 %v1217_v44, %v489_v58  ;;  %v472_v44 = vld [vmem:[%s5397_s19 + $0x10] sm:$0xff] }
 0x190   : > { %4548 = vpow2.f32 %v4196_v55  ;;  %v4198_v27 = vmul.f32 -1.442695, %v1173_v54  ;;  %v4202_v26 = vmul.f32 -1.442695, %v1216_v48  ;;  %vm1721_vm9 = vcmp.lt.s32.totalorder %v1719_v28, %v7769_v14  ;;  %v476_v62 = vld [vmem:[%s5397_s19 + $0x30] sm:$0xff] }
 0x191   : > { %4550 = vpow2.f32 %v4200_v53  ;;  %v4199_v6 = vmul.f32 -1.442695, %v1175_v46  ;;  %v4203_v13 = vmul.f32 -1.442695, %v1218_v40  ;;  %v1722_v3 = vsel %vm1720_vm8, 1, %v7664_v18  ;;  %v7770_v53 = vld [vmem:[#allocation63_spill] sm:$0xff] }
 0x192   : > { %4552 = vpow2.f32 %v4197_v47  ;;  %1725 = vperm.xlu1 %4547, %v1722_v3   ;;  %v1723_v55 = vsel %vm1721_vm9, 1, %v7664_v18  ;;  %vm2038_vm10 = vcmp.lt.s32.totalorder %v7770_v53, %v7769_v14  ;;  %vm2672_vm12 = vcmp.lt.s32.totalorder %v7772_v15, %v7769_v14 }
 0x193   : > { %4554 = vpow2.f32 %v4201_v45  ;;  %v2040_v46 = vsel %vm2038_vm10, 1, %v7664_v18  ;;  %v7771_v45 = vld [vmem:[#allocation68_spill] sm:$0xff]  ;;  %v2674_v35 = vsel %vm2672_vm12, 1, %v7664_v18  ;;  %vm2989_vm13 = vcmp.lt.s32.totalorder %v7773_v60, %v7769_v14 }
 0x194   : > { %4556 = vpow2.f32 %v4198_v27  ;;  %vm2355_vm11 = vcmp.lt.s32.totalorder %v7771_v45, %v7769_v14  ;;  %v482_v27 = vunpack.c.l.bf16 %v472_v44  ;;  %v485_v3 = vunpack.c.h.bf16 %v473_v61  ;;  %v7774_v45 = vld [vmem:[#allocation85_spill] sm:$0xff] }
 0x195   : > { %4558 = vpow2.f32 %v4202_v26  ;;  %v2357_v0 = vsel %vm2355_vm11, 1, %v7664_v18  ;;  %v477_v26 = vld [vmem:[%s5397_s19 + $0x38] sm:$0xff]  ;;  %v2991_v53 = vsel %vm2989_vm13, 1, %v7664_v18  ;;  %vm3306_vm14 = vcmp.lt.s32.totalorder %v7774_v45, %v7769_v14 }
 0x196   : > { %4560 = vpow2.f32 %v4199_v6  ;;  %1728 = vperm.xlu1 %4547, %v1723_v55   ;;  %v484_v6 = vunpack.c.l.bf16 %v473_v61  ;;  %v490_v55 = vunpack.c.l.bf16 %v476_v62  ;;  %v464_v45 = vld [vmem:[#allocation3] sm:$0xff] }
 0x197   : > { %4562 = vpow2.f32 %v4203_v13  ;;  %v483_v13 = vunpack.c.h.bf16 %v472_v44 }
 0x19a   : > { %v4549_v47 = vpop.eup %4548  ;;  %2045 = vperm.xlu1 %4547, %v2040_v46  }
 0x19b   : > { %v4551_v40 = vpop.eup %4550  ;;  %v1318_v58 = vadd.f32 1.0, %v4549_v47  ;;  %v492_v47 = vunpack.c.l.bf16 %v477_v26 }
 0x19c   : > { %v4553_v48 = vpop.eup %4552  ;;  %v1342_v2 = vadd.f32 1.0, %v4551_v40 }
 0x19d   : > { %v4555_v54 = vpop.eup %4554  ;;  %v1319_v33 = vadd.f32 1.0, %v4553_v48  ;;  %4564 = vrcp.f32 %v1318_v58  ;;  %v491_v58 = vunpack.c.h.bf16 %v476_v62 }
 0x19e   : > { %v4557_v1 = vpop.eup %4556  ;;  %v1343_v43 = vadd.f32 1.0, %v4555_v54  ;;  %2362 = vperm.xlu1 %4547, %v2357_v0   ;;  %4566 = vrcp.f32 %v1342_v2  ;;  %v493_v0 = vunpack.c.h.bf16 %v477_v26 }
 0x19f   : > { %v4559_v17 = vpop.eup %4558  ;;  %v1320_v63 = vadd.f32 1.0, %v4557_v1  ;;  %4568 = vrcp.f32 %v1319_v33 }
 0x1a0   : > { %v4561_v34 = vpop.eup %4560  ;;  %v1344_v4 = vadd.f32 1.0, %v4559_v17  ;;  %4570 = vrcp.f32 %v1343_v43 }
 0x1a1   : > { %v4563_v25 = vpop.eup %4562  ;;  %v1321_v50 = vadd.f32 1.0, %v4561_v34  ;;  %4572 = vrcp.f32 %v1320_v63 }
 0x1a2   : > { %v1345_v28 = vadd.f32 1.0, %v4563_v25  ;;  %2679 = vperm.xlu1 %4547, %v2674_v35   ;;  %4574 = vrcp.f32 %v1344_v4  ;;  %v3308_v25 = vsel %vm3306_vm14, 1, %v7664_v18  ;;  %v7775_v4 = vld [vmem:[#allocation90_spill] sm:$0xff] }
 0x1a3   : > { %4576 = vrcp.f32 %v1321_v50  ;;  %vm3623_vm15 = vcmp.lt.s32.totalorder %v7775_v4, %v7769_v14  ;;  %v5967_v14 = vpop.permute.xlu0 %1408  ;;  %v467_v4 = vld [vmem:[#allocation3 + $0x18] sm:$0xff] }
 0x1a4   : > { %4578 = vrcp.f32 %v1345_v28  ;;  %vm1413_vm0 = vcmp.eq.s32.totalorder %v5967_v14, 1  ;;  %v7780_v14 = vld [vmem:[#allocation88_spill] sm:$0xff] }
 0x1a6   : > { %2996 = vperm.xlu1 %4547, %v2991_v53  }
 0x1a7   : > { %v4565_v62 = vpop.eup %4564 }
 0x1a8   : > { %v4567_v26 = vpop.eup %4566 }
 0x1aa   : > { %3313 = vperm.xlu1 %4547, %v3308_v25   ;;  %v1412_v25 = vpop.permute.xlu0 %1411 }
 0x1ab   : > { %vm1414_vm1 = vcmp.eq.s32.totalorder %v1412_v25, 1  ;;  %v7778_v25 = vld [vmem:[#allocation86_spill] sm:$0xff] }
 0x1cb   : > { %v1254_v46 = vpop.f32.mrb[4].mxu0  ;;  %v1297_v48 = vpop.f32.mrb[4].mxu1 }
 0x1cc   : > { %v1255_v40 = vadd.f32 %v1254_v46, %v482_v27  ;;  %v1256_v54 = vpop.f32.mrb[5].mxu0  ;;  %v1298_v1 = vadd.f32 %v1297_v48, %v484_v6  ;;  %v1299_v15 = vpop.f32.mrb[5].mxu1  ;;  %v465_v48 = vld [vmem:[#allocation3 + $0x8] sm:$0xff] }
 0x1cd   : > { %v1257_v2 = vadd.f32 %v1256_v54, %v483_v13  ;;  %v1258_v17 = vpop.f32.mrb[6].mxu0  ;;  %v1300_v33 = vadd.f32 %v1299_v15, %v485_v3  ;;  %v1301_v43 = vpop.f32.mrb[6].mxu1  ;;  %v3625_v3 = vsel %vm3623_vm15, 1, %v7664_v18 }
 0x1ce   : > { %4580 = vtanh.f32 %v1255_v40  ;;  %v1259_v34 = vadd.f32 %v1258_v17, %v490_v55  ;;  %v1260_v44 = vpop.f32.mrb[7].mxu0  ;;  %v4204_v63 = vmul.f32 -1.442695, %v1298_v1  ;;  %v1302_v61 = vadd.f32 %v1301_v43, %v492_v47  ;;  %v1303_v35 = vpop.f32.mrb[7].mxu1  ;;  %3630 = vperm.xlu1 %4547, %v3625_v3  }
 0x1cf   : > { %4582 = vtanh.f32 %v1257_v2  ;;  %v4205_v60 = vmul.f32 -1.442695, %v1300_v33  ;;  %v1261_v50 = vadd.f32 %v1260_v44, %v491_v58  ;;  %v1304_v27 = vadd.f32 %v1303_v35, %v493_v0  ;;  %v4569_v6 = vpop.eup %4568  ;;  %v466_v58 = vld [vmem:[#allocation3 + $0x10] sm:$0xff] }
 0x1d0   : > { %4584 = vtanh.f32 %v1259_v34  ;;  %v4206_v28 = vmul.f32 -1.442695, %v1302_v61  ;;  %v4571_v55 = vpop.eup %4570  ;;  %v1382_v1 = vmul.f32 %v4567_v26, %v464_v45 }
 0x1d1   : > { %4586 = vpow2.f32 %v4204_v63  ;;  %v4207_v13 = vmul.f32 -1.442695, %v1304_v27  ;;  %v4573_v53 = vpop.eup %4572  ;;  %v1383_v18 = vmul.f32 %v4571_v55, %v465_v48 }
 0x1d2   : > { %4588 = vpow2.f32 %v4205_v60  ;;  %v4575_v46 = vpop.eup %4574 }
 0x1d3   : > { %4590 = vpow2.f32 %v4206_v28  ;;  %v4577_v47 = vpop.eup %4576  ;;  %v1384_v43 = vmul.f32 %v4575_v46, %v466_v58 }
 0x1d4   : > { %4592 = vtanh.f32 %v1261_v50  ;;  %v4579_v40 = vpop.eup %4578 }
 0x1d5   : > { %4594 = vpow2.f32 %v4207_v13  ;;  %v1385_v3 = vmul.f32 %v4579_v40, %v467_v4 }
 0x1d8   : > { %v4581_v54 = vpop.eup %4580 }
 0x1d9   : > { %v4583_v0 = vpop.eup %4582  ;;  %v1386_v2 = vmul.f32 %v4581_v54, %v4565_v62 }
 0x1da   : > { %v4585_v15 = vpop.eup %4584  ;;  %v1387_v17 = vmul.f32 %v4583_v0, %v4569_v6 }
 0x1db   : > { %v4587_v33 = vpop.eup %4586  ;;  %v1390_v34 = vadd.f32 %v1386_v2, %v1382_v1  ;;  %v1388_v44 = vmul.f32 %v4585_v15, %v4573_v53 }
 0x1dc   : > { %v4589_v63 = vpop.eup %4588  ;;  %v1370_v61 = vadd.f32 1.0, %v4587_v33  ;;  %v1391_v35 = vadd.f32 %v1387_v17, %v1383_v18 }
 0x1dd   : > { %v4591_v60 = vpop.eup %4590  ;;  %4596 = vtanh.f32 %v1390_v34  ;;  %v5972_v62 = vsel %vm1413_vm0, %v1390_v34, %v464_v45  ;;  %v1371_v50 = vadd.f32 1.0, %v4589_v63  ;;  %v1392_v27 = vadd.f32 %v1388_v44, %v1384_v43  ;;  %v7776_v43 = vld [vmem:[#allocation81_spill] sm:$0xff] }
 0x1de   : > { %v4593_v26 = vpop.eup %4592  ;;  %4598 = vrcp.f32 %v1370_v61  ;;  %v1372_v28 = vadd.f32 1.0, %v4591_v60  ;;  %v5976_v6 = vsel %vm1413_vm0, %v1391_v35, %v465_v48  ;;  %v5060_v63 = vld [vmem:[#allocation2 + $0x8] sm:$0xff] }
 0x1df   : > { %v4595_v13 = vpop.eup %4594  ;;  %4600 = vtanh.f32 %v1391_v35  ;;  %v1389_v55 = vmul.f32 %v4593_v26, %v4577_v47  ;;  %v5979_v53 = vsel %vm1414_vm1, %v1392_v27, %v466_v58  ;;  %v5061_v35 = vld [vmem:[#allocation2 + $0x18] sm:$0xff]  ;;  %v7777_v60 = vld [vmem:[#allocation80_spill] sm:$0xff] }
 0x1e0   : > { %4602 = vrcp.f32 %v1371_v50  ;;  %v1373_v46 = vadd.f32 1.0, %v4595_v13  ;;  %v7781_v13 = vld [vmem:[#allocation89_spill] sm:$0xff] }
 0x1e1   : > { %4604 = vrcp.f32 %v1372_v28  ;;  %v1393_v45 = vadd.f32 %v1389_v55, %v1385_v3  ;;  %v7779_v28 = vld [vmem:[#allocation87_spill] sm:$0xff]  ;;  %v7783_v55 = vld [vmem:[#allocation92_spill] sm:$0xff] }
 0x1e2   : > { %4606 = vrcp.f32 %v1373_v46  ;;  %v7782_v3 = vld [vmem:[#allocation91_spill] sm:$0xff]  ;;  %v7784_v46 = vld [vmem:[#allocation93_spill] sm:$0xff] }
 0x1e3   : > { %4608 = vtanh.f32 %v1392_v27  ;;  %v5982_v54 = vsel %vm1414_vm1, %v1393_v45, %v467_v4 }
 0x1e4   : > { %4610 = vtanh.f32 %v1393_v45  ;;  %v7785_v45 = vld [vmem:[#allocation94_spill] sm:$0xff] }
 0x1e7   : > { %v4597_v0 = vpop.eup %4596 }
 0x1e8   : > { %v4599_v48 = vpop.eup %4598 }
 0x1e9   : > { %v4601_v1 = vpop.eup %4600  ;;  %v1398_v2 = vmul.f32 %v4599_v48, %v4597_v0  ;;  %v7786_v0 = vld [vmem:[#allocation95_spill] sm:$0xff]  ;;  %v7787_v48 = vld [vmem:[#allocation96_spill] sm:$0xff] }
 0x1ea   : > { %v4603_v15 = vpop.eup %4602 }
 0x1eb   : > { %v4605_v40 = vpop.eup %4604  ;;  %v1399_v47 = vmul.f32 %v4603_v15, %v4601_v1  ;;  %v5998_v50 = vsel %vm1413_vm0, %v1398_v2, %v7777_v60  ;;  %v7788_v1 = vld [vmem:[#allocation97_spill] sm:$0xff]  ;;  %v7789_v2 = vld [vmem:[#allocation98_spill] sm:$0xff]  ;;  %v7790_v15 = vld [vmem:[#allocation99_spill] sm:$0xff] }
 0x1ec   : > { %v4607_v18 = vpop.eup %4606  ;;  %v7801_v60 = vld [vmem:[#allocation110_spill] sm:$0xff] }
 0x1ed   : > { %v4609_v58 = vpop.eup %4608  ;;  %v5990_v61 = vsel %vm1413_vm0, %v1399_v47, %v5060_v63  ;;  %v7792_v47 = vld [vmem:[#allocation101_spill] sm:$0xff]  ;;  %v7799_v63 = vld [vmem:[#allocation108_spill] sm:$0xff]  ;;  %vm3993_vm0 = vcmask (!%p4348_p10), 7168  }
 0x1ee   : > { %v4611_v17 = vpop.eup %4610  ;;  %v1400_v33 = vmul.f32 %v4609_v58, %v4605_v40  ;;  %v7791_v40 = vld [vmem:[#allocation100_spill] sm:$0xff]  ;;  %v7794_v58 = vld [vmem:[#allocation103_spill] sm:$0xff] }
 0x1ef   : > { %v1401_v34 = vmul.f32 %v4611_v17, %v4607_v18  ;;  %v7793_v18 = vld [vmem:[#allocation102_spill] sm:$0xff]  ;;  %v7795_v17 = vld [vmem:[#allocation104_spill] sm:$0xff] }
 0x1f0   : > { %v5986_v44 = vsel %vm1414_vm1, %v1400_v33, %v7776_v43  ;;  %v7796_v33 = vld [vmem:[#allocation105_spill] sm:$0xff]  ;;  %v7798_v43 = vld [vmem:[#allocation107_spill] sm:$0xff] }
 0x1f1   : > { %v5993_v4 = vsel %vm1414_vm1, %v1401_v34, %v5061_v35  ;;  %v6004_v26 = vpack.c.bf16 %v5986_v44, %v5998_v50  ;;  %v7797_v34 = vld [vmem:[#allocation106_spill] sm:$0xff]  ;;  %v7800_v35 = vld [vmem:[#allocation109_spill] sm:$0xff] }
 0x1f2   : > { %v1424_v27 = vpack.c.bf16 %v5993_v4, %v5990_v61 }
 0x1f4   : > { %1482 = vmatprep.mubr.bf16.mxu0 %v1424_v27  ;;  %1525 = vmatprep.mubr.bf16.mxu1 %v1424_v27 }
 0x1f5   : > { %1483 = vmatmul.mubr.bf16.vlgmr.msra.gmra.mrb[8].mxu0 %v6004_v26  ;;  %1526 = vmatmul.mubr.bf16.vlgmr.msra.gmra.mrb[8].mxu1 %v6004_v26 }
 0x1f6   : > { %1537 = vmatpush1.bf16.msra.mxu0 %v7778_v25  ;;  %1580 = vmatpush1.bf16.msra.mxu1 %v7779_v28 }
 0x1f7   : > { %1568 = vmatprep.mubr.bf16.mxu0 %v1424_v27  ;;  %1611 = vmatprep.mubr.bf16.mxu1 %v1424_v27  ;;  %v7802_v27 = vld [vmem:[#allocation111_spill] sm:$0xff] }
 0x1f8   : > { %1538 = vmatprep.subr.bf16.mxu0 %v7780_v14  ;;  %1581 = vmatprep.subr.bf16.mxu1 %v7781_v13 }
 0x1fa   : > { %1539 = vmatpush1.bf16.msra.mxu0 %v7782_v3  ;;  %1582 = vmatpush1.bf16.msra.mxu1 %v7783_v55 }
 0x1fb   : > { %1540 = vmatprep.subr.bf16.mxu0 %v7784_v46  ;;  %1583 = vmatprep.subr.bf16.mxu1 %v7785_v45 }
 0x1fe   : > { %1541 = vmatpush1.bf16.msra.mxu0 %v7786_v0  ;;  %1584 = vmatpush1.bf16.msra.mxu1 %v7787_v48 }
 0x1ff   : > { %1542 = vmatprep.subr.bf16.mxu0 %v7788_v1  ;;  %1585 = vmatprep.subr.bf16.mxu1 %v7789_v2 }
 0x202   : > { %1543 = vmatpush1.bf16.msra.mxu0 %v7790_v15  ;;  %1586 = vmatpush1.bf16.msra.mxu1 %v7791_v40 }
 0x203   : > { %1544 = vmatprep.subr.bf16.mxu0 %v7792_v47  ;;  %1587 = vmatprep.subr.bf16.mxu1 %v7793_v18  ;;  %v7803_v47 = vld [vmem:[#allocation112_spill] sm:$0xff]  ;;  %v7804_v18 = vld [vmem:[#allocation113_spill] sm:$0xff] }
 0x206   : > { %1545 = vmatpush1.bf16.msra.mxu0 %v7794_v58  ;;  %1588 = vmatpush1.bf16.msra.mxu1 %v7795_v17  ;;  %v7805_v58 = vld [vmem:[#allocation114_spill] sm:$0xff]  ;;  %v7806_v17 = vld [vmem:[#allocation115_spill] sm:$0xff] }
 0x207   : > { %1546 = vmatprep.subr.bf16.mxu0 %v7796_v33  ;;  %1589 = vmatprep.subr.bf16.mxu1 %v7797_v34  ;;  %v7807_v33 = vld [vmem:[#allocation116_spill] sm:$0xff]  ;;  %v7808_v34 = vld [vmem:[#allocation117_spill] sm:$0xff] }
 0x20a   : > { %1547 = vmatpush1.bf16.msra.mxu0 %v7798_v43  ;;  %1590 = vmatpush1.bf16.msra.mxu1 %v7799_v63  ;;  %v7809_v43 = vld [vmem:[#allocation118_spill] sm:$0xff]  ;;  %v7810_v63 = vld [vmem:[#allocation119_spill] sm:$0xff] }
 0x20b   : > { %1548 = vmatprep.subr.bf16.mxu0 %v7800_v35  ;;  %1591 = vmatprep.subr.bf16.mxu1 %v7801_v60  ;;  %v7811_v35 = vld [vmem:[#allocation120_spill] sm:$0xff]  ;;  %v7812_v60 = vld [vmem:[#allocation121_spill] sm:$0xff] }
 0x20e   : > { %1549 = vmatpush1.bf16.msra.mxu0 %v7802_v27  ;;  %1592 = vmatpush1.bf16.msra.mxu1 %v7803_v47  ;;  %v7813_v27 = vld [vmem:[#allocation122_spill] sm:$0xff]  ;;  %v7814_v47 = vld [vmem:[#allocation123_spill] sm:$0xff] }
 0x20f   : > { %1550 = vmatprep.subr.bf16.mxu0 %v7804_v18  ;;  %1593 = vmatprep.subr.bf16.mxu1 %v7805_v58  ;;  %v7815_v18 = vld [vmem:[#allocation124_spill] sm:$0xff]  ;;  %v7816_v58 = vld [vmem:[#allocation125_spill] sm:$0xff] }
 0x212   : > { %1551 = vmatpush1.bf16.msra.mxu0 %v7806_v17  ;;  %1594 = vmatpush1.bf16.msra.mxu1 %v7807_v33  ;;  %v7817_v17 = vld [vmem:[#allocation126_spill] sm:$0xff]  ;;  %v7818_v33 = vld [vmem:[#allocation127_spill] sm:$0xff] }
 0x213   : > { %1552 = vmatprep.subr.bf16.mxu0 %v7808_v34  ;;  %1595 = vmatprep.subr.bf16.mxu1 %v7809_v43  ;;  %v7819_v34 = vld [vmem:[#allocation128_spill] sm:$0xff]  ;;  %v7820_v43 = vld [vmem:[#allocation129_spill] sm:$0xff] }
 0x216   : > { %1553 = vmatpush1.bf16.msra.mxu0 %v7810_v63  ;;  %1596 = vmatpush1.bf16.msra.mxu1 %v7811_v35  ;;  %v7821_v63 = vld [vmem:[#allocation130_spill] sm:$0xff]  ;;  %v7822_v35 = vld [vmem:[#allocation131_spill] sm:$0xff] }
 0x217   : > { %1554 = vmatprep.subr.bf16.mxu0 %v7812_v60  ;;  %1597 = vmatprep.subr.bf16.mxu1 %v7813_v27  ;;  %v7823_v60 = vld [vmem:[#allocation132_spill] sm:$0xff]  ;;  %v7824_v27 = vld [vmem:[#allocation133_spill] sm:$0xff] }
 0x21a   : > { %1555 = vmatpush1.bf16.msra.mxu0 %v7814_v47  ;;  %1598 = vmatpush1.bf16.msra.mxu1 %v7815_v18  ;;  %v7825_v47 = vld [vmem:[#allocation134_spill] sm:$0xff] }
 0x21b   : > { %1556 = vmatprep.subr.bf16.mxu0 %v7816_v58  ;;  %1599 = vmatprep.subr.bf16.mxu1 %v7817_v17 }
 0x21e   : > { %1557 = vmatpush1.bf16.msra.mxu0 %v7818_v33  ;;  %1600 = vmatpush1.bf16.msra.mxu1 %v7819_v34  ;;  %v7826_v33 = vld [vmem:[#allocation138_spill] sm:$0xff] }
 0x21f   : > { %1558 = vmatprep.subr.bf16.mxu0 %v7820_v43  ;;  %1601 = vmatprep.subr.bf16.mxu1 %v7821_v63 }
 0x222   : > { %1559 = vmatpush1.bf16.msra.mxu0 %v7822_v35  ;;  %1602 = vmatpush1.bf16.msra.mxu1 %v7823_v60 }
 0x223   : > { %1560 = vmatprep.subr.bf16.mxu0 %v7824_v27  ;;  %1603 = vmatprep.subr.bf16.mxu1 %v7825_v47 }
 0x226   : > { %1561 = vmatpush1.bf16.msra.mxu0 %v5820_v51  ;;  %1604 = vmatpush1.bf16.msra.mxu1 %v5824_v49 }
 0x227   : > { %1562 = vmatprep.subr.bf16.mxu0 %v5826_v36  ;;  %1605 = vmatprep.subr.bf16.mxu1 %v7826_v33 }
 0x22a   : > { %1563 = vmatpush1.bf16.msra.mxu0 %v5832_v41  ;;  %1606 = vmatpush1.bf16.msra.mxu1 %v5836_v8 }
 0x22b   : > { %1564 = vmatprep.subr.bf16.mxu0 %v5838_v59  ;;  %1607 = vmatprep.subr.bf16.mxu1 %v5841_v9  ;;  %v4211_v9 = vld [vmem:[%s5397_s19 + $0x58] sm:$0xff] }
 0x22e   : > { %1565 = vmatpush1.bf16.msra.mxu0 %v5844_v56  ;;  %1608 = vmatpush1.bf16.msra.mxu1 %v5848_v42 }
 0x22f   : > { %1566 = vmatprep.subr.bf16.mxu0 %v5850_v24  ;;  %1609 = vmatprep.subr.bf16.mxu1 %v5853_v57 }
 0x232   : > { %1567 = vmatpush1.bf16.msra.mxu0 %v5856_v52  ;;  %1610 = vmatpush1.bf16.msra.mxu1 %v5860_v19 }
 0x233   : > { %1767 = vmatprep.subr.bf16.mxu0 %v5409_v5  ;;  %1810 = vmatprep.subr.bf16.mxu1 %v5413_v10 }
 0x235   : > { %1569 = vmatmul.mubr.bf16.vlgmr.msra.gmra.mrb[12].mxu0 %v6004_v26  ;;  %1612 = vmatmul.mubr.bf16.vlgmr.msra.gmra.mrb[12].mxu1 %v6004_v26  ;;  %v7827_v26 = vld [vmem:[#allocation29_spill] sm:$0xff] }
 0x236   : > { %1768 = vmatpush1.bf16.msra.mxu0 %v5411_v7  ;;  %1811 = vmatpush1.bf16.msra.mxu1 %v5415_v11 }
 0x237   : > { %1769 = vmatprep.subr.bf16.mxu0 %v5417_v12  ;;  %1812 = vmatprep.subr.bf16.mxu1 %v5420_v16 }
 0x23a   : > { %1770 = vmatpush1.bf16.msra.mxu0 %v5424_v20  ;;  %1813 = vmatpush1.bf16.msra.mxu1 %v5428_v21  ;;  %v7828_v21 = vld [vmem:[#allocation30_spill] sm:$0xff] }
 0x23b   : > { %1771 = vmatprep.subr.bf16.mxu0 %v5430_v22  ;;  %1814 = vmatprep.subr.bf16.mxu1 %v5433_v23  ;;  %v7829_v22 = vld [vmem:[#allocation31_spill] sm:$0xff]  ;;  %v7830_v23 = vld [vmem:[#allocation32_spill] sm:$0xff] }
 0x23e   : > { %1772 = vmatpush1.bf16.msra.mxu0 %v5438_v29  ;;  %1815 = vmatpush1.bf16.msra.mxu1 %v5442_v30  ;;  %v7831_v29 = vld [vmem:[#allocation33_spill] sm:$0xff]  ;;  %v7832_v30 = vld [vmem:[#allocation34_spill] sm:$0xff] }
 0x23f   : > { %1773 = vmatprep.subr.bf16.mxu0 %v5444_v31  ;;  %1816 = vmatprep.subr.bf16.mxu1 %v5447_v32  ;;  %v7833_v31 = vld [vmem:[#allocation35_spill] sm:$0xff]  ;;  %v7834_v32 = vld [vmem:[#allocation36_spill] sm:$0xff] }
 0x242   : > { %1774 = vmatpush1.bf16.msra.mxu0 %v5450_v37  ;;  %1817 = vmatpush1.bf16.msra.mxu1 %v5454_v38  ;;  %v7835_v37 = vld [vmem:[#allocation37_spill] sm:$0xff]  ;;  %v7836_v38 = vld [vmem:[#allocation38_spill] sm:$0xff] }
 0x243   : > { %1775 = vmatprep.subr.bf16.mxu0 %v5456_v39  ;;  %1818 = vmatprep.subr.bf16.mxu1 %v7827_v26  ;;  %v7837_v39 = vld [vmem:[#allocation39_spill] sm:$0xff]  ;;  %v7838_v26 = vld [vmem:[#allocation40_spill] sm:$0xff] }
 0x246   : > { %1776 = vmatpush1.bf16.msra.mxu0 %v7828_v21  ;;  %1819 = vmatpush1.bf16.msra.mxu1 %v7829_v22  ;;  %v7839_v21 = vld [vmem:[#allocation41_spill] sm:$0xff]  ;;  %v7840_v22 = vld [vmem:[#allocation42_spill] sm:$0xff] }
 0x247   : > { %1777 = vmatprep.subr.bf16.mxu0 %v7830_v23  ;;  %1820 = vmatprep.subr.bf16.mxu1 %v7831_v29  ;;  %v7841_v23 = vld [vmem:[#allocation43_spill] sm:$0xff]  ;;  %v7842_v29 = vld [vmem:[#allocation44_spill] sm:$0xff] }
 0x24a   : > { %1778 = vmatpush1.bf16.msra.mxu0 %v7832_v30  ;;  %1821 = vmatpush1.bf16.msra.mxu1 %v7833_v31  ;;  %v7843_v30 = vld [vmem:[#allocation45_spill] sm:$0xff]  ;;  %v7844_v31 = vld [vmem:[#allocation46_spill] sm:$0xff] }
 0x24b   : > { %1779 = vmatprep.subr.bf16.mxu0 %v7834_v32  ;;  %1822 = vmatprep.subr.bf16.mxu1 %v7835_v37  ;;  %v7845_v32 = vld [vmem:[#allocation47_spill] sm:$0xff]  ;;  %v7846_v37 = vld [vmem:[#allocation48_spill] sm:$0xff] }
 0x24e   : > { %1780 = vmatpush1.bf16.msra.mxu0 %v7836_v38  ;;  %1823 = vmatpush1.bf16.msra.mxu1 %v7837_v39  ;;  %v7847_v38 = vld [vmem:[#allocation49_spill] sm:$0xff]  ;;  %v7848_v39 = vld [vmem:[#allocation50_spill] sm:$0xff] }
 0x24f   : > { %1781 = vmatprep.subr.bf16.mxu0 %v7838_v26  ;;  %1824 = vmatprep.subr.bf16.mxu1 %v7839_v21  ;;  %v7849_v26 = vld [vmem:[#allocation51_spill] sm:$0xff]  ;;  %v7850_v21 = vld [vmem:[#allocation52_spill] sm:$0xff] }
 0x252   : > { %1782 = vmatpush1.bf16.msra.mxu0 %v7840_v22  ;;  %1825 = vmatpush1.bf16.msra.mxu1 %v7841_v23  ;;  %v7851_v22 = vld [vmem:[#allocation53_spill] sm:$0xff]  ;;  %v7852_v23 = vld [vmem:[#allocation54_spill] sm:$0xff] }
 0x253   : > { %1783 = vmatprep.subr.bf16.mxu0 %v7842_v29  ;;  %1826 = vmatprep.subr.bf16.mxu1 %v7843_v30  ;;  %v7853_v29 = vld [vmem:[#allocation55_spill] sm:$0xff]  ;;  %v7854_v30 = vld [vmem:[#allocation56_spill] sm:$0xff] }
 0x256   : > { %1784 = vmatpush1.bf16.msra.mxu0 %v7844_v31  ;;  %1827 = vmatpush1.bf16.msra.mxu1 %v7845_v32  ;;  %v7855_v31 = vld [vmem:[#allocation57_spill] sm:$0xff]  ;;  %v7856_v32 = vld [vmem:[#allocation58_spill] sm:$0xff] }
 0x257   : > { %1785 = vmatprep.subr.bf16.mxu0 %v7846_v37  ;;  %1828 = vmatprep.subr.bf16.mxu1 %v7847_v38  ;;  %v7857_v37 = vld [vmem:[#allocation59_spill] sm:$0xff]  ;;  %v7858_v38 = vld [vmem:[#allocation61_spill] sm:$0xff] }
 0x25a   : > { %1786 = vmatpush1.bf16.msra.mxu0 %v7848_v39  ;;  %1829 = vmatpush1.bf16.msra.mxu1 %v7849_v26  ;;  %v7859_v39 = vld [vmem:[#allocation62_spill] sm:$0xff]  ;;  %v7860_v26 = vld [vmem:[#allocation64_spill] sm:$0xff] }
 0x25b   : > { %1787 = vmatprep.subr.bf16.mxu0 %v7850_v21  ;;  %1830 = vmatprep.subr.bf16.mxu1 %v7851_v22  ;;  %v7861_v21 = vld [vmem:[#allocation65_spill] sm:$0xff]  ;;  %v7872_v22 = vld [vmem:[#allocation79_spill] sm:$0xff] }
 0x25e   : > { %1788 = vmatpush1.bf16.msra.mxu0 %v7852_v23  ;;  %1831 = vmatpush1.bf16.msra.mxu1 %v7853_v29  ;;  %v7862_v23 = vld [vmem:[#allocation66_spill] sm:$0xff]  ;;  %v7863_v29 = vld [vmem:[#allocation67_spill] sm:$0xff] }
 0x25f   : > { %1789 = vmatprep.subr.bf16.mxu0 %v7854_v30  ;;  %1832 = vmatprep.subr.bf16.mxu1 %v7855_v31  ;;  %v7864_v30 = vld [vmem:[#allocation69_spill] sm:$0xff]  ;;  %v7865_v31 = vld [vmem:[#allocation70_spill] sm:$0xff] }
 0x262   : > { %1790 = vmatpush1.bf16.msra.mxu0 %v7856_v32  ;;  %1833 = vmatpush1.bf16.msra.mxu1 %v7857_v37  ;;  %v7866_v32 = vld [vmem:[#allocation71_spill] sm:$0xff]  ;;  %v7867_v37 = vld [vmem:[#allocation72_spill] sm:$0xff] }
 0x263   : > { %1791 = vmatprep.subr.bf16.mxu0 %v7858_v38  ;;  %1834 = vmatprep.subr.bf16.mxu1 %v7859_v39  ;;  %v7868_v38 = vld [vmem:[#allocation74_spill] sm:$0xff]  ;;  %v7869_v39 = vld [vmem:[#allocation75_spill] sm:$0xff] }
 0x266   : > { %1792 = vmatpush1.bf16.msra.mxu0 %v7860_v26  ;;  %1835 = vmatpush1.bf16.msra.mxu1 %v7861_v21  ;;  %v7870_v26 = vld [vmem:[#allocation76_spill] sm:$0xff]  ;;  %v7871_v21 = vld [vmem:[#allocation77_spill] sm:$0xff] }
 0x267   : > { %1793 = vmatprep.subr.bf16.mxu0 %v7862_v23  ;;  %1836 = vmatprep.subr.bf16.mxu1 %v7863_v29  ;;  %v7873_v23 = vld [vmem:[#allocation82_spill] sm:$0xff]  ;;  %v7874_v29 = vld [vmem:[#allocation83_spill] sm:$0xff] }
 0x26a   : > { %1794 = vmatpush1.bf16.msra.mxu0 %v7864_v30  ;;  %1837 = vmatpush1.bf16.msra.mxu1 %v7865_v31  ;;  %v7875_v30 = vld [vmem:[#allocation84_spill] sm:$0xff]  ;;  %v4209_v31 = vld [vmem:[%s5397_s19 + $0x48] sm:$0xff] }
 0x26b   : > { %1795 = vmatprep.subr.bf16.mxu0 %v7866_v32  ;;  %1838 = vmatprep.subr.bf16.mxu1 %v7867_v37  ;;  %v4213_v32 = vld [vmem:[%s5397_s19 + $0x68] sm:$0xff]  ;;  %v1436_v20 = vunpack.c.l.bf16 %v4209_v31  ;;  %v1437_v37 = vunpack.c.h.bf16 %v4209_v31 }
 0x26c   : > { %v1444_v16 = vunpack.c.l.bf16 %v4213_v32 }
 0x26e   : > { %1796 = vmatpush1.bf16.msra.mxu0 %v7868_v38  ;;  %1839 = vmatpush1.bf16.msra.mxu1 %v7869_v39  ;;  %v1445_v39 = vunpack.c.h.bf16 %v4213_v32 }
 0x26f   : > { %1797 = vmatprep.subr.bf16.mxu0 %v7870_v26  ;;  %1840 = vmatprep.subr.bf16.mxu1 %v7871_v21 }
 0x272   : > { %1798 = vmatpush1.bf16.msra.mxu0 %v7872_v22  ;;  %1841 = vmatpush1.bf16.msra.mxu1 %v7873_v23 }
 0x273   : > { %1853 = vmatprep.subr.bf16.mxu0 %v7874_v29  ;;  %1896 = vmatprep.subr.bf16.mxu1 %v7875_v30 }
 0x2c8   : > { %v1484_v38 = vpop.f32.mrb[8].mxu0  ;;  %v1527_v12 = vpop.f32.mrb[8].mxu1 }
 0x2c9   : > { %v1528_v11 = vadd.f32 %v1527_v12, %v1436_v20  ;;  %v1486_v26 = vpop.f32.mrb[9].mxu0  ;;  %v1529_v7 = vpop.f32.mrb[9].mxu1 }
 0x2ca   : > { %v1530_v21 = vadd.f32 %v1529_v7, %v1437_v37  ;;  %v1488_v10 = vpop.f32.mrb[10].mxu0  ;;  %v1531_v22 = vpop.f32.mrb[10].mxu1 }
 0x2cb   : > { %v4220_v5 = vmul.f32 -1.442695, %v1528_v11  ;;  %v1532_v23 = vadd.f32 %v1531_v22, %v1444_v16  ;;  %v1490_v19 = vpop.f32.mrb[11].mxu0  ;;  %v1533_v29 = vpop.f32.mrb[11].mxu1 }
 0x2cc   : > { %v4221_v52 = vmul.f32 -1.442695, %v1530_v21  ;;  %v1534_v30 = vadd.f32 %v1533_v29, %v1445_v39  ;;  %v4208_v29 = vld [vmem:[%s5397_s19 + $0x40] sm:$0xff] }
 0x2cd   : > { %4612 = vpow2.f32 %v4220_v5  ;;  %v4222_v57 = vmul.f32 -1.442695, %v1532_v23 }
 0x2ce   : > { %4614 = vpow2.f32 %v4221_v52  ;;  %v4223_v31 = vmul.f32 -1.442695, %v1534_v30  ;;  %v4212_v52 = vld [vmem:[%s5397_s19 + $0x60] sm:$0xff] }
 0x2cf   : > { %4616 = vpow2.f32 %v4222_v57  ;;  %v1434_v57 = vunpack.c.l.bf16 %v4208_v29 }
 0x2d0   : > { %4618 = vpow2.f32 %v4223_v31 }
 0x2d7   : > { %v4613_v32 = vpop.eup %4612 }
 0x2d8   : > { %v1658_v12 = vadd.f32 1.0, %v4613_v32  ;;  %v4615_v20 = vpop.eup %4614 }
 0x2d9   : > { %v1659_v7 = vadd.f32 1.0, %v4615_v20  ;;  %v4617_v37 = vpop.eup %4616  ;;  %v1442_v20 = vunpack.c.l.bf16 %v4212_v52 }
 0x2da   : > { %4620 = vrcp.f32 %v1658_v12  ;;  %v1660_v11 = vadd.f32 1.0, %v4617_v37  ;;  %v4619_v16 = vpop.eup %4618  ;;  %v1435_v12 = vunpack.c.h.bf16 %v4208_v29  ;;  %v1443_v37 = vunpack.c.h.bf16 %v4212_v52  ;;  %v4210_v52 = vld [vmem:[%s5397_s19 + $0x50] sm:$0xff] }
 0x2db   : > { %4622 = vrcp.f32 %v1659_v7  ;;  %v1661_v21 = vadd.f32 1.0, %v4619_v16 }
 0x2dc   : > { %4624 = vrcp.f32 %v1660_v11  ;;  %v1485_v11 = vadd.f32 %v1484_v38, %v1434_v57  ;;  %v1487_v16 = vadd.f32 %v1486_v26, %v1435_v12 }
 0x2dd   : > { %4626 = vrcp.f32 %v1661_v21  ;;  %v1489_v21 = vadd.f32 %v1488_v10, %v1442_v20  ;;  %v4214_v10 = vld [vmem:[%s5397_s19 + $0x70] sm:$0xff]  ;;  %v1438_v20 = vunpack.c.l.bf16 %v4210_v52 }
 0x2de   : > { %v4217_v24 = vmul.f32 -1.442695, %v1487_v16  ;;  %v1439_v16 = vunpack.c.h.bf16 %v4210_v52  ;;  %v1447_v41 = vunpack.c.h.bf16 %v4214_v10 }
 0x2df   : > { %v4218_v42 = vmul.f32 -1.442695, %v1489_v21  ;;  %v1441_v21 = vunpack.c.h.bf16 %v4211_v9 }
 0x2e4   : > { %v4621_v5 = vpop.eup %4620 }
 0x2e5   : > { %v6141_v22 = vmul.f32 %v4621_v5, %v5972_v62  ;;  %v4623_v23 = vpop.eup %4622  ;;  %v1491_v5 = vadd.f32 %v1490_v19, %v1443_v37  ;;  %v4215_v19 = vld [vmem:[%s5397_s19 + $0x78] sm:$0xff]  ;;  %v1440_v37 = vunpack.c.l.bf16 %v4211_v9 }
 0x2e6   : > { %v6145_v30 = vmul.f32 %v4623_v23, %v5976_v6  ;;  %v4625_v39 = vpop.eup %4624  ;;  %v4216_v23 = vmul.f32 -1.442695, %v1485_v11 }
 0x2e7   : > { %v6149_v31 = vmul.f32 %v4625_v39, %v5979_v53  ;;  %v4627_v32 = vpop.eup %4626  ;;  %v4219_v39 = vmul.f32 -1.442695, %v1491_v5 }
 0x2e8   : > { %v6152_v7 = vmul.f32 %v4627_v32, %v5982_v54  ;;  %4628 = vpow2.f32 %v4216_v23 }
 0x2e9   : > { %4630 = vpow2.f32 %v4217_v24  ;;  %v1446_v24 = vunpack.c.l.bf16 %v4214_v10 }
 0x2ea   : > { %4632 = vpow2.f32 %v4218_v42  ;;  %v1448_v42 = vunpack.c.l.bf16 %v4215_v19 }
 0x2eb   : > { %4634 = vpow2.f32 %v4219_v39  ;;  %v1449_v39 = vunpack.c.h.bf16 %v4215_v19 }
 0x2f2   : > { %v4629_v29 = vpop.eup %4628 }
 0x2f3   : > { %v4631_v32 = vpop.eup %4630  ;;  %v1634_v57 = vadd.f32 1.0, %v4629_v29 }
 0x2f4   : > { %v4633_v56 = vpop.eup %4632  ;;  %v1635_v26 = vadd.f32 1.0, %v4631_v32 }
 0x2f5   : > { %v4635_v38 = vpop.eup %4634  ;;  %v1636_v12 = vadd.f32 1.0, %v4633_v56  ;;  %4636 = vrcp.f32 %v1634_v57 }
 0x2f6   : > { %v1637_v11 = vadd.f32 1.0, %v4635_v38  ;;  %4638 = vrcp.f32 %v1635_v26 }
 0x2f7   : > { %4640 = vrcp.f32 %v1636_v12 }
 0x2f8   : > { %4642 = vrcp.f32 %v1637_v11 }
 0x2ff   : > { %v4637_v10 = vpop.eup %4636 }
 0x300   : > { %v4639_v11 = vpop.eup %4638 }
 0x308   : > { %v1570_v5 = vpop.f32.mrb[12].mxu0  ;;  %v1613_v23 = vpop.f32.mrb[12].mxu1 }
 0x309   : > { %v1571_v59 = vadd.f32 %v1570_v5, %v1438_v20  ;;  %v1614_v8 = vadd.f32 %v1613_v23, %v1440_v37  ;;  %v1572_v29 = vpop.f32.mrb[13].mxu0  ;;  %v1615_v32 = vpop.f32.mrb[13].mxu1 }
 0x30a   : > { %v1573_v56 = vadd.f32 %v1572_v29, %v1439_v16  ;;  %v1616_v33 = vadd.f32 %v1615_v32, %v1441_v21  ;;  %v1574_v36 = vpop.f32.mrb[14].mxu0  ;;  %v1617_v38 = vpop.f32.mrb[14].mxu1 }
 0x30b   : > { %4644 = vtanh.f32 %v1571_v59  ;;  %v4224_v9 = vmul.f32 -1.442695, %v1614_v8  ;;  %v1575_v52 = vadd.f32 %v1574_v36, %v1446_v24  ;;  %v1618_v57 = vadd.f32 %v1617_v38, %v1448_v42  ;;  %v1576_v49 = vpop.f32.mrb[15].mxu0  ;;  %v1619_v26 = vpop.f32.mrb[15].mxu1 }
 0x30c   : > { %4646 = vtanh.f32 %v1573_v56  ;;  %v4225_v51 = vmul.f32 -1.442695, %v1616_v33  ;;  %v1620_v19 = vadd.f32 %v1619_v26, %v1449_v39  ;;  %v1577_v20 = vadd.f32 %v1576_v49, %v1447_v41  ;;  %v4641_v59 = vpop.eup %4640  ;;  %v1726_v36 = vpop.permute.xlu1 %1725 }
 0x30d   : > { %4648 = vpow2.f32 %v4224_v9  ;;  %v4226_v12 = vmul.f32 -1.442695, %v1618_v57  ;;  %v4643_v8 = vpop.eup %4642  ;;  %vm1730_vm2 = vcmp.eq.s32.totalorder %v1726_v36, 1  ;;  %v7880_v36 = vld [vmem:[#allocation105_spill] sm:$0xff] }
 0x30e   : > { %4650 = vpow2.f32 %v4225_v51  ;;  %v4227_v37 = vmul.f32 -1.442695, %v1620_v19 }
 0x30f   : > { %4652 = vtanh.f32 %v1575_v52 }
 0x310   : > { %4654 = vpow2.f32 %v4226_v12  ;;  %v1729_v32 = vpop.permute.xlu1 %1728 }
 0x311   : > { %4656 = vtanh.f32 %v1577_v20  ;;  %vm1731_vm3 = vcmp.eq.s32.totalorder %v1729_v32, 1  ;;  %v7885_v32 = vld [vmem:[#allocation110_spill] sm:$0xff] }
 0x312   : > { %4658 = vpow2.f32 %v4227_v37 }
 0x315   : > { %v4645_v16 = vpop.eup %4644 }
 0x316   : > { %v4647_v21 = vpop.eup %4646  ;;  %v1702_v24 = vmul.f32 %v4645_v16, %v4637_v10 }
 0x317   : > { %v4649_v42 = vpop.eup %4648  ;;  %v1703_v33 = vmul.f32 %v4647_v21, %v4639_v11 }
 0x318   : > { %v4651_v5 = vpop.eup %4650  ;;  %v1706_v49 = vadd.f32 %v1702_v24, %v6141_v22  ;;  %v1686_v51 = vadd.f32 1.0, %v4649_v42 }
 0x319   : > { %v4653_v41 = vpop.eup %4652  ;;  %v1707_v23 = vadd.f32 %v1703_v33, %v6145_v30  ;;  %v1687_v39 = vadd.f32 1.0, %v4651_v5 }
 0x31a   : > { %v4655_v29 = vpop.eup %4654  ;;  %4660 = vtanh.f32 %v1706_v49  ;;  %v1704_v56 = vmul.f32 %v4653_v41, %v4641_v59  ;;  %v6162_v38 = vsel %vm1730_vm2, %v1706_v49, %v5972_v62  ;;  %v7881_v41 = vld [vmem:[#allocation106_spill] sm:$0xff] }
 0x31b   : > { %v4657_v9 = vpop.eup %4656  ;;  %4662 = vrcp.f32 %v1686_v51  ;;  %v1688_v52 = vadd.f32 1.0, %v4655_v29  ;;  %v6166_v22 = vsel %vm1730_vm2, %v1707_v23, %v5976_v6  ;;  %v7884_v29 = vld [vmem:[#allocation109_spill] sm:$0xff] }
 0x31c   : > { %v4659_v57 = vpop.eup %4658  ;;  %4664 = vtanh.f32 %v1707_v23  ;;  %v1705_v30 = vmul.f32 %v4657_v9, %v4643_v8  ;;  %v1708_v26 = vadd.f32 %v1704_v56, %v6149_v31  ;;  %v7882_v23 = vld [vmem:[#allocation107_spill] sm:$0xff]  ;;  %v7887_v9 = vld [vmem:[#allocation112_spill] sm:$0xff] }
 0x31d   : > { %4666 = vrcp.f32 %v1687_v39  ;;  %v1689_v19 = vadd.f32 1.0, %v4659_v57  ;;  %v7883_v39 = vld [vmem:[#allocation108_spill] sm:$0xff]  ;;  %v7886_v56 = vld [vmem:[#allocation111_spill] sm:$0xff]  ;;  %v7889_v57 = vld [vmem:[#allocation114_spill] sm:$0xff] }
 0x31e   : > { %4668 = vrcp.f32 %v1688_v52  ;;  %v1709_v12 = vadd.f32 %v1705_v30, %v6152_v7  ;;  %v6172_v62 = vsel %vm1731_vm3, %v1708_v26, %v5979_v53  ;;  %v7888_v52 = vld [vmem:[#allocation113_spill] sm:$0xff]  ;;  %v7890_v30 = vld [vmem:[#allocation115_spill] sm:$0xff] }
 0x31f   : > { %4670 = vrcp.f32 %v1689_v19  ;;  %v7892_v19 = vld [vmem:[#allocation117_spill] sm:$0xff] }
 0x320   : > { %4672 = vtanh.f32 %v1708_v26  ;;  %v6176_v6 = vsel %vm1731_vm3, %v1709_v12, %v5982_v54  ;;  %v7891_v26 = vld [vmem:[#allocation116_spill] sm:$0xff] }
 0x321   : > { %4674 = vtanh.f32 %v1709_v12  ;;  %v7893_v12 = vld [vmem:[#allocation118_spill] sm:$0xff] }
 0x324   : > { %v4661_v20 = vpop.eup %4660 }
 0x325   : > { %v4663_v37 = vpop.eup %4662 }
 0x326   : > { %v4665_v10 = vpop.eup %4664  ;;  %v1714_v31 = vmul.f32 %v4663_v37, %v4661_v20  ;;  %v7894_v20 = vld [vmem:[#allocation119_spill] sm:$0xff]  ;;  %v7895_v37 = vld [vmem:[#allocation120_spill] sm:$0xff] }
 0x327   : > { %v4667_v11 = vpop.eup %4666 }
 0x328   : > { %v4669_v59 = vpop.eup %4668  ;;  %v1715_v8 = vmul.f32 %v4667_v11, %v4665_v10  ;;  %v6192_v5 = vsel %vm1730_vm2, %v1714_v31, %v5998_v50  ;;  %v7879_v50 = vld [vmem:[#allocation104_spill] sm:$0xff]  ;;  %v7896_v10 = vld [vmem:[#allocation121_spill] sm:$0xff]  ;;  %v7897_v31 = vld [vmem:[#allocation122_spill] sm:$0xff] }
 0x329   : > { %v4671_v16 = vpop.eup %4670  ;;  %v7898_v11 = vld [vmem:[#allocation123_spill] sm:$0xff] }
 0x32a   : > { %v4673_v7 = vpop.eup %4672  ;;  %v6184_v54 = vsel %vm1730_vm2, %v1715_v8, %v5990_v61  ;;  %v7877_v61 = vld [vmem:[#allocation102_spill] sm:$0xff]  ;;  %v7900_v8 = vld [vmem:[#allocation135_spill] sm:$0xff] }
 0x32b   : > { %v4675_v21 = vpop.eup %4674  ;;  %v1716_v24 = vmul.f32 %v4673_v7, %v4669_v59  ;;  %v7899_v59 = vld [vmem:[#allocation127_spill] sm:$0xff]  ;;  %v7902_v7 = vld [vmem:[#allocation137_spill] sm:$0xff] }
 0x32c   : > { %v1717_v53 = vmul.f32 %v4675_v21, %v4671_v16  ;;  %v7901_v16 = vld [vmem:[#allocation136_spill] sm:$0xff]  ;;  %v7903_v21 = vld [vmem:[#allocation138_spill] sm:$0xff] }
 0x32d   : > { %v6180_v42 = vsel %vm1731_vm3, %v1716_v24, %v5986_v44  ;;  %v7876_v44 = vld [vmem:[#allocation101_spill] sm:$0xff]  ;;  %v7904_v24 = vld [vmem:[#allocation139_spill] sm:$0xff] }
 0x32e   : > { %v6188_v33 = vsel %vm1731_vm3, %v1717_v53, %v5993_v4  ;;  %v6198_v51 = vpack.c.bf16 %v6180_v42, %v6192_v5  ;;  %v7878_v4 = vld [vmem:[#allocation103_spill] sm:$0xff]  ;;  %v7905_v53 = vld [vmem:[#allocation140_spill] sm:$0xff] }
 0x32f   : > { %v1741_v49 = vpack.c.bf16 %v6188_v33, %v6184_v54 }
 0x331   : > { %1799 = vmatprep.mubr.bf16.mxu0 %v1741_v49  ;;  %1842 = vmatprep.mubr.bf16.mxu1 %v1741_v49 }
 0x332   : > { %1800 = vmatmul.mubr.bf16.vlgmr.msra.gmra.mrb[16].mxu0 %v6198_v51  ;;  %1843 = vmatmul.mubr.bf16.vlgmr.msra.gmra.mrb[16].mxu1 %v6198_v51 }
 0x333   : > { %1854 = vmatpush1.bf16.msra.mxu0 %v7778_v25  ;;  %1897 = vmatpush1.bf16.msra.mxu1 %v7779_v28 }
 0x334   : > { %1885 = vmatprep.mubr.bf16.mxu0 %v1741_v49  ;;  %1928 = vmatprep.mubr.bf16.mxu1 %v1741_v49  ;;  %v7906_v49 = vld [vmem:[#allocation141_spill] sm:$0xff] }
 0x335   : > { %1855 = vmatprep.subr.bf16.mxu0 %v7780_v14  ;;  %1898 = vmatprep.subr.bf16.mxu1 %v7781_v13 }
 0x337   : > { %1856 = vmatpush1.bf16.msra.mxu0 %v7782_v3  ;;  %1899 = vmatpush1.bf16.msra.mxu1 %v7783_v55 }
 0x338   : > { %1857 = vmatprep.subr.bf16.mxu0 %v7784_v46  ;;  %1900 = vmatprep.subr.bf16.mxu1 %v7785_v45 }
 0x33b   : > { %1858 = vmatpush1.bf16.msra.mxu0 %v7786_v0  ;;  %1901 = vmatpush1.bf16.msra.mxu1 %v7787_v48 }
 0x33c   : > { %1859 = vmatprep.subr.bf16.mxu0 %v7788_v1  ;;  %1902 = vmatprep.subr.bf16.mxu1 %v7789_v2 }
 0x33f   : > { %1860 = vmatpush1.bf16.msra.mxu0 %v7790_v15  ;;  %1903 = vmatpush1.bf16.msra.mxu1 %v7791_v40 }
 0x340   : > { %1861 = vmatprep.subr.bf16.mxu0 %v7876_v44  ;;  %1904 = vmatprep.subr.bf16.mxu1 %v7877_v61 }
 0x343   : > { %1862 = vmatpush1.bf16.msra.mxu0 %v7878_v4  ;;  %1905 = vmatpush1.bf16.msra.mxu1 %v7879_v50 }
 0x344   : > { %1863 = vmatprep.subr.bf16.mxu0 %v7880_v36  ;;  %1906 = vmatprep.subr.bf16.mxu1 %v7881_v41 }
 0x347   : > { %1864 = vmatpush1.bf16.msra.mxu0 %v7882_v23  ;;  %1907 = vmatpush1.bf16.msra.mxu1 %v7883_v39 }
 0x348   : > { %1865 = vmatprep.subr.bf16.mxu0 %v7884_v29  ;;  %1908 = vmatprep.subr.bf16.mxu1 %v7885_v32 }
 0x34b   : > { %1866 = vmatpush1.bf16.msra.mxu0 %v7886_v56  ;;  %1909 = vmatpush1.bf16.msra.mxu1 %v7887_v9 }
 0x34c   : > { %1867 = vmatprep.subr.bf16.mxu0 %v7888_v52  ;;  %1910 = vmatprep.subr.bf16.mxu1 %v7889_v57 }
 0x34f   : > { %1868 = vmatpush1.bf16.msra.mxu0 %v7890_v30  ;;  %1911 = vmatpush1.bf16.msra.mxu1 %v7891_v26 }
 0x350   : > { %1869 = vmatprep.subr.bf16.mxu0 %v7892_v19  ;;  %1912 = vmatprep.subr.bf16.mxu1 %v7893_v12  ;;  %v4231_v12 = vld [vmem:[%s5397_s19 + $0x98] sm:$0xff] }
 0x353   : > { %1870 = vmatpush1.bf16.msra.mxu0 %v7894_v20  ;;  %1913 = vmatpush1.bf16.msra.mxu1 %v7895_v37 }
 0x354   : > { %1871 = vmatprep.subr.bf16.mxu0 %v7896_v10  ;;  %1914 = vmatprep.subr.bf16.mxu1 %v7897_v31 }
 0x357   : > { %1872 = vmatpush1.bf16.msra.mxu0 %v7898_v11  ;;  %1915 = vmatpush1.bf16.msra.mxu1 %v7815_v18 }
 0x358   : > { %1873 = vmatprep.subr.bf16.mxu0 %v7816_v58  ;;  %1916 = vmatprep.subr.bf16.mxu1 %v7817_v17 }
 0x35b   : > { %1874 = vmatpush1.bf16.msra.mxu0 %v7899_v59  ;;  %1917 = vmatpush1.bf16.msra.mxu1 %v7819_v34 }
 0x35c   : > { %1875 = vmatprep.subr.bf16.mxu0 %v7820_v43  ;;  %1918 = vmatprep.subr.bf16.mxu1 %v7821_v63 }
 0x35f   : > { %1876 = vmatpush1.bf16.msra.mxu0 %v7822_v35  ;;  %1919 = vmatpush1.bf16.msra.mxu1 %v7823_v60  ;;  %v7907_v35 = vld [vmem:[#allocation142_spill] sm:$0xff]  ;;  %v7908_v60 = vld [vmem:[#allocation143_spill] sm:$0xff] }
 0x360   : > { %1877 = vmatprep.subr.bf16.mxu0 %v7824_v27  ;;  %1920 = vmatprep.subr.bf16.mxu1 %v7825_v47  ;;  %v7909_v27 = vld [vmem:[#allocation144_spill] sm:$0xff]  ;;  %v7910_v47 = vld [vmem:[#allocation145_spill] sm:$0xff] }
 0x363   : > { %1878 = vmatpush1.bf16.msra.mxu0 %v7900_v8  ;;  %1921 = vmatpush1.bf16.msra.mxu1 %v7901_v16  ;;  %v7911_v8 = vld [vmem:[#allocation146_spill] sm:$0xff]  ;;  %v7912_v16 = vld [vmem:[#allocation147_spill] sm:$0xff] }
 0x364   : > { %1879 = vmatprep.subr.bf16.mxu0 %v7902_v7  ;;  %1922 = vmatprep.subr.bf16.mxu1 %v7903_v21  ;;  %v7913_v7 = vld [vmem:[#allocation148_spill] sm:$0xff] }
 0x365   : > { %v7914_v21 = vld [vmem:[#allocation12_spill] sm:$0xff] }
 0x367   : > { %1880 = vmatpush1.bf16.msra.mxu0 %v7904_v24  ;;  %1923 = vmatpush1.bf16.msra.mxu1 %v7905_v53  ;;  %v7915_v24 = vld [vmem:[#allocation14_spill] sm:$0xff] }
 0x368   : > { %1881 = vmatprep.subr.bf16.mxu0 %v7906_v49  ;;  %1924 = vmatprep.subr.bf16.mxu1 %v7907_v35  ;;  %v7916_v35 = vld [vmem:[#allocation13_spill] sm:$0xff]  ;;  %v7925_v49 = vld [vmem:[#allocation23_spill] sm:$0xff] }
 0x36b   : > { %1882 = vmatpush1.bf16.msra.mxu0 %v7908_v60  ;;  %1925 = vmatpush1.bf16.msra.mxu1 %v7909_v27  ;;  %v7917_v60 = vld [vmem:[#allocation15_spill] sm:$0xff]  ;;  %v7918_v27 = vld [vmem:[#allocation16_spill] sm:$0xff] }
 0x36c   : > { %1883 = vmatprep.subr.bf16.mxu0 %v7910_v47  ;;  %1926 = vmatprep.subr.bf16.mxu1 %v7911_v8  ;;  %v7919_v47 = vld [vmem:[#allocation17_spill] sm:$0xff]  ;;  %v7920_v8 = vld [vmem:[#allocation18_spill] sm:$0xff] }
 0x36f   : > { %1884 = vmatpush1.bf16.msra.mxu0 %v7912_v16  ;;  %1927 = vmatpush1.bf16.msra.mxu1 %v7913_v7  ;;  %v7921_v16 = vld [vmem:[#allocation19_spill] sm:$0xff]  ;;  %v7922_v7 = vld [vmem:[#allocation20_spill] sm:$0xff] }
 0x370   : > { %2084 = vmatprep.subr.bf16.mxu0 %v7914_v21  ;;  %2127 = vmatprep.subr.bf16.mxu1 %v7915_v24  ;;  %v7923_v21 = vld [vmem:[#allocation21_spill] sm:$0xff]  ;;  %v7924_v24 = vld [vmem:[#allocation22_spill] sm:$0xff] }
 0x372   : > { %1886 = vmatmul.mubr.bf16.vlgmr.msra.gmra.mrb[20].mxu0 %v6198_v51  ;;  %1929 = vmatmul.mubr.bf16.vlgmr.msra.gmra.mrb[20].mxu1 %v6198_v51  ;;  %v7926_v51 = vld [vmem:[#allocation24_spill] sm:$0xff] }
 0x373   : > { %2085 = vmatpush1.bf16.msra.mxu0 %v7916_v35  ;;  %2128 = vmatpush1.bf16.msra.mxu1 %v7917_v60  ;;  %v7927_v35 = vld [vmem:[#allocation25_spill] sm:$0xff]  ;;  %v7928_v60 = vld [vmem:[#allocation26_spill] sm:$0xff] }
 0x374   : > { %2086 = vmatprep.subr.bf16.mxu0 %v7918_v27  ;;  %2129 = vmatprep.subr.bf16.mxu1 %v7919_v47  ;;  %v7929_v27 = vld [vmem:[#allocation27_spill] sm:$0xff]  ;;  %v7930_v47 = vld [vmem:[#allocation28_spill] sm:$0xff] }
 0x377   : > { %2087 = vmatpush1.bf16.msra.mxu0 %v7920_v8  ;;  %2130 = vmatpush1.bf16.msra.mxu1 %v7921_v16  ;;  %v7931_v8 = vld [vmem:[#allocation29_spill] sm:$0xff]  ;;  %v7932_v16 = vld [vmem:[#allocation30_spill] sm:$0xff] }
 0x378   : > { %2088 = vmatprep.subr.bf16.mxu0 %v7922_v7  ;;  %2131 = vmatprep.subr.bf16.mxu1 %v7923_v21  ;;  %v7933_v7 = vld [vmem:[#allocation31_spill] sm:$0xff]  ;;  %v7934_v21 = vld [vmem:[#allocation32_spill] sm:$0xff] }
 0x37b   : > { %2089 = vmatpush1.bf16.msra.mxu0 %v7924_v24  ;;  %2132 = vmatpush1.bf16.msra.mxu1 %v7925_v49  ;;  %v7935_v24 = vld [vmem:[#allocation33_spill] sm:$0xff]  ;;  %v7936_v49 = vld [vmem:[#allocation34_spill] sm:$0xff] }
 0x37c   : > { %2090 = vmatprep.subr.bf16.mxu0 %v7926_v51  ;;  %2133 = vmatprep.subr.bf16.mxu1 %v7927_v35  ;;  %v7937_v51 = vld [vmem:[#allocation35_spill] sm:$0xff]  ;;  %v7938_v35 = vld [vmem:[#allocation36_spill] sm:$0xff] }
 0x37f   : > { %2091 = vmatpush1.bf16.msra.mxu0 %v7928_v60  ;;  %2134 = vmatpush1.bf16.msra.mxu1 %v7929_v27  ;;  %v7939_v60 = vld [vmem:[#allocation37_spill] sm:$0xff]  ;;  %v7940_v27 = vld [vmem:[#allocation38_spill] sm:$0xff] }
 0x380   : > { %2092 = vmatprep.subr.bf16.mxu0 %v7930_v47  ;;  %2135 = vmatprep.subr.bf16.mxu1 %v7931_v8  ;;  %v7941_v47 = vld [vmem:[#allocation39_spill] sm:$0xff]  ;;  %v7942_v8 = vld [vmem:[#allocation40_spill] sm:$0xff] }
 0x383   : > { %2093 = vmatpush1.bf16.msra.mxu0 %v7932_v16  ;;  %2136 = vmatpush1.bf16.msra.mxu1 %v7933_v7  ;;  %v7943_v16 = vld [vmem:[#allocation41_spill] sm:$0xff]  ;;  %v7944_v7 = vld [vmem:[#allocation42_spill] sm:$0xff] }
 0x384   : > { %2094 = vmatprep.subr.bf16.mxu0 %v7934_v21  ;;  %2137 = vmatprep.subr.bf16.mxu1 %v7935_v24  ;;  %v7945_v21 = vld [vmem:[#allocation43_spill] sm:$0xff]  ;;  %v7946_v24 = vld [vmem:[#allocation44_spill] sm:$0xff] }
 0x387   : > { %2095 = vmatpush1.bf16.msra.mxu0 %v7936_v49  ;;  %2138 = vmatpush1.bf16.msra.mxu1 %v7937_v51  ;;  %v7947_v49 = vld [vmem:[#allocation45_spill] sm:$0xff]  ;;  %v7948_v51 = vld [vmem:[#allocation46_spill] sm:$0xff] }
 0x388   : > { %2096 = vmatprep.subr.bf16.mxu0 %v7938_v35  ;;  %2139 = vmatprep.subr.bf16.mxu1 %v7939_v60  ;;  %v7949_v35 = vld [vmem:[#allocation47_spill] sm:$0xff]  ;;  %v7950_v60 = vld [vmem:[#allocation48_spill] sm:$0xff] }
 0x38b   : > { %2097 = vmatpush1.bf16.msra.mxu0 %v7940_v27  ;;  %2140 = vmatpush1.bf16.msra.mxu1 %v7941_v47  ;;  %v7951_v27 = vld [vmem:[#allocation49_spill] sm:$0xff]  ;;  %v7952_v47 = vld [vmem:[#allocation50_spill] sm:$0xff] }
 0x38c   : > { %2098 = vmatprep.subr.bf16.mxu0 %v7942_v8  ;;  %2141 = vmatprep.subr.bf16.mxu1 %v7943_v16  ;;  %v7953_v8 = vld [vmem:[#allocation51_spill] sm:$0xff]  ;;  %v7954_v16 = vld [vmem:[#allocation52_spill] sm:$0xff] }
 0x38f   : > { %2099 = vmatpush1.bf16.msra.mxu0 %v7944_v7  ;;  %2142 = vmatpush1.bf16.msra.mxu1 %v7945_v21  ;;  %v7955_v7 = vld [vmem:[#allocation53_spill] sm:$0xff]  ;;  %v7956_v21 = vld [vmem:[#allocation54_spill] sm:$0xff] }
 0x390   : > { %2100 = vmatprep.subr.bf16.mxu0 %v7946_v24  ;;  %2143 = vmatprep.subr.bf16.mxu1 %v7947_v49  ;;  %v7957_v24 = vld [vmem:[#allocation55_spill] sm:$0xff]  ;;  %v7958_v49 = vld [vmem:[#allocation56_spill] sm:$0xff] }
 0x393   : > { %2101 = vmatpush1.bf16.msra.mxu0 %v7948_v51  ;;  %2144 = vmatpush1.bf16.msra.mxu1 %v7949_v35  ;;  %v7959_v51 = vld [vmem:[#allocation57_spill] sm:$0xff]  ;;  %v7960_v35 = vld [vmem:[#allocation58_spill] sm:$0xff] }
 0x394   : > { %2102 = vmatprep.subr.bf16.mxu0 %v7950_v60  ;;  %2145 = vmatprep.subr.bf16.mxu1 %v7951_v27  ;;  %v7961_v60 = vld [vmem:[#allocation59_spill] sm:$0xff]  ;;  %v7962_v27 = vld [vmem:[#allocation61_spill] sm:$0xff] }
 0x397   : > { %2103 = vmatpush1.bf16.msra.mxu0 %v7952_v47  ;;  %2146 = vmatpush1.bf16.msra.mxu1 %v7953_v8  ;;  %v7963_v47 = vld [vmem:[#allocation62_spill] sm:$0xff]  ;;  %v7964_v8 = vld [vmem:[#allocation64_spill] sm:$0xff] }
 0x398   : > { %2104 = vmatprep.subr.bf16.mxu0 %v7954_v16  ;;  %2147 = vmatprep.subr.bf16.mxu1 %v7955_v7  ;;  %v7965_v16 = vld [vmem:[#allocation65_spill] sm:$0xff]  ;;  %v7976_v7 = vld [vmem:[#allocation79_spill] sm:$0xff] }
 0x39b   : > { %2105 = vmatpush1.bf16.msra.mxu0 %v7956_v21  ;;  %2148 = vmatpush1.bf16.msra.mxu1 %v7957_v24  ;;  %v7966_v21 = vld [vmem:[#allocation66_spill] sm:$0xff]  ;;  %v7967_v24 = vld [vmem:[#allocation67_spill] sm:$0xff] }
 0x39c   : > { %2106 = vmatprep.subr.bf16.mxu0 %v7958_v49  ;;  %2149 = vmatprep.subr.bf16.mxu1 %v7959_v51  ;;  %v7968_v49 = vld [vmem:[#allocation69_spill] sm:$0xff]  ;;  %v7969_v51 = vld [vmem:[#allocation70_spill] sm:$0xff] }
 0x39f   : > { %2107 = vmatpush1.bf16.msra.mxu0 %v7960_v35  ;;  %2150 = vmatpush1.bf16.msra.mxu1 %v7961_v60  ;;  %v7970_v35 = vld [vmem:[#allocation71_spill] sm:$0xff]  ;;  %v7971_v60 = vld [vmem:[#allocation72_spill] sm:$0xff] }
 0x3a0   : > { %2108 = vmatprep.subr.bf16.mxu0 %v7962_v27  ;;  %2151 = vmatprep.subr.bf16.mxu1 %v7963_v47  ;;  %v7972_v27 = vld [vmem:[#allocation74_spill] sm:$0xff]  ;;  %v7973_v47 = vld [vmem:[#allocation75_spill] sm:$0xff] }
 0x3a3   : > { %2109 = vmatpush1.bf16.msra.mxu0 %v7964_v8  ;;  %2152 = vmatpush1.bf16.msra.mxu1 %v7965_v16  ;;  %v7974_v8 = vld [vmem:[#allocation76_spill] sm:$0xff]  ;;  %v7975_v16 = vld [vmem:[#allocation77_spill] sm:$0xff] }
 0x3a4   : > { %2110 = vmatprep.subr.bf16.mxu0 %v7966_v21  ;;  %2153 = vmatprep.subr.bf16.mxu1 %v7967_v24  ;;  %v7977_v21 = vld [vmem:[#allocation82_spill] sm:$0xff]  ;;  %v7978_v24 = vld [vmem:[#allocation83_spill] sm:$0xff] }
 0x3a7   : > { %2111 = vmatpush1.bf16.msra.mxu0 %v7968_v49  ;;  %2154 = vmatpush1.bf16.msra.mxu1 %v7969_v51  ;;  %v7979_v49 = vld [vmem:[#allocation84_spill] sm:$0xff]  ;;  %v4229_v51 = vld [vmem:[%s5397_s19 + $0x88] sm:$0xff] }
 0x3a8   : > { %2112 = vmatprep.subr.bf16.mxu0 %v7970_v35  ;;  %2155 = vmatprep.subr.bf16.mxu1 %v7971_v60  ;;  %v4233_v35 = vld [vmem:[%s5397_s19 + $0xa8] sm:$0xff]  ;;  %v1753_v53 = vunpack.c.l.bf16 %v4229_v51  ;;  %v1754_v60 = vunpack.c.h.bf16 %v4229_v51 }
 0x3a9   : > { %v1761_v63 = vunpack.c.l.bf16 %v4233_v35 }
 0x3ab   : > { %2113 = vmatpush1.bf16.msra.mxu0 %v7972_v27  ;;  %2156 = vmatpush1.bf16.msra.mxu1 %v7973_v47  ;;  %v1762_v47 = vunpack.c.h.bf16 %v4233_v35 }
 0x3ac   : > { %2114 = vmatprep.subr.bf16.mxu0 %v7974_v8  ;;  %2157 = vmatprep.subr.bf16.mxu1 %v7975_v16 }
 0x3af   : > { %2115 = vmatpush1.bf16.msra.mxu0 %v7976_v7  ;;  %2158 = vmatpush1.bf16.msra.mxu1 %v7977_v21 }
 0x3b0   : > { %2170 = vmatprep.subr.bf16.mxu0 %v7978_v24  ;;  %2213 = vmatprep.subr.bf16.mxu1 %v7979_v49 }
 0x405   : > { %v1801_v27 = vpop.f32.mrb[16].mxu0  ;;  %v1844_v43 = vpop.f32.mrb[16].mxu1 }
 0x406   : > { %v1845_v34 = vadd.f32 %v1844_v43, %v1753_v53  ;;  %v1803_v8 = vpop.f32.mrb[17].mxu0  ;;  %v1846_v59 = vpop.f32.mrb[17].mxu1 }
 0x407   : > { %v1847_v16 = vadd.f32 %v1846_v59, %v1754_v60  ;;  %v1805_v17 = vpop.f32.mrb[18].mxu0  ;;  %v1848_v7 = vpop.f32.mrb[18].mxu1 }
 0x408   : > { %v4240_v58 = vmul.f32 -1.442695, %v1845_v34  ;;  %v1849_v21 = vadd.f32 %v1848_v7, %v1761_v63  ;;  %v1807_v18 = vpop.f32.mrb[19].mxu0  ;;  %v1850_v24 = vpop.f32.mrb[19].mxu1 }
 0x409   : > { %v4241_v11 = vmul.f32 -1.442695, %v1847_v16  ;;  %v1851_v49 = vadd.f32 %v1850_v24, %v1762_v47  ;;  %v4232_v24 = vld [vmem:[%s5397_s19 + $0xa0] sm:$0xff] }
 0x40a   : > { %4676 = vpow2.f32 %v4240_v58  ;;  %v4242_v31 = vmul.f32 -1.442695, %v1849_v21 }
 0x40b   : > { %4678 = vpow2.f32 %v4241_v11  ;;  %v4243_v51 = vmul.f32 -1.442695, %v1851_v49  ;;  %v4228_v11 = vld [vmem:[%s5397_s19 + $0x80] sm:$0xff] }
 0x40c   : > { %4680 = vpow2.f32 %v4242_v31  ;;  %v1751_v49 = vunpack.c.l.bf16 %v4228_v11 }
 0x40d   : > { %4682 = vpow2.f32 %v4243_v51 }
 0x414   : > { %v4677_v35 = vpop.eup %4676 }
 0x415   : > { %v1975_v43 = vadd.f32 1.0, %v4677_v35  ;;  %v4679_v53 = vpop.eup %4678 }
 0x416   : > { %v1976_v60 = vadd.f32 1.0, %v4679_v53  ;;  %v4681_v59 = vpop.eup %4680  ;;  %v1759_v53 = vunpack.c.l.bf16 %v4232_v24 }
 0x417   : > { %4684 = vrcp.f32 %v1975_v43  ;;  %v1977_v34 = vadd.f32 1.0, %v4681_v59  ;;  %v4683_v63 = vpop.eup %4682  ;;  %v1752_v43 = vunpack.c.h.bf16 %v4228_v11  ;;  %v1760_v59 = vunpack.c.h.bf16 %v4232_v24  ;;  %v4230_v24 = vld [vmem:[%s5397_s19 + $0x90] sm:$0xff] }
 0x418   : > { %4686 = vrcp.f32 %v1976_v60  ;;  %v1978_v16 = vadd.f32 1.0, %v4683_v63 }
 0x419   : > { %4688 = vrcp.f32 %v1977_v34  ;;  %v1802_v34 = vadd.f32 %v1801_v27, %v1751_v49  ;;  %v1804_v63 = vadd.f32 %v1803_v8, %v1752_v43 }
 0x41a   : > { %4690 = vrcp.f32 %v1978_v16  ;;  %v1806_v16 = vadd.f32 %v1805_v17, %v1759_v53  ;;  %v4234_v17 = vld [vmem:[%s5397_s19 + $0xb0] sm:$0xff]  ;;  %v1755_v53 = vunpack.c.l.bf16 %v4230_v24 }
 0x41b   : > { %v4237_v10 = vmul.f32 -1.442695, %v1804_v63  ;;  %v1756_v63 = vunpack.c.h.bf16 %v4230_v24  ;;  %v1764_v30 = vunpack.c.h.bf16 %v4234_v17 }
 0x41c   : > { %v4238_v37 = vmul.f32 -1.442695, %v1806_v16  ;;  %v1758_v16 = vunpack.c.h.bf16 %v4231_v12 }
 0x421   : > { %v4685_v47 = vpop.eup %4684 }
 0x422   : > { %v6335_v58 = vmul.f32 %v4685_v47, %v6162_v38  ;;  %v4687_v31 = vpop.eup %4686  ;;  %v1808_v47 = vadd.f32 %v1807_v18, %v1760_v59  ;;  %v4235_v18 = vld [vmem:[%s5397_s19 + $0xb8] sm:$0xff]  ;;  %v1757_v59 = vunpack.c.l.bf16 %v4231_v12 }
 0x423   : > { %v6339_v7 = vmul.f32 %v4687_v31, %v6166_v22  ;;  %v4689_v21 = vpop.eup %4688  ;;  %v4236_v31 = vmul.f32 -1.442695, %v1802_v34 }
 0x424   : > { %v6343_v51 = vmul.f32 %v4689_v21, %v6172_v62  ;;  %v4691_v35 = vpop.eup %4690  ;;  %v4239_v21 = vmul.f32 -1.442695, %v1808_v47 }
 0x425   : > { %v6346_v60 = vmul.f32 %v4691_v35, %v6176_v6  ;;  %4692 = vpow2.f32 %v4236_v31 }
 0x426   : > { %4694 = vpow2.f32 %v4237_v10  ;;  %v1763_v10 = vunpack.c.l.bf16 %v4234_v17 }
 0x427   : > { %4696 = vpow2.f32 %v4238_v37  ;;  %v1765_v37 = vunpack.c.l.bf16 %v4235_v18 }
 0x428   : > { %4698 = vpow2.f32 %v4239_v21  ;;  %v1766_v21 = vunpack.c.h.bf16 %v4235_v18 }
 0x42f   : > { %v4693_v11 = vpop.eup %4692 }
 0x430   : > { %v4695_v35 = vpop.eup %4694  ;;  %v1951_v49 = vadd.f32 1.0, %v4693_v11 }
 0x431   : > { %v4697_v20 = vpop.eup %4696  ;;  %v1952_v8 = vadd.f32 1.0, %v4695_v35 }
 0x432   : > { %v4699_v27 = vpop.eup %4698  ;;  %v1953_v43 = vadd.f32 1.0, %v4697_v20  ;;  %4700 = vrcp.f32 %v1951_v49 }
 0x433   : > { %v1954_v34 = vadd.f32 1.0, %v4699_v27  ;;  %4702 = vrcp.f32 %v1952_v8 }
 0x434   : > { %4704 = vrcp.f32 %v1953_v43 }
 0x435   : > { %4706 = vrcp.f32 %v1954_v34 }
 0x43c   : > { %v4701_v17 = vpop.eup %4700 }
 0x43d   : > { %v4703_v34 = vpop.eup %4702 }
 0x445   : > { %v1887_v47 = vpop.f32.mrb[20].mxu0  ;;  %v1930_v31 = vpop.f32.mrb[20].mxu1 }
 0x446   : > { %v1888_v19 = vadd.f32 %v1887_v47, %v1755_v53  ;;  %v1931_v26 = vadd.f32 %v1930_v31, %v1757_v59  ;;  %v1889_v11 = vpop.f32.mrb[21].mxu0  ;;  %v1932_v35 = vpop.f32.mrb[21].mxu1 }
 0x447   : > { %v1890_v20 = vadd.f32 %v1889_v11, %v1756_v63  ;;  %v1933_v57 = vadd.f32 %v1932_v35, %v1758_v16  ;;  %v1891_v52 = vpop.f32.mrb[22].mxu0  ;;  %v1934_v27 = vpop.f32.mrb[22].mxu1 }
 0x448   : > { %4708 = vtanh.f32 %v1888_v19  ;;  %v4244_v12 = vmul.f32 -1.442695, %v1931_v26  ;;  %v1892_v24 = vadd.f32 %v1891_v52, %v1763_v10  ;;  %v1935_v49 = vadd.f32 %v1934_v27, %v1765_v37  ;;  %v1893_v9 = vpop.f32.mrb[23].mxu0  ;;  %v1936_v8 = vpop.f32.mrb[23].mxu1 }
 0x449   : > { %4710 = vtanh.f32 %v1890_v20  ;;  %v4245_v56 = vmul.f32 -1.442695, %v1933_v57  ;;  %v1937_v18 = vadd.f32 %v1936_v8, %v1766_v21  ;;  %v1894_v53 = vadd.f32 %v1893_v9, %v1764_v30  ;;  %v4705_v19 = vpop.eup %4704  ;;  %v2043_v47 = vpop.permute.xlu0 %2042 }
 0x44a   : > { %4712 = vpow2.f32 %v4244_v12  ;;  %v4246_v43 = vmul.f32 -1.442695, %v1935_v49  ;;  %v4707_v26 = vpop.eup %4706  ;;  %vm2047_vm4 = vcmp.eq.s32.totalorder %v2043_v47, 1  ;;  %v2046_v49 = vpop.permute.xlu1 %2045  ;;  %v7984_v47 = vld [vmem:[#allocation115_spill] sm:$0xff] }
 0x44b   : > { %4714 = vpow2.f32 %v4245_v56  ;;  %v4247_v59 = vmul.f32 -1.442695, %v1937_v18  ;;  %vm2048_vm5 = vcmp.eq.s32.totalorder %v2046_v49, 1  ;;  %v7993_v49 = vld [vmem:[#allocation124_spill] sm:$0xff] }
 0x44c   : > { %4716 = vtanh.f32 %v1892_v24 }
 0x44d   : > { %4718 = vpow2.f32 %v4246_v43 }
 0x44e   : > { %4720 = vtanh.f32 %v1894_v53 }
 0x44f   : > { %4722 = vpow2.f32 %v4247_v59 }
 0x452   : > { %v4709_v52 = vpop.eup %4708 }
 0x453   : > { %v4711_v63 = vpop.eup %4710  ;;  %v2019_v16 = vmul.f32 %v4709_v52, %v4701_v17 }
 0x454   : > { %v4713_v10 = vpop.eup %4712  ;;  %v2020_v37 = vmul.f32 %v4711_v63, %v4703_v34 }
 0x455   : > { %v4715_v57 = vpop.eup %4714  ;;  %v2023_v31 = vadd.f32 %v2019_v16, %v6335_v58  ;;  %v2003_v9 = vadd.f32 1.0, %v4713_v10 }
 0x456   : > { %v4717_v56 = vpop.eup %4716  ;;  %v2024_v30 = vadd.f32 %v2020_v37, %v6339_v7  ;;  %v2004_v21 = vadd.f32 1.0, %v4715_v57 }
 0x457   : > { %v4719_v11 = vpop.eup %4718  ;;  %4724 = vtanh.f32 %v2023_v31  ;;  %v2021_v35 = vmul.f32 %v4717_v56, %v4705_v19  ;;  %v6356_v20 = vsel %vm2047_vm4, %v2023_v31, %v6162_v38  ;;  %v7985_v56 = vld [vmem:[#allocation116_spill] sm:$0xff] }
 0x458   : > { %v4721_v27 = vpop.eup %4720  ;;  %4726 = vrcp.f32 %v2003_v9  ;;  %v2005_v12 = vadd.f32 1.0, %v4719_v11  ;;  %v6360_v24 = vsel %vm2047_vm4, %v2024_v30, %v6166_v22  ;;  %v7988_v11 = vld [vmem:[#allocation119_spill] sm:$0xff] }
 0x459   : > { %v4723_v58 = vpop.eup %4722  ;;  %4728 = vtanh.f32 %v2024_v30  ;;  %v2025_v7 = vadd.f32 %v2021_v35, %v6343_v51  ;;  %v2022_v8 = vmul.f32 %v4721_v27, %v4707_v26  ;;  %v7986_v30 = vld [vmem:[#allocation117_spill] sm:$0xff]  ;;  %v7989_v35 = vld [vmem:[#allocation120_spill] sm:$0xff] }
 0x45a   : > { %4730 = vrcp.f32 %v2004_v21  ;;  %v2006_v18 = vadd.f32 1.0, %v4723_v58  ;;  %v7987_v21 = vld [vmem:[#allocation118_spill] sm:$0xff]  ;;  %v7990_v27 = vld [vmem:[#allocation121_spill] sm:$0xff]  ;;  %v7992_v58 = vld [vmem:[#allocation123_spill] sm:$0xff] }
 0x45b   : > { %4732 = vtanh.f32 %v2025_v7  ;;  %v2026_v38 = vadd.f32 %v2022_v8, %v6346_v60  ;;  %v6366_v43 = vsel %vm2048_vm5, %v2025_v7, %v6172_v62  ;;  %v7994_v7 = vld [vmem:[#allocation125_spill] sm:$0xff]  ;;  %v7995_v8 = vld [vmem:[#allocation126_spill] sm:$0xff] }
 0x45c   : > { %4734 = vrcp.f32 %v2005_v12  ;;  %v7991_v12 = vld [vmem:[#allocation122_spill] sm:$0xff] }
 0x45d   : > { %4736 = vtanh.f32 %v2026_v38  ;;  %v6370_v22 = vsel %vm2048_vm5, %v2026_v38, %v6176_v6  ;;  %v7997_v38 = vld [vmem:[#allocation128_spill] sm:$0xff] }
 0x45e   : > { %4738 = vrcp.f32 %v2006_v18  ;;  %v7996_v18 = vld [vmem:[#allocation127_spill] sm:$0xff] }
 0x461   : > { %v4725_v53 = vpop.eup %4724 }
 0x462   : > { %v4727_v51 = vpop.eup %4726 }
 0x463   : > { %v4729_v59 = vpop.eup %4728  ;;  %v2031_v17 = vmul.f32 %v4727_v51, %v4725_v53  ;;  %v7998_v53 = vld [vmem:[#allocation129_spill] sm:$0xff]  ;;  %v7999_v51 = vld [vmem:[#allocation130_spill] sm:$0xff] }
 0x464   : > { %v4731_v34 = vpop.eup %4730 }
 0x465   : > { %v4733_v19 = vpop.eup %4732  ;;  %v2032_v26 = vmul.f32 %v4731_v34, %v4729_v59  ;;  %v6388_v31 = vsel %vm2047_vm4, %v2031_v17, %v6192_v5  ;;  %v7983_v5 = vld [vmem:[#allocation114_spill] sm:$0xff]  ;;  %v8000_v59 = vld [vmem:[#allocation131_spill] sm:$0xff]  ;;  %v8001_v17 = vld [vmem:[#allocation132_spill] sm:$0xff] }
 0x466   : > { %v4735_v52 = vpop.eup %4734  ;;  %v8002_v34 = vld [vmem:[#allocation133_spill] sm:$0xff] }
 0x467   : > { %v4737_v60 = vpop.eup %4736  ;;  %v2033_v63 = vmul.f32 %v4735_v52, %v4733_v19  ;;  %v6378_v6 = vsel %vm2047_vm4, %v2032_v26, %v6184_v54  ;;  %v7981_v54 = vld [vmem:[#allocation112_spill] sm:$0xff]  ;;  %v8003_v19 = vld [vmem:[#allocation134_spill] sm:$0xff]  ;;  %v8004_v26 = vld [vmem:[#allocation135_spill] sm:$0xff] }
 0x468   : > { %v4739_v16 = vpop.eup %4738  ;;  %v8005_v52 = vld [vmem:[#allocation136_spill] sm:$0xff] }
 0x469   : > { %v2034_v62 = vmul.f32 %v4739_v16, %v4737_v60  ;;  %v6374_v10 = vsel %vm2048_vm5, %v2033_v63, %v6180_v42  ;;  %v7980_v42 = vld [vmem:[#allocation111_spill] sm:$0xff]  ;;  %v8006_v60 = vld [vmem:[#allocation137_spill] sm:$0xff]  ;;  %v8007_v63 = vld [vmem:[#allocation138_spill] sm:$0xff] }
 0x46a   : > { %v6392_v9 = vpack.c.bf16 %v6374_v10, %v6388_v31  ;;  %v8008_v16 = vld [vmem:[#allocation139_spill] sm:$0xff] }
 0x46b   : > { %v6382_v37 = vsel %vm2048_vm5, %v2034_v62, %v6188_v33  ;;  %v7982_v33 = vld [vmem:[#allocation113_spill] sm:$0xff]  ;;  %v8009_v62 = vld [vmem:[#allocation140_spill] sm:$0xff] }
 0x46c   : > { %v2058_v57 = vpack.c.bf16 %v6382_v37, %v6378_v6 }
 0x46e   : > { %2116 = vmatprep.mubr.bf16.mxu0 %v2058_v57  ;;  %2159 = vmatprep.mubr.bf16.mxu1 %v2058_v57 }
 0x46f   : > { %2117 = vmatmul.mubr.bf16.vlgmr.msra.gmra.mrb[24].mxu0 %v6392_v9  ;;  %2160 = vmatmul.mubr.bf16.vlgmr.msra.gmra.mrb[24].mxu1 %v6392_v9 }
 0x470   : > { %2171 = vmatpush1.bf16.msra.mxu0 %v7778_v25  ;;  %2214 = vmatpush1.bf16.msra.mxu1 %v7779_v28 }
 0x471   : > { %2202 = vmatprep.mubr.bf16.mxu0 %v2058_v57  ;;  %2245 = vmatprep.mubr.bf16.mxu1 %v2058_v57  ;;  %v8010_v57 = vld [vmem:[#allocation141_spill] sm:$0xff] }
 0x472   : > { %2172 = vmatprep.subr.bf16.mxu0 %v7780_v14  ;;  %2215 = vmatprep.subr.bf16.mxu1 %v7781_v13 }
 0x474   : > { %2173 = vmatpush1.bf16.msra.mxu0 %v7782_v3  ;;  %2216 = vmatpush1.bf16.msra.mxu1 %v7783_v55 }
 0x475   : > { %2174 = vmatprep.subr.bf16.mxu0 %v7784_v46  ;;  %2217 = vmatprep.subr.bf16.mxu1 %v7785_v45 }
 0x478   : > { %2175 = vmatpush1.bf16.msra.mxu0 %v7786_v0  ;;  %2218 = vmatpush1.bf16.msra.mxu1 %v7787_v48 }
 0x479   : > { %2176 = vmatprep.subr.bf16.mxu0 %v7788_v1  ;;  %2219 = vmatprep.subr.bf16.mxu1 %v7789_v2 }
 0x47c   : > { %2177 = vmatpush1.bf16.msra.mxu0 %v7790_v15  ;;  %2220 = vmatpush1.bf16.msra.mxu1 %v7791_v40 }
 0x47d   : > { %2178 = vmatprep.subr.bf16.mxu0 %v7876_v44  ;;  %2221 = vmatprep.subr.bf16.mxu1 %v7877_v61 }
 0x480   : > { %2179 = vmatpush1.bf16.msra.mxu0 %v7878_v4  ;;  %2222 = vmatpush1.bf16.msra.mxu1 %v7879_v50 }
 0x481   : > { %2180 = vmatprep.subr.bf16.mxu0 %v7880_v36  ;;  %2223 = vmatprep.subr.bf16.mxu1 %v7881_v41 }
 0x484   : > { %2181 = vmatpush1.bf16.msra.mxu0 %v7882_v23  ;;  %2224 = vmatpush1.bf16.msra.mxu1 %v7883_v39 }
 0x485   : > { %2182 = vmatprep.subr.bf16.mxu0 %v7884_v29  ;;  %2225 = vmatprep.subr.bf16.mxu1 %v7885_v32 }
 0x488   : > { %2183 = vmatpush1.bf16.msra.mxu0 %v7980_v42  ;;  %2226 = vmatpush1.bf16.msra.mxu1 %v7981_v54 }
 0x489   : > { %2184 = vmatprep.subr.bf16.mxu0 %v7982_v33  ;;  %2227 = vmatprep.subr.bf16.mxu1 %v7983_v5 }
 0x48c   : > { %2185 = vmatpush1.bf16.msra.mxu0 %v7984_v47  ;;  %2228 = vmatpush1.bf16.msra.mxu1 %v7985_v56 }
 0x48d   : > { %2186 = vmatprep.subr.bf16.mxu0 %v7986_v30  ;;  %2229 = vmatprep.subr.bf16.mxu1 %v7987_v21  ;;  %v4251_v21 = vld [vmem:[%s5397_s19 + $0xd8] sm:$0xff] }
 0x490   : > { %2187 = vmatpush1.bf16.msra.mxu0 %v7988_v11  ;;  %2230 = vmatpush1.bf16.msra.mxu1 %v7989_v35 }
 0x491   : > { %2188 = vmatprep.subr.bf16.mxu0 %v7990_v27  ;;  %2231 = vmatprep.subr.bf16.mxu1 %v7991_v12 }
 0x494   : > { %2189 = vmatpush1.bf16.msra.mxu0 %v7992_v58  ;;  %2232 = vmatpush1.bf16.msra.mxu1 %v7993_v49 }
 0x495   : > { %2190 = vmatprep.subr.bf16.mxu0 %v7994_v7  ;;  %2233 = vmatprep.subr.bf16.mxu1 %v7995_v8 }
 0x498   : > { %2191 = vmatpush1.bf16.msra.mxu0 %v7996_v18  ;;  %2234 = vmatpush1.bf16.msra.mxu1 %v7997_v38 }
 0x499   : > { %2192 = vmatprep.subr.bf16.mxu0 %v7998_v53  ;;  %2235 = vmatprep.subr.bf16.mxu1 %v7999_v51 }
 0x49c   : > { %2193 = vmatpush1.bf16.msra.mxu0 %v8000_v59  ;;  %2236 = vmatpush1.bf16.msra.mxu1 %v8001_v17  ;;  %v8011_v59 = vld [vmem:[#allocation142_spill] sm:$0xff]  ;;  %v8012_v17 = vld [vmem:[#allocation143_spill] sm:$0xff] }
 0x49d   : > { %2194 = vmatprep.subr.bf16.mxu0 %v8002_v34  ;;  %2237 = vmatprep.subr.bf16.mxu1 %v8003_v19  ;;  %v8013_v34 = vld [vmem:[#allocation144_spill] sm:$0xff]  ;;  %v8014_v19 = vld [vmem:[#allocation145_spill] sm:$0xff] }
 0x4a0   : > { %2195 = vmatpush1.bf16.msra.mxu0 %v8004_v26  ;;  %2238 = vmatpush1.bf16.msra.mxu1 %v8005_v52  ;;  %v8015_v26 = vld [vmem:[#allocation146_spill] sm:$0xff]  ;;  %v8016_v52 = vld [vmem:[#allocation147_spill] sm:$0xff] }
 0x4a1   : > { %2196 = vmatprep.subr.bf16.mxu0 %v8006_v60  ;;  %2239 = vmatprep.subr.bf16.mxu1 %v8007_v63  ;;  %v8017_v60 = vld [vmem:[#allocation148_spill] sm:$0xff] }
 0x4a2   : > { %v8018_v63 = vld [vmem:[#allocation12_spill] sm:$0xff] }
 0x4a4   : > { %2197 = vmatpush1.bf16.msra.mxu0 %v8008_v16  ;;  %2240 = vmatpush1.bf16.msra.mxu1 %v8009_v62  ;;  %v8019_v16 = vld [vmem:[#allocation14_spill] sm:$0xff] }
 0x4a5   : > { %2198 = vmatprep.subr.bf16.mxu0 %v8010_v57  ;;  %2241 = vmatprep.subr.bf16.mxu1 %v8011_v59  ;;  %v8020_v59 = vld [vmem:[#allocation13_spill] sm:$0xff]  ;;  %v8029_v57 = vld [vmem:[#allocation23_spill] sm:$0xff] }
 0x4a8   : > { %2199 = vmatpush1.bf16.msra.mxu0 %v8012_v17  ;;  %2242 = vmatpush1.bf16.msra.mxu1 %v8013_v34  ;;  %v8021_v17 = vld [vmem:[#allocation15_spill] sm:$0xff]  ;;  %v8022_v34 = vld [vmem:[#allocation16_spill] sm:$0xff] }
 0x4a9   : > { %2200 = vmatprep.subr.bf16.mxu0 %v8014_v19  ;;  %2243 = vmatprep.subr.bf16.mxu1 %v8015_v26  ;;  %v8023_v19 = vld [vmem:[#allocation17_spill] sm:$0xff]  ;;  %v8024_v26 = vld [vmem:[#allocation18_spill] sm:$0xff] }
 0x4ac   : > { %2201 = vmatpush1.bf16.msra.mxu0 %v8016_v52  ;;  %2244 = vmatpush1.bf16.msra.mxu1 %v8017_v60  ;;  %v8025_v52 = vld [vmem:[#allocation19_spill] sm:$0xff]  ;;  %v8026_v60 = vld [vmem:[#allocation20_spill] sm:$0xff] }
 0x4ad   : > { %2401 = vmatprep.subr.bf16.mxu0 %v8018_v63  ;;  %2444 = vmatprep.subr.bf16.mxu1 %v8019_v16  ;;  %v8027_v63 = vld [vmem:[#allocation21_spill] sm:$0xff]  ;;  %v8028_v16 = vld [vmem:[#allocation22_spill] sm:$0xff] }
 0x4af   : > { %2203 = vmatmul.mubr.bf16.vlgmr.msra.gmra.mrb[28].mxu0 %v6392_v9  ;;  %2246 = vmatmul.mubr.bf16.vlgmr.msra.gmra.mrb[28].mxu1 %v6392_v9  ;;  %v8030_v9 = vld [vmem:[#allocation24_spill] sm:$0xff] }
 0x4b0   : > { %2402 = vmatpush1.bf16.msra.mxu0 %v8020_v59  ;;  %2445 = vmatpush1.bf16.msra.mxu1 %v8021_v17  ;;  %v8031_v59 = vld [vmem:[#allocation25_spill] sm:$0xff]  ;;  %v8032_v17 = vld [vmem:[#allocation26_spill] sm:$0xff] }
 0x4b1   : > { %2403 = vmatprep.subr.bf16.mxu0 %v8022_v34  ;;  %2446 = vmatprep.subr.bf16.mxu1 %v8023_v19  ;;  %v8033_v34 = vld [vmem:[#allocation27_spill] sm:$0xff]  ;;  %v8034_v19 = vld [vmem:[#allocation28_spill] sm:$0xff] }
 0x4b4   : > { %2404 = vmatpush1.bf16.msra.mxu0 %v8024_v26  ;;  %2447 = vmatpush1.bf16.msra.mxu1 %v8025_v52  ;;  %v8035_v26 = vld [vmem:[#allocation29_spill] sm:$0xff]  ;;  %v8036_v52 = vld [vmem:[#allocation30_spill] sm:$0xff] }
 0x4b5   : > { %2405 = vmatprep.subr.bf16.mxu0 %v8026_v60  ;;  %2448 = vmatprep.subr.bf16.mxu1 %v8027_v63  ;;  %v8037_v60 = vld [vmem:[#allocation31_spill] sm:$0xff]  ;;  %v8038_v63 = vld [vmem:[#allocation32_spill] sm:$0xff] }
 0x4b8   : > { %2406 = vmatpush1.bf16.msra.mxu0 %v8028_v16  ;;  %2449 = vmatpush1.bf16.msra.mxu1 %v8029_v57  ;;  %v8039_v16 = vld [vmem:[#allocation33_spill] sm:$0xff]  ;;  %v8040_v57 = vld [vmem:[#allocation34_spill] sm:$0xff] }
 0x4b9   : > { %2407 = vmatprep.subr.bf16.mxu0 %v8030_v9  ;;  %2450 = vmatprep.subr.bf16.mxu1 %v8031_v59  ;;  %v8041_v9 = vld [vmem:[#allocation35_spill] sm:$0xff]  ;;  %v8042_v59 = vld [vmem:[#allocation36_spill] sm:$0xff] }
 0x4bc   : > { %2408 = vmatpush1.bf16.msra.mxu0 %v8032_v17  ;;  %2451 = vmatpush1.bf16.msra.mxu1 %v8033_v34  ;;  %v8043_v17 = vld [vmem:[#allocation37_spill] sm:$0xff]  ;;  %v8044_v34 = vld [vmem:[#allocation38_spill] sm:$0xff] }
 0x4bd   : > { %2409 = vmatprep.subr.bf16.mxu0 %v8034_v19  ;;  %2452 = vmatprep.subr.bf16.mxu1 %v8035_v26  ;;  %v8045_v19 = vld [vmem:[#allocation39_spill] sm:$0xff]  ;;  %v8046_v26 = vld [vmem:[#allocation40_spill] sm:$0xff] }
 0x4c0   : > { %2410 = vmatpush1.bf16.msra.mxu0 %v8036_v52  ;;  %2453 = vmatpush1.bf16.msra.mxu1 %v8037_v60  ;;  %v8047_v52 = vld [vmem:[#allocation41_spill] sm:$0xff]  ;;  %v8048_v60 = vld [vmem:[#allocation42_spill] sm:$0xff] }
 0x4c1   : > { %2411 = vmatprep.subr.bf16.mxu0 %v8038_v63  ;;  %2454 = vmatprep.subr.bf16.mxu1 %v8039_v16  ;;  %v8049_v63 = vld [vmem:[#allocation43_spill] sm:$0xff]  ;;  %v8050_v16 = vld [vmem:[#allocation44_spill] sm:$0xff] }
 0x4c4   : > { %2412 = vmatpush1.bf16.msra.mxu0 %v8040_v57  ;;  %2455 = vmatpush1.bf16.msra.mxu1 %v8041_v9  ;;  %v8051_v57 = vld [vmem:[#allocation45_spill] sm:$0xff]  ;;  %v8052_v9 = vld [vmem:[#allocation46_spill] sm:$0xff] }
 0x4c5   : > { %2413 = vmatprep.subr.bf16.mxu0 %v8042_v59  ;;  %2456 = vmatprep.subr.bf16.mxu1 %v8043_v17  ;;  %v8053_v59 = vld [vmem:[#allocation47_spill] sm:$0xff]  ;;  %v8054_v17 = vld [vmem:[#allocation48_spill] sm:$0xff] }
 0x4c8   : > { %2414 = vmatpush1.bf16.msra.mxu0 %v8044_v34  ;;  %2457 = vmatpush1.bf16.msra.mxu1 %v8045_v19  ;;  %v8055_v34 = vld [vmem:[#allocation49_spill] sm:$0xff]  ;;  %v8056_v19 = vld [vmem:[#allocation50_spill] sm:$0xff] }
 0x4c9   : > { %2415 = vmatprep.subr.bf16.mxu0 %v8046_v26  ;;  %2458 = vmatprep.subr.bf16.mxu1 %v8047_v52  ;;  %v8057_v26 = vld [vmem:[#allocation51_spill] sm:$0xff]  ;;  %v8058_v52 = vld [vmem:[#allocation52_spill] sm:$0xff] }
 0x4cc   : > { %2416 = vmatpush1.bf16.msra.mxu0 %v8048_v60  ;;  %2459 = vmatpush1.bf16.msra.mxu1 %v8049_v63  ;;  %v8059_v60 = vld [vmem:[#allocation53_spill] sm:$0xff]  ;;  %v8060_v63 = vld [vmem:[#allocation54_spill] sm:$0xff] }
 0x4cd   : > { %2417 = vmatprep.subr.bf16.mxu0 %v8050_v16  ;;  %2460 = vmatprep.subr.bf16.mxu1 %v8051_v57  ;;  %v8061_v16 = vld [vmem:[#allocation55_spill] sm:$0xff]  ;;  %v8062_v57 = vld [vmem:[#allocation56_spill] sm:$0xff] }
 0x4d0   : > { %2418 = vmatpush1.bf16.msra.mxu0 %v8052_v9  ;;  %2461 = vmatpush1.bf16.msra.mxu1 %v8053_v59  ;;  %v8063_v9 = vld [vmem:[#allocation57_spill] sm:$0xff]  ;;  %v8064_v59 = vld [vmem:[#allocation58_spill] sm:$0xff] }
 0x4d1   : > { %2419 = vmatprep.subr.bf16.mxu0 %v8054_v17  ;;  %2462 = vmatprep.subr.bf16.mxu1 %v8055_v34  ;;  %v8065_v17 = vld [vmem:[#allocation59_spill] sm:$0xff]  ;;  %v8066_v34 = vld [vmem:[#allocation61_spill] sm:$0xff] }
 0x4d4   : > { %2420 = vmatpush1.bf16.msra.mxu0 %v8056_v19  ;;  %2463 = vmatpush1.bf16.msra.mxu1 %v8057_v26  ;;  %v8067_v19 = vld [vmem:[#allocation62_spill] sm:$0xff]  ;;  %v8068_v26 = vld [vmem:[#allocation64_spill] sm:$0xff] }
 0x4d5   : > { %2421 = vmatprep.subr.bf16.mxu0 %v8058_v52  ;;  %2464 = vmatprep.subr.bf16.mxu1 %v8059_v60  ;;  %v8069_v52 = vld [vmem:[#allocation65_spill] sm:$0xff]  ;;  %v8080_v60 = vld [vmem:[#allocation79_spill] sm:$0xff] }
 0x4d8   : > { %2422 = vmatpush1.bf16.msra.mxu0 %v8060_v63  ;;  %2465 = vmatpush1.bf16.msra.mxu1 %v8061_v16  ;;  %v8070_v63 = vld [vmem:[#allocation66_spill] sm:$0xff]  ;;  %v8071_v16 = vld [vmem:[#allocation67_spill] sm:$0xff] }
 0x4d9   : > { %2423 = vmatprep.subr.bf16.mxu0 %v8062_v57  ;;  %2466 = vmatprep.subr.bf16.mxu1 %v8063_v9  ;;  %v8072_v57 = vld [vmem:[#allocation69_spill] sm:$0xff]  ;;  %v8073_v9 = vld [vmem:[#allocation70_spill] sm:$0xff] }
 0x4dc   : > { %2424 = vmatpush1.bf16.msra.mxu0 %v8064_v59  ;;  %2467 = vmatpush1.bf16.msra.mxu1 %v8065_v17  ;;  %v8074_v59 = vld [vmem:[#allocation71_spill] sm:$0xff]  ;;  %v8075_v17 = vld [vmem:[#allocation72_spill] sm:$0xff] }
 0x4dd   : > { %2425 = vmatprep.subr.bf16.mxu0 %v8066_v34  ;;  %2468 = vmatprep.subr.bf16.mxu1 %v8067_v19  ;;  %v8076_v34 = vld [vmem:[#allocation74_spill] sm:$0xff]  ;;  %v8077_v19 = vld [vmem:[#allocation75_spill] sm:$0xff] }
 0x4e0   : > { %2426 = vmatpush1.bf16.msra.mxu0 %v8068_v26  ;;  %2469 = vmatpush1.bf16.msra.mxu1 %v8069_v52  ;;  %v8078_v26 = vld [vmem:[#allocation76_spill] sm:$0xff]  ;;  %v8079_v52 = vld [vmem:[#allocation77_spill] sm:$0xff] }
 0x4e1   : > { %2427 = vmatprep.subr.bf16.mxu0 %v8070_v63  ;;  %2470 = vmatprep.subr.bf16.mxu1 %v8071_v16  ;;  %v8081_v63 = vld [vmem:[#allocation82_spill] sm:$0xff]  ;;  %v8082_v16 = vld [vmem:[#allocation83_spill] sm:$0xff] }
 0x4e4   : > { %2428 = vmatpush1.bf16.msra.mxu0 %v8072_v57  ;;  %2471 = vmatpush1.bf16.msra.mxu1 %v8073_v9  ;;  %v8083_v57 = vld [vmem:[#allocation84_spill] sm:$0xff]  ;;  %v4249_v9 = vld [vmem:[%s5397_s19 + $0xc8] sm:$0xff] }
 0x4e5   : > { %2429 = vmatprep.subr.bf16.mxu0 %v8074_v59  ;;  %2472 = vmatprep.subr.bf16.mxu1 %v8075_v17  ;;  %v4253_v59 = vld [vmem:[%s5397_s19 + $0xe8] sm:$0xff]  ;;  %v2070_v62 = vunpack.c.l.bf16 %v4249_v9  ;;  %v2071_v17 = vunpack.c.h.bf16 %v4249_v9 }
 0x4e6   : > { %v2078_v51 = vunpack.c.l.bf16 %v4253_v59 }
 0x4e8   : > { %2430 = vmatpush1.bf16.msra.mxu0 %v8076_v34  ;;  %2473 = vmatpush1.bf16.msra.mxu1 %v8077_v19  ;;  %v2079_v19 = vunpack.c.h.bf16 %v4253_v59 }
 0x4e9   : > { %2431 = vmatprep.subr.bf16.mxu0 %v8078_v26  ;;  %2474 = vmatprep.subr.bf16.mxu1 %v8079_v52 }
 0x4ec   : > { %2432 = vmatpush1.bf16.msra.mxu0 %v8080_v60  ;;  %2475 = vmatpush1.bf16.msra.mxu1 %v8081_v63 }
 0x4ed   : > { %2487 = vmatprep.subr.bf16.mxu0 %v8082_v16  ;;  %2530 = vmatprep.subr.bf16.mxu1 %v8083_v57 }
 0x542   : > { %v2118_v34 = vpop.f32.mrb[24].mxu0  ;;  %v2161_v53 = vpop.f32.mrb[24].mxu1 }
 0x543   : > { %v2162_v38 = vadd.f32 %v2161_v53, %v2070_v62  ;;  %v2120_v26 = vpop.f32.mrb[25].mxu0  ;;  %v2163_v18 = vpop.f32.mrb[25].mxu1 }
 0x544   : > { %v2164_v52 = vadd.f32 %v2163_v18, %v2071_v17  ;;  %v2122_v8 = vpop.f32.mrb[26].mxu0  ;;  %v2165_v60 = vpop.f32.mrb[26].mxu1 }
 0x545   : > { %v4260_v7 = vmul.f32 -1.442695, %v2162_v38  ;;  %v2166_v63 = vadd.f32 %v2165_v60, %v2078_v51  ;;  %v2124_v49 = vpop.f32.mrb[27].mxu0  ;;  %v2167_v16 = vpop.f32.mrb[27].mxu1 }
 0x546   : > { %v4261_v58 = vmul.f32 -1.442695, %v2164_v52  ;;  %v2168_v57 = vadd.f32 %v2167_v16, %v2079_v19  ;;  %v4248_v19 = vld [vmem:[%s5397_s19 + $0xc0] sm:$0xff] }
 0x547   : > { %4740 = vpow2.f32 %v4260_v7  ;;  %v4262_v12 = vmul.f32 -1.442695, %v2166_v63  ;;  %v4252_v16 = vld [vmem:[%s5397_s19 + $0xe0] sm:$0xff] }
 0x548   : > { %4742 = vpow2.f32 %v4261_v58  ;;  %v4263_v9 = vmul.f32 -1.442695, %v2168_v57  ;;  %v2068_v57 = vunpack.c.l.bf16 %v4248_v19 }
 0x549   : > { %4744 = vpow2.f32 %v4262_v12 }
 0x54a   : > { %4746 = vpow2.f32 %v4263_v9 }
 0x551   : > { %v4741_v59 = vpop.eup %4740 }
 0x552   : > { %v2292_v53 = vadd.f32 1.0, %v4741_v59  ;;  %v4743_v62 = vpop.eup %4742 }
 0x553   : > { %v2293_v18 = vadd.f32 1.0, %v4743_v62  ;;  %v4745_v17 = vpop.eup %4744  ;;  %v2076_v62 = vunpack.c.l.bf16 %v4252_v16 }
 0x554   : > { %4748 = vrcp.f32 %v2292_v53  ;;  %v2294_v38 = vadd.f32 1.0, %v4745_v17  ;;  %v4747_v51 = vpop.eup %4746  ;;  %v2069_v53 = vunpack.c.h.bf16 %v4248_v19  ;;  %v2077_v17 = vunpack.c.h.bf16 %v4252_v16  ;;  %v4250_v16 = vld [vmem:[%s5397_s19 + $0xd0] sm:$0xff] }
 0x555   : > { %4750 = vrcp.f32 %v2293_v18  ;;  %v2295_v52 = vadd.f32 1.0, %v4747_v51 }
 0x556   : > { %4752 = vrcp.f32 %v2294_v38  ;;  %v2119_v38 = vadd.f32 %v2118_v34, %v2068_v57  ;;  %v2121_v51 = vadd.f32 %v2120_v26, %v2069_v53 }
 0x557   : > { %4754 = vrcp.f32 %v2295_v52  ;;  %v2123_v52 = vadd.f32 %v2122_v8, %v2076_v62  ;;  %v4254_v8 = vld [vmem:[%s5397_s19 + $0xf0] sm:$0xff]  ;;  %v2072_v62 = vunpack.c.l.bf16 %v4250_v16 }
 0x558   : > { %v4257_v27 = vmul.f32 -1.442695, %v2121_v51  ;;  %v2073_v51 = vunpack.c.h.bf16 %v4250_v16  ;;  %v2081_v47 = vunpack.c.h.bf16 %v4254_v8 }
 0x559   : > { %v4258_v35 = vmul.f32 -1.442695, %v2123_v52  ;;  %v2075_v52 = vunpack.c.h.bf16 %v4251_v21 }
 0x55e   : > { %v4749_v7 = vpop.eup %4748 }
 0x55f   : > { %v6529_v58 = vmul.f32 %v4749_v7, %v6356_v20  ;;  %v4751_v12 = vpop.eup %4750  ;;  %v2125_v7 = vadd.f32 %v2124_v49, %v2077_v17  ;;  %v4255_v49 = vld [vmem:[%s5397_s19 + $0xf8] sm:$0xff]  ;;  %v2074_v17 = vunpack.c.l.bf16 %v4251_v21 }
 0x560   : > { %v6533_v60 = vmul.f32 %v4751_v12, %v6360_v24  ;;  %v4753_v63 = vpop.eup %4752  ;;  %v4256_v12 = vmul.f32 -1.442695, %v2119_v38 }
 0x561   : > { %v6537_v9 = vmul.f32 %v4753_v63, %v6366_v43  ;;  %v4755_v59 = vpop.eup %4754  ;;  %v4259_v63 = vmul.f32 -1.442695, %v2125_v7 }
 0x562   : > { %v6540_v18 = vmul.f32 %v4755_v59, %v6370_v22  ;;  %4756 = vpow2.f32 %v4256_v12 }
 0x563   : > { %4758 = vpow2.f32 %v4257_v27  ;;  %v2080_v27 = vunpack.c.l.bf16 %v4254_v8 }
 0x564   : > { %4760 = vpow2.f32 %v4258_v35  ;;  %v2082_v35 = vunpack.c.l.bf16 %v4255_v49 }
 0x565   : > { %4762 = vpow2.f32 %v4259_v63  ;;  %v2083_v63 = vunpack.c.h.bf16 %v4255_v49 }
 0x56c   : > { %v4757_v19 = vpop.eup %4756 }
 0x56d   : > { %v4759_v59 = vpop.eup %4758  ;;  %v2268_v57 = vadd.f32 1.0, %v4757_v19 }
 0x56e   : > { %v4761_v11 = vpop.eup %4760  ;;  %v2269_v26 = vadd.f32 1.0, %v4759_v59 }
 0x56f   : > { %v4763_v34 = vpop.eup %4762  ;;  %v2270_v53 = vadd.f32 1.0, %v4761_v11  ;;  %4764 = vrcp.f32 %v2268_v57 }
 0x570   : > { %v2271_v38 = vadd.f32 1.0, %v4763_v34  ;;  %4766 = vrcp.f32 %v2269_v26 }
 0x571   : > { %4768 = vrcp.f32 %v2270_v53 }
 0x572   : > { %4770 = vrcp.f32 %v2271_v38 }
 0x579   : > { %v4765_v8 = vpop.eup %4764 }
 0x57a   : > { %v4767_v38 = vpop.eup %4766 }
 0x582   : > { %v2204_v7 = vpop.f32.mrb[28].mxu0  ;;  %v2247_v12 = vpop.f32.mrb[28].mxu1 }
 0x583   : > { %v2205_v30 = vadd.f32 %v2204_v7, %v2072_v62  ;;  %v2248_v56 = vadd.f32 %v2247_v12, %v2074_v17  ;;  %v2206_v19 = vpop.f32.mrb[29].mxu0  ;;  %v2249_v59 = vpop.f32.mrb[29].mxu1 }
 0x584   : > { %v2207_v11 = vadd.f32 %v2206_v19, %v2073_v51  ;;  %v2250_v5 = vadd.f32 %v2249_v59, %v2075_v52  ;;  %v2208_v33 = vpop.f32.mrb[30].mxu0  ;;  %v2251_v34 = vpop.f32.mrb[30].mxu1 }
 0x585   : > { %4772 = vtanh.f32 %v2205_v30  ;;  %v4264_v21 = vmul.f32 -1.442695, %v2248_v56  ;;  %v2209_v16 = vadd.f32 %v2208_v33, %v2080_v27  ;;  %v2252_v57 = vadd.f32 %v2251_v34, %v2082_v35  ;;  %v2210_v54 = vpop.f32.mrb[31].mxu0  ;;  %v2253_v26 = vpop.f32.mrb[31].mxu1 }
 0x586   : > { %4774 = vtanh.f32 %v2207_v11  ;;  %v4265_v42 = vmul.f32 -1.442695, %v2250_v5  ;;  %v2254_v49 = vadd.f32 %v2253_v26, %v2083_v63  ;;  %v2211_v62 = vadd.f32 %v2210_v54, %v2081_v47  ;;  %v4769_v30 = vpop.eup %4768  ;;  %v2360_v7 = vpop.permute.xlu0 %2359 }
 0x587   : > { %4776 = vpow2.f32 %v4264_v21  ;;  %v4266_v53 = vmul.f32 -1.442695, %v2252_v57  ;;  %v4771_v56 = vpop.eup %4770  ;;  %vm2364_vm6 = vcmp.eq.s32.totalorder %v2360_v7, 1  ;;  %v2363_v57 = vpop.permute.xlu1 %2362  ;;  %v8088_v7 = vld [vmem:[#allocation115_spill] sm:$0xff] }
 0x588   : > { %4778 = vpow2.f32 %v4265_v42  ;;  %v4267_v17 = vmul.f32 -1.442695, %v2254_v49  ;;  %vm2365_vm7 = vcmp.eq.s32.totalorder %v2363_v57, 1  ;;  %v8097_v57 = vld [vmem:[#allocation124_spill] sm:$0xff] }
 0x589   : > { %4780 = vtanh.f32 %v2209_v16 }
 0x58a   : > { %4782 = vpow2.f32 %v4266_v53 }
 0x58b   : > { %4784 = vtanh.f32 %v2211_v62 }
 0x58c   : > { %4786 = vpow2.f32 %v4267_v17 }
 0x58f   : > { %v4773_v33 = vpop.eup %4772 }
 0x590   : > { %v4775_v51 = vpop.eup %4774  ;;  %v2336_v52 = vmul.f32 %v4773_v33, %v4765_v8 }
 0x591   : > { %v4777_v27 = vpop.eup %4776  ;;  %v2337_v35 = vmul.f32 %v4775_v51, %v4767_v38 }
 0x592   : > { %v4779_v5 = vpop.eup %4778  ;;  %v2340_v12 = vadd.f32 %v2336_v52, %v6529_v58  ;;  %v2320_v54 = vadd.f32 1.0, %v4777_v27 }
 0x593   : > { %v4781_v42 = vpop.eup %4780  ;;  %v2341_v47 = vadd.f32 %v2337_v35, %v6533_v60  ;;  %v2321_v63 = vadd.f32 1.0, %v4779_v5 }
 0x594   : > { %v4783_v19 = vpop.eup %4782  ;;  %4788 = vtanh.f32 %v2340_v12  ;;  %v2338_v59 = vmul.f32 %v4781_v42, %v4769_v30  ;;  %v6550_v11 = vsel %vm2364_vm6, %v2340_v12, %v6356_v20  ;;  %v8089_v42 = vld [vmem:[#allocation116_spill] sm:$0xff] }
 0x595   : > { %v4785_v34 = vpop.eup %4784  ;;  %4790 = vrcp.f32 %v2320_v54  ;;  %v2322_v21 = vadd.f32 1.0, %v4783_v19  ;;  %v6554_v16 = vsel %vm2364_vm6, %v2341_v47, %v6360_v24  ;;  %v8092_v19 = vld [vmem:[#allocation119_spill] sm:$0xff] }
 0x596   : > { %v4787_v58 = vpop.eup %4786  ;;  %4792 = vtanh.f32 %v2341_v47  ;;  %v2342_v60 = vadd.f32 %v2338_v59, %v6537_v9  ;;  %v2339_v26 = vmul.f32 %v4785_v34, %v4771_v56  ;;  %v8090_v47 = vld [vmem:[#allocation117_spill] sm:$0xff]  ;;  %v8093_v59 = vld [vmem:[#allocation120_spill] sm:$0xff] }
 0x597   : > { %4794 = vrcp.f32 %v2321_v63  ;;  %v2323_v49 = vadd.f32 1.0, %v4787_v58  ;;  %v8091_v63 = vld [vmem:[#allocation118_spill] sm:$0xff]  ;;  %v8094_v34 = vld [vmem:[#allocation121_spill] sm:$0xff]  ;;  %v8096_v58 = vld [vmem:[#allocation123_spill] sm:$0xff] }
 0x598   : > { %4796 = vtanh.f32 %v2342_v60  ;;  %v2343_v20 = vadd.f32 %v2339_v26, %v6540_v18  ;;  %v6560_v53 = vsel %vm2365_vm7, %v2342_v60, %v6366_v43  ;;  %v8098_v60 = vld [vmem:[#allocation125_spill] sm:$0xff]  ;;  %v8099_v26 = vld [vmem:[#allocation126_spill] sm:$0xff] }
 0x599   : > { %4798 = vrcp.f32 %v2322_v21  ;;  %v8095_v21 = vld [vmem:[#allocation122_spill] sm:$0xff] }
 0x59a   : > { %4800 = vtanh.f32 %v2343_v20  ;;  %v6564_v24 = vsel %vm2365_vm7, %v2343_v20, %v6370_v22  ;;  %v8101_v20 = vld [vmem:[#allocation128_spill] sm:$0xff] }
 0x59b   : > { %4802 = vrcp.f32 %v2323_v49  ;;  %v8100_v49 = vld [vmem:[#allocation127_spill] sm:$0xff] }
 0x59e   : > { %v4789_v62 = vpop.eup %4788 }
 0x59f   : > { %v4791_v9 = vpop.eup %4790 }
 0x5a0   : > { %v4793_v17 = vpop.eup %4792  ;;  %v2348_v8 = vmul.f32 %v4791_v9, %v4789_v62  ;;  %v8102_v62 = vld [vmem:[#allocation129_spill] sm:$0xff]  ;;  %v8103_v9 = vld [vmem:[#allocation130_spill] sm:$0xff] }
 0x5a1   : > { %v4795_v38 = vpop.eup %4794 }
 0x5a2   : > { %v4797_v30 = vpop.eup %4796  ;;  %v2349_v56 = vmul.f32 %v4795_v38, %v4793_v17  ;;  %v6582_v12 = vsel %vm2364_vm6, %v2348_v8, %v6388_v31  ;;  %v8087_v31 = vld [vmem:[#allocation114_spill] sm:$0xff]  ;;  %v8104_v17 = vld [vmem:[#allocation131_spill] sm:$0xff]  ;;  %v8105_v8 = vld [vmem:[#allocation132_spill] sm:$0xff] }
 0x5a3   : > { %v4799_v33 = vpop.eup %4798  ;;  %v8106_v38 = vld [vmem:[#allocation133_spill] sm:$0xff] }
 0x5a4   : > { %v4801_v18 = vpop.eup %4800  ;;  %v2350_v51 = vmul.f32 %v4799_v33, %v4797_v30  ;;  %v6572_v22 = vsel %vm2364_vm6, %v2349_v56, %v6378_v6  ;;  %v8085_v6 = vld [vmem:[#allocation112_spill] sm:$0xff]  ;;  %v8107_v30 = vld [vmem:[#allocation134_spill] sm:$0xff]  ;;  %v8108_v56 = vld [vmem:[#allocation135_spill] sm:$0xff] }
 0x5a5   : > { %v4803_v52 = vpop.eup %4802  ;;  %v8109_v33 = vld [vmem:[#allocation136_spill] sm:$0xff] }
 0x5a6   : > { %v2351_v43 = vmul.f32 %v4803_v52, %v4801_v18  ;;  %v6568_v27 = vsel %vm2365_vm7, %v2350_v51, %v6374_v10  ;;  %v8084_v10 = vld [vmem:[#allocation111_spill] sm:$0xff]  ;;  %v8110_v18 = vld [vmem:[#allocation137_spill] sm:$0xff]  ;;  %v8111_v51 = vld [vmem:[#allocation138_spill] sm:$0xff] }
 0x5a7   : > { %v6586_v54 = vpack.c.bf16 %v6568_v27, %v6582_v12  ;;  %v8112_v52 = vld [vmem:[#allocation139_spill] sm:$0xff] }
 0x5a8   : > { %v6576_v35 = vsel %vm2365_vm7, %v2351_v43, %v6382_v37  ;;  %v8086_v37 = vld [vmem:[#allocation113_spill] sm:$0xff]  ;;  %v8113_v43 = vld [vmem:[#allocation140_spill] sm:$0xff] }
 0x5a9   : > { %v2375_v5 = vpack.c.bf16 %v6576_v35, %v6572_v22 }
 0x5ab   : > { %2433 = vmatprep.mubr.bf16.mxu0 %v2375_v5  ;;  %2476 = vmatprep.mubr.bf16.mxu1 %v2375_v5 }
 0x5ac   : > { %2434 = vmatmul.mubr.bf16.vlgmr.msra.gmra.mrb[32].mxu0 %v6586_v54  ;;  %2477 = vmatmul.mubr.bf16.vlgmr.msra.gmra.mrb[32].mxu1 %v6586_v54 }
 0x5ad   : > { %2488 = vmatpush1.bf16.msra.mxu0 %v7778_v25  ;;  %2531 = vmatpush1.bf16.msra.mxu1 %v7779_v28 }
 0x5ae   : > { %2519 = vmatprep.mubr.bf16.mxu0 %v2375_v5  ;;  %2562 = vmatprep.mubr.bf16.mxu1 %v2375_v5  ;;  %v8114_v5 = vld [vmem:[#allocation141_spill] sm:$0xff] }
 0x5af   : > { %2489 = vmatprep.subr.bf16.mxu0 %v7780_v14  ;;  %2532 = vmatprep.subr.bf16.mxu1 %v7781_v13 }
 0x5b1   : > { %2490 = vmatpush1.bf16.msra.mxu0 %v7782_v3  ;;  %2533 = vmatpush1.bf16.msra.mxu1 %v7783_v55 }
 0x5b2   : > { %2491 = vmatprep.subr.bf16.mxu0 %v7784_v46  ;;  %2534 = vmatprep.subr.bf16.mxu1 %v7785_v45 }
 0x5b5   : > { %2492 = vmatpush1.bf16.msra.mxu0 %v7786_v0  ;;  %2535 = vmatpush1.bf16.msra.mxu1 %v7787_v48 }
 0x5b6   : > { %2493 = vmatprep.subr.bf16.mxu0 %v7788_v1  ;;  %2536 = vmatprep.subr.bf16.mxu1 %v7789_v2 }
 0x5b9   : > { %2494 = vmatpush1.bf16.msra.mxu0 %v7790_v15  ;;  %2537 = vmatpush1.bf16.msra.mxu1 %v7791_v40 }
 0x5ba   : > { %2495 = vmatprep.subr.bf16.mxu0 %v7876_v44  ;;  %2538 = vmatprep.subr.bf16.mxu1 %v7877_v61 }
 0x5bd   : > { %2496 = vmatpush1.bf16.msra.mxu0 %v7878_v4  ;;  %2539 = vmatpush1.bf16.msra.mxu1 %v7879_v50 }
 0x5be   : > { %2497 = vmatprep.subr.bf16.mxu0 %v7880_v36  ;;  %2540 = vmatprep.subr.bf16.mxu1 %v7881_v41 }
 0x5c1   : > { %2498 = vmatpush1.bf16.msra.mxu0 %v7882_v23  ;;  %2541 = vmatpush1.bf16.msra.mxu1 %v7883_v39 }
 0x5c2   : > { %2499 = vmatprep.subr.bf16.mxu0 %v7884_v29  ;;  %2542 = vmatprep.subr.bf16.mxu1 %v7885_v32 }
 0x5c5   : > { %2500 = vmatpush1.bf16.msra.mxu0 %v8084_v10  ;;  %2543 = vmatpush1.bf16.msra.mxu1 %v8085_v6 }
 0x5c6   : > { %2501 = vmatprep.subr.bf16.mxu0 %v8086_v37  ;;  %2544 = vmatprep.subr.bf16.mxu1 %v8087_v31 }
 0x5c9   : > { %2502 = vmatpush1.bf16.msra.mxu0 %v8088_v7  ;;  %2545 = vmatpush1.bf16.msra.mxu1 %v8089_v42 }
 0x5ca   : > { %2503 = vmatprep.subr.bf16.mxu0 %v8090_v47  ;;  %2546 = vmatprep.subr.bf16.mxu1 %v8091_v63  ;;  %v4271_v63 = vld [vmem:[%s5397_s19 + $0x118] sm:$0xff] }
 0x5cd   : > { %2504 = vmatpush1.bf16.msra.mxu0 %v8092_v19  ;;  %2547 = vmatpush1.bf16.msra.mxu1 %v8093_v59 }
 0x5ce   : > { %2505 = vmatprep.subr.bf16.mxu0 %v8094_v34  ;;  %2548 = vmatprep.subr.bf16.mxu1 %v8095_v21 }
 0x5d1   : > { %2506 = vmatpush1.bf16.msra.mxu0 %v8096_v58  ;;  %2549 = vmatpush1.bf16.msra.mxu1 %v8097_v57 }
 0x5d2   : > { %2507 = vmatprep.subr.bf16.mxu0 %v8098_v60  ;;  %2550 = vmatprep.subr.bf16.mxu1 %v8099_v26 }
 0x5d5   : > { %2508 = vmatpush1.bf16.msra.mxu0 %v8100_v49  ;;  %2551 = vmatpush1.bf16.msra.mxu1 %v8101_v20 }
 0x5d6   : > { %2509 = vmatprep.subr.bf16.mxu0 %v8102_v62  ;;  %2552 = vmatprep.subr.bf16.mxu1 %v8103_v9 }
 0x5d9   : > { %2510 = vmatpush1.bf16.msra.mxu0 %v8104_v17  ;;  %2553 = vmatpush1.bf16.msra.mxu1 %v8105_v8  ;;  %v8115_v17 = vld [vmem:[#allocation142_spill] sm:$0xff]  ;;  %v8116_v8 = vld [vmem:[#allocation143_spill] sm:$0xff] }
 0x5da   : > { %2511 = vmatprep.subr.bf16.mxu0 %v8106_v38  ;;  %2554 = vmatprep.subr.bf16.mxu1 %v8107_v30  ;;  %v8117_v38 = vld [vmem:[#allocation144_spill] sm:$0xff]  ;;  %v8118_v30 = vld [vmem:[#allocation145_spill] sm:$0xff] }
 0x5dd   : > { %2512 = vmatpush1.bf16.msra.mxu0 %v8108_v56  ;;  %2555 = vmatpush1.bf16.msra.mxu1 %v8109_v33  ;;  %v8119_v56 = vld [vmem:[#allocation146_spill] sm:$0xff]  ;;  %v8120_v33 = vld [vmem:[#allocation147_spill] sm:$0xff] }
 0x5de   : > { %2513 = vmatprep.subr.bf16.mxu0 %v8110_v18  ;;  %2556 = vmatprep.subr.bf16.mxu1 %v8111_v51  ;;  %v8121_v18 = vld [vmem:[#allocation148_spill] sm:$0xff] }
 0x5df   : > { %v8122_v51 = vld [vmem:[#allocation12_spill] sm:$0xff] }
 0x5e1   : > { %2514 = vmatpush1.bf16.msra.mxu0 %v8112_v52  ;;  %2557 = vmatpush1.bf16.msra.mxu1 %v8113_v43  ;;  %v8123_v52 = vld [vmem:[#allocation14_spill] sm:$0xff] }
 0x5e2   : > { %2515 = vmatprep.subr.bf16.mxu0 %v8114_v5  ;;  %2558 = vmatprep.subr.bf16.mxu1 %v8115_v17  ;;  %v8124_v17 = vld [vmem:[#allocation13_spill] sm:$0xff]  ;;  %v8133_v5 = vld [vmem:[#allocation23_spill] sm:$0xff] }
 0x5e5   : > { %2516 = vmatpush1.bf16.msra.mxu0 %v8116_v8  ;;  %2559 = vmatpush1.bf16.msra.mxu1 %v8117_v38  ;;  %v8125_v8 = vld [vmem:[#allocation15_spill] sm:$0xff]  ;;  %v8126_v38 = vld [vmem:[#allocation16_spill] sm:$0xff] }
 0x5e6   : > { %2517 = vmatprep.subr.bf16.mxu0 %v8118_v30  ;;  %2560 = vmatprep.subr.bf16.mxu1 %v8119_v56  ;;  %v8127_v30 = vld [vmem:[#allocation17_spill] sm:$0xff]  ;;  %v8128_v56 = vld [vmem:[#allocation18_spill] sm:$0xff] }
 0x5e9   : > { %2518 = vmatpush1.bf16.msra.mxu0 %v8120_v33  ;;  %2561 = vmatpush1.bf16.msra.mxu1 %v8121_v18  ;;  %v8129_v33 = vld [vmem:[#allocation19_spill] sm:$0xff]  ;;  %v8130_v18 = vld [vmem:[#allocation20_spill] sm:$0xff] }
 0x5ea   : > { %2718 = vmatprep.subr.bf16.mxu0 %v8122_v51  ;;  %2761 = vmatprep.subr.bf16.mxu1 %v8123_v52  ;;  %v8131_v51 = vld [vmem:[#allocation21_spill] sm:$0xff]  ;;  %v8132_v52 = vld [vmem:[#allocation22_spill] sm:$0xff] }
 0x5ec   : > { %2520 = vmatmul.mubr.bf16.vlgmr.msra.gmra.mrb[36].mxu0 %v6586_v54  ;;  %2563 = vmatmul.mubr.bf16.vlgmr.msra.gmra.mrb[36].mxu1 %v6586_v54  ;;  %v8134_v54 = vld [vmem:[#allocation24_spill] sm:$0xff] }
 0x5ed   : > { %2719 = vmatpush1.bf16.msra.mxu0 %v8124_v17  ;;  %2762 = vmatpush1.bf16.msra.mxu1 %v8125_v8  ;;  %v8135_v17 = vld [vmem:[#allocation25_spill] sm:$0xff]  ;;  %v8136_v8 = vld [vmem:[#allocation26_spill] sm:$0xff] }
 0x5ee   : > { %2720 = vmatprep.subr.bf16.mxu0 %v8126_v38  ;;  %2763 = vmatprep.subr.bf16.mxu1 %v8127_v30  ;;  %v8137_v38 = vld [vmem:[#allocation27_spill] sm:$0xff]  ;;  %v8138_v30 = vld [vmem:[#allocation28_spill] sm:$0xff] }
 0x5f1   : > { %2721 = vmatpush1.bf16.msra.mxu0 %v8128_v56  ;;  %2764 = vmatpush1.bf16.msra.mxu1 %v8129_v33  ;;  %v8139_v56 = vld [vmem:[#allocation29_spill] sm:$0xff]  ;;  %v8140_v33 = vld [vmem:[#allocation30_spill] sm:$0xff] }
 0x5f2   : > { %2722 = vmatprep.subr.bf16.mxu0 %v8130_v18  ;;  %2765 = vmatprep.subr.bf16.mxu1 %v8131_v51  ;;  %v8141_v18 = vld [vmem:[#allocation31_spill] sm:$0xff]  ;;  %v8142_v51 = vld [vmem:[#allocation32_spill] sm:$0xff] }
 0x5f5   : > { %2723 = vmatpush1.bf16.msra.mxu0 %v8132_v52  ;;  %2766 = vmatpush1.bf16.msra.mxu1 %v8133_v5  ;;  %v8143_v52 = vld [vmem:[#allocation33_spill] sm:$0xff]  ;;  %v8144_v5 = vld [vmem:[#allocation34_spill] sm:$0xff] }
 0x5f6   : > { %2724 = vmatprep.subr.bf16.mxu0 %v8134_v54  ;;  %2767 = vmatprep.subr.bf16.mxu1 %v8135_v17  ;;  %v8145_v54 = vld [vmem:[#allocation35_spill] sm:$0xff]  ;;  %v8146_v17 = vld [vmem:[#allocation36_spill] sm:$0xff] }
 0x5f9   : > { %2725 = vmatpush1.bf16.msra.mxu0 %v8136_v8  ;;  %2768 = vmatpush1.bf16.msra.mxu1 %v8137_v38  ;;  %v8147_v8 = vld [vmem:[#allocation37_spill] sm:$0xff]  ;;  %v8148_v38 = vld [vmem:[#allocation38_spill] sm:$0xff] }
 0x5fa   : > { %2726 = vmatprep.subr.bf16.mxu0 %v8138_v30  ;;  %2769 = vmatprep.subr.bf16.mxu1 %v8139_v56  ;;  %v8149_v30 = vld [vmem:[#allocation39_spill] sm:$0xff]  ;;  %v8150_v56 = vld [vmem:[#allocation40_spill] sm:$0xff] }
 0x5fd   : > { %2727 = vmatpush1.bf16.msra.mxu0 %v8140_v33  ;;  %2770 = vmatpush1.bf16.msra.mxu1 %v8141_v18  ;;  %v8151_v33 = vld [vmem:[#allocation41_spill] sm:$0xff]  ;;  %v8152_v18 = vld [vmem:[#allocation42_spill] sm:$0xff] }
 0x5fe   : > { %2728 = vmatprep.subr.bf16.mxu0 %v8142_v51  ;;  %2771 = vmatprep.subr.bf16.mxu1 %v8143_v52  ;;  %v8153_v51 = vld [vmem:[#allocation43_spill] sm:$0xff]  ;;  %v8154_v52 = vld [vmem:[#allocation44_spill] sm:$0xff] }
 0x601   : > { %2729 = vmatpush1.bf16.msra.mxu0 %v8144_v5  ;;  %2772 = vmatpush1.bf16.msra.mxu1 %v8145_v54  ;;  %v8155_v5 = vld [vmem:[#allocation45_spill] sm:$0xff]  ;;  %v8156_v54 = vld [vmem:[#allocation46_spill] sm:$0xff] }
 0x602   : > { %2730 = vmatprep.subr.bf16.mxu0 %v8146_v17  ;;  %2773 = vmatprep.subr.bf16.mxu1 %v8147_v8  ;;  %v8157_v17 = vld [vmem:[#allocation47_spill] sm:$0xff]  ;;  %v8158_v8 = vld [vmem:[#allocation48_spill] sm:$0xff] }
 0x605   : > { %2731 = vmatpush1.bf16.msra.mxu0 %v8148_v38  ;;  %2774 = vmatpush1.bf16.msra.mxu1 %v8149_v30  ;;  %v8159_v38 = vld [vmem:[#allocation49_spill] sm:$0xff]  ;;  %v8160_v30 = vld [vmem:[#allocation50_spill] sm:$0xff] }
 0x606   : > { %2732 = vmatprep.subr.bf16.mxu0 %v8150_v56  ;;  %2775 = vmatprep.subr.bf16.mxu1 %v8151_v33  ;;  %v8161_v56 = vld [vmem:[#allocation51_spill] sm:$0xff]  ;;  %v8162_v33 = vld [vmem:[#allocation52_spill] sm:$0xff] }
 0x609   : > { %2733 = vmatpush1.bf16.msra.mxu0 %v8152_v18  ;;  %2776 = vmatpush1.bf16.msra.mxu1 %v8153_v51  ;;  %v8163_v18 = vld [vmem:[#allocation53_spill] sm:$0xff]  ;;  %v8164_v51 = vld [vmem:[#allocation54_spill] sm:$0xff] }
 0x60a   : > { %2734 = vmatprep.subr.bf16.mxu0 %v8154_v52  ;;  %2777 = vmatprep.subr.bf16.mxu1 %v8155_v5  ;;  %v8165_v52 = vld [vmem:[#allocation55_spill] sm:$0xff]  ;;  %v8166_v5 = vld [vmem:[#allocation56_spill] sm:$0xff] }
 0x60d   : > { %2735 = vmatpush1.bf16.msra.mxu0 %v8156_v54  ;;  %2778 = vmatpush1.bf16.msra.mxu1 %v8157_v17  ;;  %v8167_v54 = vld [vmem:[#allocation57_spill] sm:$0xff]  ;;  %v8168_v17 = vld [vmem:[#allocation58_spill] sm:$0xff] }
 0x60e   : > { %2736 = vmatprep.subr.bf16.mxu0 %v8158_v8  ;;  %2779 = vmatprep.subr.bf16.mxu1 %v8159_v38  ;;  %v8169_v8 = vld [vmem:[#allocation59_spill] sm:$0xff]  ;;  %v8170_v38 = vld [vmem:[#allocation61_spill] sm:$0xff] }
 0x611   : > { %2737 = vmatpush1.bf16.msra.mxu0 %v8160_v30  ;;  %2780 = vmatpush1.bf16.msra.mxu1 %v8161_v56  ;;  %v8171_v30 = vld [vmem:[#allocation62_spill] sm:$0xff]  ;;  %v8172_v56 = vld [vmem:[#allocation64_spill] sm:$0xff] }
 0x612   : > { %2738 = vmatprep.subr.bf16.mxu0 %v8162_v33  ;;  %2781 = vmatprep.subr.bf16.mxu1 %v8163_v18  ;;  %v8173_v33 = vld [vmem:[#allocation65_spill] sm:$0xff]  ;;  %v8184_v18 = vld [vmem:[#allocation79_spill] sm:$0xff] }
 0x615   : > { %2739 = vmatpush1.bf16.msra.mxu0 %v8164_v51  ;;  %2782 = vmatpush1.bf16.msra.mxu1 %v8165_v52  ;;  %v8174_v51 = vld [vmem:[#allocation66_spill] sm:$0xff]  ;;  %v8175_v52 = vld [vmem:[#allocation67_spill] sm:$0xff] }
 0x616   : > { %2740 = vmatprep.subr.bf16.mxu0 %v8166_v5  ;;  %2783 = vmatprep.subr.bf16.mxu1 %v8167_v54  ;;  %v8176_v5 = vld [vmem:[#allocation69_spill] sm:$0xff]  ;;  %v8177_v54 = vld [vmem:[#allocation70_spill] sm:$0xff] }
 0x619   : > { %2741 = vmatpush1.bf16.msra.mxu0 %v8168_v17  ;;  %2784 = vmatpush1.bf16.msra.mxu1 %v8169_v8  ;;  %v8178_v17 = vld [vmem:[#allocation71_spill] sm:$0xff]  ;;  %v8179_v8 = vld [vmem:[#allocation72_spill] sm:$0xff] }
 0x61a   : > { %2742 = vmatprep.subr.bf16.mxu0 %v8170_v38  ;;  %2785 = vmatprep.subr.bf16.mxu1 %v8171_v30  ;;  %v8180_v38 = vld [vmem:[#allocation74_spill] sm:$0xff]  ;;  %v8181_v30 = vld [vmem:[#allocation75_spill] sm:$0xff] }
 0x61d   : > { %2743 = vmatpush1.bf16.msra.mxu0 %v8172_v56  ;;  %2786 = vmatpush1.bf16.msra.mxu1 %v8173_v33  ;;  %v8182_v56 = vld [vmem:[#allocation76_spill] sm:$0xff]  ;;  %v8183_v33 = vld [vmem:[#allocation77_spill] sm:$0xff] }
 0x61e   : > { %2744 = vmatprep.subr.bf16.mxu0 %v8174_v51  ;;  %2787 = vmatprep.subr.bf16.mxu1 %v8175_v52  ;;  %v8185_v51 = vld [vmem:[#allocation82_spill] sm:$0xff]  ;;  %v8186_v52 = vld [vmem:[#allocation83_spill] sm:$0xff] }
 0x621   : > { %2745 = vmatpush1.bf16.msra.mxu0 %v8176_v5  ;;  %2788 = vmatpush1.bf16.msra.mxu1 %v8177_v54  ;;  %v8187_v5 = vld [vmem:[#allocation84_spill] sm:$0xff]  ;;  %v4269_v54 = vld [vmem:[%s5397_s19 + $0x108] sm:$0xff] }
 0x622   : > { %2746 = vmatprep.subr.bf16.mxu0 %v8178_v17  ;;  %2789 = vmatprep.subr.bf16.mxu1 %v8179_v8  ;;  %v4273_v17 = vld [vmem:[%s5397_s19 + $0x128] sm:$0xff]  ;;  %v2387_v43 = vunpack.c.l.bf16 %v4269_v54  ;;  %v2388_v8 = vunpack.c.h.bf16 %v4269_v54 }
 0x623   : > { %v2395_v9 = vunpack.c.l.bf16 %v4273_v17 }
 0x625   : > { %2747 = vmatpush1.bf16.msra.mxu0 %v8180_v38  ;;  %2790 = vmatpush1.bf16.msra.mxu1 %v8181_v30  ;;  %v2396_v30 = vunpack.c.h.bf16 %v4273_v17 }
 0x626   : > { %2748 = vmatprep.subr.bf16.mxu0 %v8182_v56  ;;  %2791 = vmatprep.subr.bf16.mxu1 %v8183_v33 }
 0x629   : > { %2749 = vmatpush1.bf16.msra.mxu0 %v8184_v18  ;;  %2792 = vmatpush1.bf16.msra.mxu1 %v8185_v51 }
 0x62a   : > { %2804 = vmatprep.subr.bf16.mxu0 %v8186_v52  ;;  %2847 = vmatprep.subr.bf16.mxu1 %v8187_v5 }
 0x67f   : > { %v2435_v38 = vpop.f32.mrb[32].mxu0  ;;  %v2478_v62 = vpop.f32.mrb[32].mxu1 }
 0x680   : > { %v2479_v20 = vadd.f32 %v2478_v62, %v2387_v43  ;;  %v2437_v56 = vpop.f32.mrb[33].mxu0  ;;  %v2480_v49 = vpop.f32.mrb[33].mxu1 }
 0x681   : > { %v2481_v33 = vadd.f32 %v2480_v49, %v2388_v8  ;;  %v2439_v26 = vpop.f32.mrb[34].mxu0  ;;  %v2482_v18 = vpop.f32.mrb[34].mxu1 }
 0x682   : > { %v4280_v60 = vmul.f32 -1.442695, %v2479_v20  ;;  %v2483_v51 = vadd.f32 %v2482_v18, %v2395_v9  ;;  %v2441_v57 = vpop.f32.mrb[35].mxu0  ;;  %v2484_v52 = vpop.f32.mrb[35].mxu1 }
 0x683   : > { %v4281_v58 = vmul.f32 -1.442695, %v2481_v33  ;;  %v2485_v5 = vadd.f32 %v2484_v52, %v2396_v30  ;;  %v4268_v30 = vld [vmem:[%s5397_s19 + $0x100] sm:$0xff] }
 0x684   : > { %4804 = vpow2.f32 %v4280_v60  ;;  %v4282_v21 = vmul.f32 -1.442695, %v2483_v51  ;;  %v4272_v52 = vld [vmem:[%s5397_s19 + $0x120] sm:$0xff] }
 0x685   : > { %4806 = vpow2.f32 %v4281_v58  ;;  %v4283_v54 = vmul.f32 -1.442695, %v2485_v5  ;;  %v2385_v5 = vunpack.c.l.bf16 %v4268_v30 }
 0x686   : > { %4808 = vpow2.f32 %v4282_v21 }
 0x687   : > { %4810 = vpow2.f32 %v4283_v54 }
 0x68e   : > { %v4805_v17 = vpop.eup %4804 }
 0x68f   : > { %v2609_v62 = vadd.f32 1.0, %v4805_v17  ;;  %v4807_v43 = vpop.eup %4806 }
 0x690   : > { %v2610_v49 = vadd.f32 1.0, %v4807_v43  ;;  %v4809_v8 = vpop.eup %4808  ;;  %v2393_v43 = vunpack.c.l.bf16 %v4272_v52 }
 0x691   : > { %4812 = vrcp.f32 %v2609_v62  ;;  %v2611_v20 = vadd.f32 1.0, %v4809_v8  ;;  %v4811_v9 = vpop.eup %4810  ;;  %v2386_v62 = vunpack.c.h.bf16 %v4268_v30  ;;  %v2394_v8 = vunpack.c.h.bf16 %v4272_v52  ;;  %v4270_v52 = vld [vmem:[%s5397_s19 + $0x110] sm:$0xff] }
 0x692   : > { %4814 = vrcp.f32 %v2610_v49  ;;  %v2612_v33 = vadd.f32 1.0, %v4811_v9 }
 0x693   : > { %4816 = vrcp.f32 %v2611_v20  ;;  %v2436_v20 = vadd.f32 %v2435_v38, %v2385_v5  ;;  %v2438_v9 = vadd.f32 %v2437_v56, %v2386_v62 }
 0x694   : > { %4818 = vrcp.f32 %v2612_v33  ;;  %v2440_v33 = vadd.f32 %v2439_v26, %v2393_v43  ;;  %v4274_v26 = vld [vmem:[%s5397_s19 + $0x130] sm:$0xff]  ;;  %v2389_v43 = vunpack.c.l.bf16 %v4270_v52 }
 0x695   : > { %v4277_v34 = vmul.f32 -1.442695, %v2438_v9  ;;  %v2390_v9 = vunpack.c.h.bf16 %v4270_v52  ;;  %v2398_v7 = vunpack.c.h.bf16 %v4274_v26 }
 0x696   : > { %v4278_v59 = vmul.f32 -1.442695, %v2440_v33  ;;  %v2392_v33 = vunpack.c.h.bf16 %v4271_v63 }
 0x69b   : > { %v4813_v60 = vpop.eup %4812 }
 0x69c   : > { %v6723_v58 = vmul.f32 %v4813_v60, %v6550_v11  ;;  %v4815_v21 = vpop.eup %4814  ;;  %v2442_v60 = vadd.f32 %v2441_v57, %v2394_v8  ;;  %v4275_v57 = vld [vmem:[%s5397_s19 + $0x138] sm:$0xff]  ;;  %v2391_v8 = vunpack.c.l.bf16 %v4271_v63 }
 0x69d   : > { %v6727_v18 = vmul.f32 %v4815_v21, %v6554_v16  ;;  %v4817_v51 = vpop.eup %4816  ;;  %v4276_v21 = vmul.f32 -1.442695, %v2436_v20 }
 0x69e   : > { %v6731_v54 = vmul.f32 %v4817_v51, %v6560_v53  ;;  %v4819_v17 = vpop.eup %4818  ;;  %v4279_v51 = vmul.f32 -1.442695, %v2442_v60 }
 0x69f   : > { %v6734_v49 = vmul.f32 %v4819_v17, %v6564_v24  ;;  %4820 = vpow2.f32 %v4276_v21 }
 0x6a0   : > { %4822 = vpow2.f32 %v4277_v34  ;;  %v2397_v34 = vunpack.c.l.bf16 %v4274_v26 }
 0x6a1   : > { %4824 = vpow2.f32 %v4278_v59  ;;  %v2399_v59 = vunpack.c.l.bf16 %v4275_v57 }
 0x6a2   : > { %4826 = vpow2.f32 %v4279_v51  ;;  %v2400_v51 = vunpack.c.h.bf16 %v4275_v57 }
 0x6a9   : > { %v4821_v30 = vpop.eup %4820 }
 0x6aa   : > { %v4823_v17 = vpop.eup %4822  ;;  %v2585_v5 = vadd.f32 1.0, %v4821_v30 }
 0x6ab   : > { %v4825_v19 = vpop.eup %4824  ;;  %v2586_v56 = vadd.f32 1.0, %v4823_v17 }
 0x6ac   : > { %v4827_v38 = vpop.eup %4826  ;;  %v2587_v62 = vadd.f32 1.0, %v4825_v19  ;;  %4828 = vrcp.f32 %v2585_v5 }
 0x6ad   : > { %v2588_v20 = vadd.f32 1.0, %v4827_v38  ;;  %4830 = vrcp.f32 %v2586_v56 }
 0x6ae   : > { %4832 = vrcp.f32 %v2587_v62 }
 0x6af   : > { %4834 = vrcp.f32 %v2588_v20 }
 0x6b6   : > { %v4829_v26 = vpop.eup %4828 }
 0x6b7   : > { %v4831_v20 = vpop.eup %4830 }
 0x6bf   : > { %v2521_v60 = vpop.f32.mrb[36].mxu0  ;;  %v2564_v21 = vpop.f32.mrb[36].mxu1 }
 0x6c0   : > { %v2522_v47 = vadd.f32 %v2521_v60, %v2389_v43  ;;  %v2565_v42 = vadd.f32 %v2564_v21, %v2391_v8  ;;  %v2523_v30 = vpop.f32.mrb[37].mxu0  ;;  %v2566_v17 = vpop.f32.mrb[37].mxu1 }
 0x6c1   : > { %v2524_v19 = vadd.f32 %v2523_v30, %v2390_v9  ;;  %v2567_v31 = vadd.f32 %v2566_v17, %v2392_v33  ;;  %v2525_v37 = vpop.f32.mrb[38].mxu0  ;;  %v2568_v38 = vpop.f32.mrb[38].mxu1 }
 0x6c2   : > { %4836 = vtanh.f32 %v2522_v47  ;;  %v4284_v63 = vmul.f32 -1.442695, %v2565_v42  ;;  %v2526_v52 = vadd.f32 %v2525_v37, %v2397_v34  ;;  %v2569_v5 = vadd.f32 %v2568_v38, %v2399_v59  ;;  %v2527_v6 = vpop.f32.mrb[39].mxu0  ;;  %v2570_v56 = vpop.f32.mrb[39].mxu1 }
 0x6c3   : > { %4838 = vtanh.f32 %v2524_v19  ;;  %v4285_v10 = vmul.f32 -1.442695, %v2567_v31  ;;  %v2571_v57 = vadd.f32 %v2570_v56, %v2400_v51  ;;  %v2528_v43 = vadd.f32 %v2527_v6, %v2398_v7  ;;  %v4833_v47 = vpop.eup %4832  ;;  %v2677_v60 = vpop.permute.xlu0 %2676 }
 0x6c4   : > { %4840 = vpow2.f32 %v4284_v63  ;;  %v4286_v62 = vmul.f32 -1.442695, %v2569_v5  ;;  %v4835_v42 = vpop.eup %4834  ;;  %vm2681_vm8 = vcmp.eq.s32.totalorder %v2677_v60, 1  ;;  %v2680_v5 = vpop.permute.xlu1 %2679  ;;  %v8192_v60 = vld [vmem:[#allocation115_spill] sm:$0xff] }
 0x6c5   : > { %4842 = vpow2.f32 %v4285_v10  ;;  %v4287_v8 = vmul.f32 -1.442695, %v2571_v57  ;;  %vm2682_vm9 = vcmp.eq.s32.totalorder %v2680_v5, 1  ;;  %v8201_v5 = vld [vmem:[#allocation124_spill] sm:$0xff] }
 0x6c6   : > { %4844 = vtanh.f32 %v2526_v52 }
 0x6c7   : > { %4846 = vpow2.f32 %v4286_v62 }
 0x6c8   : > { %4848 = vtanh.f32 %v2528_v43 }
 0x6c9   : > { %4850 = vpow2.f32 %v4287_v8 }
 0x6cc   : > { %v4837_v37 = vpop.eup %4836 }
 0x6cd   : > { %v4839_v9 = vpop.eup %4838  ;;  %v2653_v33 = vmul.f32 %v4837_v37, %v4829_v26 }
 0x6ce   : > { %v4841_v34 = vpop.eup %4840  ;;  %v2654_v59 = vmul.f32 %v4839_v9, %v4831_v20 }
 0x6cf   : > { %v4843_v31 = vpop.eup %4842  ;;  %v2657_v21 = vadd.f32 %v2653_v33, %v6723_v58  ;;  %v2637_v6 = vadd.f32 1.0, %v4841_v34 }
 0x6d0   : > { %v4845_v10 = vpop.eup %4844  ;;  %v2658_v7 = vadd.f32 %v2654_v59, %v6727_v18  ;;  %v2638_v51 = vadd.f32 1.0, %v4843_v31 }
 0x6d1   : > { %v4847_v30 = vpop.eup %4846  ;;  %4852 = vtanh.f32 %v2657_v21  ;;  %v2655_v17 = vmul.f32 %v4845_v10, %v4833_v47  ;;  %v6744_v19 = vsel %vm2681_vm8, %v2657_v21, %v6550_v11  ;;  %v8193_v10 = vld [vmem:[#allocation116_spill] sm:$0xff] }
 0x6d2   : > { %v4849_v38 = vpop.eup %4848  ;;  %4854 = vrcp.f32 %v2637_v6  ;;  %v2639_v63 = vadd.f32 1.0, %v4847_v30  ;;  %v6748_v52 = vsel %vm2681_vm8, %v2658_v7, %v6554_v16  ;;  %v8196_v30 = vld [vmem:[#allocation119_spill] sm:$0xff] }
 0x6d3   : > { %v4851_v58 = vpop.eup %4850  ;;  %4856 = vtanh.f32 %v2658_v7  ;;  %v2659_v18 = vadd.f32 %v2655_v17, %v6731_v54  ;;  %v2656_v56 = vmul.f32 %v4849_v38, %v4835_v42  ;;  %v8194_v7 = vld [vmem:[#allocation117_spill] sm:$0xff]  ;;  %v8197_v17 = vld [vmem:[#allocation120_spill] sm:$0xff] }
 0x6d4   : > { %4858 = vrcp.f32 %v2638_v51  ;;  %v2640_v57 = vadd.f32 1.0, %v4851_v58  ;;  %v8195_v51 = vld [vmem:[#allocation118_spill] sm:$0xff]  ;;  %v8198_v38 = vld [vmem:[#allocation121_spill] sm:$0xff]  ;;  %v8200_v58 = vld [vmem:[#allocation123_spill] sm:$0xff] }
 0x6d5   : > { %4860 = vtanh.f32 %v2659_v18  ;;  %v2660_v11 = vadd.f32 %v2656_v56, %v6734_v49  ;;  %v6754_v62 = vsel %vm2682_vm9, %v2659_v18, %v6560_v53  ;;  %v8202_v18 = vld [vmem:[#allocation125_spill] sm:$0xff]  ;;  %v8203_v56 = vld [vmem:[#allocation126_spill] sm:$0xff] }
 0x6d6   : > { %4862 = vrcp.f32 %v2639_v63  ;;  %v8199_v63 = vld [vmem:[#allocation122_spill] sm:$0xff] }
 0x6d7   : > { %4864 = vtanh.f32 %v2660_v11  ;;  %v6758_v16 = vsel %vm2682_vm9, %v2660_v11, %v6564_v24  ;;  %v8205_v11 = vld [vmem:[#allocation128_spill] sm:$0xff] }
 0x6d8   : > { %4866 = vrcp.f32 %v2640_v57  ;;  %v8204_v57 = vld [vmem:[#allocation127_spill] sm:$0xff] }
 0x6db   : > { %v4853_v43 = vpop.eup %4852 }
 0x6dc   : > { %v4855_v54 = vpop.eup %4854 }
 0x6dd   : > { %v4857_v8 = vpop.eup %4856  ;;  %v2665_v26 = vmul.f32 %v4855_v54, %v4853_v43  ;;  %v8206_v43 = vld [vmem:[#allocation129_spill] sm:$0xff]  ;;  %v8207_v54 = vld [vmem:[#allocation130_spill] sm:$0xff] }
 0x6de   : > { %v4859_v20 = vpop.eup %4858 }
 0x6df   : > { %v4861_v47 = vpop.eup %4860  ;;  %v2666_v42 = vmul.f32 %v4859_v20, %v4857_v8  ;;  %v6776_v21 = vsel %vm2681_vm8, %v2665_v26, %v6582_v12  ;;  %v8191_v12 = vld [vmem:[#allocation114_spill] sm:$0xff]  ;;  %v8208_v8 = vld [vmem:[#allocation131_spill] sm:$0xff]  ;;  %v8209_v26 = vld [vmem:[#allocation132_spill] sm:$0xff] }
 0x6e0   : > { %v4863_v37 = vpop.eup %4862  ;;  %v8210_v20 = vld [vmem:[#allocation133_spill] sm:$0xff] }
 0x6e1   : > { %v4865_v49 = vpop.eup %4864  ;;  %v2667_v9 = vmul.f32 %v4863_v37, %v4861_v47  ;;  %v6766_v24 = vsel %vm2681_vm8, %v2666_v42, %v6572_v22  ;;  %v8189_v22 = vld [vmem:[#allocation112_spill] sm:$0xff]  ;;  %v8211_v47 = vld [vmem:[#allocation134_spill] sm:$0xff]  ;;  %v8212_v42 = vld [vmem:[#allocation135_spill] sm:$0xff] }
 0x6e2   : > { %v4867_v33 = vpop.eup %4866  ;;  %v8213_v37 = vld [vmem:[#allocation136_spill] sm:$0xff] }
 0x6e3   : > { %v2668_v53 = vmul.f32 %v4867_v33, %v4865_v49  ;;  %v6762_v34 = vsel %vm2682_vm9, %v2667_v9, %v6568_v27  ;;  %v8188_v27 = vld [vmem:[#allocation111_spill] sm:$0xff]  ;;  %v8214_v49 = vld [vmem:[#allocation137_spill] sm:$0xff]  ;;  %v8215_v9 = vld [vmem:[#allocation138_spill] sm:$0xff] }
 0x6e4   : > { %v6780_v6 = vpack.c.bf16 %v6762_v34, %v6776_v21  ;;  %v8216_v33 = vld [vmem:[#allocation139_spill] sm:$0xff] }
 0x6e5   : > { %v6770_v59 = vsel %vm2682_vm9, %v2668_v53, %v6576_v35  ;;  %v8190_v35 = vld [vmem:[#allocation113_spill] sm:$0xff]  ;;  %v8217_v53 = vld [vmem:[#allocation140_spill] sm:$0xff] }
 0x6e6   : > { %v2692_v31 = vpack.c.bf16 %v6770_v59, %v6766_v24 }
 0x6e8   : > { %2750 = vmatprep.mubr.bf16.mxu0 %v2692_v31  ;;  %2793 = vmatprep.mubr.bf16.mxu1 %v2692_v31 }
 0x6e9   : > { %2751 = vmatmul.mubr.bf16.vlgmr.msra.gmra.mrb[40].mxu0 %v6780_v6  ;;  %2794 = vmatmul.mubr.bf16.vlgmr.msra.gmra.mrb[40].mxu1 %v6780_v6 }
 0x6ea   : > { %2805 = vmatpush1.bf16.msra.mxu0 %v7778_v25  ;;  %2848 = vmatpush1.bf16.msra.mxu1 %v7779_v28 }
 0x6eb   : > { %2836 = vmatprep.mubr.bf16.mxu0 %v2692_v31  ;;  %2879 = vmatprep.mubr.bf16.mxu1 %v2692_v31  ;;  %v8218_v31 = vld [vmem:[#allocation141_spill] sm:$0xff] }
 0x6ec   : > { %2806 = vmatprep.subr.bf16.mxu0 %v7780_v14  ;;  %2849 = vmatprep.subr.bf16.mxu1 %v7781_v13 }
 0x6ee   : > { %2807 = vmatpush1.bf16.msra.mxu0 %v7782_v3  ;;  %2850 = vmatpush1.bf16.msra.mxu1 %v7783_v55 }
 0x6ef   : > { %2808 = vmatprep.subr.bf16.mxu0 %v7784_v46  ;;  %2851 = vmatprep.subr.bf16.mxu1 %v7785_v45 }
 0x6f2   : > { %2809 = vmatpush1.bf16.msra.mxu0 %v7786_v0  ;;  %2852 = vmatpush1.bf16.msra.mxu1 %v7787_v48 }
 0x6f3   : > { %2810 = vmatprep.subr.bf16.mxu0 %v7788_v1  ;;  %2853 = vmatprep.subr.bf16.mxu1 %v7789_v2 }
 0x6f6   : > { %2811 = vmatpush1.bf16.msra.mxu0 %v7790_v15  ;;  %2854 = vmatpush1.bf16.msra.mxu1 %v7791_v40 }
 0x6f7   : > { %2812 = vmatprep.subr.bf16.mxu0 %v7876_v44  ;;  %2855 = vmatprep.subr.bf16.mxu1 %v7877_v61 }
 0x6fa   : > { %2813 = vmatpush1.bf16.msra.mxu0 %v7878_v4  ;;  %2856 = vmatpush1.bf16.msra.mxu1 %v7879_v50 }
 0x6fb   : > { %2814 = vmatprep.subr.bf16.mxu0 %v7880_v36  ;;  %2857 = vmatprep.subr.bf16.mxu1 %v7881_v41 }
 0x6fe   : > { %2815 = vmatpush1.bf16.msra.mxu0 %v7882_v23  ;;  %2858 = vmatpush1.bf16.msra.mxu1 %v7883_v39 }
 0x6ff   : > { %2816 = vmatprep.subr.bf16.mxu0 %v7884_v29  ;;  %2859 = vmatprep.subr.bf16.mxu1 %v7885_v32 }
 0x702   : > { %2817 = vmatpush1.bf16.msra.mxu0 %v8188_v27  ;;  %2860 = vmatpush1.bf16.msra.mxu1 %v8189_v22 }
 0x703   : > { %2818 = vmatprep.subr.bf16.mxu0 %v8190_v35  ;;  %2861 = vmatprep.subr.bf16.mxu1 %v8191_v12 }
 0x706   : > { %2819 = vmatpush1.bf16.msra.mxu0 %v8192_v60  ;;  %2862 = vmatpush1.bf16.msra.mxu1 %v8193_v10 }
 0x707   : > { %2820 = vmatprep.subr.bf16.mxu0 %v8194_v7  ;;  %2863 = vmatprep.subr.bf16.mxu1 %v8195_v51  ;;  %v4291_v51 = vld [vmem:[%s5397_s19 + $0x158] sm:$0xff] }
 0x70a   : > { %2821 = vmatpush1.bf16.msra.mxu0 %v8196_v30  ;;  %2864 = vmatpush1.bf16.msra.mxu1 %v8197_v17 }
 0x70b   : > { %2822 = vmatprep.subr.bf16.mxu0 %v8198_v38  ;;  %2865 = vmatprep.subr.bf16.mxu1 %v8199_v63 }
 0x70e   : > { %2823 = vmatpush1.bf16.msra.mxu0 %v8200_v58  ;;  %2866 = vmatpush1.bf16.msra.mxu1 %v8201_v5 }
 0x70f   : > { %2824 = vmatprep.subr.bf16.mxu0 %v8202_v18  ;;  %2867 = vmatprep.subr.bf16.mxu1 %v8203_v56 }
 0x712   : > { %2825 = vmatpush1.bf16.msra.mxu0 %v8204_v57  ;;  %2868 = vmatpush1.bf16.msra.mxu1 %v8205_v11 }
 0x713   : > { %2826 = vmatprep.subr.bf16.mxu0 %v8206_v43  ;;  %2869 = vmatprep.subr.bf16.mxu1 %v8207_v54 }
 0x716   : > { %2827 = vmatpush1.bf16.msra.mxu0 %v8208_v8  ;;  %2870 = vmatpush1.bf16.msra.mxu1 %v8209_v26  ;;  %v8219_v8 = vld [vmem:[#allocation142_spill] sm:$0xff]  ;;  %v8220_v26 = vld [vmem:[#allocation143_spill] sm:$0xff] }
 0x717   : > { %2828 = vmatprep.subr.bf16.mxu0 %v8210_v20  ;;  %2871 = vmatprep.subr.bf16.mxu1 %v8211_v47  ;;  %v8221_v20 = vld [vmem:[#allocation144_spill] sm:$0xff]  ;;  %v8222_v47 = vld [vmem:[#allocation145_spill] sm:$0xff] }
 0x71a   : > { %2829 = vmatpush1.bf16.msra.mxu0 %v8212_v42  ;;  %2872 = vmatpush1.bf16.msra.mxu1 %v8213_v37  ;;  %v8223_v42 = vld [vmem:[#allocation146_spill] sm:$0xff]  ;;  %v8224_v37 = vld [vmem:[#allocation147_spill] sm:$0xff] }
 0x71b   : > { %2830 = vmatprep.subr.bf16.mxu0 %v8214_v49  ;;  %2873 = vmatprep.subr.bf16.mxu1 %v8215_v9  ;;  %v8225_v49 = vld [vmem:[#allocation148_spill] sm:$0xff] }
 0x71c   : > { %v8226_v9 = vld [vmem:[#allocation12_spill] sm:$0xff] }
 0x71e   : > { %2831 = vmatpush1.bf16.msra.mxu0 %v8216_v33  ;;  %2874 = vmatpush1.bf16.msra.mxu1 %v8217_v53  ;;  %v8227_v33 = vld [vmem:[#allocation14_spill] sm:$0xff] }
 0x71f   : > { %2832 = vmatprep.subr.bf16.mxu0 %v8218_v31  ;;  %2875 = vmatprep.subr.bf16.mxu1 %v8219_v8  ;;  %v8228_v8 = vld [vmem:[#allocation13_spill] sm:$0xff]  ;;  %v8237_v31 = vld [vmem:[#allocation23_spill] sm:$0xff] }
 0x722   : > { %2833 = vmatpush1.bf16.msra.mxu0 %v8220_v26  ;;  %2876 = vmatpush1.bf16.msra.mxu1 %v8221_v20  ;;  %v8229_v26 = vld [vmem:[#allocation15_spill] sm:$0xff]  ;;  %v8230_v20 = vld [vmem:[#allocation16_spill] sm:$0xff] }
 0x723   : > { %2834 = vmatprep.subr.bf16.mxu0 %v8222_v47  ;;  %2877 = vmatprep.subr.bf16.mxu1 %v8223_v42  ;;  %v8231_v47 = vld [vmem:[#allocation17_spill] sm:$0xff]  ;;  %v8232_v42 = vld [vmem:[#allocation18_spill] sm:$0xff] }
 0x726   : > { %2835 = vmatpush1.bf16.msra.mxu0 %v8224_v37  ;;  %2878 = vmatpush1.bf16.msra.mxu1 %v8225_v49  ;;  %v8233_v37 = vld [vmem:[#allocation19_spill] sm:$0xff]  ;;  %v8234_v49 = vld [vmem:[#allocation20_spill] sm:$0xff] }
 0x727   : > { %3035 = vmatprep.subr.bf16.mxu0 %v8226_v9  ;;  %3078 = vmatprep.subr.bf16.mxu1 %v8227_v33  ;;  %v8235_v9 = vld [vmem:[#allocation21_spill] sm:$0xff]  ;;  %v8236_v33 = vld [vmem:[#allocation22_spill] sm:$0xff] }
 0x729   : > { %2837 = vmatmul.mubr.bf16.vlgmr.msra.gmra.mrb[44].mxu0 %v6780_v6  ;;  %2880 = vmatmul.mubr.bf16.vlgmr.msra.gmra.mrb[44].mxu1 %v6780_v6  ;;  %v8238_v6 = vld [vmem:[#allocation24_spill] sm:$0xff] }
 0x72a   : > { %3036 = vmatpush1.bf16.msra.mxu0 %v8228_v8  ;;  %3079 = vmatpush1.bf16.msra.mxu1 %v8229_v26  ;;  %v8239_v8 = vld [vmem:[#allocation25_spill] sm:$0xff]  ;;  %v8240_v26 = vld [vmem:[#allocation26_spill] sm:$0xff] }
 0x72b   : > { %3037 = vmatprep.subr.bf16.mxu0 %v8230_v20  ;;  %3080 = vmatprep.subr.bf16.mxu1 %v8231_v47  ;;  %v8241_v20 = vld [vmem:[#allocation27_spill] sm:$0xff]  ;;  %v8242_v47 = vld [vmem:[#allocation28_spill] sm:$0xff] }
 0x72e   : > { %3038 = vmatpush1.bf16.msra.mxu0 %v8232_v42  ;;  %3081 = vmatpush1.bf16.msra.mxu1 %v8233_v37  ;;  %v8243_v42 = vld [vmem:[#allocation29_spill] sm:$0xff]  ;;  %v8244_v37 = vld [vmem:[#allocation30_spill] sm:$0xff] }
 0x72f   : > { %3039 = vmatprep.subr.bf16.mxu0 %v8234_v49  ;;  %3082 = vmatprep.subr.bf16.mxu1 %v8235_v9  ;;  %v8245_v49 = vld [vmem:[#allocation31_spill] sm:$0xff]  ;;  %v8246_v9 = vld [vmem:[#allocation32_spill] sm:$0xff] }
 0x732   : > { %3040 = vmatpush1.bf16.msra.mxu0 %v8236_v33  ;;  %3083 = vmatpush1.bf16.msra.mxu1 %v8237_v31  ;;  %v8247_v33 = vld [vmem:[#allocation33_spill] sm:$0xff]  ;;  %v8248_v31 = vld [vmem:[#allocation34_spill] sm:$0xff] }
 0x733   : > { %3041 = vmatprep.subr.bf16.mxu0 %v8238_v6  ;;  %3084 = vmatprep.subr.bf16.mxu1 %v8239_v8  ;;  %v8249_v6 = vld [vmem:[#allocation35_spill] sm:$0xff]  ;;  %v8250_v8 = vld [vmem:[#allocation36_spill] sm:$0xff] }
 0x736   : > { %3042 = vmatpush1.bf16.msra.mxu0 %v8240_v26  ;;  %3085 = vmatpush1.bf16.msra.mxu1 %v8241_v20  ;;  %v8251_v26 = vld [vmem:[#allocation37_spill] sm:$0xff]  ;;  %v8252_v20 = vld [vmem:[#allocation38_spill] sm:$0xff] }
 0x737   : > { %3043 = vmatprep.subr.bf16.mxu0 %v8242_v47  ;;  %3086 = vmatprep.subr.bf16.mxu1 %v8243_v42  ;;  %v8253_v47 = vld [vmem:[#allocation39_spill] sm:$0xff]  ;;  %v8254_v42 = vld [vmem:[#allocation40_spill] sm:$0xff] }
 0x73a   : > { %3044 = vmatpush1.bf16.msra.mxu0 %v8244_v37  ;;  %3087 = vmatpush1.bf16.msra.mxu1 %v8245_v49  ;;  %v8255_v37 = vld [vmem:[#allocation41_spill] sm:$0xff]  ;;  %v8256_v49 = vld [vmem:[#allocation42_spill] sm:$0xff] }
 0x73b   : > { %3045 = vmatprep.subr.bf16.mxu0 %v8246_v9  ;;  %3088 = vmatprep.subr.bf16.mxu1 %v8247_v33  ;;  %v8257_v9 = vld [vmem:[#allocation43_spill] sm:$0xff]  ;;  %v8258_v33 = vld [vmem:[#allocation44_spill] sm:$0xff] }
 0x73e   : > { %3046 = vmatpush1.bf16.msra.mxu0 %v8248_v31  ;;  %3089 = vmatpush1.bf16.msra.mxu1 %v8249_v6  ;;  %v8259_v31 = vld [vmem:[#allocation45_spill] sm:$0xff]  ;;  %v8260_v6 = vld [vmem:[#allocation46_spill] sm:$0xff] }
 0x73f   : > { %3047 = vmatprep.subr.bf16.mxu0 %v8250_v8  ;;  %3090 = vmatprep.subr.bf16.mxu1 %v8251_v26  ;;  %v8261_v8 = vld [vmem:[#allocation47_spill] sm:$0xff]  ;;  %v8262_v26 = vld [vmem:[#allocation48_spill] sm:$0xff] }
 0x742   : > { %3048 = vmatpush1.bf16.msra.mxu0 %v8252_v20  ;;  %3091 = vmatpush1.bf16.msra.mxu1 %v8253_v47  ;;  %v8263_v20 = vld [vmem:[#allocation49_spill] sm:$0xff]  ;;  %v8264_v47 = vld [vmem:[#allocation50_spill] sm:$0xff] }
 0x743   : > { %3049 = vmatprep.subr.bf16.mxu0 %v8254_v42  ;;  %3092 = vmatprep.subr.bf16.mxu1 %v8255_v37  ;;  %v8265_v42 = vld [vmem:[#allocation51_spill] sm:$0xff]  ;;  %v8266_v37 = vld [vmem:[#allocation52_spill] sm:$0xff] }
 0x746   : > { %3050 = vmatpush1.bf16.msra.mxu0 %v8256_v49  ;;  %3093 = vmatpush1.bf16.msra.mxu1 %v8257_v9  ;;  %v8267_v49 = vld [vmem:[#allocation53_spill] sm:$0xff]  ;;  %v8268_v9 = vld [vmem:[#allocation54_spill] sm:$0xff] }
 0x747   : > { %3051 = vmatprep.subr.bf16.mxu0 %v8258_v33  ;;  %3094 = vmatprep.subr.bf16.mxu1 %v8259_v31  ;;  %v8269_v33 = vld [vmem:[#allocation55_spill] sm:$0xff]  ;;  %v8270_v31 = vld [vmem:[#allocation56_spill] sm:$0xff] }
 0x74a   : > { %3052 = vmatpush1.bf16.msra.mxu0 %v8260_v6  ;;  %3095 = vmatpush1.bf16.msra.mxu1 %v8261_v8  ;;  %v8271_v6 = vld [vmem:[#allocation57_spill] sm:$0xff]  ;;  %v8272_v8 = vld [vmem:[#allocation58_spill] sm:$0xff] }
 0x74b   : > { %3053 = vmatprep.subr.bf16.mxu0 %v8262_v26  ;;  %3096 = vmatprep.subr.bf16.mxu1 %v8263_v20  ;;  %v8273_v26 = vld [vmem:[#allocation59_spill] sm:$0xff]  ;;  %v8274_v20 = vld [vmem:[#allocation61_spill] sm:$0xff] }
 0x74e   : > { %3054 = vmatpush1.bf16.msra.mxu0 %v8264_v47  ;;  %3097 = vmatpush1.bf16.msra.mxu1 %v8265_v42  ;;  %v8275_v47 = vld [vmem:[#allocation62_spill] sm:$0xff]  ;;  %v8276_v42 = vld [vmem:[#allocation64_spill] sm:$0xff] }
 0x74f   : > { %3055 = vmatprep.subr.bf16.mxu0 %v8266_v37  ;;  %3098 = vmatprep.subr.bf16.mxu1 %v8267_v49  ;;  %v8277_v37 = vld [vmem:[#allocation65_spill] sm:$0xff]  ;;  %v8288_v49 = vld [vmem:[#allocation79_spill] sm:$0xff] }
 0x752   : > { %3056 = vmatpush1.bf16.msra.mxu0 %v8268_v9  ;;  %3099 = vmatpush1.bf16.msra.mxu1 %v8269_v33  ;;  %v8278_v9 = vld [vmem:[#allocation66_spill] sm:$0xff]  ;;  %v8279_v33 = vld [vmem:[#allocation67_spill] sm:$0xff] }
 0x753   : > { %3057 = vmatprep.subr.bf16.mxu0 %v8270_v31  ;;  %3100 = vmatprep.subr.bf16.mxu1 %v8271_v6  ;;  %v8280_v31 = vld [vmem:[#allocation69_spill] sm:$0xff]  ;;  %v8281_v6 = vld [vmem:[#allocation70_spill] sm:$0xff] }
 0x756   : > { %3058 = vmatpush1.bf16.msra.mxu0 %v8272_v8  ;;  %3101 = vmatpush1.bf16.msra.mxu1 %v8273_v26  ;;  %v8282_v8 = vld [vmem:[#allocation71_spill] sm:$0xff]  ;;  %v8283_v26 = vld [vmem:[#allocation72_spill] sm:$0xff] }
 0x757   : > { %3059 = vmatprep.subr.bf16.mxu0 %v8274_v20  ;;  %3102 = vmatprep.subr.bf16.mxu1 %v8275_v47  ;;  %v8284_v20 = vld [vmem:[#allocation74_spill] sm:$0xff]  ;;  %v8285_v47 = vld [vmem:[#allocation75_spill] sm:$0xff] }
 0x75a   : > { %3060 = vmatpush1.bf16.msra.mxu0 %v8276_v42  ;;  %3103 = vmatpush1.bf16.msra.mxu1 %v8277_v37  ;;  %v8286_v42 = vld [vmem:[#allocation76_spill] sm:$0xff]  ;;  %v8287_v37 = vld [vmem:[#allocation77_spill] sm:$0xff] }
 0x75b   : > { %3061 = vmatprep.subr.bf16.mxu0 %v8278_v9  ;;  %3104 = vmatprep.subr.bf16.mxu1 %v8279_v33  ;;  %v8289_v9 = vld [vmem:[#allocation82_spill] sm:$0xff]  ;;  %v8290_v33 = vld [vmem:[#allocation83_spill] sm:$0xff] }
 0x75e   : > { %3062 = vmatpush1.bf16.msra.mxu0 %v8280_v31  ;;  %3105 = vmatpush1.bf16.msra.mxu1 %v8281_v6  ;;  %v8291_v31 = vld [vmem:[#allocation84_spill] sm:$0xff]  ;;  %v4289_v6 = vld [vmem:[%s5397_s19 + $0x148] sm:$0xff] }
 0x75f   : > { %3063 = vmatprep.subr.bf16.mxu0 %v8282_v8  ;;  %3106 = vmatprep.subr.bf16.mxu1 %v8283_v26  ;;  %v4293_v8 = vld [vmem:[%s5397_s19 + $0x168] sm:$0xff]  ;;  %v2704_v53 = vunpack.c.l.bf16 %v4289_v6  ;;  %v2705_v26 = vunpack.c.h.bf16 %v4289_v6 }
 0x760   : > { %v2712_v54 = vunpack.c.l.bf16 %v4293_v8 }
 0x762   : > { %3064 = vmatpush1.bf16.msra.mxu0 %v8284_v20  ;;  %3107 = vmatpush1.bf16.msra.mxu1 %v8285_v47  ;;  %v2713_v47 = vunpack.c.h.bf16 %v4293_v8 }
 0x763   : > { %3065 = vmatprep.subr.bf16.mxu0 %v8286_v42  ;;  %3108 = vmatprep.subr.bf16.mxu1 %v8287_v37 }
 0x766   : > { %3066 = vmatpush1.bf16.msra.mxu0 %v8288_v49  ;;  %3109 = vmatpush1.bf16.msra.mxu1 %v8289_v9 }
 0x767   : > { %3121 = vmatprep.subr.bf16.mxu0 %v8290_v33  ;;  %3164 = vmatprep.subr.bf16.mxu1 %v8291_v31 }
 0x7bc   : > { %v2752_v20 = vpop.f32.mrb[40].mxu0  ;;  %v2795_v43 = vpop.f32.mrb[40].mxu1 }
 0x7bd   : > { %v2796_v11 = vadd.f32 %v2795_v43, %v2704_v53  ;;  %v2754_v42 = vpop.f32.mrb[41].mxu0  ;;  %v2797_v57 = vpop.f32.mrb[41].mxu1 }
 0x7be   : > { %v2798_v37 = vadd.f32 %v2797_v57, %v2705_v26  ;;  %v2756_v56 = vpop.f32.mrb[42].mxu0  ;;  %v2799_v49 = vpop.f32.mrb[42].mxu1 }
 0x7bf   : > { %v4300_v18 = vmul.f32 -1.442695, %v2796_v11  ;;  %v2800_v9 = vadd.f32 %v2799_v49, %v2712_v54  ;;  %v2758_v5 = vpop.f32.mrb[43].mxu0  ;;  %v2801_v33 = vpop.f32.mrb[43].mxu1 }
 0x7c0   : > { %v4301_v58 = vmul.f32 -1.442695, %v2798_v37  ;;  %v2802_v31 = vadd.f32 %v2801_v33, %v2713_v47  ;;  %v4288_v47 = vld [vmem:[%s5397_s19 + $0x140] sm:$0xff] }
 0x7c1   : > { %4868 = vpow2.f32 %v4300_v18  ;;  %v4302_v63 = vmul.f32 -1.442695, %v2800_v9  ;;  %v4292_v33 = vld [vmem:[%s5397_s19 + $0x160] sm:$0xff] }
 0x7c2   : > { %4870 = vpow2.f32 %v4301_v58  ;;  %v4303_v6 = vmul.f32 -1.442695, %v2802_v31  ;;  %v2702_v31 = vunpack.c.l.bf16 %v4288_v47 }
 0x7c3   : > { %4872 = vpow2.f32 %v4302_v63 }
 0x7c4   : > { %4874 = vpow2.f32 %v4303_v6 }
 0x7cb   : > { %v4869_v8 = vpop.eup %4868 }
 0x7cc   : > { %v2926_v43 = vadd.f32 1.0, %v4869_v8  ;;  %v4871_v53 = vpop.eup %4870 }
 0x7cd   : > { %v2927_v57 = vadd.f32 1.0, %v4871_v53  ;;  %v4873_v26 = vpop.eup %4872  ;;  %v2710_v53 = vunpack.c.l.bf16 %v4292_v33 }
 0x7ce   : > { %4876 = vrcp.f32 %v2926_v43  ;;  %v2928_v11 = vadd.f32 1.0, %v4873_v26  ;;  %v4875_v54 = vpop.eup %4874  ;;  %v2703_v43 = vunpack.c.h.bf16 %v4288_v47  ;;  %v2711_v26 = vunpack.c.h.bf16 %v4292_v33  ;;  %v4290_v33 = vld [vmem:[%s5397_s19 + $0x150] sm:$0xff] }
 0x7cf   : > { %4878 = vrcp.f32 %v2927_v57  ;;  %v2929_v37 = vadd.f32 1.0, %v4875_v54 }
 0x7d0   : > { %4880 = vrcp.f32 %v2928_v11  ;;  %v2753_v11 = vadd.f32 %v2752_v20, %v2702_v31  ;;  %v2755_v54 = vadd.f32 %v2754_v42, %v2703_v43 }
 0x7d1   : > { %4882 = vrcp.f32 %v2929_v37  ;;  %v2757_v37 = vadd.f32 %v2756_v56, %v2710_v53  ;;  %v4294_v56 = vld [vmem:[%s5397_s19 + $0x170] sm:$0xff]  ;;  %v2706_v53 = vunpack.c.l.bf16 %v4290_v33 }
 0x7d2   : > { %v4297_v38 = vmul.f32 -1.442695, %v2755_v54  ;;  %v2707_v54 = vunpack.c.h.bf16 %v4290_v33  ;;  %v2715_v60 = vunpack.c.h.bf16 %v4294_v56 }
 0x7d3   : > { %v4298_v17 = vmul.f32 -1.442695, %v2757_v37  ;;  %v2709_v37 = vunpack.c.h.bf16 %v4291_v51 }
 0x7d8   : > { %v4877_v18 = vpop.eup %4876 }
 0x7d9   : > { %v6917_v58 = vmul.f32 %v4877_v18, %v6744_v19  ;;  %v4879_v63 = vpop.eup %4878  ;;  %v2759_v18 = vadd.f32 %v2758_v5, %v2711_v26  ;;  %v4295_v5 = vld [vmem:[%s5397_s19 + $0x178] sm:$0xff]  ;;  %v2708_v26 = vunpack.c.l.bf16 %v4291_v51 }
 0x7da   : > { %v6921_v49 = vmul.f32 %v4879_v63, %v6748_v52  ;;  %v4881_v9 = vpop.eup %4880  ;;  %v4296_v63 = vmul.f32 -1.442695, %v2753_v11 }
 0x7db   : > { %v6925_v6 = vmul.f32 %v4881_v9, %v6754_v62  ;;  %v4883_v8 = vpop.eup %4882  ;;  %v4299_v9 = vmul.f32 -1.442695, %v2759_v18 }
 0x7dc   : > { %v6928_v57 = vmul.f32 %v4883_v8, %v6758_v16  ;;  %4884 = vpow2.f32 %v4296_v63 }
 0x7dd   : > { %4886 = vpow2.f32 %v4297_v38  ;;  %v2714_v38 = vunpack.c.l.bf16 %v4294_v56 }
 0x7de   : > { %4888 = vpow2.f32 %v4298_v17  ;;  %v2716_v17 = vunpack.c.l.bf16 %v4295_v5 }
 0x7df   : > { %4890 = vpow2.f32 %v4299_v9  ;;  %v2717_v9 = vunpack.c.h.bf16 %v4295_v5 }
 0x7e6   : > { %v4885_v47 = vpop.eup %4884 }
 0x7e7   : > { %v4887_v8 = vpop.eup %4886  ;;  %v2902_v31 = vadd.f32 1.0, %v4885_v47 }
 0x7e8   : > { %v4889_v30 = vpop.eup %4888  ;;  %v2903_v42 = vadd.f32 1.0, %v4887_v8 }
 0x7e9   : > { %v4891_v20 = vpop.eup %4890  ;;  %v2904_v43 = vadd.f32 1.0, %v4889_v30  ;;  %4892 = vrcp.f32 %v2902_v31 }
 0x7ea   : > { %v2905_v11 = vadd.f32 1.0, %v4891_v20  ;;  %4894 = vrcp.f32 %v2903_v42 }
 0x7eb   : > { %4896 = vrcp.f32 %v2904_v43 }
 0x7ec   : > { %4898 = vrcp.f32 %v2905_v11 }
 0x7f3   : > { %v4893_v56 = vpop.eup %4892 }
 0x7f4   : > { %v4895_v11 = vpop.eup %4894 }
 0x7fc   : > { %v2838_v18 = vpop.f32.mrb[44].mxu0  ;;  %v2881_v63 = vpop.f32.mrb[44].mxu1 }
 0x7fd   : > { %v2839_v7 = vadd.f32 %v2838_v18, %v2706_v53  ;;  %v2882_v10 = vadd.f32 %v2881_v63, %v2708_v26  ;;  %v2840_v47 = vpop.f32.mrb[45].mxu0  ;;  %v2883_v8 = vpop.f32.mrb[45].mxu1 }
 0x7fe   : > { %v2841_v30 = vadd.f32 %v2840_v47, %v2707_v54  ;;  %v2884_v12 = vadd.f32 %v2883_v8, %v2709_v37  ;;  %v2842_v35 = vpop.f32.mrb[46].mxu0  ;;  %v2885_v20 = vpop.f32.mrb[46].mxu1 }
 0x7ff   : > { %4900 = vtanh.f32 %v2839_v7  ;;  %v4304_v51 = vmul.f32 -1.442695, %v2882_v10  ;;  %v2843_v33 = vadd.f32 %v2842_v35, %v2714_v38  ;;  %v2886_v31 = vadd.f32 %v2885_v20, %v2716_v17  ;;  %v2844_v22 = vpop.f32.mrb[47].mxu0  ;;  %v2887_v42 = vpop.f32.mrb[47].mxu1 }
 0x800   : > { %4902 = vtanh.f32 %v2841_v30  ;;  %v4305_v27 = vmul.f32 -1.442695, %v2884_v12  ;;  %v2888_v5 = vadd.f32 %v2887_v42, %v2717_v9  ;;  %v2845_v53 = vadd.f32 %v2844_v22, %v2715_v60  ;;  %v4897_v7 = vpop.eup %4896  ;;  %v2994_v18 = vpop.permute.xlu0 %2993 }
 0x801   : > { %4904 = vpow2.f32 %v4304_v51  ;;  %v4306_v43 = vmul.f32 -1.442695, %v2886_v31  ;;  %v4899_v10 = vpop.eup %4898  ;;  %vm2998_vm10 = vcmp.eq.s32.totalorder %v2994_v18, 1  ;;  %v2997_v31 = vpop.permute.xlu1 %2996  ;;  %v8296_v18 = vld [vmem:[#allocation115_spill] sm:$0xff] }
 0x802   : > { %4906 = vpow2.f32 %v4305_v27  ;;  %v4307_v26 = vmul.f32 -1.442695, %v2888_v5  ;;  %vm2999_vm11 = vcmp.eq.s32.totalorder %v2997_v31, 1  ;;  %v8305_v31 = vld [vmem:[#allocation124_spill] sm:$0xff] }
 0x803   : > { %4908 = vtanh.f32 %v2843_v33 }
 0x804   : > { %4910 = vpow2.f32 %v4306_v43 }
 0x805   : > { %4912 = vtanh.f32 %v2845_v53 }
 0x806   : > { %4914 = vpow2.f32 %v4307_v26 }
 0x809   : > { %v4901_v35 = vpop.eup %4900 }
 0x80a   : > { %v4903_v54 = vpop.eup %4902  ;;  %v2970_v37 = vmul.f32 %v4901_v35, %v4893_v56 }
 0x80b   : > { %v4905_v38 = vpop.eup %4904  ;;  %v2971_v17 = vmul.f32 %v4903_v54, %v4895_v11 }
 0x80c   : > { %v4907_v12 = vpop.eup %4906  ;;  %v2974_v63 = vadd.f32 %v2970_v37, %v6917_v58  ;;  %v2954_v22 = vadd.f32 1.0, %v4905_v38 }
 0x80d   : > { %v4909_v27 = vpop.eup %4908  ;;  %v2975_v60 = vadd.f32 %v2971_v17, %v6921_v49  ;;  %v2955_v9 = vadd.f32 1.0, %v4907_v12 }
 0x80e   : > { %v4911_v47 = vpop.eup %4910  ;;  %4916 = vtanh.f32 %v2974_v63  ;;  %v2972_v8 = vmul.f32 %v4909_v27, %v4897_v7  ;;  %v6938_v30 = vsel %vm2998_vm10, %v2974_v63, %v6744_v19  ;;  %v8297_v27 = vld [vmem:[#allocation116_spill] sm:$0xff] }
 0x80f   : > { %v4913_v20 = vpop.eup %4912  ;;  %4918 = vrcp.f32 %v2954_v22  ;;  %v2956_v51 = vadd.f32 1.0, %v4911_v47  ;;  %v6942_v33 = vsel %vm2998_vm10, %v2975_v60, %v6748_v52  ;;  %v8300_v47 = vld [vmem:[#allocation119_spill] sm:$0xff] }
 0x810   : > { %v4915_v58 = vpop.eup %4914  ;;  %4920 = vtanh.f32 %v2975_v60  ;;  %v2976_v49 = vadd.f32 %v2972_v8, %v6925_v6  ;;  %v2973_v42 = vmul.f32 %v4913_v20, %v4899_v10  ;;  %v8298_v60 = vld [vmem:[#allocation117_spill] sm:$0xff]  ;;  %v8301_v8 = vld [vmem:[#allocation120_spill] sm:$0xff] }
 0x811   : > { %4922 = vrcp.f32 %v2955_v9  ;;  %v2957_v5 = vadd.f32 1.0, %v4915_v58  ;;  %v8299_v9 = vld [vmem:[#allocation118_spill] sm:$0xff]  ;;  %v8302_v20 = vld [vmem:[#allocation121_spill] sm:$0xff]  ;;  %v8304_v58 = vld [vmem:[#allocation123_spill] sm:$0xff] }
 0x812   : > { %4924 = vtanh.f32 %v2976_v49  ;;  %v2977_v19 = vadd.f32 %v2973_v42, %v6928_v57  ;;  %v6948_v43 = vsel %vm2999_vm11, %v2976_v49, %v6754_v62  ;;  %v8306_v49 = vld [vmem:[#allocation125_spill] sm:$0xff]  ;;  %v8307_v42 = vld [vmem:[#allocation126_spill] sm:$0xff] }
 0x813   : > { %4926 = vrcp.f32 %v2956_v51  ;;  %v8303_v51 = vld [vmem:[#allocation122_spill] sm:$0xff] }
 0x814   : > { %4928 = vtanh.f32 %v2977_v19  ;;  %v6952_v52 = vsel %vm2999_vm11, %v2977_v19, %v6758_v16  ;;  %v8309_v19 = vld [vmem:[#allocation128_spill] sm:$0xff] }
 0x815   : > { %4930 = vrcp.f32 %v2957_v5  ;;  %v8308_v5 = vld [vmem:[#allocation127_spill] sm:$0xff] }
 0x818   : > { %v4917_v53 = vpop.eup %4916 }
 0x819   : > { %v4919_v6 = vpop.eup %4918 }
 0x81a   : > { %v4921_v26 = vpop.eup %4920  ;;  %v2982_v56 = vmul.f32 %v4919_v6, %v4917_v53  ;;  %v8310_v53 = vld [vmem:[#allocation129_spill] sm:$0xff]  ;;  %v8311_v6 = vld [vmem:[#allocation130_spill] sm:$0xff] }
 0x81b   : > { %v4923_v11 = vpop.eup %4922 }
 0x81c   : > { %v4925_v7 = vpop.eup %4924  ;;  %v2983_v10 = vmul.f32 %v4923_v11, %v4921_v26  ;;  %v6970_v63 = vsel %vm2998_vm10, %v2982_v56, %v6776_v21  ;;  %v8295_v21 = vld [vmem:[#allocation114_spill] sm:$0xff]  ;;  %v8312_v26 = vld [vmem:[#allocation131_spill] sm:$0xff]  ;;  %v8313_v56 = vld [vmem:[#allocation132_spill] sm:$0xff] }
 0x81d   : > { %v4927_v35 = vpop.eup %4926  ;;  %v8314_v11 = vld [vmem:[#allocation133_spill] sm:$0xff] }
 0x81e   : > { %v4929_v57 = vpop.eup %4928  ;;  %v2984_v54 = vmul.f32 %v4927_v35, %v4925_v7  ;;  %v6960_v16 = vsel %vm2998_vm10, %v2983_v10, %v6766_v24  ;;  %v8293_v24 = vld [vmem:[#allocation112_spill] sm:$0xff]  ;;  %v8315_v7 = vld [vmem:[#allocation134_spill] sm:$0xff]  ;;  %v8316_v10 = vld [vmem:[#allocation135_spill] sm:$0xff] }
 0x81f   : > { %v4931_v37 = vpop.eup %4930  ;;  %v8317_v35 = vld [vmem:[#allocation136_spill] sm:$0xff] }
 0x820   : > { %v2985_v62 = vmul.f32 %v4931_v37, %v4929_v57  ;;  %v6956_v38 = vsel %vm2999_vm11, %v2984_v54, %v6762_v34  ;;  %v8292_v34 = vld [vmem:[#allocation111_spill] sm:$0xff]  ;;  %v8318_v57 = vld [vmem:[#allocation137_spill] sm:$0xff]  ;;  %v8319_v54 = vld [vmem:[#allocation138_spill] sm:$0xff] }
 0x821   : > { %v6974_v22 = vpack.c.bf16 %v6956_v38, %v6970_v63  ;;  %v8320_v37 = vld [vmem:[#allocation139_spill] sm:$0xff] }
 0x822   : > { %v6964_v17 = vsel %vm2999_vm11, %v2985_v62, %v6770_v59  ;;  %v8294_v59 = vld [vmem:[#allocation113_spill] sm:$0xff]  ;;  %v8321_v62 = vld [vmem:[#allocation140_spill] sm:$0xff] }
 0x823   : > { %v3009_v12 = vpack.c.bf16 %v6964_v17, %v6960_v16 }
 0x825   : > { %3067 = vmatprep.mubr.bf16.mxu0 %v3009_v12  ;;  %3110 = vmatprep.mubr.bf16.mxu1 %v3009_v12 }
 0x826   : > { %3068 = vmatmul.mubr.bf16.vlgmr.msra.gmra.mrb[48].mxu0 %v6974_v22  ;;  %3111 = vmatmul.mubr.bf16.vlgmr.msra.gmra.mrb[48].mxu1 %v6974_v22 }
 0x827   : > { %3122 = vmatpush1.bf16.msra.mxu0 %v7778_v25  ;;  %3165 = vmatpush1.bf16.msra.mxu1 %v7779_v28 }
 0x828   : > { %3153 = vmatprep.mubr.bf16.mxu0 %v3009_v12  ;;  %3196 = vmatprep.mubr.bf16.mxu1 %v3009_v12  ;;  %v8322_v12 = vld [vmem:[#allocation141_spill] sm:$0xff] }
 0x829   : > { %3123 = vmatprep.subr.bf16.mxu0 %v7780_v14  ;;  %3166 = vmatprep.subr.bf16.mxu1 %v7781_v13 }
 0x82b   : > { %3124 = vmatpush1.bf16.msra.mxu0 %v7782_v3  ;;  %3167 = vmatpush1.bf16.msra.mxu1 %v7783_v55 }
 0x82c   : > { %3125 = vmatprep.subr.bf16.mxu0 %v7784_v46  ;;  %3168 = vmatprep.subr.bf16.mxu1 %v7785_v45 }
 0x82f   : > { %3126 = vmatpush1.bf16.msra.mxu0 %v7786_v0  ;;  %3169 = vmatpush1.bf16.msra.mxu1 %v7787_v48 }
 0x830   : > { %3127 = vmatprep.subr.bf16.mxu0 %v7788_v1  ;;  %3170 = vmatprep.subr.bf16.mxu1 %v7789_v2 }
 0x833   : > { %3128 = vmatpush1.bf16.msra.mxu0 %v7790_v15  ;;  %3171 = vmatpush1.bf16.msra.mxu1 %v7791_v40 }
 0x834   : > { %3129 = vmatprep.subr.bf16.mxu0 %v7876_v44  ;;  %3172 = vmatprep.subr.bf16.mxu1 %v7877_v61 }
 0x837   : > { %3130 = vmatpush1.bf16.msra.mxu0 %v7878_v4  ;;  %3173 = vmatpush1.bf16.msra.mxu1 %v7879_v50 }
 0x838   : > { %3131 = vmatprep.subr.bf16.mxu0 %v7880_v36  ;;  %3174 = vmatprep.subr.bf16.mxu1 %v7881_v41 }
 0x83b   : > { %3132 = vmatpush1.bf16.msra.mxu0 %v7882_v23  ;;  %3175 = vmatpush1.bf16.msra.mxu1 %v7883_v39 }
 0x83c   : > { %3133 = vmatprep.subr.bf16.mxu0 %v7884_v29  ;;  %3176 = vmatprep.subr.bf16.mxu1 %v7885_v32 }
 0x83f   : > { %3134 = vmatpush1.bf16.msra.mxu0 %v8292_v34  ;;  %3177 = vmatpush1.bf16.msra.mxu1 %v8293_v24 }
 0x840   : > { %3135 = vmatprep.subr.bf16.mxu0 %v8294_v59  ;;  %3178 = vmatprep.subr.bf16.mxu1 %v8295_v21 }
 0x843   : > { %3136 = vmatpush1.bf16.msra.mxu0 %v8296_v18  ;;  %3179 = vmatpush1.bf16.msra.mxu1 %v8297_v27 }
 0x844   : > { %3137 = vmatprep.subr.bf16.mxu0 %v8298_v60  ;;  %3180 = vmatprep.subr.bf16.mxu1 %v8299_v9  ;;  %v4311_v9 = vld [vmem:[%s5397_s19 + $0x198] sm:$0xff] }
 0x847   : > { %3138 = vmatpush1.bf16.msra.mxu0 %v8300_v47  ;;  %3181 = vmatpush1.bf16.msra.mxu1 %v8301_v8 }
 0x848   : > { %3139 = vmatprep.subr.bf16.mxu0 %v8302_v20  ;;  %3182 = vmatprep.subr.bf16.mxu1 %v8303_v51 }
 0x84b   : > { %3140 = vmatpush1.bf16.msra.mxu0 %v8304_v58  ;;  %3183 = vmatpush1.bf16.msra.mxu1 %v8305_v31 }
 0x84c   : > { %3141 = vmatprep.subr.bf16.mxu0 %v8306_v49  ;;  %3184 = vmatprep.subr.bf16.mxu1 %v8307_v42 }
 0x84f   : > { %3142 = vmatpush1.bf16.msra.mxu0 %v8308_v5  ;;  %3185 = vmatpush1.bf16.msra.mxu1 %v8309_v19 }
 0x850   : > { %3143 = vmatprep.subr.bf16.mxu0 %v8310_v53  ;;  %3186 = vmatprep.subr.bf16.mxu1 %v8311_v6 }
 0x853   : > { %3144 = vmatpush1.bf16.msra.mxu0 %v8312_v26  ;;  %3187 = vmatpush1.bf16.msra.mxu1 %v8313_v56  ;;  %v8323_v26 = vld [vmem:[#allocation142_spill] sm:$0xff]  ;;  %v8324_v56 = vld [vmem:[#allocation143_spill] sm:$0xff] }
 0x854   : > { %3145 = vmatprep.subr.bf16.mxu0 %v8314_v11  ;;  %3188 = vmatprep.subr.bf16.mxu1 %v8315_v7  ;;  %v8325_v11 = vld [vmem:[#allocation144_spill] sm:$0xff]  ;;  %v8326_v7 = vld [vmem:[#allocation145_spill] sm:$0xff] }
 0x857   : > { %3146 = vmatpush1.bf16.msra.mxu0 %v8316_v10  ;;  %3189 = vmatpush1.bf16.msra.mxu1 %v8317_v35  ;;  %v8327_v10 = vld [vmem:[#allocation146_spill] sm:$0xff]  ;;  %v8328_v35 = vld [vmem:[#allocation147_spill] sm:$0xff] }
 0x858   : > { %3147 = vmatprep.subr.bf16.mxu0 %v8318_v57  ;;  %3190 = vmatprep.subr.bf16.mxu1 %v8319_v54  ;;  %v8329_v57 = vld [vmem:[#allocation148_spill] sm:$0xff] }
 0x859   : > { %v8330_v54 = vld [vmem:[#allocation12_spill] sm:$0xff] }
 0x85b   : > { %3148 = vmatpush1.bf16.msra.mxu0 %v8320_v37  ;;  %3191 = vmatpush1.bf16.msra.mxu1 %v8321_v62  ;;  %v8331_v37 = vld [vmem:[#allocation14_spill] sm:$0xff] }
 0x85c   : > { %3149 = vmatprep.subr.bf16.mxu0 %v8322_v12  ;;  %3192 = vmatprep.subr.bf16.mxu1 %v8323_v26  ;;  %v8332_v26 = vld [vmem:[#allocation13_spill] sm:$0xff]  ;;  %v8341_v12 = vld [vmem:[#allocation23_spill] sm:$0xff] }
 0x85f   : > { %3150 = vmatpush1.bf16.msra.mxu0 %v8324_v56  ;;  %3193 = vmatpush1.bf16.msra.mxu1 %v8325_v11  ;;  %v8333_v56 = vld [vmem:[#allocation15_spill] sm:$0xff]  ;;  %v8334_v11 = vld [vmem:[#allocation16_spill] sm:$0xff] }
 0x860   : > { %3151 = vmatprep.subr.bf16.mxu0 %v8326_v7  ;;  %3194 = vmatprep.subr.bf16.mxu1 %v8327_v10  ;;  %v8335_v7 = vld [vmem:[#allocation17_spill] sm:$0xff]  ;;  %v8336_v10 = vld [vmem:[#allocation18_spill] sm:$0xff] }
 0x863   : > { %3152 = vmatpush1.bf16.msra.mxu0 %v8328_v35  ;;  %3195 = vmatpush1.bf16.msra.mxu1 %v8329_v57  ;;  %v8337_v35 = vld [vmem:[#allocation19_spill] sm:$0xff]  ;;  %v8338_v57 = vld [vmem:[#allocation20_spill] sm:$0xff] }
 0x864   : > { %3352 = vmatprep.subr.bf16.mxu0 %v8330_v54  ;;  %3395 = vmatprep.subr.bf16.mxu1 %v8331_v37  ;;  %v8339_v54 = vld [vmem:[#allocation21_spill] sm:$0xff]  ;;  %v8340_v37 = vld [vmem:[#allocation22_spill] sm:$0xff] }
 0x866   : > { %3154 = vmatmul.mubr.bf16.vlgmr.msra.gmra.mrb[52].mxu0 %v6974_v22  ;;  %3197 = vmatmul.mubr.bf16.vlgmr.msra.gmra.mrb[52].mxu1 %v6974_v22  ;;  %v8342_v22 = vld [vmem:[#allocation24_spill] sm:$0xff] }
 0x867   : > { %3353 = vmatpush1.bf16.msra.mxu0 %v8332_v26  ;;  %3396 = vmatpush1.bf16.msra.mxu1 %v8333_v56  ;;  %v8343_v26 = vld [vmem:[#allocation25_spill] sm:$0xff]  ;;  %v8344_v56 = vld [vmem:[#allocation26_spill] sm:$0xff] }
 0x868   : > { %3354 = vmatprep.subr.bf16.mxu0 %v8334_v11  ;;  %3397 = vmatprep.subr.bf16.mxu1 %v8335_v7  ;;  %v8345_v11 = vld [vmem:[#allocation27_spill] sm:$0xff]  ;;  %v8346_v7 = vld [vmem:[#allocation28_spill] sm:$0xff] }
 0x86b   : > { %3355 = vmatpush1.bf16.msra.mxu0 %v8336_v10  ;;  %3398 = vmatpush1.bf16.msra.mxu1 %v8337_v35  ;;  %v8347_v10 = vld [vmem:[#allocation29_spill] sm:$0xff]  ;;  %v8348_v35 = vld [vmem:[#allocation30_spill] sm:$0xff] }
 0x86c   : > { %3356 = vmatprep.subr.bf16.mxu0 %v8338_v57  ;;  %3399 = vmatprep.subr.bf16.mxu1 %v8339_v54  ;;  %v8349_v57 = vld [vmem:[#allocation31_spill] sm:$0xff]  ;;  %v8350_v54 = vld [vmem:[#allocation32_spill] sm:$0xff] }
 0x86f   : > { %3357 = vmatpush1.bf16.msra.mxu0 %v8340_v37  ;;  %3400 = vmatpush1.bf16.msra.mxu1 %v8341_v12  ;;  %v8351_v37 = vld [vmem:[#allocation33_spill] sm:$0xff]  ;;  %v8352_v12 = vld [vmem:[#allocation34_spill] sm:$0xff] }
 0x870   : > { %3358 = vmatprep.subr.bf16.mxu0 %v8342_v22  ;;  %3401 = vmatprep.subr.bf16.mxu1 %v8343_v26  ;;  %v8353_v22 = vld [vmem:[#allocation35_spill] sm:$0xff]  ;;  %v8354_v26 = vld [vmem:[#allocation36_spill] sm:$0xff] }
 0x873   : > { %3359 = vmatpush1.bf16.msra.mxu0 %v8344_v56  ;;  %3402 = vmatpush1.bf16.msra.mxu1 %v8345_v11  ;;  %v8355_v56 = vld [vmem:[#allocation37_spill] sm:$0xff]  ;;  %v8356_v11 = vld [vmem:[#allocation38_spill] sm:$0xff] }
 0x874   : > { %3360 = vmatprep.subr.bf16.mxu0 %v8346_v7  ;;  %3403 = vmatprep.subr.bf16.mxu1 %v8347_v10  ;;  %v8357_v7 = vld [vmem:[#allocation39_spill] sm:$0xff]  ;;  %v8358_v10 = vld [vmem:[#allocation40_spill] sm:$0xff] }
 0x877   : > { %3361 = vmatpush1.bf16.msra.mxu0 %v8348_v35  ;;  %3404 = vmatpush1.bf16.msra.mxu1 %v8349_v57  ;;  %v8359_v35 = vld [vmem:[#allocation41_spill] sm:$0xff]  ;;  %v8360_v57 = vld [vmem:[#allocation42_spill] sm:$0xff] }
 0x878   : > { %3362 = vmatprep.subr.bf16.mxu0 %v8350_v54  ;;  %3405 = vmatprep.subr.bf16.mxu1 %v8351_v37  ;;  %v8361_v54 = vld [vmem:[#allocation43_spill] sm:$0xff]  ;;  %v8362_v37 = vld [vmem:[#allocation44_spill] sm:$0xff] }
 0x87b   : > { %3363 = vmatpush1.bf16.msra.mxu0 %v8352_v12  ;;  %3406 = vmatpush1.bf16.msra.mxu1 %v8353_v22  ;;  %v8363_v12 = vld [vmem:[#allocation45_spill] sm:$0xff]  ;;  %v8364_v22 = vld [vmem:[#allocation46_spill] sm:$0xff] }
 0x87c   : > { %3364 = vmatprep.subr.bf16.mxu0 %v8354_v26  ;;  %3407 = vmatprep.subr.bf16.mxu1 %v8355_v56  ;;  %v8365_v26 = vld [vmem:[#allocation47_spill] sm:$0xff]  ;;  %v8366_v56 = vld [vmem:[#allocation48_spill] sm:$0xff] }
 0x87f   : > { %3365 = vmatpush1.bf16.msra.mxu0 %v8356_v11  ;;  %3408 = vmatpush1.bf16.msra.mxu1 %v8357_v7  ;;  %v8367_v11 = vld [vmem:[#allocation49_spill] sm:$0xff]  ;;  %v8368_v7 = vld [vmem:[#allocation50_spill] sm:$0xff] }
 0x880   : > { %3366 = vmatprep.subr.bf16.mxu0 %v8358_v10  ;;  %3409 = vmatprep.subr.bf16.mxu1 %v8359_v35  ;;  %v8369_v10 = vld [vmem:[#allocation51_spill] sm:$0xff]  ;;  %v8370_v35 = vld [vmem:[#allocation52_spill] sm:$0xff] }
 0x883   : > { %3367 = vmatpush1.bf16.msra.mxu0 %v8360_v57  ;;  %3410 = vmatpush1.bf16.msra.mxu1 %v8361_v54  ;;  %v8371_v57 = vld [vmem:[#allocation53_spill] sm:$0xff]  ;;  %v8372_v54 = vld [vmem:[#allocation54_spill] sm:$0xff] }
 0x884   : > { %3368 = vmatprep.subr.bf16.mxu0 %v8362_v37  ;;  %3411 = vmatprep.subr.bf16.mxu1 %v8363_v12  ;;  %v8373_v37 = vld [vmem:[#allocation55_spill] sm:$0xff]  ;;  %v8374_v12 = vld [vmem:[#allocation56_spill] sm:$0xff] }
 0x887   : > { %3369 = vmatpush1.bf16.msra.mxu0 %v8364_v22  ;;  %3412 = vmatpush1.bf16.msra.mxu1 %v8365_v26  ;;  %v8375_v22 = vld [vmem:[#allocation57_spill] sm:$0xff]  ;;  %v8376_v26 = vld [vmem:[#allocation58_spill] sm:$0xff] }
 0x888   : > { %3370 = vmatprep.subr.bf16.mxu0 %v8366_v56  ;;  %3413 = vmatprep.subr.bf16.mxu1 %v8367_v11  ;;  %v8377_v56 = vld [vmem:[#allocation59_spill] sm:$0xff]  ;;  %v8378_v11 = vld [vmem:[#allocation61_spill] sm:$0xff] }
 0x88b   : > { %3371 = vmatpush1.bf16.msra.mxu0 %v8368_v7  ;;  %3414 = vmatpush1.bf16.msra.mxu1 %v8369_v10  ;;  %v8379_v7 = vld [vmem:[#allocation62_spill] sm:$0xff]  ;;  %v8380_v10 = vld [vmem:[#allocation64_spill] sm:$0xff] }
 0x88c   : > { %3372 = vmatprep.subr.bf16.mxu0 %v8370_v35  ;;  %3415 = vmatprep.subr.bf16.mxu1 %v8371_v57  ;;  %v8381_v35 = vld [vmem:[#allocation65_spill] sm:$0xff]  ;;  %v8382_v57 = vld [vmem:[#allocation66_spill] sm:$0xff] }
 0x88f   : > { %3373 = vmatpush1.bf16.msra.mxu0 %v8372_v54  ;;  %3416 = vmatpush1.bf16.msra.mxu1 %v8373_v37  ;;  %v8383_v54 = vld [vmem:[#allocation67_spill] sm:$0xff]  ;;  %v8384_v37 = vld [vmem:[#allocation69_spill] sm:$0xff] }
 0x890   : > { %3374 = vmatprep.subr.bf16.mxu0 %v8374_v12  ;;  %3417 = vmatprep.subr.bf16.mxu1 %v8375_v22  ;;  %v8385_v12 = vld [vmem:[#allocation70_spill] sm:$0xff]  ;;  %v8386_v22 = vld [vmem:[#allocation71_spill] sm:$0xff] }
 0x893   : > { %3375 = vmatpush1.bf16.msra.mxu0 %v8376_v26  ;;  %3418 = vmatpush1.bf16.msra.mxu1 %v8377_v56  ;;  %v8387_v26 = vld [vmem:[#allocation72_spill] sm:$0xff]  ;;  %v8388_v56 = vld [vmem:[#allocation74_spill] sm:$0xff] }
 0x894   : > { %3376 = vmatprep.subr.bf16.mxu0 %v8378_v11  ;;  %3419 = vmatprep.subr.bf16.mxu1 %v8379_v7  ;;  %v8389_v11 = vld [vmem:[#allocation75_spill] sm:$0xff]  ;;  %v8390_v7 = vld [vmem:[#allocation76_spill] sm:$0xff] }
 0x897   : > { %3377 = vmatpush1.bf16.msra.mxu0 %v8380_v10  ;;  %3420 = vmatpush1.bf16.msra.mxu1 %v8381_v35  ;;  %v8391_v10 = vld [vmem:[#allocation77_spill] sm:$0xff]  ;;  %v8392_v35 = vld [vmem:[#allocation79_spill] sm:$0xff] }
 0x898   : > { %3378 = vmatprep.subr.bf16.mxu0 %v8382_v57  ;;  %3421 = vmatprep.subr.bf16.mxu1 %v8383_v54  ;;  %v8393_v57 = vld [vmem:[#allocation82_spill] sm:$0xff]  ;;  %v8394_v54 = vld [vmem:[#allocation83_spill] sm:$0xff] }
 0x89b   : > { %3379 = vmatpush1.bf16.msra.mxu0 %v8384_v37  ;;  %3422 = vmatpush1.bf16.msra.mxu1 %v8385_v12  ;;  %v8395_v37 = vld [vmem:[#allocation84_spill] sm:$0xff]  ;;  %v4309_v12 = vld [vmem:[%s5397_s19 + $0x188] sm:$0xff] }
 0x89c   : > { %3380 = vmatprep.subr.bf16.mxu0 %v8386_v22  ;;  %3423 = vmatprep.subr.bf16.mxu1 %v8387_v26  ;;  %v4313_v22 = vld [vmem:[%s5397_s19 + $0x1a8] sm:$0xff]  ;;  %v3021_v62 = vunpack.c.l.bf16 %v4309_v12  ;;  %v3022_v26 = vunpack.c.h.bf16 %v4309_v12 }
 0x89d   : > { %v3029_v6 = vunpack.c.l.bf16 %v4313_v22 }
 0x89f   : > { %3381 = vmatpush1.bf16.msra.mxu0 %v8388_v56  ;;  %3424 = vmatpush1.bf16.msra.mxu1 %v8389_v11  ;;  %v3030_v11 = vunpack.c.h.bf16 %v4313_v22 }
 0x8a0   : > { %3382 = vmatprep.subr.bf16.mxu0 %v8390_v7  ;;  %3425 = vmatprep.subr.bf16.mxu1 %v8391_v10 }
 0x8a3   : > { %3383 = vmatpush1.bf16.msra.mxu0 %v8392_v35  ;;  %3426 = vmatpush1.bf16.msra.mxu1 %v8393_v57 }
 0x8a4   : > { %3438 = vmatprep.subr.bf16.mxu0 %v8394_v54  ;;  %3481 = vmatprep.subr.bf16.mxu1 %v8395_v37 }
 0x8f9   : > { %v3069_v56 = vpop.f32.mrb[48].mxu0  ;;  %v3112_v53 = vpop.f32.mrb[48].mxu1 }
 0x8fa   : > { %v3113_v19 = vadd.f32 %v3112_v53, %v3021_v62  ;;  %v3071_v7 = vpop.f32.mrb[49].mxu0  ;;  %v3114_v5 = vpop.f32.mrb[49].mxu1 }
 0x8fb   : > { %v3115_v10 = vadd.f32 %v3114_v5, %v3022_v26  ;;  %v3073_v42 = vpop.f32.mrb[50].mxu0  ;;  %v3116_v35 = vpop.f32.mrb[50].mxu1 }
 0x8fc   : > { %v4320_v49 = vmul.f32 -1.442695, %v3113_v19  ;;  %v3117_v57 = vadd.f32 %v3116_v35, %v3029_v6  ;;  %v3075_v31 = vpop.f32.mrb[51].mxu0  ;;  %v3118_v54 = vpop.f32.mrb[51].mxu1 }
 0x8fd   : > { %v4321_v58 = vmul.f32 -1.442695, %v3115_v10  ;;  %v3119_v37 = vadd.f32 %v3118_v54, %v3030_v11  ;;  %v4308_v11 = vld [vmem:[%s5397_s19 + $0x180] sm:$0xff] }
 0x8fe   : > { %4932 = vpow2.f32 %v4320_v49  ;;  %v4322_v51 = vmul.f32 -1.442695, %v3117_v57  ;;  %v4312_v54 = vld [vmem:[%s5397_s19 + $0x1a0] sm:$0xff] }
 0x8ff   : > { %4934 = vpow2.f32 %v4321_v58  ;;  %v4323_v12 = vmul.f32 -1.442695, %v3119_v37  ;;  %v3019_v37 = vunpack.c.l.bf16 %v4308_v11 }
 0x900   : > { %4936 = vpow2.f32 %v4322_v51 }
 0x901   : > { %4938 = vpow2.f32 %v4323_v12 }
 0x908   : > { %v4933_v22 = vpop.eup %4932 }
 0x909   : > { %v3243_v53 = vadd.f32 1.0, %v4933_v22  ;;  %v4935_v62 = vpop.eup %4934 }
 0x90a   : > { %v3244_v5 = vadd.f32 1.0, %v4935_v62  ;;  %v4937_v26 = vpop.eup %4936  ;;  %v3027_v62 = vunpack.c.l.bf16 %v4312_v54 }
 0x90b   : > { %4940 = vrcp.f32 %v3243_v53  ;;  %v3245_v19 = vadd.f32 1.0, %v4937_v26  ;;  %v4939_v6 = vpop.eup %4938  ;;  %v3020_v53 = vunpack.c.h.bf16 %v4308_v11  ;;  %v3028_v26 = vunpack.c.h.bf16 %v4312_v54  ;;  %v4310_v54 = vld [vmem:[%s5397_s19 + $0x190] sm:$0xff] }
 0x90c   : > { %4942 = vrcp.f32 %v3244_v5  ;;  %v3246_v10 = vadd.f32 1.0, %v4939_v6 }
 0x90d   : > { %4944 = vrcp.f32 %v3245_v19  ;;  %v3070_v19 = vadd.f32 %v3069_v56, %v3019_v37  ;;  %v3072_v6 = vadd.f32 %v3071_v7, %v3020_v53 }
 0x90e   : > { %4946 = vrcp.f32 %v3246_v10  ;;  %v3074_v10 = vadd.f32 %v3073_v42, %v3027_v62  ;;  %v4314_v42 = vld [vmem:[%s5397_s19 + $0x1b0] sm:$0xff]  ;;  %v3023_v62 = vunpack.c.l.bf16 %v4310_v54 }
 0x90f   : > { %v4317_v20 = vmul.f32 -1.442695, %v3072_v6  ;;  %v3024_v6 = vunpack.c.h.bf16 %v4310_v54  ;;  %v3032_v18 = vunpack.c.h.bf16 %v4314_v42 }
 0x910   : > { %v4318_v8 = vmul.f32 -1.442695, %v3074_v10  ;;  %v3026_v10 = vunpack.c.h.bf16 %v4311_v9 }
 0x915   : > { %v4941_v49 = vpop.eup %4940 }
 0x916   : > { %v7111_v58 = vmul.f32 %v4941_v49, %v6938_v30  ;;  %v4943_v51 = vpop.eup %4942  ;;  %v3076_v49 = vadd.f32 %v3075_v31, %v3028_v26  ;;  %v4315_v31 = vld [vmem:[%s5397_s19 + $0x1b8] sm:$0xff]  ;;  %v3025_v26 = vunpack.c.l.bf16 %v4311_v9 }
 0x917   : > { %v7115_v35 = vmul.f32 %v4943_v51, %v6942_v33  ;;  %v4945_v57 = vpop.eup %4944  ;;  %v4316_v51 = vmul.f32 -1.442695, %v3070_v19 }
 0x918   : > { %v7119_v12 = vmul.f32 %v4945_v57, %v6948_v43  ;;  %v4947_v22 = vpop.eup %4946  ;;  %v4319_v57 = vmul.f32 -1.442695, %v3076_v49 }
 0x919   : > { %v7122_v5 = vmul.f32 %v4947_v22, %v6952_v52  ;;  %4948 = vpow2.f32 %v4316_v51 }
 0x91a   : > { %4950 = vpow2.f32 %v4317_v20  ;;  %v3031_v20 = vunpack.c.l.bf16 %v4314_v42 }
 0x91b   : > { %4952 = vpow2.f32 %v4318_v8  ;;  %v3033_v8 = vunpack.c.l.bf16 %v4315_v31 }
 0x91c   : > { %4954 = vpow2.f32 %v4319_v57  ;;  %v3034_v57 = vunpack.c.h.bf16 %v4315_v31 }
 0x923   : > { %v4949_v11 = vpop.eup %4948 }
 0x924   : > { %v4951_v22 = vpop.eup %4950  ;;  %v3219_v37 = vadd.f32 1.0, %v4949_v11 }
 0x925   : > { %v4953_v47 = vpop.eup %4952  ;;  %v3220_v7 = vadd.f32 1.0, %v4951_v22 }
 0x926   : > { %v4955_v56 = vpop.eup %4954  ;;  %v3221_v53 = vadd.f32 1.0, %v4953_v47  ;;  %4956 = vrcp.f32 %v3219_v37 }
 0x927   : > { %v3222_v19 = vadd.f32 1.0, %v4955_v56  ;;  %4958 = vrcp.f32 %v3220_v7 }
 0x928   : > { %4960 = vrcp.f32 %v3221_v53 }
 0x929   : > { %4962 = vrcp.f32 %v3222_v19 }
 0x930   : > { %v4957_v42 = vpop.eup %4956 }
 0x931   : > { %v4959_v19 = vpop.eup %4958 }
 0x939   : > { %v3155_v49 = vpop.f32.mrb[52].mxu0  ;;  %v3198_v51 = vpop.f32.mrb[52].mxu1 }
 0x93a   : > { %v3156_v60 = vadd.f32 %v3155_v49, %v3023_v62  ;;  %v3199_v27 = vadd.f32 %v3198_v51, %v3025_v26  ;;  %v3157_v11 = vpop.f32.mrb[53].mxu0  ;;  %v3200_v22 = vpop.f32.mrb[53].mxu1 }
 0x93b   : > { %v3158_v47 = vadd.f32 %v3157_v11, %v3024_v6  ;;  %v3201_v21 = vadd.f32 %v3200_v22, %v3026_v10  ;;  %v3159_v59 = vpop.f32.mrb[54].mxu0  ;;  %v3202_v56 = vpop.f32.mrb[54].mxu1 }
 0x93c   : > { %4964 = vtanh.f32 %v3156_v60  ;;  %v4324_v9 = vmul.f32 -1.442695, %v3199_v27  ;;  %v3160_v54 = vadd.f32 %v3159_v59, %v3031_v20  ;;  %v3203_v37 = vadd.f32 %v3202_v56, %v3033_v8  ;;  %v3161_v24 = vpop.f32.mrb[55].mxu0  ;;  %v3204_v7 = vpop.f32.mrb[55].mxu1 }
 0x93d   : > { %4966 = vtanh.f32 %v3158_v47  ;;  %v4325_v34 = vmul.f32 -1.442695, %v3201_v21  ;;  %v3205_v31 = vadd.f32 %v3204_v7, %v3034_v57  ;;  %v3162_v62 = vadd.f32 %v3161_v24, %v3032_v18  ;;  %v4961_v60 = vpop.eup %4960  ;;  %v3311_v49 = vpop.permute.xlu0 %3310 }
 0x93e   : > { %4968 = vpow2.f32 %v4324_v9  ;;  %v4326_v53 = vmul.f32 -1.442695, %v3203_v37  ;;  %v4963_v27 = vpop.eup %4962  ;;  %vm3315_vm12 = vcmp.eq.s32.totalorder %v3311_v49, 1  ;;  %v3314_v37 = vpop.permute.xlu1 %3313  ;;  %v8424_v49 = vld [vmem:[#allocation139_spill] sm:$0xff] }
 0x93f   : > { %4970 = vpow2.f32 %v4325_v34  ;;  %v4327_v26 = vmul.f32 -1.442695, %v3205_v31  ;;  %vm3316_vm13 = vcmp.eq.s32.totalorder %v3314_v37, 1  ;;  %v8433_v37 = vld [vmem:[#allocation148_spill] sm:$0xff] }
 0x940   : > { %4972 = vtanh.f32 %v3160_v54 }
 0x941   : > { %4974 = vpow2.f32 %v4326_v53 }
 0x942   : > { %4976 = vtanh.f32 %v3162_v62 }
 0x943   : > { %4978 = vpow2.f32 %v4327_v26 }
 0x946   : > { %v4965_v59 = vpop.eup %4964 }
 0x947   : > { %v4967_v6 = vpop.eup %4966  ;;  %v3287_v10 = vmul.f32 %v4965_v59, %v4957_v42 }
 0x948   : > { %v4969_v20 = vpop.eup %4968  ;;  %v3288_v8 = vmul.f32 %v4967_v6, %v4959_v19 }
 0x949   : > { %v4971_v21 = vpop.eup %4970  ;;  %v3291_v51 = vadd.f32 %v3287_v10, %v7111_v58  ;;  %v3271_v24 = vadd.f32 1.0, %v4969_v20 }
 0x94a   : > { %v4973_v34 = vpop.eup %4972  ;;  %v3292_v18 = vadd.f32 %v3288_v8, %v7115_v35  ;;  %v3272_v57 = vadd.f32 1.0, %v4971_v21 }
 0x94b   : > { %v4975_v11 = vpop.eup %4974  ;;  %4980 = vtanh.f32 %v3291_v51  ;;  %v3289_v22 = vmul.f32 %v4973_v34, %v4961_v60  ;;  %v7132_v47 = vsel %vm3315_vm12, %v3291_v51, %v6938_v30  ;;  %v8425_v34 = vld [vmem:[#allocation140_spill] sm:$0xff] }
 0x94c   : > { %v4977_v56 = vpop.eup %4976  ;;  %4982 = vrcp.f32 %v3271_v24  ;;  %v3273_v9 = vadd.f32 1.0, %v4975_v11  ;;  %v7136_v54 = vsel %vm3315_vm12, %v3292_v18, %v6942_v33  ;;  %v8428_v11 = vld [vmem:[#allocation143_spill] sm:$0xff] }
 0x94d   : > { %v4979_v58 = vpop.eup %4978  ;;  %4984 = vtanh.f32 %v3292_v18  ;;  %v3293_v35 = vadd.f32 %v3289_v22, %v7119_v12  ;;  %v3290_v7 = vmul.f32 %v4977_v56, %v4963_v27  ;;  %v8426_v18 = vld [vmem:[#allocation141_spill] sm:$0xff]  ;;  %v8429_v22 = vld [vmem:[#allocation144_spill] sm:$0xff] }
 0x94e   : > { %4986 = vrcp.f32 %v3272_v57  ;;  %v3274_v31 = vadd.f32 1.0, %v4979_v58  ;;  %v8427_v57 = vld [vmem:[#allocation142_spill] sm:$0xff]  ;;  %v8430_v56 = vld [vmem:[#allocation145_spill] sm:$0xff]  ;;  %v8432_v58 = vld [vmem:[#allocation147_spill] sm:$0xff] }
 0x94f   : > { %4988 = vtanh.f32 %v3293_v35  ;;  %v3294_v30 = vadd.f32 %v3290_v7, %v7122_v5  ;;  %v7142_v53 = vsel %vm3316_vm13, %v3293_v35, %v6948_v43  ;;  %v4329_v35 = vld [vmem:[%s5397_s19 + $0x1c8] sm:$0xff] }
 0x950   : > { %4990 = vrcp.f32 %v3273_v9  ;;  %v8431_v9 = vld [vmem:[#allocation146_spill] sm:$0xff]  ;;  %v4333_v7 = vld [vmem:[%s5397_s19 + $0x1e8] sm:$0xff] }
 0x951   : > { %4992 = vtanh.f32 %v3294_v30  ;;  %v7146_v33 = vsel %vm3316_vm13, %v3294_v30, %v6952_v52  ;;  %v3339_v30 = vunpack.c.h.bf16 %v4329_v35 }
 0x952   : > { %4994 = vrcp.f32 %v3274_v31  ;;  %v3338_v31 = vunpack.c.l.bf16 %v4329_v35  ;;  %v4331_v35 = vld [vmem:[%s5397_s19 + $0x1d8] sm:$0xff] }
 0x955   : > { %v4981_v62 = vpop.eup %4980 }
 0x956   : > { %v4983_v12 = vpop.eup %4982 }
 0x957   : > { %v4985_v26 = vpop.eup %4984  ;;  %v3299_v42 = vmul.f32 %v4983_v12, %v4981_v62  ;;  %v3346_v62 = vunpack.c.l.bf16 %v4333_v7 }
 0x958   : > { %v4987_v19 = vpop.eup %4986 }
 0x959   : > { %v4989_v60 = vpop.eup %4988  ;;  %v3300_v27 = vmul.f32 %v4987_v19, %v4985_v26  ;;  %v7164_v51 = vsel %vm3315_vm12, %v3299_v42, %v6970_v63  ;;  %v8423_v63 = vld [vmem:[#allocation138_spill] sm:$0xff]  ;;  %v3347_v42 = vunpack.c.h.bf16 %v4333_v7 }
 0x95a   : > { %v4991_v59 = vpop.eup %4990 }
 0x95b   : > { %v4993_v5 = vpop.eup %4992  ;;  %v3301_v6 = vmul.f32 %v4991_v59, %v4989_v60  ;;  %v7154_v52 = vsel %vm3315_vm12, %v3300_v27, %v6960_v16  ;;  %v8421_v16 = vld [vmem:[#allocation136_spill] sm:$0xff] }
 0x95c   : > { %v4995_v10 = vpop.eup %4994 }
 0x95d   : > { %v3302_v43 = vmul.f32 %v4995_v10, %v4993_v5  ;;  %v7150_v20 = vsel %vm3316_vm13, %v3301_v6, %v6956_v38  ;;  %v8420_v38 = vld [vmem:[#allocation135_spill] sm:$0xff] }
 0x95e   : > { %v7168_v24 = vpack.c.bf16 %v7150_v20, %v7164_v51 }
 0x95f   : > { %v7158_v8 = vsel %vm3316_vm13, %v3302_v43, %v6964_v17  ;;  %v8422_v17 = vld [vmem:[#allocation137_spill] sm:$0xff] }
 0x960   : > { %v3326_v21 = vpack.c.bf16 %v7158_v8, %v7154_v52 }
 0x962   : > { %3384 = vmatprep.mubr.bf16.mxu0 %v3326_v21  ;;  %3427 = vmatprep.mubr.bf16.mxu1 %v3326_v21 }
 0x963   : > { %3385 = vmatmul.mubr.bf16.vlgmr.msra.gmra.mrb[56].mxu0 %v7168_v24  ;;  %3428 = vmatmul.mubr.bf16.vlgmr.msra.gmra.mrb[56].mxu1 %v7168_v24 }
 0x964   : > { %3439 = vmatpush1.bf16.msra.mxu0 %v7778_v25  ;;  %3482 = vmatpush1.bf16.msra.mxu1 %v7779_v28  ;;  %v8396_v25 = vld [vmem:[#allocation111_spill] sm:$0xff]  ;;  %v8397_v28 = vld [vmem:[#allocation112_spill] sm:$0xff] }
 0x965   : > { %3470 = vmatprep.mubr.bf16.mxu0 %v3326_v21  ;;  %3513 = vmatprep.mubr.bf16.mxu1 %v3326_v21 }
 0x966   : > { %3440 = vmatprep.subr.bf16.mxu0 %v7780_v14  ;;  %3483 = vmatprep.subr.bf16.mxu1 %v7781_v13  ;;  %v8398_v14 = vld [vmem:[#allocation113_spill] sm:$0xff]  ;;  %v8399_v13 = vld [vmem:[#allocation114_spill] sm:$0xff] }
 0x968   : > { %3441 = vmatpush1.bf16.msra.mxu0 %v7782_v3  ;;  %3484 = vmatpush1.bf16.msra.mxu1 %v7783_v55  ;;  %v8400_v3 = vld [vmem:[#allocation115_spill] sm:$0xff]  ;;  %v8401_v55 = vld [vmem:[#allocation116_spill] sm:$0xff] }
 0x969   : > { %3442 = vmatprep.subr.bf16.mxu0 %v7784_v46  ;;  %3485 = vmatprep.subr.bf16.mxu1 %v7785_v45  ;;  %v8402_v46 = vld [vmem:[#allocation117_spill] sm:$0xff]  ;;  %v8403_v45 = vld [vmem:[#allocation118_spill] sm:$0xff] }
 0x96c   : > { %3443 = vmatpush1.bf16.msra.mxu0 %v7786_v0  ;;  %3486 = vmatpush1.bf16.msra.mxu1 %v7787_v48  ;;  %v8404_v0 = vld [vmem:[#allocation119_spill] sm:$0xff]  ;;  %v8405_v48 = vld [vmem:[#allocation120_spill] sm:$0xff] }
 0x96d   : > { %3444 = vmatprep.subr.bf16.mxu0 %v7788_v1  ;;  %3487 = vmatprep.subr.bf16.mxu1 %v7789_v2  ;;  %v8406_v1 = vld [vmem:[#allocation121_spill] sm:$0xff]  ;;  %v8407_v2 = vld [vmem:[#allocation122_spill] sm:$0xff] }
 0x970   : > { %3445 = vmatpush1.bf16.msra.mxu0 %v7790_v15  ;;  %3488 = vmatpush1.bf16.msra.mxu1 %v7791_v40  ;;  %v8408_v15 = vld [vmem:[#allocation123_spill] sm:$0xff]  ;;  %v8409_v40 = vld [vmem:[#allocation124_spill] sm:$0xff] }
 0x971   : > { %3446 = vmatprep.subr.bf16.mxu0 %v7876_v44  ;;  %3489 = vmatprep.subr.bf16.mxu1 %v7877_v61  ;;  %v8410_v44 = vld [vmem:[#allocation125_spill] sm:$0xff]  ;;  %v8411_v61 = vld [vmem:[#allocation126_spill] sm:$0xff] }
 0x974   : > { %3447 = vmatpush1.bf16.msra.mxu0 %v7878_v4  ;;  %3490 = vmatpush1.bf16.msra.mxu1 %v7879_v50  ;;  %v8412_v4 = vld [vmem:[#allocation127_spill] sm:$0xff]  ;;  %v8413_v50 = vld [vmem:[#allocation128_spill] sm:$0xff] }
 0x975   : > { %3448 = vmatprep.subr.bf16.mxu0 %v7880_v36  ;;  %3491 = vmatprep.subr.bf16.mxu1 %v7881_v41  ;;  %v8414_v36 = vld [vmem:[#allocation129_spill] sm:$0xff]  ;;  %v8415_v41 = vld [vmem:[#allocation130_spill] sm:$0xff] }
 0x978   : > { %3449 = vmatpush1.bf16.msra.mxu0 %v7882_v23  ;;  %3492 = vmatpush1.bf16.msra.mxu1 %v7883_v39  ;;  %v8416_v23 = vld [vmem:[#allocation131_spill] sm:$0xff]  ;;  %v8417_v39 = vld [vmem:[#allocation132_spill] sm:$0xff] }
 0x979   : > { %3450 = vmatprep.subr.bf16.mxu0 %v7884_v29  ;;  %3493 = vmatprep.subr.bf16.mxu1 %v7885_v32  ;;  %v8418_v29 = vld [vmem:[#allocation133_spill] sm:$0xff]  ;;  %v8419_v32 = vld [vmem:[#allocation134_spill] sm:$0xff] }
 0x97c   : > { %3451 = vmatpush1.bf16.msra.mxu0 %v8396_v25  ;;  %3494 = vmatpush1.bf16.msra.mxu1 %v8397_v28 }
 0x97d   : > { %3452 = vmatprep.subr.bf16.mxu0 %v8398_v14  ;;  %3495 = vmatprep.subr.bf16.mxu1 %v8399_v13 }
 0x980   : > { %3453 = vmatpush1.bf16.msra.mxu0 %v8400_v3  ;;  %3496 = vmatpush1.bf16.msra.mxu1 %v8401_v55 }
 0x981   : > { %3454 = vmatprep.subr.bf16.mxu0 %v8402_v46  ;;  %3497 = vmatprep.subr.bf16.mxu1 %v8403_v45 }
 0x984   : > { %3455 = vmatpush1.bf16.msra.mxu0 %v8404_v0  ;;  %3498 = vmatpush1.bf16.msra.mxu1 %v8405_v48 }
 0x985   : > { %3456 = vmatprep.subr.bf16.mxu0 %v8406_v1  ;;  %3499 = vmatprep.subr.bf16.mxu1 %v8407_v2 }
 0x988   : > { %3457 = vmatpush1.bf16.msra.mxu0 %v8408_v15  ;;  %3500 = vmatpush1.bf16.msra.mxu1 %v8409_v40 }
 0x989   : > { %3458 = vmatprep.subr.bf16.mxu0 %v8410_v44  ;;  %3501 = vmatprep.subr.bf16.mxu1 %v8411_v61  ;;  %v4328_v61 = vld [vmem:[%s5397_s19 + $0x1c0] sm:$0xff] }
 0x98c   : > { %3459 = vmatpush1.bf16.msra.mxu0 %v8412_v4  ;;  %3502 = vmatpush1.bf16.msra.mxu1 %v8413_v50 }
 0x98d   : > { %3460 = vmatprep.subr.bf16.mxu0 %v8414_v36  ;;  %3503 = vmatprep.subr.bf16.mxu1 %v8415_v41  ;;  %v4332_v36 = vld [vmem:[%s5397_s19 + $0x1e0] sm:$0xff]  ;;  %v3336_v41 = vunpack.c.l.bf16 %v4328_v61 }
 0x990   : > { %3461 = vmatpush1.bf16.msra.mxu0 %v8416_v23  ;;  %3504 = vmatpush1.bf16.msra.mxu1 %v8417_v39 }
 0x991   : > { %3462 = vmatprep.subr.bf16.mxu0 %v8418_v29  ;;  %3505 = vmatprep.subr.bf16.mxu1 %v8419_v32  ;;  %v3337_v29 = vunpack.c.h.bf16 %v4328_v61  ;;  %v3344_v32 = vunpack.c.l.bf16 %v4332_v36 }
 0x994   : > { %3463 = vmatpush1.bf16.msra.mxu0 %v8420_v38  ;;  %3506 = vmatpush1.bf16.msra.mxu1 %v8421_v16  ;;  %v3345_v16 = vunpack.c.h.bf16 %v4332_v36 }
 0x995   : > { %3464 = vmatprep.subr.bf16.mxu0 %v8422_v17  ;;  %3507 = vmatprep.subr.bf16.mxu1 %v8423_v63 }
 0x998   : > { %3465 = vmatpush1.bf16.msra.mxu0 %v8424_v49  ;;  %3508 = vmatpush1.bf16.msra.mxu1 %v8425_v34 }
 0x999   : > { %3466 = vmatprep.subr.bf16.mxu0 %v8426_v18  ;;  %3509 = vmatprep.subr.bf16.mxu1 %v8427_v57 }
 0x99c   : > { %3467 = vmatpush1.bf16.msra.mxu0 %v8428_v11  ;;  %3510 = vmatpush1.bf16.msra.mxu1 %v8429_v22 }
 0x99d   : > { %3468 = vmatprep.subr.bf16.mxu0 %v8430_v56  ;;  %3511 = vmatprep.subr.bf16.mxu1 %v8431_v9 }
 0x9a0   : > { %3469 = vmatpush1.bf16.msra.mxu0 %v8432_v58  ;;  %3512 = vmatpush1.bf16.msra.mxu1 %v8433_v37  ;;  %v4330_v37 = vld [vmem:[%s5397_s19 + $0x1d0] sm:$0xff] }
 0x9a3   : > { %3471 = vmatmul.mubr.bf16.vlgmr.msra.gmra.mrb[60].mxu0 %v7168_v24  ;;  %3514 = vmatmul.mubr.bf16.vlgmr.msra.gmra.mrb[60].mxu1 %v7168_v24 }
 0xa36   : > { %v3386_v12 = vpop.f32.mrb[56].mxu0  ;;  %v3429_v26 = vpop.f32.mrb[56].mxu1 }
 0xa37   : > { %v3430_v19 = vadd.f32 %v3429_v26, %v3338_v31  ;;  %v3388_v60 = vpop.f32.mrb[57].mxu0  ;;  %v3431_v27 = vpop.f32.mrb[57].mxu1  ;;  %v3387_v17 = vadd.f32 %v3386_v12, %v3336_v41  ;;  %v4335_v12 = vld [vmem:[%s5397_s19 + $0x1f8] sm:$0xff] }
 0xa38   : > { %v3432_v59 = vadd.f32 %v3431_v27, %v3339_v30  ;;  %v3390_v5 = vpop.f32.mrb[58].mxu0  ;;  %v3433_v6 = vpop.f32.mrb[58].mxu1  ;;  %v3389_v63 = vadd.f32 %v3388_v60, %v3337_v29  ;;  %v3341_v27 = vunpack.c.h.bf16 %v4330_v37 }
 0xa39   : > { %v4340_v10 = vmul.f32 -1.442695, %v3430_v19  ;;  %v3434_v43 = vadd.f32 %v3433_v6, %v3346_v62  ;;  %v3392_v21 = vpop.f32.mrb[59].mxu0  ;;  %v3435_v25 = vpop.f32.mrb[59].mxu1  ;;  %v3391_v49 = vadd.f32 %v3390_v5, %v3344_v32  ;;  %v4336_v18 = vmul.f32 -1.442695, %v3387_v17 }
 0xa3a   : > { %v4341_v28 = vmul.f32 -1.442695, %v3432_v59  ;;  %v3436_v24 = vadd.f32 %v3435_v25, %v3347_v42  ;;  %v3393_v34 = vadd.f32 %v3392_v21, %v3345_v16  ;;  %v4337_v57 = vmul.f32 -1.442695, %v3389_v63  ;;  %v4334_v62 = vld [vmem:[%s5397_s19 + $0x1f0] sm:$0xff] }
 0xa3b   : > { %4996 = vpow2.f32 %v4340_v10  ;;  %v4342_v14 = vmul.f32 -1.442695, %v3434_v43  ;;  %v4338_v11 = vmul.f32 -1.442695, %v3391_v49  ;;  %v3340_v42 = vunpack.c.l.bf16 %v4330_v37  ;;  %v3628_v49 = vpop.permute.xlu0 %3627 }
 0xa3c   : > { %4998 = vpow2.f32 %v4341_v28  ;;  %v4343_v13 = vmul.f32 -1.442695, %v3436_v24  ;;  %v4339_v22 = vmul.f32 -1.442695, %v3393_v34  ;;  %v3342_v19 = vunpack.c.l.bf16 %v4331_v35 }
 0xa3d   : > { %5000 = vpow2.f32 %v4342_v14  ;;  %v3343_v59 = vunpack.c.h.bf16 %v4331_v35  ;;  %v3348_v5 = vunpack.c.l.bf16 %v4334_v62  ;;  %v3350_v6 = vunpack.c.l.bf16 %v4335_v12 }
 0xa3e   : > { %5002 = vpow2.f32 %v4343_v13  ;;  %v3351_v21 = vunpack.c.h.bf16 %v4335_v12  ;;  %v3349_v13 = vunpack.c.h.bf16 %v4334_v62  ;;  %vm3632_vm14 = vcmp.eq.s32.totalorder %v3628_v49, 1  ;;  %v3672_v49 = vld [vmem:[#allocation9 + $0x70] sm:$0xff] (!%p4348_p10) }
 0xa45   : > { %v4997_v3 = vpop.eup %4996 }
 0xa46   : > { %v3560_v55 = vadd.f32 1.0, %v4997_v3  ;;  %v4999_v46 = vpop.eup %4998 }
 0xa47   : > { %v3561_v45 = vadd.f32 1.0, %v4999_v46  ;;  %v5001_v0 = vpop.eup %5000 }
 0xa48   : > { %5004 = vrcp.f32 %v3560_v55  ;;  %v3562_v48 = vadd.f32 1.0, %v5001_v0  ;;  %v5003_v1 = vpop.eup %5002 }
 0xa49   : > { %5006 = vrcp.f32 %v3561_v45  ;;  %v3563_v2 = vadd.f32 1.0, %v5003_v1 }
 0xa4a   : > { %5008 = vrcp.f32 %v3562_v48 }
 0xa4b   : > { %5010 = vrcp.f32 %v3563_v2 }
 0xa4c   : > { %5012 = vpow2.f32 %v4336_v18 }
 0xa4d   : > { %5014 = vpow2.f32 %v4337_v57 }
 0xa4e   : > { %5016 = vpow2.f32 %v4338_v11 }
 0xa4f   : > { %5018 = vpow2.f32 %v4339_v22 }
 0xa52   : > { %v5005_v15 = vpop.eup %5004 }
 0xa53   : > { %v7239_v40 = vmul.f32 %v5005_v15, %v7132_v47  ;;  %v5007_v44 = vpop.eup %5006 }
 0xa54   : > { %v7243_v4 = vmul.f32 %v5007_v44, %v7136_v54  ;;  %v5009_v50 = vpop.eup %5008 }
 0xa55   : > { %v7247_v23 = vmul.f32 %v5009_v50, %v7142_v53  ;;  %v5011_v39 = vpop.eup %5010 }
 0xa56   : > { %v7250_v38 = vmul.f32 %v5011_v39, %v7146_v33  ;;  %v5013_v56 = vpop.eup %5012 }
 0xa57   : > { %v5015_v9 = vpop.eup %5014  ;;  %v3536_v31 = vadd.f32 1.0, %v5013_v56 }
 0xa58   : > { %v5017_v58 = vpop.eup %5016  ;;  %v3537_v30 = vadd.f32 1.0, %v5015_v9 }
 0xa59   : > { %v5019_v7 = vpop.eup %5018  ;;  %v3538_v26 = vadd.f32 1.0, %v5017_v58  ;;  %5020 = vrcp.f32 %v3536_v31 }
 0xa5a   : > { %v3539_v60 = vadd.f32 1.0, %v5019_v7  ;;  %5022 = vrcp.f32 %v3537_v30  ;;  %v3631_v7 = vpop.permute.xlu1 %3630 }
 0xa5b   : > { %5024 = vrcp.f32 %v3538_v26  ;;  %vm3633_vm15 = vcmp.eq.s32.totalorder %v3631_v7, 1 }
 0xa5c   : > { %5026 = vrcp.f32 %v3539_v60 }
 0xa63   : > { %v5021_v39 = vpop.eup %5020 }
 0xa64   : > { %v5023_v29 = vpop.eup %5022 }
 0xa65   : > { %v5025_v32 = vpop.eup %5024 }
 0xa66   : > { %v5027_v16 = vpop.eup %5026 }
 0xa76   : > { %v3472_v10 = vpop.f32.mrb[60].mxu0  ;;  %v3515_v43 = vpop.f32.mrb[60].mxu1 }
 0xa77   : > { %v3473_v25 = vadd.f32 %v3472_v10, %v3340_v42  ;;  %v3516_v28 = vadd.f32 %v3515_v43, %v3342_v19  ;;  %v3474_v24 = vpop.f32.mrb[61].mxu0  ;;  %v3517_v14 = vpop.f32.mrb[61].mxu1 }
 0xa78   : > { %v3475_v3 = vadd.f32 %v3474_v24, %v3341_v27  ;;  %v3518_v55 = vadd.f32 %v3517_v14, %v3343_v59  ;;  %v3476_v46 = vpop.f32.mrb[62].mxu0  ;;  %v3519_v45 = vpop.f32.mrb[62].mxu1 }
 0xa79   : > { %5028 = vtanh.f32 %v3473_v25  ;;  %v4344_v0 = vmul.f32 -1.442695, %v3516_v28  ;;  %v3477_v48 = vadd.f32 %v3476_v46, %v3348_v5  ;;  %v3520_v1 = vadd.f32 %v3519_v45, %v3350_v6  ;;  %v3478_v2 = vpop.f32.mrb[63].mxu0  ;;  %v3521_v15 = vpop.f32.mrb[63].mxu1  ;;  %v3662_v45 = vld [vmem:[#allocation9 + $0x20] sm:$0xff] (!%p4348_p10) }
 0xa7a   : > { %5030 = vtanh.f32 %v3475_v3  ;;  %v4345_v44 = vmul.f32 -1.442695, %v3518_v55  ;;  %v3522_v61 = vadd.f32 %v3521_v15, %v3351_v21  ;;  %v3479_v36 = vadd.f32 %v3478_v2, %v3349_v13  ;;  %v3659_v13 = vld [vmem:[#allocation9 + $0x8] sm:$0xff] (!%p4348_p10)  ;;  %v3660_v2 = vld [vmem:[#allocation9 + $0x10] sm:$0xff] (!%p4348_p10) }
 0xa7b   : > { %5032 = vpow2.f32 %v4344_v0  ;;  %v4346_v50 = vmul.f32 -1.442695, %v3520_v1  ;;  %v3663_v3 = vld [vmem:[#allocation9 + $0x28] sm:$0xff] (!%p4348_p10)  ;;  %v3661_v0 = vld [vmem:[#allocation9 + $0x18] sm:$0xff] (!%p4348_p10)  ;;  %v3664_v15 = vld [vmem:[#allocation9 + $0x30] sm:$0xff] (!%p4348_p10) }
 0xa7c   : > { %5034 = vpow2.f32 %v4345_v44  ;;  %v4347_v41 = vmul.f32 -1.442695, %v3522_v61  ;;  %v4354_v46 = vpack.c.bf16 (!%p4348_p10), %v3663_v3, %v3659_v13  ;;  %v3667_v44 = vld [vmem:[#allocation9 + $0x48] sm:$0xff] (!%p4348_p10)  ;;  %v3701_v13 = vld [vmem:[#allocation9 + $0x158] sm:$0xff] (!%p4348_p10) }
 0xa7d   : > { %5036 = vtanh.f32 %v3477_v48  ;;  %v3665_v48 = vld [vmem:[#allocation9 + $0x38] sm:$0xff] (!%p4348_p10) }
 0xa7e   : > { %5038 = vpow2.f32 %v4346_v50  ;;  %v4418_v1 = vpack.c.bf16 (!%p4348_p10), %v3665_v48, %v3661_v0  ;;  %4355 = vmatprep.subr.bf16.mxu0 (!%p4348_p10), %v4354_v46  ;;  %v3671_v50 = vld [vmem:[#allocation9 + $0x68] sm:$0xff] (!%p4348_p10)  ;;  %v3705_v3 = vld [vmem:[#allocation9 + $0x178] sm:$0xff] (!%p4348_p10)  ;;  %v3702_v0 = vld [vmem:[#allocation9 + $0x160] sm:$0xff] (!%p4348_p10) }
 0xa7f   : > { %5040 = vtanh.f32 %v3479_v36  ;;  %v3666_v36 = vld [vmem:[#allocation9 + $0x40] sm:$0xff] (!%p4348_p10)  ;;  %v3700_v48 = vld [vmem:[#allocation9 + $0x150] sm:$0xff] (!%p4348_p10) }
 0xa80   : > { %5042 = vpow2.f32 %v4347_v41  ;;  %v3670_v41 = vld [vmem:[#allocation9 + $0x60] sm:$0xff] (!%p4348_p10)  ;;  %4419 = vmatprep.subr.bf16.mxu1 (!%p4348_p10), %v4418_v1  ;;  %v3704_v1 = vld [vmem:[#allocation9 + $0x170] sm:$0xff] (!%p4348_p10) }
 0xa83   : > { %v5029_v17 = vpop.eup %5028 }
 0xa84   : > { %v5031_v63 = vpop.eup %5030  ;;  %v3604_v34 = vmul.f32 %v5029_v17, %v5021_v39  ;;  %v4358_v39 = vpack.c.bf16 (!%p4348_p10), %v3671_v50, %v3667_v44  ;;  %v3668_v17 = vld [vmem:[#allocation9 + $0x50] sm:$0xff] (!%p4348_p10)  ;;  %v3709_v44 = vld [vmem:[#allocation9 + $0x198] sm:$0xff] (!%p4348_p10)  ;;  %v4440_v50 = vpack.c.bf16 (!%p4348_p10), %v3704_v1, %v3700_v48  ;;  %v3751_v1 = vld [vmem:[#allocation9 + $0x2e8] sm:$0xff] (!%p4348_p10) }
 0xa85   : > { %v5033_v18 = vpop.eup %5032  ;;  %v3605_v57 = vmul.f32 %v5031_v63, %v5023_v29  ;;  %v4360_v29 = vpack.c.bf16 (!%p4348_p10), %v3670_v41, %v3666_v36  ;;  %v3706_v41 = vld [vmem:[#allocation9 + $0x180] sm:$0xff] (!%p4348_p10)  ;;  %v3744_v48 = vld [vmem:[#allocation9 + $0x2b0] sm:$0xff] (!%p4348_p10) }
 0xa86   : > { %v5035_v11 = vpop.eup %5034  ;;  %v3608_v22 = vadd.f32 %v3604_v34, %v7239_v40  ;;  %v3588_v56 = vadd.f32 1.0, %v5033_v18  ;;  %v3675_v34 = vld [vmem:[#allocation9 + $0x88] sm:$0xff] (!%p4348_p10) }
 0xa87   : > { %v5037_v9 = vpop.eup %5036  ;;  %v3609_v58 = vadd.f32 %v3605_v57, %v7243_v4  ;;  %v3589_v37 = vadd.f32 1.0, %v5035_v11  ;;  %v3679_v18 = vld [vmem:[#allocation9 + $0xa8] sm:$0xff] (!%p4348_p10)  ;;  %v4424_v57 = vpack.c.bf16 (!%p4348_p10), %v3672_v49, %v3668_v17  ;;  %v3717_v49 = vld [vmem:[#allocation9 + $0x1d8] sm:$0xff] (!%p4348_p10) }
 0xa88   : > { %v5039_v35 = vpop.eup %5038  ;;  %5044 = vtanh.f32 %v3608_v22  ;;  %v3638_v31 = vsel %vm3632_vm14, %v3608_v22, %v7132_v47  ;;  %v3606_v30 = vmul.f32 %v5037_v9, %v5025_v32  ;;  %v3669_v32 = vld [vmem:[#allocation9 + $0x58] sm:$0xff] (!%p4348_p10)  ;;  %v4362_v11 = vpack.c.bf16 (!%p4348_p10), %v3679_v18, %v3675_v34  ;;  %v3674_v22 = vld [vmem:[#allocation9 + $0x80] sm:$0xff] (!%p4348_p10)  ;;  %v3715_v17 = vld [vmem:[#allocation9 + $0x1c8] sm:$0xff] (!%p4348_p10) }
 0xa89   : > { %v5041_v62 = vpop.eup %5040  ;;  %3646 = vst [vmem:[#allocation3] sm:$0xff] %v3638_v31  ;;  %5046 = vrcp.f32 %v3588_v56  ;;  %v3639_v12 = vsel %vm3632_vm14, %v3609_v58, %v7136_v54  ;;  %v3590_v40 = vadd.f32 1.0, %v5039_v35  ;;  %v3678_v56 = vld [vmem:[#allocation9 + $0xa0] sm:$0xff] (!%p4348_p10)  ;;  %v3677_v9 = vld [vmem:[#allocation9 + $0x98] sm:$0xff] (!%p4348_p10)  ;;  %v3680_v35 = vld [vmem:[#allocation9 + $0xb0] sm:$0xff] (!%p4348_p10) }
 0xa8a   : > { %v5043_v26 = vpop.eup %5042  ;;  %5048 = vtanh.f32 %v3609_v58  ;;  %3647 = vst [vmem:[#allocation3 + $0x8] sm:$0xff] %v3639_v12  ;;  %v3610_v4 = vadd.f32 %v3606_v30, %v7247_v23  ;;  %v3607_v42 = vmul.f32 %v5041_v62, %v5027_v16  ;;  %v3673_v16 = vld [vmem:[#allocation9 + $0x78] sm:$0xff] (!%p4348_p10)  ;;  %v4364_v7 = vpack.c.bf16 (!%p4348_p10), %v3678_v56, %v3674_v22  ;;  %v3683_v30 = vld [vmem:[#allocation9 + $0xc8] sm:$0xff] (!%p4348_p10)  ;;  %v3682_v12 = vld [vmem:[#allocation9 + $0xc0] sm:$0xff] (!%p4348_p10) }
 0xa8b   : > { %5050 = vrcp.f32 %v3589_v37  ;;  %v3591_v19 = vadd.f32 1.0, %v5043_v26  ;;  %v4422_v63 = vpack.c.bf16 (!%p4348_p10), %v3673_v16, %v3669_v32  ;;  %v3681_v58 = vld [vmem:[#allocation9 + $0xb8] sm:$0xff] (!%p4348_p10)  ;;  %v3676_v37 = vld [vmem:[#allocation9 + $0x90] sm:$0xff] (!%p4348_p10)  ;;  %v3687_v62 = vld [vmem:[#allocation9 + $0xe8] sm:$0xff] (!%p4348_p10) }
 0xa8c   : > { %5052 = vtanh.f32 %v3610_v4  ;;  %v3640_v47 = vsel %vm3633_vm15, %v3610_v4, %v7142_v53  ;;  %v3611_v60 = vadd.f32 %v3607_v42, %v7250_v38  ;;  %v4426_v31 = vpack.c.bf16 (!%p4348_p10), %v3681_v58, %v3677_v9  ;;  %v3686_v4 = vld [vmem:[#allocation9 + $0xe0] sm:$0xff] (!%p4348_p10)  ;;  %v3685_v42 = vld [vmem:[#allocation9 + $0xd8] sm:$0xff] (!%p4348_p10)  ;;  %v3712_v16 = vld [vmem:[#allocation9 + $0x1b0] sm:$0xff] (!%p4348_p10) }
 0xa8d   : > { %3648 = vst [vmem:[#allocation3 + $0x10] sm:$0xff] %v3640_v47  ;;  %5054 = vrcp.f32 %v3590_v40  ;;  %v4428_v40 = vpack.c.bf16 (!%p4348_p10), %v3680_v35, %v3676_v37  ;;  %v4366_v26 = vpack.c.bf16 (!%p4348_p10), %v3687_v62, %v3683_v30  ;;  %v3721_v34 = vld [vmem:[#allocation9 + $0x1f8] sm:$0xff] (!%p4348_p10)  ;;  %v3714_v22 = vld [vmem:[#allocation9 + $0x1c0] sm:$0xff] (!%p4348_p10)  ;;  %v3716_v9 = vld [vmem:[#allocation9 + $0x1d0] sm:$0xff] (!%p4348_p10) }
 0xa8e   : > { %5056 = vtanh.f32 %v3611_v60  ;;  %v3641_v54 = vsel %vm3633_vm15, %v3611_v60, %v7146_v33  ;;  %v3684_v60 = vld [vmem:[#allocation9 + $0xd0] sm:$0xff] (!%p4348_p10)  ;;  %v3718_v56 = vld [vmem:[#allocation9 + $0x1e0] sm:$0xff] (!%p4348_p10)  ;;  %v4446_v58 = vpack.c.bf16 (!%p4348_p10), %v3721_v34, %v3717_v49  ;;  %v3723_v35 = vld [vmem:[#allocation9 + $0x208] sm:$0xff] (!%p4348_p10) }
 0xa8f   : > { %3649 = vst [vmem:[#allocation3 + $0x18] sm:$0xff] %v3641_v54  ;;  %5058 = vrcp.f32 %v3591_v19  ;;  %v3689_v19 = vld [vmem:[#allocation9 + $0xf8] sm:$0xff] (!%p4348_p10)  ;;  %v3688_v54 = vld [vmem:[#allocation9 + $0xf0] sm:$0xff] (!%p4348_p10)  ;;  %v4384_v62 = vpack.c.bf16 (!%p4348_p10), %v3718_v56, %v3714_v22 }
 0xa90   : > { %v4430_v47 = vpack.c.bf16 (!%p4348_p10), %v3689_v19, %v3685_v42  ;;  %v3720_v37 = vld [vmem:[#allocation9 + $0x1f0] sm:$0xff] (!%p4348_p10)  ;;  %v3729_v30 = vld [vmem:[#allocation9 + $0x238] sm:$0xff] (!%p4348_p10) }
 0xa91   : > { %v3724_v42 = vld [vmem:[#allocation9 + $0x210] sm:$0xff] (!%p4348_p10) }
 0xa92   : > { %v5045_v27 = vpop.eup %5044  ;;  %v3756_v22 = vld [vmem:[#allocation9 + $0x310] sm:$0xff] (!%p4348_p10) }
 0xa93   : > { %v5047_v23 = vpop.eup %5046 }
 0xa94   : > { %v5049_v59 = vpop.eup %5048  ;;  %v3616_v5 = vmul.f32 %v5047_v23, %v5045_v27  ;;  %v3691_v27 = vld [vmem:[#allocation9 + $0x108] sm:$0xff] (!%p4348_p10) }
 0xa95   : > { %v5051_v6 = vpop.eup %5050  ;;  %v3695_v23 = vld [vmem:[#allocation9 + $0x128] sm:$0xff] (!%p4348_p10) }
 0xa96   : > { %v5053_v10 = vpop.eup %5052  ;;  %v7270_v43 = vsel %vm3632_vm14, %v3616_v5, %v7164_v51  ;;  %v3617_v53 = vmul.f32 %v5051_v6, %v5049_v59  ;;  %v4368_v59 = vpack.c.bf16 (!%p4348_p10), %v3686_v4, %v3682_v12  ;;  %v3693_v5 = vld [vmem:[#allocation9 + $0x118] sm:$0xff] (!%p4348_p10)  ;;  %v4448_v12 = vpack.c.bf16 (!%p4348_p10), %v3720_v37, %v3716_v9  ;;  %v3726_v4 = vld [vmem:[#allocation9 + $0x220] sm:$0xff] (!%p4348_p10)  ;;  %v3760_v9 = vld [vmem:[#allocation9 + $0x330] sm:$0xff] (!%p4348_p10) }
 0xa97   : > { %v5055_v38 = vpop.eup %5054  ;;  %3642 = vst [vmem:[#allocation2] sm:$0xff] %v7270_v43  ;;  %3653 = sbr.rel (%p4348_p10) target bundleno = 3149 (0xc4d), region = 68  ;;  %v3697_v6 = vld [vmem:[#allocation9 + $0x138] sm:$0xff] (!%p4348_p10)  ;;  %v3767_v37 = vld [vmem:[#allocation9 + $0x368] sm:$0xff] (!%p4348_p10) }
 0xa98   : > { %v5057_v21 = vpop.eup %5056  ;;  %v3635_v33 = vsel %vm3632_vm14, %v3617_v53, %v7154_v52  ;;  %v3618_v25 = vmul.f32 %v5055_v38, %v5053_v10  ;;  %v3658_v52 = vld [vmem:[#allocation9] sm:$0xff] (!%p4348_p10)  ;;  %v4432_v10 = vpack.c.bf16 (!%p4348_p10), %v3688_v54, %v3684_v60  ;;  %v4370_v53 = vpack.c.bf16 (!%p4348_p10), %v3695_v23, %v3691_v27  ;;  %v3731_v60 = vld [vmem:[#allocation9 + $0x248] sm:$0xff] (!%p4348_p10)  ;;  %v3733_v27 = vld [vmem:[#allocation9 + $0x258] sm:$0xff] (!%p4348_p10) }
 0xa99   : > { %v5059_v28 = vpop.eup %5058  ;;  %3643 = vst [vmem:[#allocation2 + $0x8] sm:$0xff] %v3635_v33  ;;  %v3690_v38 = vld [vmem:[#allocation9 + $0x100] sm:$0xff] (!%p4348_p10)  ;;  %v3735_v54 = vld [vmem:[#allocation9 + $0x268] sm:$0xff] (!%p4348_p10)  ;;  %v3737_v23 = vld [vmem:[#allocation9 + $0x278] sm:$0xff] (!%p4348_p10) }
 0xa9a   : > { %v7277_v24 = vsel %vm3633_vm15, %v3618_v25, %v7150_v20  ;;  %v3619_v14 = vmul.f32 %v5059_v28, %v5057_v21  ;;  %v4356_v20 = vpack.c.bf16 (!%p4348_p10), %v3662_v45, %v3658_v52  ;;  %v3694_v21 = vld [vmem:[#allocation9 + $0x120] sm:$0xff] (!%p4348_p10)  ;;  %v4434_v25 = vpack.c.bf16 (!%p4348_p10), %v3697_v6, %v3693_v5  ;;  %v3696_v28 = vld [vmem:[#allocation9 + $0x130] sm:$0xff] (!%p4348_p10) }
 0xa9b   : > { %3644 = vst [vmem:[#allocation2 + $0x10] sm:$0xff] %v7277_v24  ;;  %v4372_v52 = vpack.c.bf16 (!%p4348_p10), %v3694_v21, %v3690_v38  ;;  %v3698_v45 = vld [vmem:[#allocation9 + $0x140] sm:$0xff] (!%p4348_p10)  ;;  %v4390_v6 = vpack.c.bf16 (!%p4348_p10), %v3735_v54, %v3731_v60  ;;  %v3732_v38 = vld [vmem:[#allocation9 + $0x250] sm:$0xff] (!%p4348_p10)  ;;  %v4454_v21 = vpack.c.bf16 (!%p4348_p10), %v3737_v23, %v3733_v27  ;;  %v3773_v60 = vld [vmem:[#allocation9 + $0x398] sm:$0xff] (!%p4348_p10) }
 0xa9c   : > { %v3637_v51 = vsel %vm3633_vm15, %v3619_v14, %v7158_v8  ;;  %v4420_v8 = vpack.c.bf16 (!%p4348_p10), %v3664_v15, %v3660_v2  ;;  %4357 = vmatpush1.bf16.msra.mxu0 (!%p4348_p10), %v4356_v20  ;;  %v3699_v14 = vld [vmem:[#allocation9 + $0x148] sm:$0xff] (!%p4348_p10)  ;;  %v4438_v20 = vpack.c.bf16 (!%p4348_p10), %v3705_v3, %v3701_v13  ;;  %v3777_v54 = vld [vmem:[#allocation9 + $0x3b8] sm:$0xff] (!%p4348_p10) }
 0xa9d   : > { %3645 = vst [vmem:[#allocation2 + $0x18] sm:$0xff] %v3637_v51  ;;  %v3655_v55 = vsub.f32 (!%p4348_p10), %v3635_v33, %v3637_v51  ;;  %4359 = vmatprep.subr.bf16.mxu0 (!%p4348_p10), %v4358_v39  ;;  %v3692_v33 = vld [vmem:[#allocation9 + $0x110] sm:$0xff] (!%p4348_p10)  ;;  %v3703_v51 = vld [vmem:[#allocation9 + $0x168] sm:$0xff] (!%p4348_p10)  ;;  %v3710_v39 = vld [vmem:[#allocation9 + $0x1a0] sm:$0xff] (!%p4348_p10) }
 0xa9e   : > { %4421 = vmatpush1.bf16.msra.mxu1 %v4420_v8  ;;  %v4374_v46 = vpack.c.bf16 %v3703_v51, %v3699_v14  ;;  %v3707_v2 = vld [vmem:[#allocation9 + $0x188] sm:$0xff]  ;;  %v4376_v8 = vpack.c.bf16 %v3702_v0, %v3698_v45  ;;  %v4380_v18 = vpack.c.bf16 %v3710_v39, %v3706_v41  ;;  %v3741_v14 = vld [vmem:[#allocation9 + $0x298] sm:$0xff]  ;;  %v3740_v45 = vld [vmem:[#allocation9 + $0x290] sm:$0xff] }
 0xa9f   : > { %v3657_v61 = vand.u32 2147483647, %v3655_v55  ;;  %4423 = vmatprep.subr.bf16.mxu1 %v4422_v63  ;;  %v4436_v55 = vpack.c.bf16 %v3696_v28, %v3692_v33  ;;  %v3711_v15 = vld [vmem:[#allocation9 + $0x1a8] sm:$0xff]  ;;  %v3736_v33 = vld [vmem:[#allocation9 + $0x270] sm:$0xff]  ;;  %v3745_v51 = vld [vmem:[#allocation9 + $0x2b8] sm:$0xff] }
 0xaa0   : > { %4361 = vmatpush1.bf16.msra.mxu0 %v4360_v29  ;;  %v4378_v36 = vpack.c.bf16 %v3711_v15, %v3707_v2  ;;  %v3708_v29 = vld [vmem:[#allocation9 + $0x190] sm:$0xff]  ;;  %v3719_v63 = vld [vmem:[#allocation9 + $0x1e8] sm:$0xff]  ;;  %v4456_v3 = vpack.c.bf16 %v3736_v33, %v3732_v38  ;;  %v4458_v0 = vpack.c.bf16 %v3745_v51, %v3741_v14  ;;  %v3749_v2 = vld [vmem:[#allocation9 + $0x2d8] sm:$0xff] }
 0xaa1   : > { %3872 = vmatprep.mubr.f32.mxu0 %v3657_v61  ;;  %3943 = vmatprep.mubr.f32.mxu1 %v3657_v61  ;;  %v3713_v61 = vld [vmem:[#allocation9 + $0x1b8] sm:$0xff]  ;;  %v3743_v28 = vld [vmem:[#allocation9 + $0x2a8] sm:$0xff]  ;;  %v3748_v41 = vld [vmem:[#allocation9 + $0x2d0] sm:$0xff] }
 0xaa2   : > { %4425 = vmatpush1.bf16.msra.mxu1 %v4424_v57  ;;  %4363 = vmatprep.subr.bf16.mxu0 %v4362_v11  ;;  %v4442_v32 = vpack.c.bf16 %v3713_v61, %v3709_v44  ;;  %v4444_v57 = vpack.c.bf16 %v3712_v16, %v3708_v29  ;;  %v4382_v11 = vpack.c.bf16 %v3719_v63, %v3715_v17  ;;  %v3753_v15 = vld [vmem:[#allocation9 + $0x2f8] sm:$0xff]  ;;  %v3752_v29 = vld [vmem:[#allocation9 + $0x2f0] sm:$0xff]  ;;  %v3759_v16 = vld [vmem:[#allocation9 + $0x328] sm:$0xff] }
 0xaa3   : > { %4427 = vmatprep.subr.bf16.mxu1 %v4426_v31  ;;  %v3725_v31 = vld [vmem:[#allocation9 + $0x218] sm:$0xff]  ;;  %v4460_v61 = vpack.c.bf16 %v3744_v48, %v3740_v45  ;;  %v4462_v39 = vpack.c.bf16 %v3753_v15, %v3749_v2  ;;  %v4464_v34 = vpack.c.bf16 %v3752_v29, %v3748_v41  ;;  %v3776_v38 = vld [vmem:[#allocation9 + $0x3b0] sm:$0xff]  ;;  %v3783_v33 = vld [vmem:[#allocation9 + $0x3e8] sm:$0xff]  ;;  %v3788_v2 = vlaneseq }
 0xaa4   : > { %4365 = vmatpush1.bf16.msra.mxu0 %v4364_v7  ;;  %v3727_v7 = vld [vmem:[#allocation9 + $0x228] sm:$0xff]  ;;  %v4450_v19 = vpack.c.bf16 %v3729_v30, %v3725_v31  ;;  %v3757_v17 = vld [vmem:[#allocation9 + $0x318] sm:$0xff]  ;;  %v4468_v30 = vpack.c.bf16 %v3760_v9, %v3756_v22  ;;  %v3784_v45 = vld [vmem:[#allocation9 + $0x3f0] sm:$0xff] }
 0xaa5   : > { %4367 = vmatprep.subr.bf16.mxu0 %v4366_v26  ;;  %v3722_v26 = vld [vmem:[#allocation9 + $0x200] sm:$0xff]  ;;  %v3761_v63 = vld [vmem:[#allocation9 + $0x338] sm:$0xff]  ;;  %v3789_v15 = vshrl.u32 %v3788_v2, 7 }
 0xaa6   : > { %4429 = vmatpush1.bf16.msra.mxu1 %v4428_v40  ;;  %v4386_v40 = vpack.c.bf16 %v3727_v7, %v3723_v35  ;;  %v4466_v56 = vpack.c.bf16 %v3761_v63, %v3757_v17  ;;  %v3765_v35 = vld [vmem:[#allocation9 + $0x358] sm:$0xff] }
 0xaa7   : > { %4431 = vmatprep.subr.bf16.mxu1 %v4430_v47  ;;  %v3728_v47 = vld [vmem:[#allocation9 + $0x230] sm:$0xff]  ;;  %v3769_v7 = vld [vmem:[#allocation9 + $0x378] sm:$0xff] }
 0xaa8   : > { %4369 = vmatpush1.bf16.msra.mxu0 %v4368_v59  ;;  %v4388_v59 = vpack.c.bf16 %v3726_v4, %v3722_v26  ;;  %v4452_v5 = vpack.c.bf16 %v3728_v47, %v3724_v42  ;;  %v3764_v26 = vld [vmem:[#allocation9 + $0x350] sm:$0xff]  ;;  %v4470_v4 = vpack.c.bf16 %v3769_v7, %v3765_v35  ;;  %v3775_v47 = vld [vmem:[#allocation9 + $0x3a8] sm:$0xff] }
 0xaa9   : > { %4371 = vmatprep.subr.bf16.mxu0 %v4370_v53  ;;  %v3734_v53 = vld [vmem:[#allocation9 + $0x260] sm:$0xff]  ;;  %v3768_v42 = vld [vmem:[#allocation9 + $0x370] sm:$0xff] }
 0xaaa   : > { %4433 = vmatpush1.bf16.msra.mxu1 %v4432_v10  ;;  %v3730_v10 = vld [vmem:[#allocation9 + $0x240] sm:$0xff]  ;;  %v4472_v23 = vpack.c.bf16 %v3768_v42, %v3764_v26  ;;  %v4349_v42 = vld [vmem:[#allocation4] ss:$0 sm:$0xff] }
 0xaab   : > { %4435 = vmatprep.subr.bf16.mxu1 %v4434_v25  ;;  %v3739_v25 = vld [vmem:[#allocation9 + $0x288] sm:$0xff]  ;;  %v4392_v13 = vpack.c.bf16 %v3734_v53, %v3730_v10  ;;  %v3772_v10 = vld [vmem:[#allocation9 + $0x390] sm:$0xff]  ;;  %v4474_v53 = vpack.c.bf16 %v3777_v54, %v3773_v60 }
 0xaac   : > { %4373 = vmatpush1.bf16.msra.mxu0 %v4372_v52  ;;  %v4394_v52 = vpack.c.bf16 %v3743_v28, %v3739_v25  ;;  %v3781_v25 = vld [vmem:[#allocation9 + $0x3d8] sm:$0xff]  ;;  %v4476_v51 = vpack.c.bf16 %v3776_v38, %v3772_v10 }
 0xaad   : > { %4375 = vmatprep.subr.bf16.mxu0 %v4374_v46  ;;  %v3742_v46 = vld [vmem:[#allocation9 + $0x2a0] sm:$0xff]  ;;  %v3785_v28 = vld [vmem:[#allocation9 + $0x3f8] sm:$0xff] }
 0xaae   : > { %4437 = vmatpush1.bf16.msra.mxu1 %v4436_v55  ;;  %v3738_v55 = vld [vmem:[#allocation9 + $0x280] sm:$0xff] }
 0xaaf   : > { %4439 = vmatprep.subr.bf16.mxu1 %v4438_v20  ;;  %v3747_v20 = vld [vmem:[#allocation9 + $0x2c8] sm:$0xff]  ;;  %v4396_v44 = vpack.c.bf16 %v3742_v46, %v3738_v55  ;;  %v4478_v55 = vpack.c.bf16 %v3785_v28, %v3781_v25  ;;  %v3780_v46 = vld [vmem:[#allocation9 + $0x3d0] sm:$0xff] }
 0xab0   : > { %4377 = vmatpush1.bf16.msra.mxu0 %v4376_v8  ;;  %v4398_v8 = vpack.c.bf16 %v3751_v1, %v3747_v20  ;;  %v4480_v20 = vpack.c.bf16 %v3784_v45, %v3780_v46 }
 0xab1   : > { %4379 = vmatprep.subr.bf16.mxu0 %v4378_v36  ;;  %v3750_v36 = vld [vmem:[#allocation9 + $0x2e0] sm:$0xff] }
 0xab2   : > { %4441 = vmatpush1.bf16.msra.mxu1 %v4440_v50  ;;  %v3746_v50 = vld [vmem:[#allocation9 + $0x2c0] sm:$0xff] }
 0xab3   : > { %4443 = vmatprep.subr.bf16.mxu1 %v4442_v32  ;;  %v3755_v32 = vld [vmem:[#allocation9 + $0x308] sm:$0xff]  ;;  %v4400_v49 = vpack.c.bf16 %v3750_v36, %v3746_v50  ;;  %v3954_v36 = vld [vmem:[%s7312_s5] sm:$0xf] }
 0xab4   : > { %4381 = vmatpush1.bf16.msra.mxu0 %v4380_v18  ;;  %v4402_v18 = vpack.c.bf16 %v3759_v16, %v3755_v32 }
 0xab5   : > { %4383 = vmatprep.subr.bf16.mxu0 %v4382_v11  ;;  %v3758_v11 = vld [vmem:[#allocation9 + $0x320] sm:$0xff] }
 0xab6   : > { %4445 = vmatpush1.bf16.msra.mxu1 %v4444_v57  ;;  %v3754_v57 = vld [vmem:[#allocation9 + $0x300] sm:$0xff] }
 0xab7   : > { %4447 = vmatprep.subr.bf16.mxu1 %v4446_v58  ;;  %v3763_v58 = vld [vmem:[#allocation9 + $0x348] sm:$0xff]  ;;  %v4404_v31 = vpack.c.bf16 %v3758_v11, %v3754_v57 }
 0xab8   : > { %4385 = vmatpush1.bf16.msra.mxu0 %v4384_v62  ;;  %v4406_v62 = vpack.c.bf16 %v3767_v37, %v3763_v58 }
 0xab9   : > { %4387 = vmatprep.subr.bf16.mxu0 %v4386_v40  ;;  %v3766_v40 = vld [vmem:[#allocation9 + $0x360] sm:$0xff] }
 0xaba   : > { %4449 = vmatpush1.bf16.msra.mxu1 %v4448_v12  ;;  %v3762_v12 = vld [vmem:[#allocation9 + $0x340] sm:$0xff] }
 0xabb   : > { %4451 = vmatprep.subr.bf16.mxu1 %v4450_v19  ;;  %v3771_v19 = vld [vmem:[#allocation9 + $0x388] sm:$0xff]  ;;  %v4408_v27 = vpack.c.bf16 %v3766_v40, %v3762_v12 }
 0xabc   : > { %4389 = vmatpush1.bf16.msra.mxu0 %v4388_v59  ;;  %v4410_v59 = vpack.c.bf16 %v3775_v47, %v3771_v19 }
 0xabd   : > { %4391 = vmatprep.subr.bf16.mxu0 %v4390_v6  ;;  %v3774_v6 = vld [vmem:[#allocation9 + $0x3a0] sm:$0xff] }
 0xabe   : > { %4453 = vmatpush1.bf16.msra.mxu1 %v4452_v5  ;;  %v3770_v5 = vld [vmem:[#allocation9 + $0x380] sm:$0xff] }
 0xabf   : > { %4455 = vmatprep.subr.bf16.mxu1 %v4454_v21  ;;  %v3779_v21 = vld [vmem:[#allocation9 + $0x3c8] sm:$0xff]  ;;  %v4412_v14 = vpack.c.bf16 %v3774_v6, %v3770_v5 }
 0xac0   : > { %4393 = vmatpush1.bf16.msra.mxu0 %v4392_v13  ;;  %v4414_v13 = vpack.c.bf16 %v3783_v33, %v3779_v21 }
 0xac1   : > { %4395 = vmatprep.subr.bf16.mxu0 %v4394_v52  ;;  %v3782_v52 = vld [vmem:[#allocation9 + $0x3e0] sm:$0xff] }
 0xac2   : > { %4457 = vmatpush1.bf16.msra.mxu1 %v4456_v3  ;;  %v3778_v3 = vld [vmem:[#allocation9 + $0x3c0] sm:$0xff] }
 0xac3   : > { %4459 = vmatprep.subr.bf16.mxu1 %v4458_v0  ;;  %v3654_v0 = vsub.f32 %v7270_v43, %v7277_v24  ;;  %v4416_v48 = vpack.c.bf16 %v3782_v52, %v3778_v3  ;;  %v3798_v43 = vsub.s32 2, %v3789_v15  ;;  %v3802_v24 = vsub.s32 3, %v3789_v15 }
 0xac4   : > { %4397 = vmatpush1.bf16.msra.mxu0 %v4396_v44  ;;  %v3790_v44 = vsub.s32 0, %v3789_v15 }
 0xac5   : > { %4399 = vmatprep.subr.bf16.mxu0 %v4398_v8  ;;  %v3656_v1 = vand.u32 2147483647, %v3654_v0  ;;  %v3794_v8 = vsub.s32 1, %v3789_v15  ;;  %v3967_v11 = vrot.slane %v3954_v36, %v3798_v43 }
 0xac6   : > { %4461 = vmatpush1.bf16.msra.mxu1 %v4460_v61  ;;  %v3786_v61 = vld [vmem:[%s7311_s4] sm:$0xf]  ;;  %v3959_v17 = vrot.slane %v3954_v36, %v3790_v44 }
 0xac7   : > { %4463 = vmatprep.subr.bf16.mxu1 %v4462_v39  ;;  %v3791_v50 = vrot.slane %v3786_v61, %v3790_v44  ;;  %v3795_v41 = vrot.slane %v3786_v61, %v3794_v8  ;;  %v3799_v39 = vrot.slane %v3786_v61, %v3798_v43  ;;  %v3803_v29 = vrot.slane %v3786_v61, %v3802_v24 }
 0xac8   : > { %4401 = vmatpush1.bf16.msra.mxu0 %v4400_v49 }
 0xac9   : > { %4403 = vmatprep.subr.bf16.mxu0 %v4402_v18  ;;  %v3963_v18 = vrot.slane %v3954_v36, %v3794_v8 }
 0xaca   : > { %4465 = vmatpush1.bf16.msra.mxu1 %v4464_v34 }
 0xacb   : > { %4467 = vmatprep.subr.bf16.mxu1 %v4466_v56 }
 0xacc   : > { %4405 = vmatpush1.bf16.msra.mxu0 %v4404_v31 }
 0xacd   : > { %4407 = vmatprep.subr.bf16.mxu0 %v4406_v62  ;;  %v3971_v62 = vrot.slane %v3954_v36, %v3802_v24 }
 0xace   : > { %4469 = vmatpush1.bf16.msra.mxu1 %v4468_v30 }
 0xacf   : > { %4471 = vmatprep.subr.bf16.mxu1 %v4470_v4 }
 0xad0   : > { %4409 = vmatpush1.bf16.msra.mxu0 %v4408_v27 }
 0xad1   : > { %4411 = vmatprep.subr.bf16.mxu0 %v4410_v59 }
 0xad2   : > { %4473 = vmatpush1.bf16.msra.mxu1 %v4472_v23 }
 0xad3   : > { %4475 = vmatprep.subr.bf16.mxu1 %v4474_v53 }
 0xad4   : > { %4413 = vmatpush1.bf16.msra.mxu0 %v4412_v14 }
 0xad5   : > { %4415 = vmatprep.subr.bf16.mxu0 %v4414_v13 }
 0xad6   : > { %4477 = vmatpush1.bf16.msra.mxu1 %v4476_v51 }
 0xad7   : > { %4479 = vmatprep.subr.bf16.mxu1 %v4478_v55 }
 0xad8   : > { %4417 = vmatpush1.bf16.msra.mxu0 %v4416_v48 }
 0xada   : > { %4481 = vmatpush1.bf16.msra.mxu1 %v4480_v20 }
 0xadb   : > { %3873 = vmatmul.mubr.f32.vlgmr.msra.gmra.mrb[0].mxu0 %v3656_v1 }
 0xadd   : > { %3944 = vmatmul.mubr.f32.vlgmr.msra.gmra.mrb[0].mxu1 %v3656_v1 }
 0xbae   : > { %v3874_v32 = vpop.f32.mrb[0].mxu0 }
 0xbaf   : > { %v3875_v16 = vadd.f32 %v3874_v32, %v3791_v50  ;;  %v3876_v63 = vpop.f32.mrb[1].mxu0 }
 0xbb0   : > { %v3945_v49 = vpop.f32.mrb[0].mxu1  ;;  %v3877_v34 = vadd.f32 %v3876_v63, %v3795_v41 }
 0xbb1   : > { %v3946_v57 = vadd.f32 %v3945_v49, %v3799_v39  ;;  %v3947_v22 = vpop.f32.mrb[1].mxu1  ;;  %v3950_v56 = vmax.f32 %v3875_v16, 0.0 }
 0xbb2   : > { %v3948_v9 = vadd.f32 %v3947_v22, %v3803_v29  ;;  %v3951_v58 = vmax.f32 %v3877_v34, 0.0 }
 0xbb3   : > { %v3952_v37 = vmax.f32 %v3946_v57, 0.0  ;;  %v3976_v35 = vmul.f32 %v3959_v17, %v3950_v56 }
 0xbb4   : > { %v3977_v7 = vmul.f32 %v3963_v18, %v3951_v58  ;;  %v3953_v30 = vmax.f32 %v3948_v9, 0.0 }
 0xbb5   : > { %v3978_v31 = vmul.f32 %v3967_v11, %v3952_v37 }
 0xbb6   : > { %v3980_v12 = vadd.f32 %v3977_v7, %v3976_v35  ;;  %v3979_v40 = vmul.f32 %v3971_v62, %v3953_v30 }
 0xbb8   : > { %v3981_v26 = vadd.f32 %v3980_v12, %v3978_v31 }
 0xbba   : > { %v3982_v4 = vadd.f32 %v3981_v26, %v3979_v40 }
 0xbbc   : > { %3983 = vadd.xlane.f32.xlu0 %v3982_v4 }
 0xc49   : > { %v3984_v19 = vpop.xlane.xlu0 %3983 }
 0xc4a   : > { %v3992_v47 = vadd.f32 %v4349_v42, %v3984_v19 }
 0xc4c   : > { %3994 = vst.msk [vmem:[%s7314_s7] sm:$0xff] %vm3993_vm0, %v3992_v47 }
 0xc4d PF: > { %p20_p1 = scmp.ge.s32.totalorder %s5338_s20, 4   ;;  %s8434_s26 = smov %s5178_s27 }
 0xc4e   : > { %s8435_s27 = smov %s5182_s28  ;;  %s8436_s28 = smov %s5349_s25 }
 0xc4f   : > { %s8437_s29 = smov %s5338_s20  ;;  %22 = sbr.rel (!%p20_p1) target bundleno = 7 (0x7), region = 107 }
 0xc56   :  { %4006 = vsyncpa [#allocation6], 1 }
 0xc57   :  { %4008 = vsyncpa [#allocation6 + $0x1], 1 }
 0xc58   :  { %4009 = vsyncpa [#allocation8], 1 }

</bundles_post_ra>
